<compile_context>
chip_gen: v6e
topology: v6e:2x2x1
jax: 0.10.0
libtpu: 0.0.40
codegen_flags: <defaults>
</compile_context>

<pallas_src>
import functools
import math

import jax
import jax.numpy as jnp
from jax import lax
from jax.experimental import pallas as pl
from jax.experimental.pallas import tpu as pltpu

COMPUTE_DTYPE = jnp.bfloat16   # MXU-native; f32 accumulation keeps ~1e-2 rel accuracy


def _round_up(x, m):
    return (x + m - 1) // m * m


# ----------------------------------------------------------------------------
# Pallas kernel: stride-1 "same" conv as a sum of shifted row-matmuls + fused bias
# ----------------------------------------------------------------------------

def _conv_tap_kernel(x_ref, w_ref, b_ref, o_ref, *, offs, tm):
    """For output-row tile m:  o = sum_t x[m*tm + off_t : ... + tm, :] @ w[t]  + bias.

    x_ref : (rows_in, Cin)  f32, whole (tiny) padded activation, resident in VMEM
    w_ref : (KK, Cin, Cout) bf16 tap weights
    b_ref : (1, Cout)       f32 bias
    o_ref : (tm, Cout)      f32 output tile
    """
    m = pl.program_id(0)
    base = pl.multiple_of(m * tm, tm)
    acc = jnp.zeros(o_ref.shape, jnp.float32)
    for t, off in enumerate(offs):                     # static unroll over KH*KW taps
        a = x_ref[pl.ds(base + off, tm), :].astype(COMPUTE_DTYPE)
        acc = acc + jnp.dot(a, w_ref[t], preferred_element_type=jnp.float32)
    o_ref[...] = acc + b_ref[...]                      # fused bias epilogue


def conv2d_same_pallas(x, w, b, *, tm=256):
    """x: (N, H, W, Cin) f32.  w: (KH, KW, Cin, Cout) (odd KH/KW, stride 1,
    padding (K-1)//2 -> output spatial size == input).  b: (Cout,).  Returns f32 NHWC."""
    N, H, W, Cin = x.shape
    KH, KW, Cin2, Cout = w.shape
    assert Cin == Cin2 and KH % 2 == 1 and KW % 2 == 1
    ph, pw = (KH - 1) // 2, (KW - 1) // 2
    Hp, Wp = H + 2 * ph, W + 2 * pw

    # One cheap zero-pad + flatten (the ONLY activation copy besides the conv itself).
    x_pad = jnp.pad(x.astype(jnp.float32), ((0, 0), (ph, ph), (pw, pw), (0, 0)))

    # Tap (i, j) of the window corresponds to a row shift of i*Wp + j in the flattened
    # padded image; valid output pixels never cross a sample boundary.
    offs = tuple(i * Wp + j for i in range(KH) for j in range(KW))
    max_off = offs[-1]

    m_valid = N * Hp * Wp                      # outputs computed over padded coordinates
    tm_eff = min(tm, _round_up(m_valid, 8))
    grid_m = pl.cdiv(m_valid, tm_eff)
    m_pad = grid_m * tm_eff
    rows_in = _round_up(m_pad + max_off, 8)    # zero guard rows keep every tap read in-bounds

    x_rows = x_pad.reshape(m_valid, Cin)
    x_rows = jnp.pad(x_rows, ((0, rows_in - m_valid), (0, 0)))

    w_taps = w.reshape(KH * KW, Cin, Cout).astype(COMPUTE_DTYPE)
    b_row = b.reshape(1, Cout).astype(jnp.float32)

    out = pl.pallas_call(
        functools.partial(_conv_tap_kernel, offs=offs, tm=tm_eff),
        out_shape=jax.ShapeDtypeStruct((m_pad, Cout), jnp.float32),
        grid=(grid_m,),
        in_specs=[
            # Full (tiny) activation, constant block index -> DMA'd into VMEM once.
            pl.BlockSpec((rows_in, Cin), lambda m: (0, 0)),
            pl.BlockSpec((KH * KW, Cin, Cout), lambda m: (0, 0, 0)),
            pl.BlockSpec((1, Cout), lambda m: (0, 0)),
        ],
        out_specs=pl.BlockSpec((tm_eff, Cout), lambda m: (m, 0)),
        compiler_params=pltpu.CompilerParams(
            dimension_semantics=("parallel",),          # megacore-splits the M tiles on v7x
            vmem_limit_bytes=32 * 1024 * 1024,          # fits v5e/v6e/v7x with headroom
        ),
    )(x_rows, w_taps, b_row)

    # Drop the padded-coordinate junk rows (cheap XLA slice).
    out = out[:m_valid].reshape(N, Hp, Wp, Cout)[:, :H, :W, :]
    return out


# ----------------------------------------------------------------------------
# InceptionA forward (PyTorch semantics; Conv2d has bias by default)
# ----------------------------------------------------------------------------

def inception_a_forward(params, x_nchw):
    x = jnp.transpose(x_nchw, (0, 2, 3, 1)).astype(jnp.float32)   # NCHW -> NHWC
    cin = x.shape[-1]

    branch1x1 = conv2d_same_pallas(x, params['b1x1_w'], params['b1x1_b'])

    branch5x5 = conv2d_same_pallas(x, params['b5_1_w'], params['b5_1_b'])
    branch5x5 = conv2d_same_pallas(branch5x5, params['b5_2_w'], params['b5_2_b'])

    branch3x3 = conv2d_same_pallas(x, params['b3_1_w'], params['b3_1_b'])
    branch3x3 = conv2d_same_pallas(branch3x3, params['b3_2_w'], params['b3_2_b'])
    branch3x3 = conv2d_same_pallas(branch3x3, params['b3_3_w'], params['b3_3_b'])

    # F.avg_pool2d(x, 3, stride=1, padding=1) [count_include_pad=True] followed by a 1x1
    # conv is EXACTLY a 3x3 conv whose weight is the 1x1 weight replicated over the
    # window and scaled by 1/9 (zero padding), bias unchanged.  No pooled intermediate.
    w_pool3 = jnp.tile(params['pool_w'].reshape(1, 1, cin, -1), (3, 3, 1, 1)) / 9.0
    branch_pool = conv2d_same_pallas(x, w_pool3, params['pool_b'])

    out = jnp.concatenate([branch1x1, branch5x5, branch3x3, branch_pool], axis=-1)
    return jnp.transpose(out, (0, 3, 1, 2))                       # back to NCHW


# ----------------------------------------------------------------------------
# Pure-JAX reference (f32, highest precision) for an in-script sanity check
# ----------------------------------------------------------------------------

def _conv_ref(x, w, b):
    ph, pw = (w.shape[0] - 1) // 2, (w.shape[1] - 1) // 2
    y = lax.conv_general_dilated(
        x, w, window_strides=(1, 1), padding=[(ph, ph), (pw, pw)],
        dimension_numbers=('NHWC', 'HWIO', 'NHWC'),
        precision=lax.Precision.HIGHEST)
    return y + b


def inception_a_reference(params, x_nchw):
    x = jnp.transpose(x_nchw, (0, 2, 3, 1)).astype(jnp.float32)
    b1 = _conv_ref(x, params['b1x1_w'], params['b1x1_b'])
    b5 = _conv_ref(x, params['b5_1_w'], params['b5_1_b'])
    b5 = _conv_ref(b5, params['b5_2_w'], params['b5_2_b'])
    b3 = _conv_ref(x, params['b3_1_w'], params['b3_1_b'])
    b3 = _conv_ref(b3, params['b3_2_w'], params['b3_2_b'])
    b3 = _conv_ref(b3, params['b3_3_w'], params['b3_3_b'])
    pooled = lax.reduce_window(x, 0.0, lax.add, (1, 3, 3, 1), (1, 1, 1, 1),
                               ((0, 0), (1, 1), (1, 1), (0, 0))) / 9.0
    bp = _conv_ref(pooled, params['pool_w'].reshape(1, 1, x.shape[-1], -1),
                   params['pool_b'])
    out = jnp.concatenate([b1, b5, b3, bp], axis=-1)
    return jnp.transpose(out, (0, 3, 1, 2))


# ----------------------------------------------------------------------------
# Deterministic parameter construction (PyTorch Conv2d default init shapes/scales)
# ----------------------------------------------------------------------------

def _conv_params(key, kh, kw, cin, cout):
    kw_key, kb_key = jax.random.split(key)
    fan_in = kh * kw * cin
    bound = 1.0 / math.sqrt(fan_in)
    w = jax.random.uniform(kw_key, (kh, kw, cin, cout), jnp.float32, -bound, bound)
    b = jax.random.uniform(kb_key, (cout,), jnp.float32, -bound, bound)
    return w, b


def make_params(key, in_channels):
    ks = jax.random.split(key, 7)
    p = {}
    p['b1x1_w'], p['b1x1_b'] = _conv_params(ks[0], 1, 1, in_channels, 16)
    p['b5_1_w'], p['b5_1_b'] = _conv_params(ks[1], 1, 1, in_channels, 16)
    p['b5_2_w'], p['b5_2_b'] = _conv_params(ks[2], 5, 5, 16, 24)
    p['b3_1_w'], p['b3_1_b'] = _conv_params(ks[3], 1, 1, in_channels, 16)
    p['b3_2_w'], p['b3_2_b'] = _conv_params(ks[4], 3, 3, 16, 24)
    p['b3_3_w'], p['b3_3_b'] = _conv_params(ks[5], 3, 3, 24, 24)
    p['pool_w'], p['pool_b'] = _conv_params(ks[6], 1, 1, in_channels, 24)
    return p


if __name__ == "__main__":
    key = jax.random.PRNGKey(0)
    k_params, k_x = jax.random.split(key)

    batch, in_channels, height, width = 2, 16, 16, 16
    params = make_params(k_params, in_channels)
    x = jax.random.normal(k_x, (batch, in_channels, height, width), jnp.float32)

    fwd = jax.jit(inception_a_forward)
    out = fwd(params, x)
    jax.block_until_ready(out)

    assert out.shape == (batch, 16 + 24 + 24 + 24, height, width)

    ref = inception_a_reference(params, x)
    max_err = float(jnp.max(jnp.abs(out - ref)))
    scale = float(jnp.max(jnp.abs(ref))) + 1e-6
    assert max_err <= 5e-2 * scale, f"mismatch vs reference: {max_err} (scale {scale})"

    print("KERNEL_OK")
</pallas_src>

<mosaic_0001>
module attributes {stable_mosaic.version = 11 : i64} {
  func.func @_conv_tap_kernel(%arg0: i32, %arg1: memref<512x16xf32, #tpu.memory_space<vmem>>, %arg2: memref<1x16x16xbf16, #tpu.memory_space<vmem>>, %arg3: memref<1x16xf32, #tpu.memory_space<vmem>>, %arg4: memref<256x16xf32, #tpu.memory_space<vmem>>) attributes {dimension_semantics = [#tpu.dimension_semantics<parallel>], iteration_bounds = array<i64: 2>, scalar_prefetch = 0 : i64, scratch_operands = 0 : i64, tpu.core_type = #tpu.core_type<tc>, window_params = [{pipeline_mode = #tpu.pipeline_mode<synchronous>, transform_indices = @transform_0, window_bounds = array<i64: 512, 16>}, {pipeline_mode = #tpu.pipeline_mode<synchronous>, transform_indices = @transform_1, window_bounds = array<i64: 1, 16, 16>}, {pipeline_mode = #tpu.pipeline_mode<synchronous>, transform_indices = @transform_2, window_bounds = array<i64: 1, 16>}, {transform_indices = @transform_3, window_bounds = array<i64: 256, 16>}]} {
    %c256_i32 = arith.constant 256 : i32
    %0 = arith.muli %arg0, %c256_i32 : i32
    %1 = tpu.assume_multiple %0, 256 : i32
    %cst = arith.constant 0.000000e+00 : f32
    %2 = vector.broadcast %cst : f32 to vector<256x16xf32>
    %c0_i32 = arith.constant 0 : i32
    %3 = arith.addi %1, %c0_i32 : i32
    %4 = arith.index_cast %3 : i32 to index
    %c0 = arith.constant 0 : index
    %5 = vector.load %arg1[%4, %c0] : memref<512x16xf32, #tpu.memory_space<vmem>>, vector<256x16xf32>
    %6 = arith.truncf %5 : vector<256x16xf32> to vector<256x16xbf16>
    %c0_0 = arith.constant 0 : index
    %c0_1 = arith.constant 0 : index
    %c0_2 = arith.constant 0 : index
    %7 = vector.load %arg2[%c0_0, %c0_1, %c0_2] : memref<1x16x16xbf16, #tpu.memory_space<vmem>>, vector<1x16x16xbf16>
    %8 = vector.shape_cast %7 : vector<1x16x16xbf16> to vector<16x16xbf16>
    %cst_3 = arith.constant dense<0.000000e+00> : vector<256x16xf32>
    %9 = tpu.matmul %6, %8, %cst_3 {dimension_numbers = #tpu.dot_dimension_numbers<[1], [0], [0], [1], [0, 0, 1, 1], [], []>} : vector<256x16xbf16>, vector<16x16xbf16>, vector<256x16xf32> -> vector<256x16xf32>
    %10 = arith.addf %2, %9 : vector<256x16xf32>
    %c0_4 = arith.constant 0 : index
    %c0_5 = arith.constant 0 : index
    %11 = vector.load %arg3[%c0_4, %c0_5] : memref<1x16xf32, #tpu.memory_space<vmem>>, vector<1x16xf32>
    %12 = vector.broadcast %11 : vector<1x16xf32> to vector<256x16xf32>
    %13 = arith.addf %10, %12 : vector<256x16xf32>
    %c0_6 = arith.constant 0 : index
    %c0_7 = arith.constant 0 : index
    %14 = vector.load %arg4[%c0_6, %c0_7] : memref<256x16xf32, #tpu.memory_space<vmem>>, vector<256x16xf32>
    tpu.vector_store %arg4[%c0_6, %c0_7], %13 {strides = array<i32>} : memref<256x16xf32, #tpu.memory_space<vmem>>, vector<256x16xf32>,
    return
  }
  func.func @transform_0(%arg0: i32) -> (i32, i32) {
    %c0_i32 = arith.constant 0 : i32
    %c0_i32_0 = arith.constant 0 : i32
    %c0_i32_1 = arith.constant 0 : i32
    return %c0_i32, %c0_i32_0 : i32, i32
  }
  func.func @transform_1(%arg0: i32) -> (i32, i32, i32) {
    %c0_i32 = arith.constant 0 : i32
    %c0_i32_0 = arith.constant 0 : i32
    %c0_i32_1 = arith.constant 0 : i32
    %c0_i32_2 = arith.constant 0 : i32
    return %c0_i32, %c0_i32_0, %c0_i32_1 : i32, i32, i32
  }
  func.func @transform_2(%arg0: i32) -> (i32, i32) {
    %c0_i32 = arith.constant 0 : i32
    %c0_i32_0 = arith.constant 0 : i32
    %c0_i32_1 = arith.constant 0 : i32
    return %c0_i32, %c0_i32_0 : i32, i32
  }
  func.func @transform_3(%arg0: i32) -> (i32, i32) {
    %c0_i32 = arith.constant 0 : i32
    %c0_i32_0 = arith.constant 0 : i32
    return %arg0, %c0_i32 : i32, i32
  }
}

module attributes {stable_mosaic.version = 11 : i64} {
  func.func @_conv_tap_kernel(%arg0: i32, %arg1: memref<808x16xf32, #tpu.memory_space<vmem>>, %arg2: memref<9x16x24xbf16, #tpu.memory_space<vmem>>, %arg3: memref<1x24xf32, #tpu.memory_space<vmem>>, %arg4: memref<256x24xf32, #tpu.memory_space<vmem>>) attributes {dimension_semantics = [#tpu.dimension_semantics<parallel>], iteration_bounds = array<i64: 3>, scalar_prefetch = 0 : i64, scratch_operands = 0 : i64, tpu.core_type = #tpu.core_type<tc>, window_params = [{pipeline_mode = #tpu.pipeline_mode<synchronous>, transform_indices = @transform_0, window_bounds = array<i64: 808, 16>}, {pipeline_mode = #tpu.pipeline_mode<synchronous>, transform_indices = @transform_1, window_bounds = array<i64: 9, 16, 24>}, {pipeline_mode = #tpu.pipeline_mode<synchronous>, transform_indices = @transform_2, window_bounds = array<i64: 1, 24>}, {transform_indices = @transform_3, window_bounds = array<i64: 256, 24>}]} {
    %c256_i32 = arith.constant 256 : i32
    %0 = arith.muli %arg0, %c256_i32 : i32
    %1 = tpu.assume_multiple %0, 256 : i32
    %cst = arith.constant 0.000000e+00 : f32
    %2 = vector.broadcast %cst : f32 to vector<256x24xf32>
    %c0_i32 = arith.constant 0 : i32
    %3 = arith.addi %1, %c0_i32 : i32
    %4 = arith.index_cast %3 : i32 to index
    %c0 = arith.constant 0 : index
    %5 = vector.load %arg1[%4, %c0] : memref<808x16xf32, #tpu.memory_space<vmem>>, vector<256x16xf32>
    %6 = arith.truncf %5 : vector<256x16xf32> to vector<256x16xbf16>
    %c0_0 = arith.constant 0 : index
    %c0_1 = arith.constant 0 : index
    %c0_2 = arith.constant 0 : index
    %7 = vector.load %arg2[%c0_0, %c0_1, %c0_2] : memref<9x16x24xbf16, #tpu.memory_space<vmem>>, vector<1x16x24xbf16>
    %8 = vector.shape_cast %7 : vector<1x16x24xbf16> to vector<16x24xbf16>
    %cst_3 = arith.constant dense<0.000000e+00> : vector<256x24xf32>
    %9 = tpu.matmul %6, %8, %cst_3 {dimension_numbers = #tpu.dot_dimension_numbers<[1], [0], [0], [1], [0, 0, 1, 1], [], []>} : vector<256x16xbf16>, vector<16x24xbf16>, vector<256x24xf32> -> vector<256x24xf32>
    %10 = arith.addf %2, %9 : vector<256x24xf32>
    %c1_i32 = arith.constant 1 : i32
    %11 = arith.addi %1, %c1_i32 : i32
    %12 = arith.index_cast %11 : i32 to index
    %c0_4 = arith.constant 0 : index
    %13 = vector.load %arg1[%12, %c0_4] : memref<808x16xf32, #tpu.memory_space<vmem>>, vector<256x16xf32>
    %14 = arith.truncf %13 : vector<256x16xf32> to vector<256x16xbf16>
    %c1 = arith.constant 1 : index
    %c0_5 = arith.constant 0 : index
    %c0_6 = arith.constant 0 : index
    %15 = vector.load %arg2[%c1, %c0_5, %c0_6] : memref<9x16x24xbf16, #tpu.memory_space<vmem>>, vector<1x16x24xbf16>
    %16 = vector.shape_cast %15 : vector<1x16x24xbf16> to vector<16x24xbf16>
    %cst_7 = arith.constant dense<0.000000e+00> : vector<256x24xf32>
    %17 = tpu.matmul %14, %16, %cst_7 {dimension_numbers = #tpu.dot_dimension_numbers<[1], [0], [0], [1], [0, 0, 1, 1], [], []>} : vector<256x16xbf16>, vector<16x24xbf16>, vector<256x24xf32> -> vector<256x24xf32>
    %18 = arith.addf %10, %17 : vector<256x24xf32>
    %c2_i32 = arith.constant 2 : i32
    %19 = arith.addi %1, %c2_i32 : i32
    %20 = arith.index_cast %19 : i32 to index
    %c0_8 = arith.constant 0 : index
    %21 = vector.load %arg1[%20, %c0_8] : memref<808x16xf32, #tpu.memory_space<vmem>>, vector<256x16xf32>
    %22 = arith.truncf %21 : vector<256x16xf32> to vector<256x16xbf16>
    %c2 = arith.constant 2 : index
    %c0_9 = arith.constant 0 : index
    %c0_10 = arith.constant 0 : index
    %23 = vector.load %arg2[%c2, %c0_9, %c0_10] : memref<9x16x24xbf16, #tpu.memory_space<vmem>>, vector<1x16x24xbf16>
    %24 = vector.shape_cast %23 : vector<1x16x24xbf16> to vector<16x24xbf16>
    %cst_11 = arith.constant dense<0.000000e+00> : vector<256x24xf32>
    %25 = tpu.matmul %22, %24, %cst_11 {dimension_numbers = #tpu.dot_dimension_numbers<[1], [0], [0], [1], [0, 0, 1, 1], [], []>} : vector<256x16xbf16>, vector<16x24xbf16>, vector<256x24xf32> -> vector<256x24xf32>
    %26 = arith.addf %18, %25 : vector<256x24xf32>
    %c18_i32 = arith.constant 18 : i32
    %27 = arith.addi %1, %c18_i32 : i32
    %28 = arith.index_cast %27 : i32 to index
    %c0_12 = arith.constant 0 : index
    %29 = vector.load %arg1[%28, %c0_12] : memref<808x16xf32, #tpu.memory_space<vmem>>, vector<256x16xf32>
    %30 = arith.truncf %29 : vector<256x16xf32> to vector<256x16xbf16>
    %c3 = arith.constant 3 : index
    %c0_13 = arith.constant 0 : index
    %c0_14 = arith.constant 0 : index
    %31 = vector.load %arg2[%c3, %c0_13, %c0_14] : memref<9x16x24xbf16, #tpu.memory_space<vmem>>, vector<1x16x24xbf16>
    %32 = vector.shape_cast %31 : vector<1x16x24xbf16> to vector<16x24xbf16>
    %cst_15 = arith.constant dense<0.000000e+00> : vector<256x24xf32>
    %33 = tpu.matmul %30, %32, %cst_15 {dimension_numbers = #tpu.dot_dimension_numbers<[1], [0], [0], [1], [0, 0, 1, 1], [], []>} : vector<256x16xbf16>, vector<16x24xbf16>, vector<256x24xf32> -> vector<256x24xf32>
    %34 = arith.addf %26, %33 : vector<256x24xf32>
    %c19_i32 = arith.constant 19 : i32
    %35 = arith.addi %1, %c19_i32 : i32
    %36 = arith.index_cast %35 : i32 to index
    %c0_16 = arith.constant 0 : index
    %37 = vector.load %arg1[%36, %c0_16] : memref<808x16xf32, #tpu.memory_space<vmem>>, vector<256x16xf32>
    %38 = arith.truncf %37 : vector<256x16xf32> to vector<256x16xbf16>
    %c4 = arith.constant 4 : index
    %c0_17 = arith.constant 0 : index
    %c0_18 = arith.constant 0 : index
    %39 = vector.load %arg2[%c4, %c0_17, %c0_18] : memref<9x16x24xbf16, #tpu.memory_space<vmem>>, vector<1x16x24xbf16>
    %40 = vector.shape_cast %39 : vector<1x16x24xbf16> to vector<16x24xbf16>
    %cst_19 = arith.constant dense<0.000000e+00> : vector<256x24xf32>
    %41 = tpu.matmul %38, %40, %cst_19 {dimension_numbers = #tpu.dot_dimension_numbers<[1], [0], [0], [1], [0, 0, 1, 1], [], []>} : vector<256x16xbf16>, vector<16x24xbf16>, vector<256x24xf32> -> vector<256x24xf32>
    %42 = arith.addf %34, %41 : vector<256x24xf32>
    %c20_i32 = arith.constant 20 : i32
    %43 = arith.addi %1, %c20_i32 : i32
    %44 = arith.index_cast %43 : i32 to index
    %c0_20 = arith.constant 0 : index
    %45 = vector.load %arg1[%44, %c0_20] : memref<808x16xf32, #tpu.memory_space<vmem>>, vector<256x16xf32>
    %46 = arith.truncf %45 : vector<256x16xf32> to vector<256x16xbf16>
    %c5 = arith.constant 5 : index
    %c0_21 = arith.constant 0 : index
    %c0_22 = arith.constant 0 : index
    %47 = vector.load %arg2[%c5, %c0_21, %c0_22] : memref<9x16x24xbf16, #tpu.memory_space<vmem>>, vector<1x16x24xbf16>
    %48 = vector.shape_cast %47 : vector<1x16x24xbf16> to vector<16x24xbf16>
    %cst_23 = arith.constant dense<0.000000e+00> : vector<256x24xf32>
    %49 = tpu.matmul %46, %48, %cst_23 {dimension_numbers = #tpu.dot_dimension_numbers<[1], [0], [0], [1], [0, 0, 1, 1], [], []>} : vector<256x16xbf16>, vector<16x24xbf16>, vector<256x24xf32> -> vector<256x24xf32>
    %50 = arith.addf %42, %49 : vector<256x24xf32>
    %c36_i32 = arith.constant 36 : i32
    %51 = arith.addi %1, %c36_i32 : i32
    %52 = arith.index_cast %51 : i32 to index
    %c0_24 = arith.constant 0 : index
    %53 = vector.load %arg1[%52, %c0_24] : memref<808x16xf32, #tpu.memory_space<vmem>>, vector<256x16xf32>
    %54 = arith.truncf %53 : vector<256x16xf32> to vector<256x16xbf16>
    %c6 = arith.constant 6 : index
    %c0_25 = arith.constant 0 : index
    %c0_26 = arith.constant 0 : index
    %55 = vector.load %arg2[%c6, %c0_25, %c0_26] : memref<9x16x24xbf16, #tpu.memory_space<vmem>>, vector<1x16x24xbf16>
    %56 = vector.shape_cast %55 : vector<1x16x24xbf16> to vector<16x24xbf16>
    %cst_27 = arith.constant dense<0.000000e+00> : vector<256x24xf32>
    %57 = tpu.matmul %54, %56, %cst_27 {dimension_numbers = #tpu.dot_dimension_numbers<[1], [0], [0], [1], [0, 0, 1, 1], [], []>} : vector<256x16xbf16>, vector<16x24xbf16>, vector<256x24xf32> -> vector<256x24xf32>
    %58 = arith.addf %50, %57 : vector<256x24xf32>
    %c37_i32 = arith.constant 37 : i32
    %59 = arith.addi %1, %c37_i32 : i32
    %60 = arith.index_cast %59 : i32 to index
    %c0_28 = arith.constant 0 : index
    %61 = vector.load %arg1[%60, %c0_28] : memref<808x16xf32, #tpu.memory_space<vmem>>, vector<256x16xf32>
    %62 = arith.truncf %61 : vector<256x16xf32> to vector<256x16xbf16>
    %c7 = arith.constant 7 : index
    %c0_29 = arith.constant 0 : index
    %c0_30 = arith.constant 0 : index
    %63 = vector.load %arg2[%c7, %c0_29, %c0_30] : memref<9x16x24xbf16, #tpu.memory_space<vmem>>, vector<1x16x24xbf16>
    %64 = vector.shape_cast %63 : vector<1x16x24xbf16> to vector<16x24xbf16>
    %cst_31 = arith.constant dense<0.000000e+00> : vector<256x24xf32>
    %65 = tpu.matmul %62, %64, %cst_31 {dimension_numbers = #tpu.dot_dimension_numbers<[1], [0], [0], [1], [0, 0, 1, 1], [], []>} : vector<256x16xbf16>, vector<16x24xbf16>, vector<256x24xf32> -> vector<256x24xf32>
    %66 = arith.addf %58, %65 : vector<256x24xf32>
    %c38_i32 = arith.constant 38 : i32
    %67 = arith.addi %1, %c38_i32 : i32
    %68 = arith.index_cast %67 : i32 to index
    %c0_32 = arith.constant 0 : index
    %69 = vector.load %arg1[%68, %c0_32] : memref<808x16xf32, #tpu.memory_space<vmem>>, vector<256x16xf32>
    %70 = arith.truncf %69 : vector<256x16xf32> to vector<256x16xbf16>
    %c8 = arith.constant 8 : index
    %c0_33 = arith.constant 0 : index
    %c0_34 = arith.constant 0 : index
    %71 = vector.load %arg2[%c8, %c0_33, %c0_34] : memref<9x16x24xbf16, #tpu.memory_space<vmem>>, vector<1x16x24xbf16>
    %72 = vector.shape_cast %71 : vector<1x16x24xbf16> to vector<16x24xbf16>
    %cst_35 = arith.constant dense<0.000000e+00> : vector<256x24xf32>
    %73 = tpu.matmul %70, %72, %cst_35 {dimension_numbers = #tpu.dot_dimension_numbers<[1], [0], [0], [1], [0, 0, 1, 1], [], []>} : vector<256x16xbf16>, vector<16x24xbf16>, vector<256x24xf32> -> vector<256x24xf32>
    %74 = arith.addf %66, %73 : vector<256x24xf32>
    %c0_36 = arith.constant 0 : index
    %c0_37 = arith.constant 0 : index
    %75 = vector.load %arg3[%c0_36, %c0_37] : memref<1x24xf32, #tpu.memory_space<vmem>>, vector<1x24xf32>
    %76 = vector.broadcast %75 : vector<1x24xf32> to vector<256x24xf32>
    %77 = arith.addf %74, %76 : vector<256x24xf32>
    %c0_38 = arith.constant 0 : index
    %c0_39 = arith.constant 0 : index
    %78 = vector.load %arg4[%c0_38, %c0_39] : memref<256x24xf32, #tpu.memory_space<vmem>>, vector<256x24xf32>
    tpu.vector_store %arg4[%c0_38, %c0_39], %77 {strides = array<i32>} : memref<256x24xf32, #tpu.memory_space<vmem>>, vector<256x24xf32>,
    return
  }
  func.func @transform_0(%arg0: i32) -> (i32, i32) {
    %c0_i32 = arith.constant 0 : i32
    %c0_i32_0 = arith.constant 0 : i32
    %c0_i32_1 = arith.constant 0 : i32
    return %c0_i32, %c0_i32_0 : i32, i32
  }
  func.func @transform_1(%arg0: i32) -> (i32, i32, i32) {
    %c0_i32 = arith.constant 0 : i32
    %c0_i32_0 = arith.constant 0 : i32
    %c0_i32_1 = arith.constant 0 : i32
    %c0_i32_2 = arith.constant 0 : i32
    return %c0_i32, %c0_i32_0, %c0_i32_1 : i32, i32, i32
  }
  func.func @transform_2(%arg0: i32) -> (i32, i32) {
    %c0_i32 = arith.constant 0 : i32
    %c0_i32_0 = arith.constant 0 : i32
    %c0_i32_1 = arith.constant 0 : i32
    return %c0_i32, %c0_i32_0 : i32, i32
  }
  func.func @transform_3(%arg0: i32) -> (i32, i32) {
    %c0_i32 = arith.constant 0 : i32
    %c0_i32_0 = arith.constant 0 : i32
    return %arg0, %c0_i32 : i32, i32
  }
}

module attributes {stable_mosaic.version = 11 : i64} {
  func.func @_conv_tap_kernel(%arg0: i32, %arg1: memref<808x24xf32, #tpu.memory_space<vmem>>, %arg2: memref<9x24x24xbf16, #tpu.memory_space<vmem>>, %arg3: memref<1x24xf32, #tpu.memory_space<vmem>>, %arg4: memref<256x24xf32, #tpu.memory_space<vmem>>) attributes {dimension_semantics = [#tpu.dimension_semantics<parallel>], iteration_bounds = array<i64: 3>, scalar_prefetch = 0 : i64, scratch_operands = 0 : i64, tpu.core_type = #tpu.core_type<tc>, window_params = [{pipeline_mode = #tpu.pipeline_mode<synchronous>, transform_indices = @transform_0, window_bounds = array<i64: 808, 24>}, {pipeline_mode = #tpu.pipeline_mode<synchronous>, transform_indices = @transform_1, window_bounds = array<i64: 9, 24, 24>}, {pipeline_mode = #tpu.pipeline_mode<synchronous>, transform_indices = @transform_2, window_bounds = array<i64: 1, 24>}, {transform_indices = @transform_3, window_bounds = array<i64: 256, 24>}]} {
    %c256_i32 = arith.constant 256 : i32
    %0 = arith.muli %arg0, %c256_i32 : i32
    %1 = tpu.assume_multiple %0, 256 : i32
    %cst = arith.constant 0.000000e+00 : f32
    %2 = vector.broadcast %cst : f32 to vector<256x24xf32>
    %c0_i32 = arith.constant 0 : i32
    %3 = arith.addi %1, %c0_i32 : i32
    %4 = arith.index_cast %3 : i32 to index
    %c0 = arith.constant 0 : index
    %5 = vector.load %arg1[%4, %c0] : memref<808x24xf32, #tpu.memory_space<vmem>>, vector<256x24xf32>
    %6 = arith.truncf %5 : vector<256x24xf32> to vector<256x24xbf16>
    %c0_0 = arith.constant 0 : index
    %c0_1 = arith.constant 0 : index
    %c0_2 = arith.constant 0 : index
    %7 = vector.load %arg2[%c0_0, %c0_1, %c0_2] : memref<9x24x24xbf16, #tpu.memory_space<vmem>>, vector<1x24x24xbf16>
    %8 = vector.shape_cast %7 : vector<1x24x24xbf16> to vector<24x24xbf16>
    %cst_3 = arith.constant dense<0.000000e+00> : vector<256x24xf32>
    %9 = tpu.matmul %6, %8, %cst_3 {dimension_numbers = #tpu.dot_dimension_numbers<[1], [0], [0], [1], [0, 0, 1, 1], [], []>} : vector<256x24xbf16>, vector<24x24xbf16>, vector<256x24xf32> -> vector<256x24xf32>
    %10 = arith.addf %2, %9 : vector<256x24xf32>
    %c1_i32 = arith.constant 1 : i32
    %11 = arith.addi %1, %c1_i32 : i32
    %12 = arith.index_cast %11 : i32 to index
    %c0_4 = arith.constant 0 : index
    %13 = vector.load %arg1[%12, %c0_4] : memref<808x24xf32, #tpu.memory_space<vmem>>, vector<256x24xf32>
    %14 = arith.truncf %13 : vector<256x24xf32> to vector<256x24xbf16>
    %c1 = arith.constant 1 : index
    %c0_5 = arith.constant 0 : index
    %c0_6 = arith.constant 0 : index
    %15 = vector.load %arg2[%c1, %c0_5, %c0_6] : memref<9x24x24xbf16, #tpu.memory_space<vmem>>, vector<1x24x24xbf16>
    %16 = vector.shape_cast %15 : vector<1x24x24xbf16> to vector<24x24xbf16>
    %cst_7 = arith.constant dense<0.000000e+00> : vector<256x24xf32>
    %17 = tpu.matmul %14, %16, %cst_7 {dimension_numbers = #tpu.dot_dimension_numbers<[1], [0], [0], [1], [0, 0, 1, 1], [], []>} : vector<256x24xbf16>, vector<24x24xbf16>, vector<256x24xf32> -> vector<256x24xf32>
    %18 = arith.addf %10, %17 : vector<256x24xf32>
    %c2_i32 = arith.constant 2 : i32
    %19 = arith.addi %1, %c2_i32 : i32
    %20 = arith.index_cast %19 : i32 to index
    %c0_8 = arith.constant 0 : index
    %21 = vector.load %arg1[%20, %c0_8] : memref<808x24xf32, #tpu.memory_space<vmem>>, vector<256x24xf32>
    %22 = arith.truncf %21 : vector<256x24xf32> to vector<256x24xbf16>
    %c2 = arith.constant 2 : index
    %c0_9 = arith.constant 0 : index
    %c0_10 = arith.constant 0 : index
    %23 = vector.load %arg2[%c2, %c0_9, %c0_10] : memref<9x24x24xbf16, #tpu.memory_space<vmem>>, vector<1x24x24xbf16>
    %24 = vector.shape_cast %23 : vector<1x24x24xbf16> to vector<24x24xbf16>
    %cst_11 = arith.constant dense<0.000000e+00> : vector<256x24xf32>
    %25 = tpu.matmul %22, %24, %cst_11 {dimension_numbers = #tpu.dot_dimension_numbers<[1], [0], [0], [1], [0, 0, 1, 1], [], []>} : vector<256x24xbf16>, vector<24x24xbf16>, vector<256x24xf32> -> vector<256x24xf32>
    %26 = arith.addf %18, %25 : vector<256x24xf32>
    %c18_i32 = arith.constant 18 : i32
    %27 = arith.addi %1, %c18_i32 : i32
    %28 = arith.index_cast %27 : i32 to index
    %c0_12 = arith.constant 0 : index
    %29 = vector.load %arg1[%28, %c0_12] : memref<808x24xf32, #tpu.memory_space<vmem>>, vector<256x24xf32>
    %30 = arith.truncf %29 : vector<256x24xf32> to vector<256x24xbf16>
    %c3 = arith.constant 3 : index
    %c0_13 = arith.constant 0 : index
    %c0_14 = arith.constant 0 : index
    %31 = vector.load %arg2[%c3, %c0_13, %c0_14] : memref<9x24x24xbf16, #tpu.memory_space<vmem>>, vector<1x24x24xbf16>
    %32 = vector.shape_cast %31 : vector<1x24x24xbf16> to vector<24x24xbf16>
    %cst_15 = arith.constant dense<0.000000e+00> : vector<256x24xf32>
    %33 = tpu.matmul %30, %32, %cst_15 {dimension_numbers = #tpu.dot_dimension_numbers<[1], [0], [0], [1], [0, 0, 1, 1], [], []>} : vector<256x24xbf16>, vector<24x24xbf16>, vector<256x24xf32> -> vector<256x24xf32>
    %34 = arith.addf %26, %33 : vector<256x24xf32>
    %c19_i32 = arith.constant 19 : i32
    %35 = arith.addi %1, %c19_i32 : i32
    %36 = arith.index_cast %35 : i32 to index
    %c0_16 = arith.constant 0 : index
    %37 = vector.load %arg1[%36, %c0_16] : memref<808x24xf32, #tpu.memory_space<vmem>>, vector<256x24xf32>
    %38 = arith.truncf %37 : vector<256x24xf32> to vector<256x24xbf16>
    %c4 = arith.constant 4 : index
    %c0_17 = arith.constant 0 : index
    %c0_18 = arith.constant 0 : index
    %39 = vector.load %arg2[%c4, %c0_17, %c0_18] : memref<9x24x24xbf16, #tpu.memory_space<vmem>>, vector<1x24x24xbf16>
    %40 = vector.shape_cast %39 : vector<1x24x24xbf16> to vector<24x24xbf16>
    %cst_19 = arith.constant dense<0.000000e+00> : vector<256x24xf32>
    %41 = tpu.matmul %38, %40, %cst_19 {dimension_numbers = #tpu.dot_dimension_numbers<[1], [0], [0], [1], [0, 0, 1, 1], [], []>} : vector<256x24xbf16>, vector<24x24xbf16>, vector<256x24xf32> -> vector<256x24xf32>
    %42 = arith.addf %34, %41 : vector<256x24xf32>
    %c20_i32 = arith.constant 20 : i32
    %43 = arith.addi %1, %c20_i32 : i32
    %44 = arith.index_cast %43 : i32 to index
    %c0_20 = arith.constant 0 : index
    %45 = vector.load %arg1[%44, %c0_20] : memref<808x24xf32, #tpu.memory_space<vmem>>, vector<256x24xf32>
    %46 = arith.truncf %45 : vector<256x24xf32> to vector<256x24xbf16>
    %c5 = arith.constant 5 : index
    %c0_21 = arith.constant 0 : index
    %c0_22 = arith.constant 0 : index
    %47 = vector.load %arg2[%c5, %c0_21, %c0_22] : memref<9x24x24xbf16, #tpu.memory_space<vmem>>, vector<1x24x24xbf16>
    %48 = vector.shape_cast %47 : vector<1x24x24xbf16> to vector<24x24xbf16>
    %cst_23 = arith.constant dense<0.000000e+00> : vector<256x24xf32>
    %49 = tpu.matmul %46, %48, %cst_23 {dimension_numbers = #tpu.dot_dimension_numbers<[1], [0], [0], [1], [0, 0, 1, 1], [], []>} : vector<256x24xbf16>, vector<24x24xbf16>, vector<256x24xf32> -> vector<256x24xf32>
    %50 = arith.addf %42, %49 : vector<256x24xf32>
    %c36_i32 = arith.constant 36 : i32
    %51 = arith.addi %1, %c36_i32 : i32
    %52 = arith.index_cast %51 : i32 to index
    %c0_24 = arith.constant 0 : index
    %53 = vector.load %arg1[%52, %c0_24] : memref<808x24xf32, #tpu.memory_space<vmem>>, vector<256x24xf32>
    %54 = arith.truncf %53 : vector<256x24xf32> to vector<256x24xbf16>
    %c6 = arith.constant 6 : index
    %c0_25 = arith.constant 0 : index
    %c0_26 = arith.constant 0 : index
    %55 = vector.load %arg2[%c6, %c0_25, %c0_26] : memref<9x24x24xbf16, #tpu.memory_space<vmem>>, vector<1x24x24xbf16>
    %56 = vector.shape_cast %55 : vector<1x24x24xbf16> to vector<24x24xbf16>
    %cst_27 = arith.constant dense<0.000000e+00> : vector<256x24xf32>
    %57 = tpu.matmul %54, %56, %cst_27 {dimension_numbers = #tpu.dot_dimension_numbers<[1], [0], [0], [1], [0, 0, 1, 1], [], []>} : vector<256x24xbf16>, vector<24x24xbf16>, vector<256x24xf32> -> vector<256x24xf32>
    %58 = arith.addf %50, %57 : vector<256x24xf32>
    %c37_i32 = arith.constant 37 : i32
    %59 = arith.addi %1, %c37_i32 : i32
    %60 = arith.index_cast %59 : i32 to index
    %c0_28 = arith.constant 0 : index
    %61 = vector.load %arg1[%60, %c0_28] : memref<808x24xf32, #tpu.memory_space<vmem>>, vector<256x24xf32>
    %62 = arith.truncf %61 : vector<256x24xf32> to vector<256x24xbf16>
    %c7 = arith.constant 7 : index
    %c0_29 = arith.constant 0 : index
    %c0_30 = arith.constant 0 : index
    %63 = vector.load %arg2[%c7, %c0_29, %c0_30] : memref<9x24x24xbf16, #tpu.memory_space<vmem>>, vector<1x24x24xbf16>
    %64 = vector.shape_cast %63 : vector<1x24x24xbf16> to vector<24x24xbf16>
    %cst_31 = arith.constant dense<0.000000e+00> : vector<256x24xf32>
    %65 = tpu.matmul %62, %64, %cst_31 {dimension_numbers = #tpu.dot_dimension_numbers<[1], [0], [0], [1], [0, 0, 1, 1], [], []>} : vector<256x24xbf16>, vector<24x24xbf16>, vector<256x24xf32> -> vector<256x24xf32>
    %66 = arith.addf %58, %65 : vector<256x24xf32>
    %c38_i32 = arith.constant 38 : i32
    %67 = arith.addi %1, %c38_i32 : i32
    %68 = arith.index_cast %67 : i32 to index
    %c0_32 = arith.constant 0 : index
    %69 = vector.load %arg1[%68, %c0_32] : memref<808x24xf32, #tpu.memory_space<vmem>>, vector<256x24xf32>
    %70 = arith.truncf %69 : vector<256x24xf32> to vector<256x24xbf16>
    %c8 = arith.constant 8 : index
    %c0_33 = arith.constant 0 : index
    %c0_34 = arith.constant 0 : index
    %71 = vector.load %arg2[%c8, %c0_33, %c0_34] : memref<9x24x24xbf16, #tpu.memory_space<vmem>>, vector<1x24x24xbf16>
    %72 = vector.shape_cast %71 : vector<1x24x24xbf16> to vector<24x24xbf16>
    %cst_35 = arith.constant dense<0.000000e+00> : vector<256x24xf32>
    %73 = tpu.matmul %70, %72, %cst_35 {dimension_numbers = #tpu.dot_dimension_numbers<[1], [0], [0], [1], [0, 0, 1, 1], [], []>} : vector<256x24xbf16>, vector<24x24xbf16>, vector<256x24xf32> -> vector<256x24xf32>
    %74 = arith.addf %66, %73 : vector<256x24xf32>
    %c0_36 = arith.constant 0 : index
    %c0_37 = arith.constant 0 : index
    %75 = vector.load %arg3[%c0_36, %c0_37] : memref<1x24xf32, #tpu.memory_space<vmem>>, vector<1x24xf32>
    %76 = vector.broadcast %75 : vector<1x24xf32> to vector<256x24xf32>
    %77 = arith.addf %74, %76 : vector<256x24xf32>
    %c0_38 = arith.constant 0 : index
    %c0_39 = arith.constant 0 : index
    %78 = vector.load %arg4[%c0_38, %c0_39] : memref<256x24xf32, #tpu.memory_space<vmem>>, vector<256x24xf32>
    tpu.vector_store %arg4[%c0_38, %c0_39], %77 {strides = array<i32>} : memref<256x24xf32, #tpu.memory_space<vmem>>, vector<256x24xf32>,
    return
  }
  func.func @transform_0(%arg0: i32) -> (i32, i32) {
    %c0_i32 = arith.constant 0 : i32
    %c0_i32_0 = arith.constant 0 : i32
    %c0_i32_1 = arith.constant 0 : i32
    return %c0_i32, %c0_i32_0 : i32, i32
  }
  func.func @transform_1(%arg0: i32) -> (i32, i32, i32) {
    %c0_i32 = arith.constant 0 : i32
    %c0_i32_0 = arith.constant 0 : i32
    %c0_i32_1 = arith.constant 0 : i32
    %c0_i32_2 = arith.constant 0 : i32
    return %c0_i32, %c0_i32_0, %c0_i32_1 : i32, i32, i32
  }
  func.func @transform_2(%arg0: i32) -> (i32, i32) {
    %c0_i32 = arith.constant 0 : i32
    %c0_i32_0 = arith.constant 0 : i32
    %c0_i32_1 = arith.constant 0 : i32
    return %c0_i32, %c0_i32_0 : i32, i32
  }
  func.func @transform_3(%arg0: i32) -> (i32, i32) {
    %c0_i32 = arith.constant 0 : i32
    %c0_i32_0 = arith.constant 0 : i32
    return %arg0, %c0_i32 : i32, i32
  }
}

module attributes {stable_mosaic.version = 11 : i64} {
  func.func @_conv_tap_kernel(%arg0: i32, %arg1: memref<1112x16xf32, #tpu.memory_space<vmem>>, %arg2: memref<25x16x24xbf16, #tpu.memory_space<vmem>>, %arg3: memref<1x24xf32, #tpu.memory_space<vmem>>, %arg4: memref<256x24xf32, #tpu.memory_space<vmem>>) attributes {dimension_semantics = [#tpu.dimension_semantics<parallel>], iteration_bounds = array<i64: 4>, scalar_prefetch = 0 : i64, scratch_operands = 0 : i64, tpu.core_type = #tpu.core_type<tc>, window_params = [{pipeline_mode = #tpu.pipeline_mode<synchronous>, transform_indices = @transform_0, window_bounds = array<i64: 1112, 16>}, {pipeline_mode = #tpu.pipeline_mode<synchronous>, transform_indices = @transform_1, window_bounds = array<i64: 25, 16, 24>}, {pipeline_mode = #tpu.pipeline_mode<synchronous>, transform_indices = @transform_2, window_bounds = array<i64: 1, 24>}, {transform_indices = @transform_3, window_bounds = array<i64: 256, 24>}]} {
    %c256_i32 = arith.constant 256 : i32
    %0 = arith.muli %arg0, %c256_i32 : i32
    %1 = tpu.assume_multiple %0, 256 : i32
    %cst = arith.constant 0.000000e+00 : f32
    %2 = vector.broadcast %cst : f32 to vector<256x24xf32>
    %c0_i32 = arith.constant 0 : i32
    %3 = arith.addi %1, %c0_i32 : i32
    %4 = arith.index_cast %3 : i32 to index
    %c0 = arith.constant 0 : index
    %5 = vector.load %arg1[%4, %c0] : memref<1112x16xf32, #tpu.memory_space<vmem>>, vector<256x16xf32>
    %6 = arith.truncf %5 : vector<256x16xf32> to vector<256x16xbf16>
    %c0_0 = arith.constant 0 : index
    %c0_1 = arith.constant 0 : index
    %c0_2 = arith.constant 0 : index
    %7 = vector.load %arg2[%c0_0, %c0_1, %c0_2] : memref<25x16x24xbf16, #tpu.memory_space<vmem>>, vector<1x16x24xbf16>
    %8 = vector.shape_cast %7 : vector<1x16x24xbf16> to vector<16x24xbf16>
    %cst_3 = arith.constant dense<0.000000e+00> : vector<256x24xf32>
    %9 = tpu.matmul %6, %8, %cst_3 {dimension_numbers = #tpu.dot_dimension_numbers<[1], [0], [0], [1], [0, 0, 1, 1], [], []>} : vector<256x16xbf16>, vector<16x24xbf16>, vector<256x24xf32> -> vector<256x24xf32>
    %10 = arith.addf %2, %9 : vector<256x24xf32>
    %c1_i32 = arith.constant 1 : i32
    %11 = arith.addi %1, %c1_i32 : i32
    %12 = arith.index_cast %11 : i32 to index
    %c0_4 = arith.constant 0 : index
    %13 = vector.load %arg1[%12, %c0_4] : memref<1112x16xf32, #tpu.memory_space<vmem>>, vector<256x16xf32>
    %14 = arith.truncf %13 : vector<256x16xf32> to vector<256x16xbf16>
    %c1 = arith.constant 1 : index
    %c0_5 = arith.constant 0 : index
    %c0_6 = arith.constant 0 : index
    %15 = vector.load %arg2[%c1, %c0_5, %c0_6] : memref<25x16x24xbf16, #tpu.memory_space<vmem>>, vector<1x16x24xbf16>
    %16 = vector.shape_cast %15 : vector<1x16x24xbf16> to vector<16x24xbf16>
    %cst_7 = arith.constant dense<0.000000e+00> : vector<256x24xf32>
    %17 = tpu.matmul %14, %16, %cst_7 {dimension_numbers = #tpu.dot_dimension_numbers<[1], [0], [0], [1], [0, 0, 1, 1], [], []>} : vector<256x16xbf16>, vector<16x24xbf16>, vector<256x24xf32> -> vector<256x24xf32>
    %18 = arith.addf %10, %17 : vector<256x24xf32>
    %c2_i32 = arith.constant 2 : i32
    %19 = arith.addi %1, %c2_i32 : i32
    %20 = arith.index_cast %19 : i32 to index
    %c0_8 = arith.constant 0 : index
    %21 = vector.load %arg1[%20, %c0_8] : memref<1112x16xf32, #tpu.memory_space<vmem>>, vector<256x16xf32>
    %22 = arith.truncf %21 : vector<256x16xf32> to vector<256x16xbf16>
    %c2 = arith.constant 2 : index
    %c0_9 = arith.constant 0 : index
    %c0_10 = arith.constant 0 : index
    %23 = vector.load %arg2[%c2, %c0_9, %c0_10] : memref<25x16x24xbf16, #tpu.memory_space<vmem>>, vector<1x16x24xbf16>
    %24 = vector.shape_cast %23 : vector<1x16x24xbf16> to vector<16x24xbf16>
    %cst_11 = arith.constant dense<0.000000e+00> : vector<256x24xf32>
    %25 = tpu.matmul %22, %24, %cst_11 {dimension_numbers = #tpu.dot_dimension_numbers<[1], [0], [0], [1], [0, 0, 1, 1], [], []>} : vector<256x16xbf16>, vector<16x24xbf16>, vector<256x24xf32> -> vector<256x24xf32>
    %26 = arith.addf %18, %25 : vector<256x24xf32>
    %c3_i32 = arith.constant 3 : i32
    %27 = arith.addi %1, %c3_i32 : i32
    %28 = arith.index_cast %27 : i32 to index
    %c0_12 = arith.constant 0 : index
    %29 = vector.load %arg1[%28, %c0_12] : memref<1112x16xf32, #tpu.memory_space<vmem>>, vector<256x16xf32>
    %30 = arith.truncf %29 : vector<256x16xf32> to vector<256x16xbf16>
    %c3 = arith.constant 3 : index
    %c0_13 = arith.constant 0 : index
    %c0_14 = arith.constant 0 : index
    %31 = vector.load %arg2[%c3, %c0_13, %c0_14] : memref<25x16x24xbf16, #tpu.memory_space<vmem>>, vector<1x16x24xbf16>
    %32 = vector.shape_cast %31 : vector<1x16x24xbf16> to vector<16x24xbf16>
    %cst_15 = arith.constant dense<0.000000e+00> : vector<256x24xf32>
    %33 = tpu.matmul %30, %32, %cst_15 {dimension_numbers = #tpu.dot_dimension_numbers<[1], [0], [0], [1], [0, 0, 1, 1], [], []>} : vector<256x16xbf16>, vector<16x24xbf16>, vector<256x24xf32> -> vector<256x24xf32>
    %34 = arith.addf %26, %33 : vector<256x24xf32>
    %c4_i32 = arith.constant 4 : i32
    %35 = arith.addi %1, %c4_i32 : i32
    %36 = arith.index_cast %35 : i32 to index
    %c0_16 = arith.constant 0 : index
    %37 = vector.load %arg1[%36, %c0_16] : memref<1112x16xf32, #tpu.memory_space<vmem>>, vector<256x16xf32>
    %38 = arith.truncf %37 : vector<256x16xf32> to vector<256x16xbf16>
    %c4 = arith.constant 4 : index
    %c0_17 = arith.constant 0 : index
    %c0_18 = arith.constant 0 : index
    %39 = vector.load %arg2[%c4, %c0_17, %c0_18] : memref<25x16x24xbf16, #tpu.memory_space<vmem>>, vector<1x16x24xbf16>
    %40 = vector.shape_cast %39 : vector<1x16x24xbf16> to vector<16x24xbf16>
    %cst_19 = arith.constant dense<0.000000e+00> : vector<256x24xf32>
    %41 = tpu.matmul %38, %40, %cst_19 {dimension_numbers = #tpu.dot_dimension_numbers<[1], [0], [0], [1], [0, 0, 1, 1], [], []>} : vector<256x16xbf16>, vector<16x24xbf16>, vector<256x24xf32> -> vector<256x24xf32>
    %42 = arith.addf %34, %41 : vector<256x24xf32>
    %c20_i32 = arith.constant 20 : i32
    %43 = arith.addi %1, %c20_i32 : i32
    %44 = arith.index_cast %43 : i32 to index
    %c0_20 = arith.constant 0 : index
    %45 = vector.load %arg1[%44, %c0_20] : memref<1112x16xf32, #tpu.memory_space<vmem>>, vector<256x16xf32>
    %46 = arith.truncf %45 : vector<256x16xf32> to vector<256x16xbf16>
    %c5 = arith.constant 5 : index
    %c0_21 = arith.constant 0 : index
    %c0_22 = arith.constant 0 : index
    %47 = vector.load %arg2[%c5, %c0_21, %c0_22] : memref<25x16x24xbf16, #tpu.memory_space<vmem>>, vector<1x16x24xbf16>
    %48 = vector.shape_cast %47 : vector<1x16x24xbf16> to vector<16x24xbf16>
    %cst_23 = arith.constant dense<0.000000e+00> : vector<256x24xf32>
    %49 = tpu.matmul %46, %48, %cst_23 {dimension_numbers = #tpu.dot_dimension_numbers<[1], [0], [0], [1], [0, 0, 1, 1], [], []>} : vector<256x16xbf16>, vector<16x24xbf16>, vector<256x24xf32> -> vector<256x24xf32>
    %50 = arith.addf %42, %49 : vector<256x24xf32>
    %c21_i32 = arith.constant 21 : i32
    %51 = arith.addi %1, %c21_i32 : i32
    %52 = arith.index_cast %51 : i32 to index
    %c0_24 = arith.constant 0 : index
    %53 = vector.load %arg1[%52, %c0_24] : memref<1112x16xf32, #tpu.memory_space<vmem>>, vector<256x16xf32>
    %54 = arith.truncf %53 : vector<256x16xf32> to vector<256x16xbf16>
    %c6 = arith.constant 6 : index
    %c0_25 = arith.constant 0 : index
    %c0_26 = arith.constant 0 : index
    %55 = vector.load %arg2[%c6, %c0_25, %c0_26] : memref<25x16x24xbf16, #tpu.memory_space<vmem>>, vector<1x16x24xbf16>
    %56 = vector.shape_cast %55 : vector<1x16x24xbf16> to vector<16x24xbf16>
    %cst_27 = arith.constant dense<0.000000e+00> : vector<256x24xf32>
    %57 = tpu.matmul %54, %56, %cst_27 {dimension_numbers = #tpu.dot_dimension_numbers<[1], [0], [0], [1], [0, 0, 1, 1], [], []>} : vector<256x16xbf16>, vector<16x24xbf16>, vector<256x24xf32> -> vector<256x24xf32>
    %58 = arith.addf %50, %57 : vector<256x24xf32>
    %c22_i32 = arith.constant 22 : i32
    %59 = arith.addi %1, %c22_i32 : i32
    %60 = arith.index_cast %59 : i32 to index
    %c0_28 = arith.constant 0 : index
    %61 = vector.load %arg1[%60, %c0_28] : memref<1112x16xf32, #tpu.memory_space<vmem>>, vector<256x16xf32>
    %62 = arith.truncf %61 : vector<256x16xf32> to vector<256x16xbf16>
    %c7 = arith.constant 7 : index
    %c0_29 = arith.constant 0 : index
    %c0_30 = arith.constant 0 : index
    %63 = vector.load %arg2[%c7, %c0_29, %c0_30] : memref<25x16x24xbf16, #tpu.memory_space<vmem>>, vector<1x16x24xbf16>
    %64 = vector.shape_cast %63 : vector<1x16x24xbf16> to vector<16x24xbf16>
    %cst_31 = arith.constant dense<0.000000e+00> : vector<256x24xf32>
    %65 = tpu.matmul %62, %64, %cst_31 {dimension_numbers = #tpu.dot_dimension_numbers<[1], [0], [0], [1], [0, 0, 1, 1], [], []>} : vector<256x16xbf16>, vector<16x24xbf16>, vector<256x24xf32> -> vector<256x24xf32>
    %66 = arith.addf %58, %65 : vector<256x24xf32>
    %c23_i32 = arith.constant 23 : i32
    %67 = arith.addi %1, %c23_i32 : i32
    %68 = arith.index_cast %67 : i32 to index
    %c0_32 = arith.constant 0 : index
    %69 = vector.load %arg1[%68, %c0_32] : memref<1112x16xf32, #tpu.memory_space<vmem>>, vector<256x16xf32>
    %70 = arith.truncf %69 : vector<256x16xf32> to vector<256x16xbf16>
    %c8 = arith.constant 8 : index
    %c0_33 = arith.constant 0 : index
    %c0_34 = arith.constant 0 : index
    %71 = vector.load %arg2[%c8, %c0_33, %c0_34] : memref<25x16x24xbf16, #tpu.memory_space<vmem>>, vector<1x16x24xbf16>
    %72 = vector.shape_cast %71 : vector<1x16x24xbf16> to vector<16x24xbf16>
    %cst_35 = arith.constant dense<0.000000e+00> : vector<256x24xf32>
    %73 = tpu.matmul %70, %72, %cst_35 {dimension_numbers = #tpu.dot_dimension_numbers<[1], [0], [0], [1], [0, 0, 1, 1], [], []>} : vector<256x16xbf16>, vector<16x24xbf16>, vector<256x24xf32> -> vector<256x24xf32>
    %74 = arith.addf %66, %73 : vector<256x24xf32>
    %c24_i32 = arith.constant 24 : i32
    %75 = arith.addi %1, %c24_i32 : i32
    %76 = arith.index_cast %75 : i32 to index
    %c0_36 = arith.constant 0 : index
    %77 = vector.load %arg1[%76, %c0_36] : memref<1112x16xf32, #tpu.memory_space<vmem>>, vector<256x16xf32>
    %78 = arith.truncf %77 : vector<256x16xf32> to vector<256x16xbf16>
    %c9 = arith.constant 9 : index
    %c0_37 = arith.constant 0 : index
    %c0_38 = arith.constant 0 : index
    %79 = vector.load %arg2[%c9, %c0_37, %c0_38] : memref<25x16x24xbf16, #tpu.memory_space<vmem>>, vector<1x16x24xbf16>
    %80 = vector.shape_cast %79 : vector<1x16x24xbf16> to vector<16x24xbf16>
    %cst_39 = arith.constant dense<0.000000e+00> : vector<256x24xf32>
    %81 = tpu.matmul %78, %80, %cst_39 {dimension_numbers = #tpu.dot_dimension_numbers<[1], [0], [0], [1], [0, 0, 1, 1], [], []>} : vector<256x16xbf16>, vector<16x24xbf16>, vector<256x24xf32> -> vector<256x24xf32>
    %82 = arith.addf %74, %81 : vector<256x24xf32>
    %c40_i32 = arith.constant 40 : i32
    %83 = arith.addi %1, %c40_i32 : i32
    %84 = arith.index_cast %83 : i32 to index
    %c0_40 = arith.constant 0 : index
    %85 = vector.load %arg1[%84, %c0_40] : memref<1112x16xf32, #tpu.memory_space<vmem>>, vector<256x16xf32>
    %86 = arith.truncf %85 : vector<256x16xf32> to vector<256x16xbf16>
    %c10 = arith.constant 10 : index
    %c0_41 = arith.constant 0 : index
    %c0_42 = arith.constant 0 : index
    %87 = vector.load %arg2[%c10, %c0_41, %c0_42] : memref<25x16x24xbf16, #tpu.memory_space<vmem>>, vector<1x16x24xbf16>
    %88 = vector.shape_cast %87 : vector<1x16x24xbf16> to vector<16x24xbf16>
    %cst_43 = arith.constant dense<0.000000e+00> : vector<256x24xf32>
    %89 = tpu.matmul %86, %88, %cst_43 {dimension_numbers = #tpu.dot_dimension_numbers<[1], [0], [0], [1], [0, 0, 1, 1], [], []>} : vector<256x16xbf16>, vector<16x24xbf16>, vector<256x24xf32> -> vector<256x24xf32>
    %90 = arith.addf %82, %89 : vector<256x24xf32>
    %c41_i32 = arith.constant 41 : i32
    %91 = arith.addi %1, %c41_i32 : i32
    %92 = arith.index_cast %91 : i32 to index
    %c0_44 = arith.constant 0 : index
    %93 = vector.load %arg1[%92, %c0_44] : memref<1112x16xf32, #tpu.memory_space<vmem>>, vector<256x16xf32>
    %94 = arith.truncf %93 : vector<256x16xf32> to vector<256x16xbf16>
    %c11 = arith.constant 11 : index
    %c0_45 = arith.constant 0 : index
    %c0_46 = arith.constant 0 : index
    %95 = vector.load %arg2[%c11, %c0_45, %c0_46] : memref<25x16x24xbf16, #tpu.memory_space<vmem>>, vector<1x16x24xbf16>
    %96 = vector.shape_cast %95 : vector<1x16x24xbf16> to vector<16x24xbf16>
    %cst_47 = arith.constant dense<0.000000e+00> : vector<256x24xf32>
    %97 = tpu.matmul %94, %96, %cst_47 {dimension_numbers = #tpu.dot_dimension_numbers<[1], [0], [0], [1], [0, 0, 1, 1], [], []>} : vector<256x16xbf16>, vector<16x24xbf16>, vector<256x24xf32> -> vector<256x24xf32>
    %98 = arith.addf %90, %97 : vector<256x24xf32>
    %c42_i32 = arith.constant 42 : i32
    %99 = arith.addi %1, %c42_i32 : i32
    %100 = arith.index_cast %99 : i32 to index
    %c0_48 = arith.constant 0 : index
    %101 = vector.load %arg1[%100, %c0_48] : memref<1112x16xf32, #tpu.memory_space<vmem>>, vector<256x16xf32>
    %102 = arith.truncf %101 : vector<256x16xf32> to vector<256x16xbf16>
    %c12 = arith.constant 12 : index
    %c0_49 = arith.constant 0 : index
    %c0_50 = arith.constant 0 : index
    %103 = vector.load %arg2[%c12, %c0_49, %c0_50] : memref<25x16x24xbf16, #tpu.memory_space<vmem>>, vector<1x16x24xbf16>
    %104 = vector.shape_cast %103 : vector<1x16x24xbf16> to vector<16x24xbf16>
    %cst_51 = arith.constant dense<0.000000e+00> : vector<256x24xf32>
    %105 = tpu.matmul %102, %104, %cst_51 {dimension_numbers = #tpu.dot_dimension_numbers<[1], [0], [0], [1], [0, 0, 1, 1], [], []>} : vector<256x16xbf16>, vector<16x24xbf16>, vector<256x24xf32> -> vector<256x24xf32>
    %106 = arith.addf %98, %105 : vector<256x24xf32>
    %c43_i32 = arith.constant 43 : i32
    %107 = arith.addi %1, %c43_i32 : i32
    %108 = arith.index_cast %107 : i32 to index
    %c0_52 = arith.constant 0 : index
    %109 = vector.load %arg1[%108, %c0_52] : memref<1112x16xf32, #tpu.memory_space<vmem>>, vector<256x16xf32>
    %110 = arith.truncf %109 : vector<256x16xf32> to vector<256x16xbf16>
    %c13 = arith.constant 13 : index
    %c0_53 = arith.constant 0 : index
    %c0_54 = arith.constant 0 : index
    %111 = vector.load %arg2[%c13, %c0_53, %c0_54] : memref<25x16x24xbf16, #tpu.memory_space<vmem>>, vector<1x16x24xbf16>
    %112 = vector.shape_cast %111 : vector<1x16x24xbf16> to vector<16x24xbf16>
    %cst_55 = arith.constant dense<0.000000e+00> : vector<256x24xf32>
    %113 = tpu.matmul %110, %112, %cst_55 {dimension_numbers = #tpu.dot_dimension_numbers<[1], [0], [0], [1], [0, 0, 1, 1], [], []>} : vector<256x16xbf16>, vector<16x24xbf16>, vector<256x24xf32> -> vector<256x24xf32>
    %114 = arith.addf %106, %113 : vector<256x24xf32>
    %c44_i32 = arith.constant 44 : i32
    %115 = arith.addi %1, %c44_i32 : i32
    %116 = arith.index_cast %115 : i32 to index
    %c0_56 = arith.constant 0 : index
    %117 = vector.load %arg1[%116, %c0_56] : memref<1112x16xf32, #tpu.memory_space<vmem>>, vector<256x16xf32>
    %118 = arith.truncf %117 : vector<256x16xf32> to vector<256x16xbf16>
    %c14 = arith.constant 14 : index
    %c0_57 = arith.constant 0 : index
    %c0_58 = arith.constant 0 : index
    %119 = vector.load %arg2[%c14, %c0_57, %c0_58] : memref<25x16x24xbf16, #tpu.memory_space<vmem>>, vector<1x16x24xbf16>
    %120 = vector.shape_cast %119 : vector<1x16x24xbf16> to vector<16x24xbf16>
    %cst_59 = arith.constant dense<0.000000e+00> : vector<256x24xf32>
    %121 = tpu.matmul %118, %120, %cst_59 {dimension_numbers = #tpu.dot_dimension_numbers<[1], [0], [0], [1], [0, 0, 1, 1], [], []>} : vector<256x16xbf16>, vector<16x24xbf16>, vector<256x24xf32> -> vector<256x24xf32>
    %122 = arith.addf %114, %121 : vector<256x24xf32>
    %c60_i32 = arith.constant 60 : i32
    %123 = arith.addi %1, %c60_i32 : i32
    %124 = arith.index_cast %123 : i32 to index
    %c0_60 = arith.constant 0 : index
    %125 = vector.load %arg1[%124, %c0_60] : memref<1112x16xf32, #tpu.memory_space<vmem>>, vector<256x16xf32>
    %126 = arith.truncf %125 : vector<256x16xf32> to vector<256x16xbf16>
    %c15 = arith.constant 15 : index
    %c0_61 = arith.constant 0 : index
    %c0_62 = arith.constant 0 : index
    %127 = vector.load %arg2[%c15, %c0_61, %c0_62] : memref<25x16x24xbf16, #tpu.memory_space<vmem>>, vector<1x16x24xbf16>
    %128 = vector.shape_cast %127 : vector<1x16x24xbf16> to vector<16x24xbf16>
    %cst_63 = arith.constant dense<0.000000e+00> : vector<256x24xf32>
    %129 = tpu.matmul %126, %128, %cst_63 {dimension_numbers = #tpu.dot_dimension_numbers<[1], [0], [0], [1], [0, 0, 1, 1], [], []>} : vector<256x16xbf16>, vector<16x24xbf16>, vector<256x24xf32> -> vector<256x24xf32>
    %130 = arith.addf %122, %129 : vector<256x24xf32>
    %c61_i32 = arith.constant 61 : i32
    %131 = arith.addi %1, %c61_i32 : i32
    %132 = arith.index_cast %131 : i32 to index
    %c0_64 = arith.constant 0 : index
    %133 = vector.load %arg1[%132, %c0_64] : memref<1112x16xf32, #tpu.memory_space<vmem>>, vector<256x16xf32>
    %134 = arith.truncf %133 : vector<256x16xf32> to vector<256x16xbf16>
    %c16 = arith.constant 16 : index
    %c0_65 = arith.constant 0 : index
    %c0_66 = arith.constant 0 : index
    %135 = vector.load %arg2[%c16, %c0_65, %c0_66] : memref<25x16x24xbf16, #tpu.memory_space<vmem>>, vector<1x16x24xbf16>
    %136 = vector.shape_cast %135 : vector<1x16x24xbf16> to vector<16x24xbf16>
    %cst_67 = arith.constant dense<0.000000e+00> : vector<256x24xf32>
    %137 = tpu.matmul %134, %136, %cst_67 {dimension_numbers = #tpu.dot_dimension_numbers<[1], [0], [0], [1], [0, 0, 1, 1], [], []>} : vector<256x16xbf16>, vector<16x24xbf16>, vector<256x24xf32> -> vector<256x24xf32>
    %138 = arith.addf %130, %137 : vector<256x24xf32>
    %c62_i32 = arith.constant 62 : i32
    %139 = arith.addi %1, %c62_i32 : i32
    %140 = arith.index_cast %139 : i32 to index
    %c0_68 = arith.constant 0 : index
    %141 = vector.load %arg1[%140, %c0_68] : memref<1112x16xf32, #tpu.memory_space<vmem>>, vector<256x16xf32>
    %142 = arith.truncf %141 : vector<256x16xf32> to vector<256x16xbf16>
    %c17 = arith.constant 17 : index
    %c0_69 = arith.constant 0 : index
    %c0_70 = arith.constant 0 : index
    %143 = vector.load %arg2[%c17, %c0_69, %c0_70] : memref<25x16x24xbf16, #tpu.memory_space<vmem>>, vector<1x16x24xbf16>
    %144 = vector.shape_cast %143 : vector<1x16x24xbf16> to vector<16x24xbf16>
    %cst_71 = arith.constant dense<0.000000e+00> : vector<256x24xf32>
    %145 = tpu.matmul %142, %144, %cst_71 {dimension_numbers = #tpu.dot_dimension_numbers<[1], [0], [0], [1], [0, 0, 1, 1], [], []>} : vector<256x16xbf16>, vector<16x24xbf16>, vector<256x24xf32> -> vector<256x24xf32>
    %146 = arith.addf %138, %145 : vector<256x24xf32>
    %c63_i32 = arith.constant 63 : i32
    %147 = arith.addi %1, %c63_i32 : i32
    %148 = arith.index_cast %147 : i32 to index
    %c0_72 = arith.constant 0 : index
    %149 = vector.load %arg1[%148, %c0_72] : memref<1112x16xf32, #tpu.memory_space<vmem>>, vector<256x16xf32>
    %150 = arith.truncf %149 : vector<256x16xf32> to vector<256x16xbf16>
    %c18 = arith.constant 18 : index
    %c0_73 = arith.constant 0 : index
    %c0_74 = arith.constant 0 : index
    %151 = vector.load %arg2[%c18, %c0_73, %c0_74] : memref<25x16x24xbf16, #tpu.memory_space<vmem>>, vector<1x16x24xbf16>
    %152 = vector.shape_cast %151 : vector<1x16x24xbf16> to vector<16x24xbf16>
    %cst_75 = arith.constant dense<0.000000e+00> : vector<256x24xf32>
    %153 = tpu.matmul %150, %152, %cst_75 {dimension_numbers = #tpu.dot_dimension_numbers<[1], [0], [0], [1], [0, 0, 1, 1], [], []>} : vector<256x16xbf16>, vector<16x24xbf16>, vector<256x24xf32> -> vector<256x24xf32>
    %154 = arith.addf %146, %153 : vector<256x24xf32>
    %c64_i32 = arith.constant 64 : i32
    %155 = arith.addi %1, %c64_i32 : i32
    %156 = arith.index_cast %155 : i32 to index
    %c0_76 = arith.constant 0 : index
    %157 = vector.load %arg1[%156, %c0_76] : memref<1112x16xf32, #tpu.memory_space<vmem>>, vector<256x16xf32>
    %158 = arith.truncf %157 : vector<256x16xf32> to vector<256x16xbf16>
    %c19 = arith.constant 19 : index
    %c0_77 = arith.constant 0 : index
    %c0_78 = arith.constant 0 : index
    %159 = vector.load %arg2[%c19, %c0_77, %c0_78] : memref<25x16x24xbf16, #tpu.memory_space<vmem>>, vector<1x16x24xbf16>
    %160 = vector.shape_cast %159 : vector<1x16x24xbf16> to vector<16x24xbf16>
    %cst_79 = arith.constant dense<0.000000e+00> : vector<256x24xf32>
    %161 = tpu.matmul %158, %160, %cst_79 {dimension_numbers = #tpu.dot_dimension_numbers<[1], [0], [0], [1], [0, 0, 1, 1], [], []>} : vector<256x16xbf16>, vector<16x24xbf16>, vector<256x24xf32> -> vector<256x24xf32>
    %162 = arith.addf %154, %161 : vector<256x24xf32>
    %c80_i32 = arith.constant 80 : i32
    %163 = arith.addi %1, %c80_i32 : i32
    %164 = arith.index_cast %163 : i32 to index
    %c0_80 = arith.constant 0 : index
    %165 = vector.load %arg1[%164, %c0_80] : memref<1112x16xf32, #tpu.memory_space<vmem>>, vector<256x16xf32>
    %166 = arith.truncf %165 : vector<256x16xf32> to vector<256x16xbf16>
    %c20 = arith.constant 20 : index
    %c0_81 = arith.constant 0 : index
    %c0_82 = arith.constant 0 : index
    %167 = vector.load %arg2[%c20, %c0_81, %c0_82] : memref<25x16x24xbf16, #tpu.memory_space<vmem>>, vector<1x16x24xbf16>
    %168 = vector.shape_cast %167 : vector<1x16x24xbf16> to vector<16x24xbf16>
    %cst_83 = arith.constant dense<0.000000e+00> : vector<256x24xf32>
    %169 = tpu.matmul %166, %168, %cst_83 {dimension_numbers = #tpu.dot_dimension_numbers<[1], [0], [0], [1], [0, 0, 1, 1], [], []>} : vector<256x16xbf16>, vector<16x24xbf16>, vector<256x24xf32> -> vector<256x24xf32>
    %170 = arith.addf %162, %169 : vector<256x24xf32>
    %c81_i32 = arith.constant 81 : i32
    %171 = arith.addi %1, %c81_i32 : i32
    %172 = arith.index_cast %171 : i32 to index
    %c0_84 = arith.constant 0 : index
    %173 = vector.load %arg1[%172, %c0_84] : memref<1112x16xf32, #tpu.memory_space<vmem>>, vector<256x16xf32>
    %174 = arith.truncf %173 : vector<256x16xf32> to vector<256x16xbf16>
    %c21 = arith.constant 21 : index
    %c0_85 = arith.constant 0 : index
    %c0_86 = arith.constant 0 : index
    %175 = vector.load %arg2[%c21, %c0_85, %c0_86] : memref<25x16x24xbf16, #tpu.memory_space<vmem>>, vector<1x16x24xbf16>
    %176 = vector.shape_cast %175 : vector<1x16x24xbf16> to vector<16x24xbf16>
    %cst_87 = arith.constant dense<0.000000e+00> : vector<256x24xf32>
    %177 = tpu.matmul %174, %176, %cst_87 {dimension_numbers = #tpu.dot_dimension_numbers<[1], [0], [0], [1], [0, 0, 1, 1], [], []>} : vector<256x16xbf16>, vector<16x24xbf16>, vector<256x24xf32> -> vector<256x24xf32>
    %178 = arith.addf %170, %177 : vector<256x24xf32>
    %c82_i32 = arith.constant 82 : i32
    %179 = arith.addi %1, %c82_i32 : i32
    %180 = arith.index_cast %179 : i32 to index
    %c0_88 = arith.constant 0 : index
    %181 = vector.load %arg1[%180, %c0_88] : memref<1112x16xf32, #tpu.memory_space<vmem>>, vector<256x16xf32>
    %182 = arith.truncf %181 : vector<256x16xf32> to vector<256x16xbf16>
    %c22 = arith.constant 22 : index
    %c0_89 = arith.constant 0 : index
    %c0_90 = arith.constant 0 : index
    %183 = vector.load %arg2[%c22, %c0_89, %c0_90] : memref<25x16x24xbf16, #tpu.memory_space<vmem>>, vector<1x16x24xbf16>
    %184 = vector.shape_cast %183 : vector<1x16x24xbf16> to vector<16x24xbf16>
    %cst_91 = arith.constant dense<0.000000e+00> : vector<256x24xf32>
    %185 = tpu.matmul %182, %184, %cst_91 {dimension_numbers = #tpu.dot_dimension_numbers<[1], [0], [0], [1], [0, 0, 1, 1], [], []>} : vector<256x16xbf16>, vector<16x24xbf16>, vector<256x24xf32> -> vector<256x24xf32>
    %186 = arith.addf %178, %185 : vector<256x24xf32>
    %c83_i32 = arith.constant 83 : i32
    %187 = arith.addi %1, %c83_i32 : i32
    %188 = arith.index_cast %187 : i32 to index
    %c0_92 = arith.constant 0 : index
    %189 = vector.load %arg1[%188, %c0_92] : memref<1112x16xf32, #tpu.memory_space<vmem>>, vector<256x16xf32>
    %190 = arith.truncf %189 : vector<256x16xf32> to vector<256x16xbf16>
    %c23 = arith.constant 23 : index
    %c0_93 = arith.constant 0 : index
    %c0_94 = arith.constant 0 : index
    %191 = vector.load %arg2[%c23, %c0_93, %c0_94] : memref<25x16x24xbf16, #tpu.memory_space<vmem>>, vector<1x16x24xbf16>
    %192 = vector.shape_cast %191 : vector<1x16x24xbf16> to vector<16x24xbf16>
    %cst_95 = arith.constant dense<0.000000e+00> : vector<256x24xf32>
    %193 = tpu.matmul %190, %192, %cst_95 {dimension_numbers = #tpu.dot_dimension_numbers<[1], [0], [0], [1], [0, 0, 1, 1], [], []>} : vector<256x16xbf16>, vector<16x24xbf16>, vector<256x24xf32> -> vector<256x24xf32>
    %194 = arith.addf %186, %193 : vector<256x24xf32>
    %c84_i32 = arith.constant 84 : i32
    %195 = arith.addi %1, %c84_i32 : i32
    %196 = arith.index_cast %195 : i32 to index
    %c0_96 = arith.constant 0 : index
    %197 = vector.load %arg1[%196, %c0_96] : memref<1112x16xf32, #tpu.memory_space<vmem>>, vector<256x16xf32>
    %198 = arith.truncf %197 : vector<256x16xf32> to vector<256x16xbf16>
    %c24 = arith.constant 24 : index
    %c0_97 = arith.constant 0 : index
    %c0_98 = arith.constant 0 : index
    %199 = vector.load %arg2[%c24, %c0_97, %c0_98] : memref<25x16x24xbf16, #tpu.memory_space<vmem>>, vector<1x16x24xbf16>
    %200 = vector.shape_cast %199 : vector<1x16x24xbf16> to vector<16x24xbf16>
    %cst_99 = arith.constant dense<0.000000e+00> : vector<256x24xf32>
    %201 = tpu.matmul %198, %200, %cst_99 {dimension_numbers = #tpu.dot_dimension_numbers<[1], [0], [0], [1], [0, 0, 1, 1], [], []>} : vector<256x16xbf16>, vector<16x24xbf16>, vector<256x24xf32> -> vector<256x24xf32>
    %202 = arith.addf %194, %201 : vector<256x24xf32>
    %c0_100 = arith.constant 0 : index
    %c0_101 = arith.constant 0 : index
    %203 = vector.load %arg3[%c0_100, %c0_101] : memref<1x24xf32, #tpu.memory_space<vmem>>, vector<1x24xf32>
    %204 = vector.broadcast %203 : vector<1x24xf32> to vector<256x24xf32>
    %205 = arith.addf %202, %204 : vector<256x24xf32>
    %c0_102 = arith.constant 0 : index
    %c0_103 = arith.constant 0 : index
    %206 = vector.load %arg4[%c0_102, %c0_103] : memref<256x24xf32, #tpu.memory_space<vmem>>, vector<256x24xf32>
    tpu.vector_store %arg4[%c0_102, %c0_103], %205 {strides = array<i32>} : memref<256x24xf32, #tpu.memory_space<vmem>>, vector<256x24xf32>,
    return
  }
  func.func @transform_0(%arg0: i32) -> (i32, i32) {
    %c0_i32 = arith.constant 0 : i32
    %c0_i32_0 = arith.constant 0 : i32
    %c0_i32_1 = arith.constant 0 : i32
    return %c0_i32, %c0_i32_0 : i32, i32
  }
  func.func @transform_1(%arg0: i32) -> (i32, i32, i32) {
    %c0_i32 = arith.constant 0 : i32
    %c0_i32_0 = arith.constant 0 : i32
    %c0_i32_1 = arith.constant 0 : i32
    %c0_i32_2 = arith.constant 0 : i32
    return %c0_i32, %c0_i32_0, %c0_i32_1 : i32, i32, i32
  }
  func.func @transform_2(%arg0: i32) -> (i32, i32) {
    %c0_i32 = arith.constant 0 : i32
    %c0_i32_0 = arith.constant 0 : i32
    %c0_i32_1 = arith.constant 0 : i32
    return %c0_i32, %c0_i32_0 : i32, i32
  }
  func.func @transform_3(%arg0: i32) -> (i32, i32) {
    %c0_i32 = arith.constant 0 : i32
    %c0_i32_0 = arith.constant 0 : i32
    return %arg0, %c0_i32 : i32, i32
  }
}

</mosaic_0001>

<bundles_post_ra>
// kernel: inception_a_forward.10
= control target key start
LH: loop header
LB: loop body
LE: loop exit
PB: predicated region body
PF: predicated region fallthrough
CT: control target
= control target key end

     0   :  { %s623_s12 = smov 0   ;;  %s800_s0 = inlined_call_operand.vmem [shape: f32[512,16], index: 0, kind: input, shape index: {}]   ;;  %s801_s1 = inlined_call_operand.vmem [shape: bf16[1,16,16], index: 1, kind: input, shape index: {}]   ;;  %s802_s2 = inlined_call_operand.vmem [shape: f32[1,16], index: 2, kind: input, shape index: {}]   ;;  %s803_s3 = inlined_call_operand.vmem [shape: f32[512,16], index: 3, kind: output, shape index: {}]  }
   0x1 LB: > { %s506_s13 = sadd.s32 4294967295, %s601_s12   ;;  %p509_p0 = scmp.ge.s32.totalorder %s601_s12, 1  ;;  %s601_s12 = sphi %s623_s12, %s13_s12  }
   0x2   : > { %p127_p1 = scmp.lt.s32.totalorder %s601_s12, 3 }
   0x4   : > { %p128_p2 = pnand %p509_p0, %p127_p1 }
   0x5   : > { %s512_s16 = sshll.u32 (!%p128_p2), %s506_s13, 8  ;;  %s510_s20 = sshll.u32 (!%p128_p2), %s506_s13, 5 }
   0x6   : > { %131 = sbr.rel (%p128_p2) target bundleno = 243 (0xf3), region = 32  ;;  %s639_s19 = scalar_lea.vmem (!%p128_p2), %s800_s0, %s512_s16 }
   0x7   : > { %p147_p3 = scmp.lt.s32.totalorder (!%p128_p2), %s510_s20, 63 }
   0xb   : > { %v594_v0 = vld [vmem:[%s801_s1] sm:$0xff]   ;;  %v156_v2 = vld [vmem:[%s639_s19 + $0x8] sm:$0xff]  ;;  %vm218_vm0 = vcmask 130048   ;;  %v157_v6 = vld [vmem:[%s639_s19 + $0x10] sm:$0xff]  ;;  %s805_s20 = smov (!%p147_p3, %s510_s20), 63 }
   0xc   : > { %550 = vmatprep.subr.bf16.mxu0 %v594_v0  ;;  %584 = vmatprep.subr.bf16.mxu1 %v594_v0  ;;  %v155_v1 = vld [vmem:[%s639_s19] sm:$0xff]  ;;  %v172_v5 = vld [vmem:[%s639_s19 + $0x88] sm:$0xff]  ;;  %v158_v7 = vld [vmem:[%s639_s19 + $0x18] sm:$0xff]  ;;  %s511_s21 = sshll.u32 %s805_s20, 3 }
   0xd   : > { %v171_v3 = vld [vmem:[%s639_s19 + $0x80] sm:$0xff]  ;;  %551 = vmatpush3.bf16.msra.mxu0 %v594_v0  ;;  %585 = vmatpush3.bf16.msra.mxu1 %v594_v0  ;;  %v187_v4 = vpack.c.bf16 %v156_v2, %v155_v1  ;;  %v188_v9 = vpack.c.bf16 %v158_v7, %v157_v6  ;;  %v173_v10 = vld [vmem:[%s639_s19 + $0x90] sm:$0xff]  ;;  %v174_v11 = vld [vmem:[%s639_s19 + $0x98] sm:$0xff]  ;;  %s699_s26 = scalar_lea.vmem %s803_s3, %s511_s21 }
   0xe   : > { %v195_v8 = vpack.c.bf16 %v172_v5, %v171_v3  ;;  %v159_v12 = vld [vmem:[%s639_s19 + $0x20] sm:$0xff]  ;;  %v196_v13 = vpack.c.bf16 %v174_v11, %v173_v10  ;;  %v160_v14 = vld [vmem:[%s639_s19 + $0x28] sm:$0xff]  ;;  %v161_v19 = vld [vmem:[%s639_s19 + $0x30] sm:$0xff] }
   0xf   : > { %552 = vmatprep.mubr.msk.bf16.mxu0 %vm218_vm0, %v187_v4  ;;  %v175_v15 = vld [vmem:[%s639_s19 + $0xa0] sm:$0xff]  ;;  %v176_v16 = vld [vmem:[%s639_s19 + $0xa8] sm:$0xff]  ;;  %v189_v17 = vpack.c.bf16 %v160_v14, %v159_v12  ;;  %v162_v20 = vld [vmem:[%s639_s19 + $0x38] sm:$0xff] }
  0x10   : > { %568 = vmatprep.mubr.msk.bf16.mxu1 %vm218_vm0, %v195_v8  ;;  %553 = vmatmul.mubr.msk.bf16.vlgmr.msra.gmra.mxu0 %vm218_vm0, %v188_v9  ;;  %v197_v18 = vpack.c.bf16 %v176_v16, %v175_v15  ;;  %v177_v21 = vld [vmem:[%s639_s19 + $0xb0] sm:$0xff]  ;;  %v178_v22 = vld [vmem:[%s639_s19 + $0xb8] sm:$0xff]  ;;  %v163_v23 = vld [vmem:[%s639_s19 + $0x40] sm:$0xff]  ;;  %v190_v27 = vpack.c.bf16 %v162_v20, %v161_v19 }
  0x11   : > { %569 = vmatmul.mubr.msk.bf16.vlgmr.msra.gmra.mxu1 %vm218_vm0, %v196_v13  ;;  %556 = vmatprep.mubr.msk.bf16.mxu0 %vm218_vm0, %v189_v17  ;;  %v164_v24 = vld [vmem:[%s639_s19 + $0x48] sm:$0xff]  ;;  %v179_v25 = vld [vmem:[%s639_s19 + $0xc0] sm:$0xff]  ;;  %v198_v28 = vpack.c.bf16 %v178_v22, %v177_v21  ;;  %v165_v31 = vld [vmem:[%s639_s19 + $0x50] sm:$0xff] }
  0x12   : > { %572 = vmatprep.mubr.msk.bf16.mxu1 %vm218_vm0, %v197_v18  ;;  %v180_v26 = vld [vmem:[%s639_s19 + $0xc8] sm:$0xff]  ;;  %v191_v29 = vpack.c.bf16 %v164_v24, %v163_v23  ;;  %v166_v32 = vld [vmem:[%s639_s19 + $0x58] sm:$0xff]  ;;  %v181_v33 = vld [vmem:[%s639_s19 + $0xd0] sm:$0xff] }
  0x13   : > { %v199_v30 = vpack.c.bf16 %v180_v26, %v179_v25  ;;  %v182_v34 = vld [vmem:[%s639_s19 + $0xd8] sm:$0xff]  ;;  %v167_v35 = vld [vmem:[%s639_s19 + $0x60] sm:$0xff]  ;;  %v168_v36 = vld [vmem:[%s639_s19 + $0x68] sm:$0xff]  ;;  %v192_v39 = vpack.c.bf16 %v166_v32, %v165_v31 }
  0x14   : > { %v183_v37 = vld [vmem:[%s639_s19 + $0xe0] sm:$0xff]  ;;  %v184_v38 = vld [vmem:[%s639_s19 + $0xe8] sm:$0xff]  ;;  %v200_v40 = vpack.c.bf16 %v182_v34, %v181_v33  ;;  %v193_v41 = vpack.c.bf16 %v168_v36, %v167_v35  ;;  %v169_v43 = vld [vmem:[%s639_s19 + $0x70] sm:$0xff] }
  0x15   : > { %v201_v42 = vpack.c.bf16 %v184_v38, %v183_v37  ;;  %v170_v44 = vld [vmem:[%s639_s19 + $0x78] sm:$0xff]  ;;  %v185_v45 = vld [vmem:[%s639_s19 + $0xf0] sm:$0xff]  ;;  %v694_v49 = vld [vmem:[%s802_s2] ss:$0 sm:$0xff] }
  0x16   : > { %v186_v46 = vld [vmem:[%s639_s19 + $0xf8] sm:$0xff]  ;;  %v194_v47 = vpack.c.bf16 %v170_v44, %v169_v43 }
  0x17   : > { %v202_v48 = vpack.c.bf16 %v186_v46, %v185_v45 }
  0x18   : > { %557 = vmatmul.mubr.msk.bf16.gmra.mxu0 %vm218_vm0, %v190_v27 }
  0x19   : > { %573 = vmatmul.mubr.msk.bf16.gmra.mxu1 %vm218_vm0, %v198_v28  ;;  %560 = vmatprep.mubr.msk.bf16.mxu0 %vm218_vm0, %v191_v29 }
  0x1a   : > { %576 = vmatprep.mubr.msk.bf16.mxu1 %vm218_vm0, %v199_v30 }
  0x20   : > { %561 = vmatmul.mubr.msk.bf16.gmra.mxu0 %vm218_vm0, %v192_v39 }
  0x21   : > { %577 = vmatmul.mubr.msk.bf16.gmra.mxu1 %vm218_vm0, %v200_v40  ;;  %564 = vmatprep.mubr.msk.bf16.mxu0 %vm218_vm0, %v193_v41 }
  0x22   : > { %580 = vmatprep.mubr.msk.bf16.mxu1 %vm218_vm0, %v201_v42 }
  0x28   : > { %565 = vmatmul.mubr.msk.bf16.gmra.mxu0 %vm218_vm0, %v194_v47 }
  0x29   : > { %581 = vmatmul.mubr.msk.bf16.gmra.mxu1 %vm218_vm0, %v202_v48 }
  0xd0   : > { %v554_v50 = vpop.f32.mrf.mxu0 }
  0xd1   : > { %v310_v51 = vadd.f32 %v554_v50, %v694_v49  ;;  %v570_v52 = vpop.f32.mrf.mxu1 }
  0xd2   : > { %v374_v53 = vadd.f32 %v570_v52, %v694_v49  ;;  %v301_v54 = vpop.f32.mrf.mxu0 }
  0xd3   : > { %430 = vst.msk [vmem:[%s699_s26 + $0x10] sm:$0xff] %vm218_vm0, %v310_v51  ;;  %v302_v55 = vadd.f32 %v694_v49, %v301_v54  ;;  %v365_v56 = vpop.f32.mrf.mxu1 }
  0xd4   : > { %446 = vst.msk [vmem:[%s699_s26 + $0x90] sm:$0xff] %vm218_vm0, %v374_v53  ;;  %v366_v57 = vadd.f32 %v694_v49, %v365_v56  ;;  %v555_v58 = vpop.f32.mrf.mxu0 }
  0xd5   : > { %428 = vst.msk [vmem:[%s699_s26] sm:$0xff] %vm218_vm0, %v302_v55  ;;  %v313_v59 = vadd.f32 %v555_v58, %v694_v49  ;;  %v571_v60 = vpop.f32.mrf.mxu1 }
  0xd6   : > { %444 = vst.msk [vmem:[%s699_s26 + $0x80] sm:$0xff] %vm218_vm0, %v366_v57  ;;  %v377_v61 = vadd.f32 %v571_v60, %v694_v49  ;;  %v304_v62 = vpop.f32.mrf.mxu0 }
  0xd7   : > { %431 = vst.msk [vmem:[%s699_s26 + $0x18] sm:$0xff] %vm218_vm0, %v313_v59  ;;  %v305_v63 = vadd.f32 %v694_v49, %v304_v62  ;;  %v368_v0 = vpop.f32.mrf.mxu1 }
  0xd8   : > { %447 = vst.msk [vmem:[%s699_s26 + $0x98] sm:$0xff] %vm218_vm0, %v377_v61  ;;  %v369_v1 = vadd.f32 %v694_v49, %v368_v0  ;;  %v558_v2 = vpop.f32.mrf.mxu0 }
  0xd9   : > { %429 = vst.msk [vmem:[%s699_s26 + $0x8] sm:$0xff] %vm218_vm0, %v305_v63  ;;  %v326_v3 = vadd.f32 %v558_v2, %v694_v49  ;;  %v574_v4 = vpop.f32.mrf.mxu1 }
  0xda   : > { %445 = vst.msk [vmem:[%s699_s26 + $0x88] sm:$0xff] %vm218_vm0, %v369_v1  ;;  %v390_v5 = vadd.f32 %v574_v4, %v694_v49  ;;  %v317_v6 = vpop.f32.mrf.mxu0 }
  0xdb   : > { %434 = vst.msk [vmem:[%s699_s26 + $0x30] sm:$0xff] %vm218_vm0, %v326_v3  ;;  %v318_v7 = vadd.f32 %v694_v49, %v317_v6  ;;  %v381_v8 = vpop.f32.mrf.mxu1 }
  0xdc   : > { %450 = vst.msk [vmem:[%s699_s26 + $0xb0] sm:$0xff] %vm218_vm0, %v390_v5  ;;  %v382_v9 = vadd.f32 %v694_v49, %v381_v8  ;;  %v559_v10 = vpop.f32.mrf.mxu0 }
  0xdd   : > { %432 = vst.msk [vmem:[%s699_s26 + $0x20] sm:$0xff] %vm218_vm0, %v318_v7  ;;  %v329_v11 = vadd.f32 %v559_v10, %v694_v49  ;;  %v575_v12 = vpop.f32.mrf.mxu1 }
  0xde   : > { %448 = vst.msk [vmem:[%s699_s26 + $0xa0] sm:$0xff] %vm218_vm0, %v382_v9  ;;  %v393_v13 = vadd.f32 %v575_v12, %v694_v49  ;;  %v320_v14 = vpop.f32.mrf.mxu0 }
  0xdf   : > { %435 = vst.msk [vmem:[%s699_s26 + $0x38] sm:$0xff] %vm218_vm0, %v329_v11  ;;  %v321_v15 = vadd.f32 %v694_v49, %v320_v14  ;;  %v384_v16 = vpop.f32.mrf.mxu1 }
  0xe0   : > { %451 = vst.msk [vmem:[%s699_s26 + $0xb8] sm:$0xff] %vm218_vm0, %v393_v13  ;;  %v385_v17 = vadd.f32 %v694_v49, %v384_v16  ;;  %v562_v18 = vpop.f32.mrf.mxu0 }
  0xe1   : > { %433 = vst.msk [vmem:[%s699_s26 + $0x28] sm:$0xff] %vm218_vm0, %v321_v15  ;;  %v342_v19 = vadd.f32 %v562_v18, %v694_v49  ;;  %v578_v20 = vpop.f32.mrf.mxu1 }
  0xe2   : > { %449 = vst.msk [vmem:[%s699_s26 + $0xa8] sm:$0xff] %vm218_vm0, %v385_v17  ;;  %v406_v21 = vadd.f32 %v578_v20, %v694_v49  ;;  %v333_v22 = vpop.f32.mrf.mxu0 }
  0xe3   : > { %438 = vst.msk [vmem:[%s699_s26 + $0x50] sm:$0xff] %vm218_vm0, %v342_v19  ;;  %v334_v23 = vadd.f32 %v694_v49, %v333_v22  ;;  %v397_v24 = vpop.f32.mrf.mxu1 }
  0xe4   : > { %454 = vst.msk [vmem:[%s699_s26 + $0xd0] sm:$0xff] %vm218_vm0, %v406_v21  ;;  %v398_v25 = vadd.f32 %v694_v49, %v397_v24  ;;  %v563_v26 = vpop.f32.mrf.mxu0 }
  0xe5   : > { %436 = vst.msk [vmem:[%s699_s26 + $0x40] sm:$0xff] %vm218_vm0, %v334_v23  ;;  %v345_v27 = vadd.f32 %v563_v26, %v694_v49  ;;  %v579_v28 = vpop.f32.mrf.mxu1 }
  0xe6   : > { %452 = vst.msk [vmem:[%s699_s26 + $0xc0] sm:$0xff] %vm218_vm0, %v398_v25  ;;  %v409_v29 = vadd.f32 %v579_v28, %v694_v49  ;;  %v336_v30 = vpop.f32.mrf.mxu0 }
  0xe7   : > { %439 = vst.msk [vmem:[%s699_s26 + $0x58] sm:$0xff] %vm218_vm0, %v345_v27  ;;  %v337_v31 = vadd.f32 %v694_v49, %v336_v30  ;;  %v400_v32 = vpop.f32.mrf.mxu1 }
  0xe8   : > { %455 = vst.msk [vmem:[%s699_s26 + $0xd8] sm:$0xff] %vm218_vm0, %v409_v29  ;;  %v401_v33 = vadd.f32 %v694_v49, %v400_v32  ;;  %v566_v34 = vpop.f32.mrf.mxu0 }
  0xe9   : > { %437 = vst.msk [vmem:[%s699_s26 + $0x48] sm:$0xff] %vm218_vm0, %v337_v31  ;;  %v358_v35 = vadd.f32 %v566_v34, %v694_v49  ;;  %v582_v36 = vpop.f32.mrf.mxu1 }
  0xea   : > { %453 = vst.msk [vmem:[%s699_s26 + $0xc8] sm:$0xff] %vm218_vm0, %v401_v33  ;;  %v422_v37 = vadd.f32 %v582_v36, %v694_v49  ;;  %v349_v38 = vpop.f32.mrf.mxu0 }
  0xeb   : > { %442 = vst.msk [vmem:[%s699_s26 + $0x70] sm:$0xff] %vm218_vm0, %v358_v35  ;;  %v350_v39 = vadd.f32 %v694_v49, %v349_v38  ;;  %v413_v40 = vpop.f32.mrf.mxu1 }
  0xec   : > { %458 = vst.msk [vmem:[%s699_s26 + $0xf0] sm:$0xff] %vm218_vm0, %v422_v37  ;;  %v414_v41 = vadd.f32 %v694_v49, %v413_v40  ;;  %v567_v42 = vpop.f32.mrf.mxu0 }
  0xed   : > { %440 = vst.msk [vmem:[%s699_s26 + $0x60] sm:$0xff] %vm218_vm0, %v350_v39  ;;  %v361_v43 = vadd.f32 %v567_v42, %v694_v49  ;;  %v583_v44 = vpop.f32.mrf.mxu1 }
  0xee   : > { %456 = vst.msk [vmem:[%s699_s26 + $0xe0] sm:$0xff] %vm218_vm0, %v414_v41  ;;  %v425_v45 = vadd.f32 %v583_v44, %v694_v49  ;;  %v352_v46 = vpop.f32.mrf.mxu0 }
  0xef   : > { %443 = vst.msk [vmem:[%s699_s26 + $0x78] sm:$0xff] %vm218_vm0, %v361_v43  ;;  %v353_v47 = vadd.f32 %v694_v49, %v352_v46  ;;  %v416_v48 = vpop.f32.mrf.mxu1 }
  0xf0   : > { %459 = vst.msk [vmem:[%s699_s26 + $0xf8] sm:$0xff] %vm218_vm0, %v425_v45  ;;  %v417_v50 = vadd.f32 %v694_v49, %v416_v48 }
  0xf1   : > { %441 = vst.msk [vmem:[%s699_s26 + $0x68] sm:$0xff] %vm218_vm0, %v353_v47 }
  0xf2   : > { %457 = vst.msk [vmem:[%s699_s26 + $0xe8] sm:$0xff] %vm218_vm0, %v417_v50 }
  0xf3 PF: > { %s13_s12 = sadd.s32 1, %s601_s12  }
  0xf4   : > { %p10_p4 = scmp.ge.s32.totalorder %s13_s12, 4  }
  0xf6   :  { %12 = sbr.rel (!%p10_p4) target bundleno = 1 (0x1), region = 60 }

// kernel: inception_a_forward.11
= control target key start
LH: loop header
LB: loop body
LE: loop exit
PB: predicated region body
PF: predicated region fallthrough
CT: control target
= control target key end

     0   :  { %s3880_s12 = smov 0   ;;  %s4955_s0 = inlined_call_operand.vmem [shape: f32[808,16], index: 0, kind: input, shape index: {}]   ;;  %s4956_s1 = inlined_call_operand.vmem [shape: bf16[9,16,24], index: 1, kind: input, shape index: {}]   ;;  %s4957_s2 = inlined_call_operand.vmem [shape: f32[1,24], index: 2, kind: input, shape index: {}]   ;;  %s4958_s3 = inlined_call_operand.vmem [shape: f32[768,24], index: 3, kind: output, shape index: {}]  }
   0x1 LB: > { %s2931_s13 = sadd.s32 4294967295, %s3858_s12   ;;  %p2934_p0 = scmp.ge.s32.totalorder %s3858_s12, 1  ;;  %s3858_s12 = sphi %s3880_s12, %s13_s12  }
   0x2   : > { %p127_p1 = scmp.lt.s32.totalorder %s3858_s12, 4 }
   0x4   : > { %p128_p2 = pnand %p2934_p0, %p127_p1 }
   0x6   : > { %131 = sbr.rel (%p128_p2) target bundleno = 504 (0x1f8), region = 32 }
   0xb   : > { %v3843_v0 = vld [vmem:[%s4956_s1 + $0x8] sm:$0xff]   ;;  %s2937_s16 = sshll.u32 %s2931_s13, 8  ;;  %v3844_v1 = vld [vmem:[%s4956_s1] sm:$0xff]   ;;  %vm264_vm0 = vcmask 130048   ;;  %v3845_v14 = vld [vmem:[%s4956_s1 + $0x10] sm:$0xff]   ;;  %s2935_s9 = sshll.u32 %s2931_s13, 5 }
   0xc   : > { %s3896_s19 = scalar_lea.vmem %s4955_s0, %s2937_s16  ;;  %3527 = vmatprep.subr.bf16.mxu0 %v3843_v0  ;;  %3833 = vmatprep.subr.bf16.mxu1 %v3843_v0  ;;  %v3846_v41 = vld [vmem:[%s4956_s1 + $0x18] sm:$0xff]   ;;  %v3847_v43 = vld [vmem:[%s4956_s1 + $0x20] sm:$0xff]   ;;  %p147_p3 = scmp.lt.s32.totalorder %s2935_s9, 95  ;;  %vm2828_vm1 = vcmask 195584  }
   0xd   : > { %v2939_v2 = vld [vmem:[%s3896_s19 + $0x1] sm:$0xff]  ;;  %v2940_v3 = vld [vmem:[%s3896_s19 + $0x9] sm:$0xff]  ;;  %3528 = vmatpush3.bf16.msra.mxu0 %v3843_v0  ;;  %3834 = vmatpush3.bf16.msra.mxu1 %v3843_v0  ;;  %v2941_v7 = vld [vmem:[%s3896_s19 + $0x11] sm:$0xff] }
   0xe   : > { %v2955_v4 = vld [vmem:[%s3896_s19 + $0x81] sm:$0xff]  ;;  %v239_v5 = vpack.c.bf16 %v2940_v3, %v2939_v2  ;;  %v2956_v6 = vld [vmem:[%s3896_s19 + $0x89] sm:$0xff]  ;;  %v2942_v8 = vld [vmem:[%s3896_s19 + $0x19] sm:$0xff]  ;;  %3561 = vmatprep.subr.bf16.mxu1 %v3844_v1  ;;  %3595 = vmatprep.subr.bf16.mxu0 %v3845_v14  ;;  %s5040_s9 = smov (!%p147_p3, %s2935_s9), 95 }
   0xf   : > { %v247_v9 = vpack.c.bf16 %v2956_v6, %v2955_v4  ;;  %v240_v10 = vpack.c.bf16 %v2942_v8, %v2941_v7  ;;  %v2957_v11 = vld [vmem:[%s3896_s19 + $0x91] sm:$0xff]  ;;  %v2958_v12 = vld [vmem:[%s3896_s19 + $0x99] sm:$0xff]  ;;  %v2943_v15 = vld [vmem:[%s3896_s19 + $0x21] sm:$0xff]  ;;  %s2936_s10 = sshll.u32 %s5040_s9, 3 }
  0x10   : > { %3529 = vmatprep.mubr.msk.bf16.mxu0 %vm264_vm0, %v239_v5  ;;  %v248_v13 = vpack.c.bf16 %v2958_v12, %v2957_v11  ;;  %v2944_v16 = vld [vmem:[%s3896_s19 + $0x29] sm:$0xff]  ;;  %v2959_v17 = vld [vmem:[%s3896_s19 + $0xa1] sm:$0xff]  ;;  %v2945_v21 = vld [vmem:[%s3896_s19 + $0x31] sm:$0xff]  ;;  %s4773_s16 = scalar_lea.vmem %s4958_s3, %s2936_s10 }
  0x11   : > { %3545 = vmatprep.mubr.msk.bf16.mxu1 %vm264_vm0, %v247_v9  ;;  %3530 = vmatmul.mubr.msk.bf16.vlgmr.msra.gmra.mxu0 %vm264_vm0, %v240_v10  ;;  %v2960_v18 = vld [vmem:[%s3896_s19 + $0xa9] sm:$0xff]  ;;  %v241_v19 = vpack.c.bf16 %v2944_v16, %v2943_v15  ;;  %v2946_v22 = vld [vmem:[%s3896_s19 + $0x39] sm:$0xff]  ;;  %v2961_v23 = vld [vmem:[%s3896_s19 + $0xb1] sm:$0xff] }
  0x12   : > { %3546 = vmatmul.mubr.msk.bf16.vlgmr.msra.gmra.mxu1 %vm264_vm0, %v248_v13  ;;  %v249_v20 = vpack.c.bf16 %v2960_v18, %v2959_v17  ;;  %3596 = vmatpush3.bf16.msra.mxu0 %v3845_v14  ;;  %v2962_v24 = vld [vmem:[%s3896_s19 + $0xb9] sm:$0xff]  ;;  %v2947_v25 = vld [vmem:[%s3896_s19 + $0x41] sm:$0xff]  ;;  %v2948_v26 = vld [vmem:[%s3896_s19 + $0x49] sm:$0xff]  ;;  %v242_v29 = vpack.c.bf16 %v2946_v22, %v2945_v21 }
  0x13   : > { %3562 = vmatpush3.bf16.msra.mxu1 %v3844_v1  ;;  %3533 = vmatprep.mubr.msk.bf16.mxu0 %vm264_vm0, %v241_v19  ;;  %v2963_v27 = vld [vmem:[%s3896_s19 + $0xc1] sm:$0xff]  ;;  %v2964_v28 = vld [vmem:[%s3896_s19 + $0xc9] sm:$0xff]  ;;  %v250_v30 = vpack.c.bf16 %v2962_v24, %v2961_v23  ;;  %v243_v31 = vpack.c.bf16 %v2948_v26, %v2947_v25  ;;  %v2949_v33 = vld [vmem:[%s3896_s19 + $0x51] sm:$0xff] }
  0x14   : > { %3549 = vmatprep.mubr.msk.bf16.mxu1 %vm264_vm0, %v249_v20  ;;  %v251_v32 = vpack.c.bf16 %v2964_v28, %v2963_v27  ;;  %v2950_v34 = vld [vmem:[%s3896_s19 + $0x59] sm:$0xff]  ;;  %v2965_v35 = vld [vmem:[%s3896_s19 + $0xd1] sm:$0xff]  ;;  %v2951_v37 = vld [vmem:[%s3896_s19 + $0x61] sm:$0xff]  ;;  %3629 = vmatprep.subr.bf16.mxu1 %v3846_v41 }
  0x15   : > { %v2966_v36 = vld [vmem:[%s3896_s19 + $0xd9] sm:$0xff]  ;;  %v2952_v38 = vld [vmem:[%s3896_s19 + $0x69] sm:$0xff]  ;;  %v2967_v39 = vld [vmem:[%s3896_s19 + $0xe1] sm:$0xff]  ;;  %v244_v42 = vpack.c.bf16 %v2950_v34, %v2949_v33  ;;  %3663 = vmatprep.subr.bf16.mxu0 %v3847_v43 }
  0x16   : > { %v2968_v40 = vld [vmem:[%s3896_s19 + $0xe9] sm:$0xff]  ;;  %v252_v44 = vpack.c.bf16 %v2966_v36, %v2965_v35  ;;  %v245_v45 = vpack.c.bf16 %v2952_v38, %v2951_v37  ;;  %v2953_v47 = vld [vmem:[%s3896_s19 + $0x71] sm:$0xff]  ;;  %v2954_v48 = vld [vmem:[%s3896_s19 + $0x79] sm:$0xff] }
  0x17   : > { %v253_v46 = vpack.c.bf16 %v2968_v40, %v2967_v39  ;;  %v2969_v49 = vld [vmem:[%s3896_s19 + $0xf1] sm:$0xff]  ;;  %v2970_v50 = vld [vmem:[%s3896_s19 + $0xf9] sm:$0xff]  ;;  %v3008_v51 = vld [vmem:[%s3896_s19 + $0x2] sm:$0xff]  ;;  %v246_v55 = vpack.c.bf16 %v2954_v48, %v2953_v47 }
  0x18   : > { %v3009_v52 = vld [vmem:[%s3896_s19 + $0xa] sm:$0xff]  ;;  %v155_v53 = vld [vmem:[%s3896_s19] sm:$0xff]  ;;  %v254_v56 = vpack.c.bf16 %v2970_v50, %v2969_v49  ;;  %v3010_v59 = vld [vmem:[%s3896_s19 + $0x12] sm:$0xff] }
  0x19   : > { %3534 = vmatmul.mubr.msk.bf16.gmra.mxu0 %vm264_vm0, %v242_v29  ;;  %v156_v54 = vld [vmem:[%s3896_s19 + $0x8] sm:$0xff]  ;;  %v723_v57 = vpack.c.bf16 %v3009_v52, %v3008_v51  ;;  %v3011_v60 = vld [vmem:[%s3896_s19 + $0x1a] sm:$0xff]  ;;  %v157_v61 = vld [vmem:[%s3896_s19 + $0x10] sm:$0xff] }
  0x1a   : > { %3550 = vmatmul.mubr.msk.bf16.gmra.mxu1 %vm264_vm0, %v250_v30  ;;  %3537 = vmatprep.mubr.msk.bf16.mxu0 %vm264_vm0, %v243_v31  ;;  %v187_v58 = vpack.c.bf16 %v156_v54, %v155_v53  ;;  %v158_v62 = vld [vmem:[%s3896_s19 + $0x18] sm:$0xff]  ;;  %v159_v63 = vld [vmem:[%s3896_s19 + $0x20] sm:$0xff]  ;;  %v160_v0 = vld [vmem:[%s3896_s19 + $0x28] sm:$0xff]  ;;  %v3970_v1 = vpack.c.bf16 %v3011_v60, %v3010_v59 }
  0x1b   : > { %3553 = vmatprep.mubr.msk.bf16.mxu1 %vm264_vm0, %v251_v32  ;;  %v3012_v2 = vld [vmem:[%s3896_s19 + $0x22] sm:$0xff]  ;;  %v3013_v3 = vld [vmem:[%s3896_s19 + $0x2a] sm:$0xff]  ;;  %v188_v4 = vpack.c.bf16 %v158_v62, %v157_v61  ;;  %v189_v5 = vpack.c.bf16 %v160_v0, %v159_v63  ;;  %v3014_v7 = vld [vmem:[%s3896_s19 + $0x32] sm:$0xff] }
  0x1c   : > { %v3974_v6 = vpack.c.bf16 %v3013_v3, %v3012_v2  ;;  %v161_v8 = vld [vmem:[%s3896_s19 + $0x30] sm:$0xff]  ;;  %v162_v9 = vld [vmem:[%s3896_s19 + $0x38] sm:$0xff]  ;;  %v3986_v11 = vld [vmem:[%s4956_s1 + $0x28] sm:$0xff]  }
  0x1d   : > { %v3015_v10 = vld [vmem:[%s3896_s19 + $0x3a] sm:$0xff]  ;;  %v3016_v12 = vld [vmem:[%s3896_s19 + $0x42] sm:$0xff]  ;;  %v3017_v13 = vld [vmem:[%s3896_s19 + $0x4a] sm:$0xff]  ;;  %v190_v18 = vpack.c.bf16 %v162_v9, %v161_v8 }
  0x1e   : > { %v3994_v14 = vld [vmem:[%s4956_s1 + $0x30] sm:$0xff]   ;;  %v163_v15 = vld [vmem:[%s3896_s19 + $0x40] sm:$0xff]  ;;  %v164_v16 = vld [vmem:[%s3896_s19 + $0x48] sm:$0xff]  ;;  %v4001_v17 = vpack.c.bf16 %v3015_v10, %v3014_v7  ;;  %v4004_v19 = vpack.c.bf16 %v3017_v13, %v3016_v12 }
  0x1f   : > { %v191_v20 = vpack.c.bf16 %v164_v16, %v163_v15  ;;  %v165_v21 = vld [vmem:[%s3896_s19 + $0x50] sm:$0xff]  ;;  %v3019_v23 = vld [vmem:[%s3896_s19 + $0x5a] sm:$0xff]  ;;  %v3020_v25 = vld [vmem:[%s3896_s19 + $0x62] sm:$0xff] }
  0x20   : > { %v3018_v22 = vld [vmem:[%s3896_s19 + $0x52] sm:$0xff]  ;;  %v3021_v26 = vld [vmem:[%s3896_s19 + $0x6a] sm:$0xff]  ;;  %v167_v27 = vld [vmem:[%s3896_s19 + $0x60] sm:$0xff] }
  0x21   : > { %3538 = vmatmul.mubr.msk.bf16.gmra.mxu0 %vm264_vm0, %v244_v42  ;;  %v166_v24 = vld [vmem:[%s3896_s19 + $0x58] sm:$0xff]  ;;  %v168_v28 = vld [vmem:[%s3896_s19 + $0x68] sm:$0xff]  ;;  %v4020_v29 = vpack.c.bf16 %v3019_v23, %v3018_v22  ;;  %v4022_v31 = vpack.c.bf16 %v3021_v26, %v3020_v25  ;;  %v169_v33 = vld [vmem:[%s3896_s19 + $0x70] sm:$0xff] }
  0x22   : > { %3554 = vmatmul.mubr.msk.bf16.gmra.mxu1 %vm264_vm0, %v252_v44  ;;  %3541 = vmatprep.mubr.msk.bf16.mxu0 %vm264_vm0, %v245_v45  ;;  %v192_v30 = vpack.c.bf16 %v166_v24, %v165_v21  ;;  %v193_v32 = vpack.c.bf16 %v168_v28, %v167_v27  ;;  %v3022_v34 = vld [vmem:[%s3896_s19 + $0x72] sm:$0xff]  ;;  %v3023_v35 = vld [vmem:[%s3896_s19 + $0x7a] sm:$0xff]  ;;  %v3024_v37 = vld [vmem:[%s3896_s19 + $0x82] sm:$0xff] }
  0x23   : > { %3557 = vmatprep.mubr.msk.bf16.mxu1 %vm264_vm0, %v253_v46  ;;  %v170_v36 = vld [vmem:[%s3896_s19 + $0x78] sm:$0xff]  ;;  %v3025_v38 = vld [vmem:[%s3896_s19 + $0x8a] sm:$0xff]  ;;  %v171_v39 = vld [vmem:[%s3896_s19 + $0x80] sm:$0xff] }
  0x24   : > { %v172_v40 = vld [vmem:[%s3896_s19 + $0x88] sm:$0xff]  ;;  %v194_v42 = vpack.c.bf16 %v170_v36, %v169_v33  ;;  %v173_v45 = vld [vmem:[%s3896_s19 + $0x90] sm:$0xff]  ;;  %v3027_v47 = vld [vmem:[%s3896_s19 + $0x9a] sm:$0xff] }
  0x25   : > { %v195_v44 = vpack.c.bf16 %v172_v40, %v171_v39  ;;  %v3026_v46 = vld [vmem:[%s3896_s19 + $0x92] sm:$0xff]  ;;  %v3028_v49 = vld [vmem:[%s3896_s19 + $0xa2] sm:$0xff]  ;;  %v3029_v50 = vld [vmem:[%s3896_s19 + $0xaa] sm:$0xff] }
  0x26   : > { %v174_v48 = vld [vmem:[%s3896_s19 + $0x98] sm:$0xff]  ;;  %v175_v51 = vld [vmem:[%s3896_s19 + $0xa0] sm:$0xff]  ;;  %v176_v52 = vld [vmem:[%s3896_s19 + $0xa8] sm:$0xff]  ;;  %v4056_v53 = vpack.c.bf16 %v3027_v47, %v3026_v46 }
  0x27   : > { %v196_v54 = vpack.c.bf16 %v174_v48, %v173_v45  ;;  %v3031_v59 = vld [vmem:[%s3896_s19 + $0xba] sm:$0xff]  ;;  %v3032_v61 = vld [vmem:[%s3896_s19 + $0xc2] sm:$0xff]  ;;  %v3033_v62 = vld [vmem:[%s3896_s19 + $0xca] sm:$0xff] }
  0x28   : > { %v178_v60 = vld [vmem:[%s3896_s19 + $0xb8] sm:$0xff]  ;;  %v179_v63 = vld [vmem:[%s3896_s19 + $0xc0] sm:$0xff]  ;;  %v180_v0 = vld [vmem:[%s3896_s19 + $0xc8] sm:$0xff] }
  0x29   : > { %3542 = vmatmul.mubr.msk.bf16.gmra.mxu0 %vm264_vm0, %v246_v55  ;;  %v4058_v55 = vpack.c.bf16 %v3029_v50, %v3028_v49  ;;  %v181_v7 = vld [vmem:[%s3896_s19 + $0xd0] sm:$0xff]  ;;  %v3035_v9 = vld [vmem:[%s3896_s19 + $0xda] sm:$0xff]  ;;  %v3036_v12 = vld [vmem:[%s3896_s19 + $0xe2] sm:$0xff] }
  0x2a   : > { %3558 = vmatmul.mubr.msk.bf16.gmra.mxu1 %vm264_vm0, %v254_v56  ;;  %3597 = vmatprep.mubr.msk.bf16.mxu0 %vm264_vm0, %v723_v57  ;;  %v197_v56 = vpack.c.bf16 %v176_v52, %v175_v51  ;;  %v177_v57 = vld [vmem:[%s3896_s19 + $0xb0] sm:$0xff]  ;;  %v182_v10 = vld [vmem:[%s3896_s19 + $0xd8] sm:$0xff]  ;;  %v183_v15 = vld [vmem:[%s3896_s19 + $0xe0] sm:$0xff] }
  0x2b   : > { %3563 = vmatprep.mubr.msk.bf16.mxu1 %vm264_vm0, %v187_v58  ;;  %v3030_v58 = vld [vmem:[%s3896_s19 + $0xb2] sm:$0xff]  ;;  %v198_v3 = vpack.c.bf16 %v178_v60, %v177_v57  ;;  %v3037_v13 = vld [vmem:[%s3896_s19 + $0xea] sm:$0xff]  ;;  %v3039_v25 = vld [vmem:[%s3896_s19 + $0xfa] sm:$0xff] }
  0x2c   : > { %v4074_v2 = vpack.c.bf16 %v3031_v59, %v3030_v58  ;;  %v3034_v8 = vld [vmem:[%s3896_s19 + $0xd2] sm:$0xff]  ;;  %v184_v16 = vld [vmem:[%s3896_s19 + $0xe8] sm:$0xff]  ;;  %v4094_v21 = vpack.c.bf16 %v3037_v13, %v3036_v12  ;;  %v3113_v28 = vld [vmem:[%s3896_s19 + $0x1b] sm:$0xff] }
  0x2d   : > { %v201_v22 = vpack.c.bf16 %v184_v16, %v183_v15  ;;  %v185_v23 = vld [vmem:[%s3896_s19 + $0xf0] sm:$0xff]  ;;  %v186_v26 = vld [vmem:[%s3896_s19 + $0xf8] sm:$0xff]  ;;  %v3216_v13 = vld [vmem:[%s3896_s19 + $0x24] sm:$0xff] }
  0x2e   : > { %v3038_v24 = vld [vmem:[%s3896_s19 + $0xf2] sm:$0xff]  ;;  %v3121_v46 = vld [vmem:[%s3896_s19 + $0x5b] sm:$0xff]  ;;  %v3091_v12 = vld [vmem:[%s3896_s19 + $0x10a] sm:$0xff] }
  0x2f   : > { %v3112_v27 = vld [vmem:[%s3896_s19 + $0x13] sm:$0xff]  ;;  %v3125_v48 = vld [vmem:[%s3896_s19 + $0x7b] sm:$0xff]  ;;  %v3127_v51 = vld [vmem:[%s3896_s19 + $0x8b] sm:$0xff] }
  0x30   : > { %v1323_v33 = vpack.c.bf16 %v3113_v28, %v3112_v27  ;;  %v4123_v40 = vld [vmem:[%s4956_s1 + $0x38] sm:$0xff]   ;;  %v3131_v57 = vld [vmem:[%s3896_s19 + $0xab] sm:$0xff] }
  0x31   : > { %3598 = vmatmul.mubr.msk.bf16.vlgmr.msra.gmra.mxu0 %vm264_vm0, %v3970_v1  ;;  %v3120_v45 = vld [vmem:[%s3896_s19 + $0x53] sm:$0xff]  ;;  %v3129_v52 = vld [vmem:[%s3896_s19 + $0x9b] sm:$0xff]  ;;  %v3220_v27 = vld [vmem:[%s3896_s19 + $0x44] sm:$0xff] }
  0x32   : > { %3564 = vmatmul.mubr.msk.bf16.vlgmr.msra.gmra.mxu1 %vm264_vm0, %v188_v4  ;;  %3664 = vmatpush3.bf16.msra.mxu0 %v3847_v43  ;;  %v4040_v43 = vpack.c.bf16 %v3025_v38, %v3024_v37  ;;  %v4076_v4 = vpack.c.bf16 %v3033_v62, %v3032_v61  ;;  %v3116_v37 = vld [vmem:[%s3896_s19 + $0x33] sm:$0xff]  ;;  %v3117_v38 = vld [vmem:[%s3896_s19 + $0x3b] sm:$0xff]  ;;  %v3135_v61 = vld [vmem:[%s3896_s19 + $0xcb] sm:$0xff] }
  0x33   : > { %3630 = vmatpush3.bf16.msra.mxu1 %v3846_v41  ;;  %3567 = vmatprep.mubr.msk.bf16.mxu1 %vm264_vm0, %v189_v5  ;;  %v4038_v41 = vpack.c.bf16 %v3023_v35, %v3022_v34  ;;  %v199_v5 = vpack.c.bf16 %v180_v0, %v179_v63  ;;  %v3114_v34 = vld [vmem:[%s3896_s19 + $0x23] sm:$0xff]  ;;  %v3115_v35 = vld [vmem:[%s3896_s19 + $0x2b] sm:$0xff]  ;;  %v1325_v39 = vpack.c.bf16 %v3117_v38, %v3116_v37  ;;  %v3124_v47 = vld [vmem:[%s3896_s19 + $0x73] sm:$0xff] }
  0x34   : > { %3601 = vmatprep.mubr.msk.bf16.mxu0 %vm264_vm0, %v3974_v6  ;;  %3697 = vmatprep.subr.bf16.mxu1 %v3986_v11  ;;  %v1324_v36 = vpack.c.bf16 %v3115_v35, %v3114_v34  ;;  %v1329_v50 = vpack.c.bf16 %v3125_v48, %v3124_v47  ;;  %v3133_v58 = vld [vmem:[%s3896_s19 + $0xbb] sm:$0xff]  ;;  %v3217_v15 = vld [vmem:[%s3896_s19 + $0x2c] sm:$0xff]  ;;  %v3224_v34 = vld [vmem:[%s3896_s19 + $0x64] sm:$0xff] }
  0x35   : > { %3731 = vmatprep.subr.bf16.mxu0 %v3994_v14  ;;  %v3137_v62 = vld [vmem:[%s3896_s19 + $0xdb] sm:$0xff]  ;;  %v3221_v28 = vld [vmem:[%s3896_s19 + $0x4c] sm:$0xff] }
  0x36   : > { %v3164_v16 = vld [vmem:[%s3896_s19 + $0x14] sm:$0xff]  ;;  %v3225_v35 = vld [vmem:[%s3896_s19 + $0x6c] sm:$0xff]  ;;  %v3235_v48 = vld [vmem:[%s3896_s19 + $0xbc] sm:$0xff] }
  0x37   : > { %v1927_v37 = vpack.c.bf16 %v3225_v35, %v3224_v34  ;;  %v3226_v38 = vld [vmem:[%s3896_s19 + $0x74] sm:$0xff] }
  0x38   : > { %v3234_v47 = vld [vmem:[%s3896_s19 + $0xb4] sm:$0xff] }
  0x39   : > { %3602 = vmatmul.mubr.msk.bf16.gmra.mxu0 %vm264_vm0, %v4001_v17 }
  0x3a   : > { %3568 = vmatmul.mubr.msk.bf16.gmra.mxu1 %vm264_vm0, %v190_v18  ;;  %3605 = vmatprep.mubr.msk.bf16.mxu0 %vm264_vm0, %v4004_v19  ;;  %v4092_v18 = vpack.c.bf16 %v3035_v9, %v3034_v8  ;;  %v3142_v9 = vld [vmem:[%s3896_s19 + $0x103] sm:$0xff] }
  0x3b   : > { %3571 = vmatprep.mubr.msk.bf16.mxu1 %vm264_vm0, %v191_v20  ;;  %v200_v20 = vpack.c.bf16 %v182_v10, %v181_v7  ;;  %v3143_v10 = vld [vmem:[%s3896_s19 + $0x10b] sm:$0xff] }
  0x41   : > { %3606 = vmatmul.mubr.msk.bf16.gmra.mxu0 %vm264_vm0, %v4020_v29 }
  0x42   : > { %3572 = vmatmul.mubr.msk.bf16.gmra.mxu1 %vm264_vm0, %v192_v30  ;;  %3609 = vmatprep.mubr.msk.bf16.mxu0 %vm264_vm0, %v4022_v31  ;;  %v4108_v30 = vpack.c.bf16 %v3039_v25, %v3038_v24  ;;  %v3218_v24 = vld [vmem:[%s3896_s19 + $0x34] sm:$0xff]  ;;  %v3219_v25 = vld [vmem:[%s3896_s19 + $0x3c] sm:$0xff] }
  0x43   : > { %3575 = vmatprep.mubr.msk.bf16.mxu1 %vm264_vm0, %v193_v32  ;;  %v202_v32 = vpack.c.bf16 %v186_v26, %v185_v23  ;;  %v1924_v26 = vpack.c.bf16 %v3219_v25, %v3218_v24  ;;  %v3321_v24 = vld [vmem:[%s3896_s19 + $0x2e] sm:$0xff] }
  0x49   : > { %3610 = vmatmul.mubr.msk.bf16.gmra.mxu0 %vm264_vm0, %v4038_v41 }
  0x4a   : > { %3576 = vmatmul.mubr.msk.bf16.gmra.mxu1 %vm264_vm0, %v194_v42  ;;  %3613 = vmatprep.mubr.msk.bf16.mxu0 %vm264_vm0, %v4040_v43  ;;  %v4129_v42 = vld [vmem:[%s4956_s1 + $0x40] sm:$0xff]  }
  0x4b   : > { %3579 = vmatprep.mubr.msk.bf16.mxu1 %vm264_vm0, %v195_v44  ;;  %v3119_v44 = vld [vmem:[%s3896_s19 + $0x4b] sm:$0xff] }
  0x51   : > { %3614 = vmatmul.mubr.msk.bf16.gmra.mxu0 %vm264_vm0, %v4056_v53 }
  0x52   : > { %3580 = vmatmul.mubr.msk.bf16.gmra.mxu1 %vm264_vm0, %v196_v54  ;;  %3617 = vmatprep.mubr.msk.bf16.mxu0 %vm264_vm0, %v4058_v55 }
  0x53   : > { %3583 = vmatprep.mubr.msk.bf16.mxu1 %vm264_vm0, %v197_v56 }
  0x59   : > { %3618 = vmatmul.mubr.msk.bf16.gmra.mxu0 %vm264_vm0, %v4074_v2 }
  0x5a   : > { %3584 = vmatmul.mubr.msk.bf16.gmra.mxu1 %vm264_vm0, %v198_v3  ;;  %3621 = vmatprep.mubr.msk.bf16.mxu0 %vm264_vm0, %v4076_v4  ;;  %v3139_v3 = vld [vmem:[%s3896_s19 + $0xeb] sm:$0xff] }
  0x5b   : > { %3587 = vmatprep.mubr.msk.bf16.mxu1 %vm264_vm0, %v199_v5  ;;  %v3141_v5 = vld [vmem:[%s3896_s19 + $0xfb] sm:$0xff] }
  0x61   : > { %3622 = vmatmul.mubr.msk.bf16.gmra.mxu0 %vm264_vm0, %v4092_v18 }
  0x62   : > { %3588 = vmatmul.mubr.msk.bf16.gmra.mxu1 %vm264_vm0, %v200_v20  ;;  %3625 = vmatprep.mubr.msk.bf16.mxu0 %vm264_vm0, %v4094_v21  ;;  %v1338_v20 = vpack.c.bf16 %v3143_v10, %v3142_v9 }
  0x63   : > { %3591 = vmatprep.mubr.msk.bf16.mxu1 %vm264_vm0, %v201_v22 }
  0x69   : > { %3626 = vmatmul.mubr.msk.bf16.gmra.mxu0 %vm264_vm0, %v4108_v30 }
  0x6a   : > { %3592 = vmatmul.mubr.msk.bf16.gmra.mxu1 %vm264_vm0, %v202_v32  ;;  %3665 = vmatprep.mubr.msk.bf16.mxu0 %vm264_vm0, %v1323_v33  ;;  %v3222_v32 = vld [vmem:[%s3896_s19 + $0x54] sm:$0xff]  ;;  %v3223_v33 = vld [vmem:[%s3896_s19 + $0x5c] sm:$0xff] }
  0x6b   : > { %3631 = vmatprep.mubr.msk.bf16.mxu1 %vm264_vm0, %v3970_v1  ;;  %v3118_v1 = vld [vmem:[%s3896_s19 + $0x43] sm:$0xff] }
  0x71   : > { %3666 = vmatmul.mubr.msk.bf16.vlgmr.msra.gmra.mxu0 %vm264_vm0, %v1324_v36  ;;  %v1926_v36 = vpack.c.bf16 %v3223_v33, %v3222_v32 }
  0x72   : > { %3632 = vmatmul.mubr.msk.bf16.vlgmr.msra.gmra.mxu1 %vm264_vm0, %v3974_v6  ;;  %3732 = vmatpush3.bf16.msra.mxu0 %v3994_v14  ;;  %v1326_v6 = vpack.c.bf16 %v3119_v44, %v3118_v1  ;;  %v1327_v14 = vpack.c.bf16 %v3121_v46, %v3120_v45  ;;  %v3230_v45 = vld [vmem:[%s3896_s19 + $0x94] sm:$0xff]  ;;  %v3231_v46 = vld [vmem:[%s3896_s19 + $0x9c] sm:$0xff] }
  0x73   : > { %3698 = vmatpush3.bf16.msra.mxu1 %v3986_v11  ;;  %3635 = vmatprep.mubr.msk.bf16.mxu1 %vm264_vm0, %v4001_v17  ;;  %v3122_v11 = vld [vmem:[%s3896_s19 + $0x63] sm:$0xff]  ;;  %v3123_v17 = vld [vmem:[%s3896_s19 + $0x6b] sm:$0xff] }
  0x74   : > { %3669 = vmatprep.mubr.msk.bf16.mxu0 %vm264_vm0, %v1325_v39  ;;  %3765 = vmatprep.subr.bf16.mxu1 %v4123_v40  ;;  %v1328_v49 = vpack.c.bf16 %v3123_v17, %v3122_v11  ;;  %v3227_v39 = vld [vmem:[%s3896_s19 + $0x7c] sm:$0xff]  ;;  %v1930_v11 = vpack.c.bf16 %v3231_v46, %v3230_v45  ;;  %v3324_v45 = vld [vmem:[%s3896_s19 + $0x46] sm:$0xff]  ;;  %v3325_v46 = vld [vmem:[%s3896_s19 + $0x4e] sm:$0xff] }
  0x75   : > { %3799 = vmatprep.subr.bf16.mxu0 %v4129_v42  ;;  %v1928_v1 = vpack.c.bf16 %v3227_v39, %v3226_v38  ;;  %v3270_v39 = vld [vmem:[%s3896_s19 + $0x35] sm:$0xff] }
  0x79   : > { %3670 = vmatmul.mubr.msk.bf16.gmra.mxu0 %vm264_vm0, %v1326_v6  ;;  %v3232_v6 = vld [vmem:[%s3896_s19 + $0xa4] sm:$0xff] }
  0x7a   : > { %3636 = vmatmul.mubr.msk.bf16.gmra.mxu1 %vm264_vm0, %v4004_v19  ;;  %3673 = vmatprep.mubr.msk.bf16.mxu0 %vm264_vm0, %v1327_v14  ;;  %v3126_v19 = vld [vmem:[%s3896_s19 + $0x83] sm:$0xff]  ;;  %v3233_v14 = vld [vmem:[%s3896_s19 + $0xac] sm:$0xff] }
  0x7b   : > { %3639 = vmatprep.mubr.msk.bf16.mxu1 %vm264_vm0, %v4020_v29  ;;  %v3128_v29 = vld [vmem:[%s3896_s19 + $0x93] sm:$0xff]  ;;  %v1330_v54 = vpack.c.bf16 %v3127_v51, %v3126_v19  ;;  %v1931_v17 = vpack.c.bf16 %v3233_v14, %v3232_v6  ;;  %v1932_v19 = vpack.c.bf16 %v3235_v48, %v3234_v47  ;;  %v3272_v14 = vld [vmem:[%s3896_s19 + $0x45] sm:$0xff] }
  0x7c   : > { %v1331_v56 = vpack.c.bf16 %v3129_v52, %v3128_v29 }
  0x81   : > { %3674 = vmatmul.mubr.msk.bf16.gmra.mxu0 %vm264_vm0, %v1328_v49  ;;  %v3236_v49 = vld [vmem:[%s3896_s19 + $0xc4] sm:$0xff] }
  0x82   : > { %3640 = vmatmul.mubr.msk.bf16.gmra.mxu1 %vm264_vm0, %v4022_v31  ;;  %3677 = vmatprep.mubr.msk.bf16.mxu0 %vm264_vm0, %v1329_v50  ;;  %v3130_v31 = vld [vmem:[%s3896_s19 + $0xa3] sm:$0xff]  ;;  %v3237_v50 = vld [vmem:[%s3896_s19 + $0xcc] sm:$0xff] }
  0x83   : > { %3643 = vmatprep.mubr.msk.bf16.mxu1 %vm264_vm0, %v4038_v41  ;;  %v3132_v41 = vld [vmem:[%s3896_s19 + $0xb3] sm:$0xff]  ;;  %v1332_v59 = vpack.c.bf16 %v3131_v57, %v3130_v31  ;;  %v1933_v51 = vpack.c.bf16 %v3237_v50, %v3236_v49  ;;  %v3240_v57 = vld [vmem:[%s3896_s19 + $0xe4] sm:$0xff]  ;;  %v2525_v50 = vpack.c.bf16 %v3325_v46, %v3324_v45 }
  0x84   : > { %v1333_v60 = vpack.c.bf16 %v3133_v58, %v3132_v41  ;;  %v3241_v41 = vld [vmem:[%s3896_s19 + $0xec] sm:$0xff] }
  0x89   : > { %3678 = vmatmul.mubr.msk.bf16.gmra.mxu0 %vm264_vm0, %v1330_v54  ;;  %v3238_v54 = vld [vmem:[%s3896_s19 + $0xd4] sm:$0xff] }
  0x8a   : > { %3644 = vmatmul.mubr.msk.bf16.gmra.mxu1 %vm264_vm0, %v4040_v43  ;;  %3681 = vmatprep.mubr.msk.bf16.mxu0 %vm264_vm0, %v1331_v56  ;;  %v3134_v43 = vld [vmem:[%s3896_s19 + $0xc3] sm:$0xff] }
  0x8b   : > { %3647 = vmatprep.mubr.msk.bf16.mxu1 %vm264_vm0, %v4056_v53  ;;  %v3136_v53 = vld [vmem:[%s3896_s19 + $0xd3] sm:$0xff]  ;;  %v1334_v63 = vpack.c.bf16 %v3135_v61, %v3134_v43  ;;  %v3239_v56 = vld [vmem:[%s3896_s19 + $0xdc] sm:$0xff]  ;;  %v1935_v61 = vpack.c.bf16 %v3241_v41, %v3240_v57 }
  0x8c   : > { %v1335_v0 = vpack.c.bf16 %v3137_v62, %v3136_v53  ;;  %v3274_v41 = vld [vmem:[%s3896_s19 + $0x55] sm:$0xff] }
  0x91   : > { %3682 = vmatmul.mubr.msk.bf16.gmra.mxu0 %vm264_vm0, %v1332_v59 }
  0x92   : > { %3648 = vmatmul.mubr.msk.bf16.gmra.mxu1 %vm264_vm0, %v4058_v55  ;;  %3685 = vmatprep.mubr.msk.bf16.mxu0 %vm264_vm0, %v1333_v60  ;;  %v3138_v55 = vld [vmem:[%s3896_s19 + $0xe3] sm:$0xff]  ;;  %v1934_v60 = vpack.c.bf16 %v3239_v56, %v3238_v54 }
  0x93   : > { %3651 = vmatprep.mubr.msk.bf16.mxu1 %vm264_vm0, %v4074_v2  ;;  %v3140_v2 = vld [vmem:[%s3896_s19 + $0xf3] sm:$0xff]  ;;  %v1336_v7 = vpack.c.bf16 %v3139_v3, %v3138_v55  ;;  %v3243_v3 = vld [vmem:[%s3896_s19 + $0xfc] sm:$0xff] }
  0x94   : > { %v1337_v8 = vpack.c.bf16 %v3141_v5, %v3140_v2  ;;  %v3242_v55 = vld [vmem:[%s3896_s19 + $0xf4] sm:$0xff]  ;;  %v3244_v5 = vld [vmem:[%s3896_s19 + $0x104] sm:$0xff] }
  0x95   : > { %v1936_v9 = vpack.c.bf16 %v3243_v3, %v3242_v55 }
  0x99   : > { %3686 = vmatmul.mubr.msk.bf16.gmra.mxu0 %vm264_vm0, %v1334_v63 }
  0x9a   : > { %3652 = vmatmul.mubr.msk.bf16.gmra.mxu1 %vm264_vm0, %v4076_v4  ;;  %3689 = vmatprep.mubr.msk.bf16.mxu0 %vm264_vm0, %v1335_v0  ;;  %v3090_v4 = vld [vmem:[%s3896_s19 + $0x102] sm:$0xff] }
  0x9b   : > { %3655 = vmatprep.mubr.msk.bf16.mxu1 %vm264_vm0, %v4092_v18  ;;  %v3165_v18 = vld [vmem:[%s3896_s19 + $0x1c] sm:$0xff]  ;;  %v1038_v22 = vpack.c.bf16 %v3091_v12, %v3090_v4 }
  0x9c   : > { %v1623_v23 = vpack.c.bf16 %v3165_v18, %v3164_v16 }
  0xa1   : > { %3690 = vmatmul.mubr.msk.bf16.gmra.mxu0 %vm264_vm0, %v1336_v7  ;;  %v3245_v7 = vld [vmem:[%s3896_s19 + $0x10c] sm:$0xff] }
  0xa2   : > { %3656 = vmatmul.mubr.msk.bf16.gmra.mxu1 %vm264_vm0, %v4094_v21  ;;  %3693 = vmatprep.mubr.msk.bf16.mxu0 %vm264_vm0, %v1337_v8  ;;  %v1923_v21 = vpack.c.bf16 %v3217_v15, %v3216_v13  ;;  %v1937_v12 = vpack.c.bf16 %v3245_v7, %v3244_v5  ;;  %v3275_v5 = vld [vmem:[%s3896_s19 + $0x5d] sm:$0xff]  ;;  %v3328_v7 = vld [vmem:[%s3896_s19 + $0x66] sm:$0xff] }
  0xa3   : > { %3659 = vmatprep.mubr.msk.bf16.mxu1 %vm264_vm0, %v4108_v30  ;;  %v1925_v30 = vpack.c.bf16 %v3221_v28, %v3220_v27  ;;  %v3269_v27 = vld [vmem:[%s3896_s19 + $0x2d] sm:$0xff] }
  0xa9   : > { %3694 = vmatmul.mubr.msk.bf16.gmra.mxu0 %vm264_vm0, %v1338_v20  ;;  %v3246_v20 = vld [vmem:[%s3896_s19 + $0x114] sm:$0xff] }
  0xaa   : > { %3660 = vmatmul.mubr.msk.bf16.gmra.mxu1 %vm264_vm0, %v1038_v22  ;;  %3733 = vmatprep.mubr.msk.bf16.mxu0 %vm264_vm0, %v1923_v21  ;;  %v3247_v22 = vld [vmem:[%s3896_s19 + $0x11c] sm:$0xff] }
  0xab   : > { %3699 = vmatprep.mubr.msk.bf16.mxu1 %vm264_vm0, %v1623_v23  ;;  %v3320_v23 = vld [vmem:[%s3896_s19 + $0x26] sm:$0xff] }
  0xac   : > { %v2523_v33 = vpack.c.bf16 %v3321_v24, %v3320_v23 }
  0xb1   : > { %3734 = vmatmul.mubr.msk.bf16.vlgmr.msra.gmra.mxu0 %vm264_vm0, %v1924_v26 }
  0xb2   : > { %3700 = vmatmul.mubr.msk.bf16.vlgmr.msra.gmra.mxu1 %vm264_vm0, %v1923_v21  ;;  %3800 = vmatpush3.bf16.msra.mxu0 %v4129_v42  ;;  %v3229_v42 = vld [vmem:[%s3896_s19 + $0x8c] sm:$0xff] }
  0xb3   : > { %3766 = vmatpush3.bf16.msra.mxu1 %v4123_v40  ;;  %3703 = vmatprep.mubr.msk.bf16.mxu1 %vm264_vm0, %v1924_v26  ;;  %v3228_v40 = vld [vmem:[%s3896_s19 + $0x84] sm:$0xff] }
  0xb4   : > { %3737 = vmatprep.mubr.msk.bf16.mxu0 %vm264_vm0, %v1925_v30  ;;  %v1929_v44 = vpack.c.bf16 %v3229_v42, %v3228_v40  ;;  %v3268_v26 = vld [vmem:[%s3896_s19 + $0x25] sm:$0xff]  ;;  %v3322_v40 = vld [vmem:[%s3896_s19 + $0x36] sm:$0xff] }
  0xb5   : > { %v2223_v35 = vpack.c.bf16 %v3269_v27, %v3268_v26  ;;  %v3323_v42 = vld [vmem:[%s3896_s19 + $0x3e] sm:$0xff] }
  0xb6   : > { %v2524_v47 = vpack.c.bf16 %v3323_v42, %v3322_v40 }
  0xb9   : > { %3738 = vmatmul.mubr.msk.bf16.gmra.mxu0 %vm264_vm0, %v1926_v36 }
  0xba   : > { %3704 = vmatmul.mubr.msk.bf16.gmra.mxu1 %vm264_vm0, %v1925_v30  ;;  %3741 = vmatprep.mubr.msk.bf16.mxu0 %vm264_vm0, %v1927_v37  ;;  %v1938_v30 = vpack.c.bf16 %v3247_v22, %v3246_v20  ;;  %v3276_v20 = vld [vmem:[%s3896_s19 + $0x65] sm:$0xff]  ;;  %v3277_v22 = vld [vmem:[%s3896_s19 + $0x6d] sm:$0xff] }
  0xbb   : > { %3707 = vmatprep.mubr.msk.bf16.mxu1 %vm264_vm0, %v1926_v36  ;;  %v2227_v42 = vpack.c.bf16 %v3277_v22, %v3276_v20 }
  0xc1   : > { %3742 = vmatmul.mubr.msk.bf16.gmra.mxu0 %vm264_vm0, %v1928_v1 }
  0xc2   : > { %3708 = vmatmul.mubr.msk.bf16.gmra.mxu1 %vm264_vm0, %v1927_v37  ;;  %3745 = vmatprep.mubr.msk.bf16.mxu0 %vm264_vm0, %v1929_v44 }
  0xc3   : > { %3711 = vmatprep.mubr.msk.bf16.mxu1 %vm264_vm0, %v1928_v1 }
  0xc9   : > { %3746 = vmatmul.mubr.msk.bf16.gmra.mxu0 %vm264_vm0, %v1930_v11 }
  0xca   : > { %3712 = vmatmul.mubr.msk.bf16.gmra.mxu1 %vm264_vm0, %v1929_v44  ;;  %3749 = vmatprep.mubr.msk.bf16.mxu0 %vm264_vm0, %v1931_v17  ;;  %v3271_v44 = vld [vmem:[%s3896_s19 + $0x3d] sm:$0xff] }
  0xcb   : > { %3715 = vmatprep.mubr.msk.bf16.mxu1 %vm264_vm0, %v1930_v11  ;;  %v3273_v11 = vld [vmem:[%s3896_s19 + $0x4d] sm:$0xff]  ;;  %v2224_v49 = vpack.c.bf16 %v3271_v44, %v3270_v39 }
  0xd1   : > { %v4250_v29 = vpop.f32.mrf.mxu0  ;;  %3750 = vmatmul.mubr.msk.bf16.gmra.mxu0 %vm264_vm0, %v1932_v19 }
  0xd2   : > { %v4253_v52 = vpop.f32.mrf.mxu1  ;;  %3716 = vmatmul.mubr.msk.bf16.gmra.mxu1 %vm264_vm0, %v1931_v17  ;;  %3753 = vmatprep.mubr.msk.bf16.mxu0 %vm264_vm0, %v1933_v51 }
  0xd3   : > { %v4259_v31 = vpop.f32.mrf.mxu0  ;;  %3719 = vmatprep.mubr.msk.bf16.mxu1 %vm264_vm0, %v1932_v19 }
  0xd4   : > { %v4264_v58 = vpop.f32.mrf.mxu1 }
  0xd5   : > { %v4266_v59 = vpop.f32.mrf.mxu0 }
  0xd6   : > { %v4268_v43 = vpop.f32.mrf.mxu1 }
  0xd7   : > { %v4270_v53 = vpop.f32.mrf.mxu0 }
  0xd8   : > { %v4272_v62 = vpop.f32.mrf.mxu1 }
  0xd9   : > { %v4274_v63 = vpop.f32.mrf.mxu0  ;;  %3754 = vmatmul.mubr.msk.bf16.gmra.mxu0 %vm264_vm0, %v1934_v60 }
  0xda   : > { %v4277_v0 = vpop.f32.mrf.mxu1  ;;  %3720 = vmatmul.mubr.msk.bf16.gmra.mxu1 %vm264_vm0, %v1933_v51  ;;  %3757 = vmatprep.mubr.msk.bf16.mxu0 %vm264_vm0, %v1935_v61  ;;  %v2225_v51 = vpack.c.bf16 %v3273_v11, %v3272_v14  ;;  %v3330_v11 = vld [vmem:[%s3896_s19 + $0x76] sm:$0xff] }
  0xdb   : > { %v4283_v2 = vpop.f32.mrf.mxu0  ;;  %3723 = vmatprep.mubr.msk.bf16.mxu1 %vm264_vm0, %v1934_v60  ;;  %v3326_v60 = vld [vmem:[%s3896_s19 + $0x56] sm:$0xff] }
  0xdc   : > { %v4288_v8 = vpop.f32.mrf.mxu1 }
  0xdd   : > { %v4290_v4 = vpop.f32.mrf.mxu0 }
  0xde   : > { %v4292_v10 = vpop.f32.mrf.mxu1 }
  0xdf   : > { %v4294_v13 = vpop.f32.mrf.mxu0 }
  0xe0   : > { %v4296_v15 = vpop.f32.mrf.mxu1 }
  0xe1   : > { %v4298_v16 = vpop.f32.mrf.mxu0  ;;  %3758 = vmatmul.mubr.msk.bf16.gmra.mxu0 %vm264_vm0, %v1936_v9 }
  0xe2   : > { %v4301_v18 = vpop.f32.mrf.mxu1  ;;  %3724 = vmatmul.mubr.msk.bf16.gmra.mxu1 %vm264_vm0, %v1935_v61  ;;  %3761 = vmatprep.mubr.msk.bf16.mxu0 %vm264_vm0, %v1937_v12  ;;  %v3327_v61 = vld [vmem:[%s3896_s19 + $0x5e] sm:$0xff] }
  0xe3   : > { %v4307_v21 = vpop.f32.mrf.mxu0  ;;  %3727 = vmatprep.mubr.msk.bf16.mxu1 %vm264_vm0, %v1936_v9  ;;  %v3329_v9 = vld [vmem:[%s3896_s19 + $0x6e] sm:$0xff]  ;;  %v2526_v27 = vpack.c.bf16 %v3327_v61, %v3326_v60  ;;  %v3280_v60 = vld [vmem:[%s3896_s19 + $0x85] sm:$0xff] }
  0xe4   : > { %v4312_v25 = vpop.f32.mrf.mxu1  ;;  %v3281_v61 = vld [vmem:[%s3896_s19 + $0x8d] sm:$0xff] }
  0xe5   : > { %v4316_v28 = vpop.f32.mrf.mxu0 }
  0xe6   : > { %v4318_v32 = vpop.f32.mrf.mxu1 }
  0xe7   : > { %v4320_v34 = vpop.f32.mrf.mxu0 }
  0xe8   : > { %v4322_v36 = vpop.f32.mrf.mxu1 }
  0xe9   : > { %v4324_v37 = vpop.f32.mrf.mxu0  ;;  %3762 = vmatmul.mubr.msk.bf16.gmra.mxu0 %vm264_vm0, %v1938_v30 }
  0xea   : > { %v4327_v38 = vpop.f32.mrf.mxu1  ;;  %3728 = vmatmul.mubr.msk.bf16.gmra.mxu1 %vm264_vm0, %v1937_v12  ;;  %3801 = vmatprep.mubr.msk.bf16.mxu0 %vm264_vm0, %v2523_v33  ;;  %v2226_v33 = vpack.c.bf16 %v3275_v5, %v3274_v41 }
  0xeb   : > { %v4334_v1 = vpop.f32.mrf.mxu0  ;;  %3767 = vmatprep.mubr.msk.bf16.mxu1 %vm264_vm0, %v2223_v35 }
  0xec   : > { %v4340_v6 = vpop.f32.mrf.mxu1 }
  0xed   : > { %v4344_v17 = vpop.f32.mrf.mxu0 }
  0xee   : > { %v4346_v48 = vpop.f32.mrf.mxu1 }
  0xef   : > { %v4348_v19 = vpop.f32.mrf.mxu0 }
  0xf0   : > { %v4350_v54 = vpop.f32.mrf.mxu1 }
  0xf1   : > { %v3599_v56 = vpop.f32.mrf.mxu0  ;;  %3802 = vmatmul.mubr.msk.bf16.vlgmr.msra.gmra.mxu0 %vm264_vm0, %v2524_v47  ;;  %v3331_v47 = vld [vmem:[%s3896_s19 + $0x7e] sm:$0xff] }
  0xf2   : > { %v3565_v57 = vpop.f32.mrf.mxu1  ;;  %3768 = vmatmul.mubr.msk.bf16.vlgmr.msra.gmra.mxu1 %vm264_vm0, %v2224_v49  ;;  %3805 = vmatprep.mubr.msk.bf16.mxu0 %vm264_vm0, %v2525_v50 }
  0xf3   : > { %v571_v55 = vadd.f32 %v3565_v57, %v4250_v29  ;;  %v830_v3 = vpop.f32.mrf.mxu0  ;;  %3771 = vmatprep.mubr.msk.bf16.mxu1 %vm264_vm0, %v2225_v51  ;;  %v2527_v29 = vpack.c.bf16 %v3329_v9, %v3328_v7  ;;  %v3333_v57 = vld [vmem:[%s3896_s19 + $0x8e] sm:$0xff]  ;;  %v2528_v7 = vpack.c.bf16 %v3331_v47, %v3330_v11  ;;  %v3284_v11 = vld [vmem:[%s3896_s19 + $0xa5] sm:$0xff] }
  0xf4   : > { %v562_v12 = vpop.f32.mrf.mxu1  ;;  %v3285_v47 = vld [vmem:[%s3896_s19 + $0xad] sm:$0xff] }
  0xf5   : > { %v4365_v23 = vadd.f32 %v3599_v56, %v571_v55  ;;  %v563_v24 = vadd.f32 %v562_v12, %v4259_v31  ;;  %v3600_v26 = vpop.f32.mrf.mxu0  ;;  %v3332_v56 = vld [vmem:[%s3896_s19 + $0x86] sm:$0xff] }
  0xf6   : > { %v3566_v30 = vpop.f32.mrf.mxu1 }
  0xf7   : > { %v4368_v35 = vadd.f32 %v830_v3, %v563_v24  ;;  %v574_v39 = vadd.f32 %v3566_v30, %v4266_v59  ;;  %v833_v40 = vpop.f32.mrf.mxu0  ;;  %v3278_v59 = vld [vmem:[%s3896_s19 + $0x75] sm:$0xff] }
  0xf8   : > { %v565_v44 = vpop.f32.mrf.mxu1 }
  0xf9   : > { %v4371_v45 = vadd.f32 %v3600_v26, %v574_v39  ;;  %v566_v31 = vadd.f32 %v565_v44, %v4270_v53  ;;  %v3603_v46 = vpop.f32.mrf.mxu0  ;;  %3806 = vmatmul.mubr.msk.bf16.gmra.mxu0 %vm264_vm0, %v2526_v27  ;;  %v3279_v53 = vld [vmem:[%s3896_s19 + $0x7d] sm:$0xff]  ;;  %v2229_v26 = vpack.c.bf16 %v3281_v61, %v3280_v60 }
  0xfa   : > { %v3569_v14 = vpop.f32.mrf.mxu1  ;;  %3772 = vmatmul.mubr.msk.bf16.gmra.mxu1 %vm264_vm0, %v2226_v33  ;;  %3809 = vmatprep.mubr.msk.bf16.mxu0 %vm264_vm0, %v2527_v29  ;;  %v2228_v12 = vpack.c.bf16 %v3279_v53, %v3278_v59  ;;  %v3334_v39 = vld [vmem:[%s3896_s19 + $0x96] sm:$0xff] }
  0xfb   : > { %v4380_v49 = vadd.f32 %v833_v40, %v566_v31  ;;  %v587_v50 = vadd.f32 %v3569_v14, %v4274_v63  ;;  %v846_v51 = vpop.f32.mrf.mxu0  ;;  %3775 = vmatprep.mubr.msk.bf16.mxu1 %vm264_vm0, %v2227_v42  ;;  %v2529_v63 = vpack.c.bf16 %v3333_v57, %v3332_v56  ;;  %v3335_v40 = vld [vmem:[%s3896_s19 + $0x9e] sm:$0xff]  ;;  %v3337_v14 = vld [vmem:[%s3896_s19 + $0xae] sm:$0xff] }
  0xfc   : > { %v578_v41 = vpop.f32.mrf.mxu1  ;;  %v2530_v56 = vpack.c.bf16 %v3335_v40, %v3334_v39  ;;  %v3288_v39 = vld [vmem:[%s3896_s19 + $0xc5] sm:$0xff]  ;;  %v3289_v40 = vld [vmem:[%s3896_s19 + $0xcd] sm:$0xff] }
  0xfd   : > { %v4389_v55 = vadd.f32 %v3603_v46, %v587_v50  ;;  %v579_v3 = vadd.f32 %v578_v41, %v4283_v2  ;;  %v3604_v5 = vpop.f32.mrf.mxu0  ;;  %v3336_v46 = vld [vmem:[%s3896_s19 + $0xa6] sm:$0xff] }
  0xfe   : > { %v3570_v9 = vpop.f32.mrf.mxu1 }
  0xff   : > { %v4392_v20 = vadd.f32 %v846_v51, %v579_v3  ;;  %v590_v22 = vadd.f32 %v3570_v9, %v4290_v4  ;;  %v849_v24 = vpop.f32.mrf.mxu0  ;;  %v3282_v4 = vld [vmem:[%s3896_s19 + $0x95] sm:$0xff] }
 0x100   : > { %v581_v27 = vpop.f32.mrf.mxu1 }
 0x101   : > { %v4395_v30 = vadd.f32 %v3604_v5, %v590_v22  ;;  %v582_v2 = vadd.f32 %v581_v27, %v4294_v13  ;;  %v3607_v33 = vpop.f32.mrf.mxu0  ;;  %3810 = vmatmul.mubr.msk.bf16.gmra.mxu0 %vm264_vm0, %v2528_v7  ;;  %v3283_v13 = vld [vmem:[%s3896_s19 + $0x9d] sm:$0xff]  ;;  %v2231_v5 = vpack.c.bf16 %v3285_v47, %v3284_v11 }
 0x102   : > { %v3573_v29 = vpop.f32.mrf.mxu1  ;;  %3776 = vmatmul.mubr.msk.bf16.gmra.mxu1 %vm264_vm0, %v2228_v12  ;;  %3813 = vmatprep.mubr.msk.bf16.mxu0 %vm264_vm0, %v2529_v63  ;;  %v2230_v41 = vpack.c.bf16 %v3283_v13, %v3282_v4  ;;  %v3338_v22 = vld [vmem:[%s3896_s19 + $0xb6] sm:$0xff] }
 0x103   : > { %v4404_v42 = vadd.f32 %v849_v24, %v582_v2  ;;  %v603_v44 = vadd.f32 %v3573_v29, %v4298_v16  ;;  %v862_v31 = vpop.f32.mrf.mxu0  ;;  %3779 = vmatprep.mubr.msk.bf16.mxu1 %vm264_vm0, %v2229_v26  ;;  %v2531_v16 = vpack.c.bf16 %v3337_v14, %v3336_v46  ;;  %v3339_v24 = vld [vmem:[%s3896_s19 + $0xbe] sm:$0xff]  ;;  %v3341_v29 = vld [vmem:[%s3896_s19 + $0xce] sm:$0xff] }
 0x104   : > { %v594_v59 = vpop.f32.mrf.mxu1  ;;  %v2532_v46 = vpack.c.bf16 %v3339_v24, %v3338_v22  ;;  %v3292_v22 = vld [vmem:[%s3896_s19 + $0xe5] sm:$0xff]  ;;  %v3293_v24 = vld [vmem:[%s3896_s19 + $0xed] sm:$0xff] }
 0x105   : > { %v4413_v50 = vadd.f32 %v3607_v33, %v603_v44  ;;  %v595_v51 = vadd.f32 %v594_v59, %v4307_v21  ;;  %v3608_v53 = vpop.f32.mrf.mxu0  ;;  %v3340_v33 = vld [vmem:[%s3896_s19 + $0xc6] sm:$0xff] }
 0x106   : > { %v3574_v57 = vpop.f32.mrf.mxu1 }
 0x107   : > { %v4416_v60 = vadd.f32 %v862_v31, %v595_v51  ;;  %v606_v61 = vadd.f32 %v3574_v57, %v4316_v28  ;;  %v865_v3 = vpop.f32.mrf.mxu0  ;;  %v3286_v28 = vld [vmem:[%s3896_s19 + $0xb5] sm:$0xff] }
 0x108   : > { %v597_v7 = vpop.f32.mrf.mxu1 }
 0x109   : > { %v4419_v9 = vadd.f32 %v3608_v53, %v606_v61  ;;  %v598_v21 = vadd.f32 %v597_v7, %v4320_v34  ;;  %v3611_v12 = vpop.f32.mrf.mxu0  ;;  %3814 = vmatmul.mubr.msk.bf16.gmra.mxu0 %vm264_vm0, %v2530_v56  ;;  %v3287_v34 = vld [vmem:[%s3896_s19 + $0xbd] sm:$0xff]  ;;  %v2233_v53 = vpack.c.bf16 %v3289_v40, %v3288_v39 }
 0x10a   : > { %v3577_v63 = vpop.f32.mrf.mxu1  ;;  %3780 = vmatmul.mubr.msk.bf16.gmra.mxu1 %vm264_vm0, %v2230_v41  ;;  %3817 = vmatprep.mubr.msk.bf16.mxu0 %vm264_vm0, %v2531_v16  ;;  %v2232_v59 = vpack.c.bf16 %v3287_v34, %v3286_v28  ;;  %v3342_v61 = vld [vmem:[%s3896_s19 + $0xd6] sm:$0xff] }
 0x10b   : > { %v4428_v26 = vadd.f32 %v865_v3, %v598_v21  ;;  %v619_v27 = vadd.f32 %v3577_v63, %v4324_v37  ;;  %v878_v2 = vpop.f32.mrf.mxu0  ;;  %3783 = vmatprep.mubr.msk.bf16.mxu1 %vm264_vm0, %v2231_v5  ;;  %v2533_v37 = vpack.c.bf16 %v3341_v29, %v3340_v33  ;;  %v3343_v3 = vld [vmem:[%s3896_s19 + $0xde] sm:$0xff]  ;;  %v3345_v63 = vld [vmem:[%s3896_s19 + $0xee] sm:$0xff] }
 0x10c   : > { %v610_v4 = vpop.f32.mrf.mxu1  ;;  %v2534_v33 = vpack.c.bf16 %v3343_v3, %v3342_v61  ;;  %v3296_v61 = vld [vmem:[%s3896_s19 + $0x105] sm:$0xff]  ;;  %v3297_v3 = vld [vmem:[%s3896_s19 + $0x10d] sm:$0xff] }
 0x10d   : > { %v4437_v44 = vadd.f32 %v3611_v12, %v619_v27  ;;  %v611_v31 = vadd.f32 %v610_v4, %v4334_v1  ;;  %v3612_v13 = vpop.f32.mrf.mxu0  ;;  %v3344_v12 = vld [vmem:[%s3896_s19 + $0xe6] sm:$0xff] }
 0x10e   : > { %v3578_v14 = vpop.f32.mrf.mxu1 }
 0x10f   : > { %v4440_v11 = vadd.f32 %v878_v2, %v611_v31  ;;  %v622_v47 = vadd.f32 %v3578_v14, %v4344_v17  ;;  %v881_v51 = vpop.f32.mrf.mxu0  ;;  %v3290_v17 = vld [vmem:[%s3896_s19 + $0xd5] sm:$0xff] }
 0x110   : > { %v613_v56 = vpop.f32.mrf.mxu1 }
 0x111   : > { %v4443_v57 = vadd.f32 %v3612_v13, %v622_v47  ;;  %v614_v1 = vadd.f32 %v613_v56, %v4348_v19  ;;  %v3615_v41 = vpop.f32.mrf.mxu0  ;;  %3818 = vmatmul.mubr.msk.bf16.gmra.mxu0 %vm264_vm0, %v2532_v46  ;;  %v3291_v19 = vld [vmem:[%s3896_s19 + $0xdd] sm:$0xff]  ;;  %v2235_v13 = vpack.c.bf16 %v3293_v24, %v3292_v22 }
 0x112   : > { %v3581_v16 = vpop.f32.mrf.mxu1  ;;  %3784 = vmatmul.mubr.msk.bf16.gmra.mxu1 %vm264_vm0, %v2232_v59  ;;  %3821 = vmatprep.mubr.msk.bf16.mxu0 %vm264_vm0, %v2533_v37  ;;  %v2234_v4 = vpack.c.bf16 %v3291_v19, %v3290_v17  ;;  %v3346_v47 = vld [vmem:[%s3896_s19 + $0xf6] sm:$0xff] }
 0x113   : > { %v4452_v5 = vadd.f32 %v881_v51, %v614_v1  ;;  %v635_v7 = vadd.f32 %v3581_v16, %v4253_v52  ;;  %v894_v21 = vpop.f32.mrf.mxu0  ;;  %3787 = vmatprep.mubr.msk.bf16.mxu1 %vm264_vm0, %v2233_v53  ;;  %v2535_v52 = vpack.c.bf16 %v3345_v63, %v3344_v12  ;;  %v3347_v51 = vld [vmem:[%s3896_s19 + $0xfe] sm:$0xff]  ;;  %v3349_v16 = vld [vmem:[%s3896_s19 + $0x10e] sm:$0xff] }
 0x114   : > { %v626_v28 = vpop.f32.mrf.mxu1  ;;  %v2536_v12 = vpack.c.bf16 %v3347_v51, %v3346_v47 }
 0x115   : > { %v4461_v27 = vadd.f32 %v3615_v41, %v635_v7  ;;  %v627_v2 = vadd.f32 %v626_v28, %v4264_v58  ;;  %v3616_v34 = vpop.f32.mrf.mxu0  ;;  %v3348_v41 = vld [vmem:[%s3896_s19 + $0x106] sm:$0xff] }
 0x116   : > { %v3582_v29 = vpop.f32.mrf.mxu1 }
 0x117   : > { %v4464_v39 = vadd.f32 %v894_v21, %v627_v2  ;;  %v638_v40 = vadd.f32 %v3582_v29, %v4268_v43  ;;  %v897_v31 = vpop.f32.mrf.mxu0  ;;  %v3294_v43 = vld [vmem:[%s3896_s19 + $0xf5] sm:$0xff] }
 0x118   : > { %v629_v46 = vpop.f32.mrf.mxu1 }
 0x119   : > { %v4467_v14 = vadd.f32 %v3616_v34, %v638_v40  ;;  %v630_v58 = vadd.f32 %v629_v46, %v4272_v62  ;;  %v3619_v59 = vpop.f32.mrf.mxu0  ;;  %3822 = vmatmul.mubr.msk.bf16.gmra.mxu0 %vm264_vm0, %v2534_v33  ;;  %v3295_v62 = vld [vmem:[%s3896_s19 + $0xfd] sm:$0xff]  ;;  %v2237_v34 = vpack.c.bf16 %v3297_v3, %v3296_v61 }
 0x11a   : > { %v3585_v37 = vpop.f32.mrf.mxu1  ;;  %3788 = vmatmul.mubr.msk.bf16.gmra.mxu1 %vm264_vm0, %v2234_v4  ;;  %3825 = vmatprep.mubr.msk.bf16.mxu0 %vm264_vm0, %v2535_v52  ;;  %v2236_v28 = vpack.c.bf16 %v3295_v62, %v3294_v43  ;;  %v3350_v40 = vld [vmem:[%s3896_s19 + $0x116] sm:$0xff] }
 0x11b   : > { %v4476_v53 = vadd.f32 %v897_v31, %v630_v58  ;;  %v651_v56 = vadd.f32 %v3585_v37, %v4277_v0  ;;  %v910_v1 = vpop.f32.mrf.mxu0  ;;  %3791 = vmatprep.mubr.msk.bf16.mxu1 %vm264_vm0, %v2235_v13  ;;  %v2537_v0 = vpack.c.bf16 %v3349_v16, %v3348_v41  ;;  %v3351_v31 = vld [vmem:[%s3896_s19 + $0x11e] sm:$0xff]  ;;  %v3298_v58 = vld [vmem:[%s3896_s19 + $0x115] sm:$0xff] }
 0x11c   : > { %v642_v17 = vpop.f32.mrf.mxu1  ;;  %v2538_v51 = vpack.c.bf16 %v3351_v31, %v3350_v40 }
 0x11d   : > { %v4485_v7 = vadd.f32 %v3619_v59, %v651_v56  ;;  %v643_v21 = vadd.f32 %v642_v17, %v4288_v8  ;;  %v3620_v19 = vpop.f32.mrf.mxu0  ;;  %v3299_v59 = vld [vmem:[%s3896_s19 + $0x11d] sm:$0xff] }
 0x11e   : > { %v3586_v63 = vpop.f32.mrf.mxu1 }
 0x11f   : > { %v4488_v22 = vadd.f32 %v910_v1, %v643_v21  ;;  %v654_v24 = vadd.f32 %v3586_v63, %v4292_v10  ;;  %v913_v2 = vpop.f32.mrf.mxu0  ;;  %v2238_v1 = vpack.c.bf16 %v3299_v59, %v3298_v58 }
 0x120   : > { %v645_v33 = vpop.f32.mrf.mxu1 }
 0x121   : > { %v4491_v29 = vadd.f32 %v3620_v19, %v654_v24  ;;  %v646_v8 = vadd.f32 %v645_v33, %v4296_v15  ;;  %v3623_v4 = vpop.f32.mrf.mxu0  ;;  %3826 = vmatmul.mubr.msk.bf16.gmra.mxu0 %vm264_vm0, %v2536_v12 }
 0x122   : > { %v3589_v52 = vpop.f32.mrf.mxu1  ;;  %3792 = vmatmul.mubr.msk.bf16.gmra.mxu1 %vm264_vm0, %v2236_v28  ;;  %3829 = vmatprep.mubr.msk.bf16.mxu0 %vm264_vm0, %v2537_v0 }
 0x123   : > { %v4499_v10 = vadd.f32 %v913_v2, %v646_v8  ;;  %v667_v13 = vadd.f32 %v3589_v52, %v4301_v18  ;;  %v926_v46 = vpop.f32.mrf.mxu0  ;;  %3795 = vmatprep.mubr.msk.bf16.mxu1 %vm264_vm0, %v2237_v34 }
 0x124   : > { %v658_v15 = vpop.f32.mrf.mxu1 }
 0x125   : > { %v4505_v37 = vadd.f32 %v3623_v4, %v667_v13  ;;  %v659_v43 = vadd.f32 %v658_v15, %v4312_v25  ;;  %v3624_v47 = vpop.f32.mrf.mxu0 }
 0x126   : > { %v3590_v56 = vpop.f32.mrf.mxu1 }
 0x127   : > { %v4508_v62 = vadd.f32 %v926_v46, %v659_v43  ;;  %v670_v41 = vadd.f32 %v3590_v56, %v4318_v32  ;;  %v929_v16 = vpop.f32.mrf.mxu0 }
 0x128   : > { %v661_v18 = vpop.f32.mrf.mxu1 }
 0x129   : > { %v4511_v17 = vadd.f32 %v3624_v47, %v670_v41  ;;  %v662_v61 = vadd.f32 %v661_v18, %v4322_v36  ;;  %v3627_v3 = vpop.f32.mrf.mxu0  ;;  %3830 = vmatmul.mubr.msk.bf16.gmra.mxu0 %vm264_vm0, %v2538_v51 }
 0x12a   : > { %v3593_v21 = vpop.f32.mrf.mxu1  ;;  %3796 = vmatmul.mubr.msk.bf16.gmra.mxu1 %vm264_vm0, %v2238_v1 }
 0x12b   : > { %v4516_v25 = vadd.f32 %v929_v16, %v662_v61  ;;  %v683_v19 = vadd.f32 %v3593_v21, %v4327_v38  ;;  %v942_v12 = vpop.f32.mrf.mxu0 }
 0x12c   : > { %v674_v63 = vpop.f32.mrf.mxu1 }
 0x12d   : > { %v4519_v28 = vadd.f32 %v3627_v3, %v683_v19  ;;  %v675_v32 = vadd.f32 %v674_v63, %v4340_v6  ;;  %v3628_v0 = vpop.f32.mrf.mxu0 }
 0x12e   : > { %v3594_v24 = vpop.f32.mrf.mxu1 }
 0x12f   : > { %v4522_v2 = vadd.f32 %v942_v12, %v675_v32  ;;  %v686_v36 = vadd.f32 %v3594_v24, %v4346_v48  ;;  %v945_v34 = vpop.f32.mrf.mxu0 }
 0x130   : > { %v677_v33 = vpop.f32.mrf.mxu1 }
 0x131   : > { %v4525_v8 = vadd.f32 %v3628_v0, %v686_v36  ;;  %v678_v4 = vadd.f32 %v677_v33, %v4350_v54  ;;  %v3667_v52 = vpop.f32.mrf.mxu0 }
 0x132   : > { %v3633_v38 = vpop.f32.mrf.mxu1 }
 0x133   : > { %v4528_v40 = vadd.f32 %v945_v34, %v678_v4  ;;  %v1259_v31 = vadd.f32 %v3633_v38, %v4365_v23  ;;  %v1430_v13 = vpop.f32.mrf.mxu0 }
 0x134   : > { %v1130_v6 = vpop.f32.mrf.mxu1 }
 0x135   : > { %v4531_v46 = vadd.f32 %v3667_v52, %v1259_v31  ;;  %v1257_v58 = vadd.f32 %v1130_v6, %v4368_v35  ;;  %v3668_v59 = vpop.f32.mrf.mxu0 }
 0x136   : > { %v3634_v48 = vpop.f32.mrf.mxu1 }
 0x137   : > { %v4534_v15 = vadd.f32 %v1430_v13, %v1257_v58  ;;  %v1260_v43 = vadd.f32 %v3634_v48, %v4371_v45  ;;  %v1433_v47 = vpop.f32.mrf.mxu0 }
 0x138   : > { %v1133_v54 = vpop.f32.mrf.mxu1 }
 0x139   : > { %v4537_v51 = vadd.f32 %v3668_v59, %v1260_v43  ;;  %v1258_v56 = vadd.f32 %v1133_v54, %v4380_v49  ;;  %v3671_v1 = vpop.f32.mrf.mxu0 }
 0x13a   : > { %v3637_v23 = vpop.f32.mrf.mxu1 }
 0x13b   : > { %v4540_v41 = vadd.f32 %v1433_v47, %v1258_v56  ;;  %v1263_v16 = vadd.f32 %v3637_v23, %v4389_v55  ;;  %v1446_v18 = vpop.f32.mrf.mxu0 }
 0x13c   : > { %v1146_v35 = vpop.f32.mrf.mxu1 }
 0x13d   : > { %v4543_v61 = vadd.f32 %v3671_v1, %v1263_v16  ;;  %v1261_v3 = vadd.f32 %v1146_v35, %v4392_v20  ;;  %v3672_v21 = vpop.f32.mrf.mxu0 }
 0x13e   : > { %v3638_v45 = vpop.f32.mrf.mxu1 }
 0x13f   : > { %v4546_v19 = vadd.f32 %v1446_v18, %v1261_v3  ;;  %v1264_v12 = vadd.f32 %v3638_v45, %v4395_v30  ;;  %v1449_v63 = vpop.f32.mrf.mxu0 }
 0x140   : > { %v1149_v49 = vpop.f32.mrf.mxu1 }
 0x141   : > { %v4549_v32 = vadd.f32 %v3672_v21, %v1264_v12  ;;  %v1262_v0 = vadd.f32 %v1149_v49, %v4404_v42  ;;  %v3675_v24 = vpop.f32.mrf.mxu0 }
 0x142   : > { %v3641_v55 = vpop.f32.mrf.mxu1 }
 0x143   : > { %v4552_v36 = vadd.f32 %v1449_v63, %v1262_v0  ;;  %v1267_v34 = vadd.f32 %v3641_v55, %v4413_v50  ;;  %v1462_v33 = vpop.f32.mrf.mxu0 }
 0x144   : > { %v1162_v20 = vpop.f32.mrf.mxu1 }
 0x145   : > { %v4555_v4 = vadd.f32 %v3675_v24, %v1267_v34  ;;  %v1265_v52 = vadd.f32 %v1162_v20, %v4416_v60  ;;  %v3676_v38 = vpop.f32.mrf.mxu0 }
 0x146   : > { %v3642_v30 = vpop.f32.mrf.mxu1 }
 0x147   : > { %v4558_v31 = vadd.f32 %v1462_v33, %v1265_v52  ;;  %v1268_v13 = vadd.f32 %v3642_v30, %v4419_v9  ;;  %v1465_v6 = vpop.f32.mrf.mxu0 }
 0x148   : > { %v1165_v42 = vpop.f32.mrf.mxu1 }
 0x149   : > { %v4561_v58 = vadd.f32 %v3676_v38, %v1268_v13  ;;  %v1266_v59 = vadd.f32 %v1165_v42, %v4428_v26  ;;  %v3679_v48 = vpop.f32.mrf.mxu0 }
 0x14a   : > { %v3645_v50 = vpop.f32.mrf.mxu1 }
 0x14b   : > { %v4564_v43 = vadd.f32 %v1465_v6, %v1266_v59  ;;  %v1271_v47 = vadd.f32 %v3645_v50, %v4437_v44  ;;  %v1478_v54 = vpop.f32.mrf.mxu0 }
 0x14c   : > { %v1178_v60 = vpop.f32.mrf.mxu1 }
 0x14d   : > { %v4567_v56 = vadd.f32 %v3679_v48, %v1271_v47  ;;  %v1269_v1 = vadd.f32 %v1178_v60, %v4440_v11  ;;  %v3680_v23 = vpop.f32.mrf.mxu0 }
 0x14e   : > { %v3646_v9 = vpop.f32.mrf.mxu1 }
 0x14f   : > { %v4570_v16 = vadd.f32 %v1478_v54, %v1269_v1  ;;  %v1272_v18 = vadd.f32 %v3646_v9, %v4443_v57  ;;  %v1481_v35 = vpop.f32.mrf.mxu0 }
 0x150   : > { %v1181_v26 = vpop.f32.mrf.mxu1 }
 0x151   : > { %v4573_v3 = vadd.f32 %v3680_v23, %v1272_v18  ;;  %v1270_v21 = vadd.f32 %v1181_v26, %v4452_v5  ;;  %v3683_v45 = vpop.f32.mrf.mxu0 }
 0x152   : > { %v3649_v44 = vpop.f32.mrf.mxu1 }
 0x153   : > { %v4576_v12 = vadd.f32 %v1481_v35, %v1270_v21  ;;  %v1275_v63 = vadd.f32 %v3649_v44, %v4461_v27  ;;  %v1494_v49 = vpop.f32.mrf.mxu0 }
 0x154   : > { %v1194_v11 = vpop.f32.mrf.mxu1 }
 0x155   : > { %v4579_v0 = vadd.f32 %v3683_v45, %v1275_v63  ;;  %v1273_v24 = vadd.f32 %v1194_v11, %v4464_v39  ;;  %v3684_v55 = vpop.f32.mrf.mxu0 }
 0x156   : > { %v3650_v57 = vpop.f32.mrf.mxu1 }
 0x157   : > { %v4582_v34 = vadd.f32 %v1494_v49, %v1273_v24  ;;  %v1276_v33 = vadd.f32 %v3650_v57, %v4467_v14  ;;  %v1497_v20 = vpop.f32.mrf.mxu0 }
 0x158   : > { %v1197_v5 = vpop.f32.mrf.mxu1 }
 0x159   : > { %v4585_v52 = vadd.f32 %v3684_v55, %v1276_v33  ;;  %v1274_v38 = vadd.f32 %v1197_v5, %v4476_v53  ;;  %v3687_v30 = vpop.f32.mrf.mxu0 }
 0x15a   : > { %v3653_v27 = vpop.f32.mrf.mxu1 }
 0x15b   : > { %4959 = vst [vmem:[#allocation2_spill] sm:$0xff] %v4585_v52  ;;  %v4588_v13 = vadd.f32 %v1497_v20, %v1274_v38  ;;  %v1279_v6 = vadd.f32 %v3653_v27, %v4485_v7  ;;  %v1510_v42 = vpop.f32.mrf.mxu0 }
 0x15c   : > { %v1210_v39 = vpop.f32.mrf.mxu1 }
 0x15d   : > { %4960 = vst [vmem:[#allocation3_spill] sm:$0xff] %v4588_v13  ;;  %v4591_v59 = vadd.f32 %v3687_v30, %v1279_v6  ;;  %v1277_v48 = vadd.f32 %v1210_v39, %v4488_v22  ;;  %v3688_v50 = vpop.f32.mrf.mxu0 }
 0x15e   : > { %v3654_v14 = vpop.f32.mrf.mxu1 }
 0x15f   : > { %4961 = vst [vmem:[#allocation4_spill] sm:$0xff] %v4591_v59  ;;  %v4594_v47 = vadd.f32 %v1510_v42, %v1277_v48  ;;  %v1280_v54 = vadd.f32 %v3654_v14, %v4491_v29  ;;  %v1513_v60 = vpop.f32.mrf.mxu0 }
 0x160   : > { %v1213_v53 = vpop.f32.mrf.mxu1 }
 0x161   : > { %4962 = vst [vmem:[#allocation5_spill] sm:$0xff] %v4594_v47  ;;  %v4597_v1 = vadd.f32 %v3688_v50, %v1280_v54  ;;  %v1278_v23 = vadd.f32 %v1213_v53, %v4499_v10  ;;  %v3691_v9 = vpop.f32.mrf.mxu0 }
 0x162   : > { %v3657_v7 = vpop.f32.mrf.mxu1 }
 0x163   : > { %4963 = vst [vmem:[#allocation6_spill] sm:$0xff] %v4597_v1  ;;  %v4600_v18 = vadd.f32 %v1513_v60, %v1278_v23  ;;  %v1283_v35 = vadd.f32 %v3657_v7, %v4505_v37  ;;  %v1526_v26 = vpop.f32.mrf.mxu0 }
 0x164   : > { %v1226_v22 = vpop.f32.mrf.mxu1 }
 0x165   : > { %4964 = vst [vmem:[#allocation7_spill] sm:$0xff] %v4600_v18  ;;  %v4603_v21 = vadd.f32 %v3691_v9, %v1283_v35  ;;  %v1281_v45 = vadd.f32 %v1226_v22, %v4508_v62  ;;  %v3692_v44 = vpop.f32.mrf.mxu0 }
 0x166   : > { %v3658_v29 = vpop.f32.mrf.mxu1 }
 0x167   : > { %4965 = vst [vmem:[#allocation8_spill] sm:$0xff] %v4603_v21  ;;  %v4606_v63 = vadd.f32 %v1526_v26, %v1281_v45  ;;  %v1284_v49 = vadd.f32 %v3658_v29, %v4511_v17  ;;  %v1529_v11 = vpop.f32.mrf.mxu0 }
 0x168   : > { %v1229_v10 = vpop.f32.mrf.mxu1 }
 0x169   : > { %4966 = vst [vmem:[#allocation9_spill] sm:$0xff] %v4606_v63  ;;  %v4609_v24 = vadd.f32 %v3692_v44, %v1284_v49  ;;  %v1282_v55 = vadd.f32 %v1229_v10, %v4516_v25  ;;  %v3695_v57 = vpop.f32.mrf.mxu0 }
 0x16a   : > { %v3661_v37 = vpop.f32.mrf.mxu1 }
 0x16b   : > { %4967 = vst [vmem:[#allocation10_spill] sm:$0xff] %v4609_v24  ;;  %v4612_v33 = vadd.f32 %v1529_v11, %v1282_v55  ;;  %v1287_v20 = vadd.f32 %v3661_v37, %v4519_v28  ;;  %v1542_v5 = vpop.f32.mrf.mxu0 }
 0x16c   : > { %v1242_v62 = vpop.f32.mrf.mxu1 }
 0x16d   : > { %4968 = vst [vmem:[#allocation11_spill] sm:$0xff] %v4612_v33  ;;  %v4615_v38 = vadd.f32 %v3695_v57, %v1287_v20  ;;  %v1285_v30 = vadd.f32 %v1242_v62, %v4522_v2  ;;  %v3696_v27 = vpop.f32.mrf.mxu0 }
 0x16e   : > { %v3662_v17 = vpop.f32.mrf.mxu1 }
 0x16f   : > { %4969 = vst [vmem:[#allocation12_spill] sm:$0xff] %v4615_v38  ;;  %v4618_v6 = vadd.f32 %v1542_v5, %v1285_v30  ;;  %v1288_v42 = vadd.f32 %v3662_v17, %v4525_v8  ;;  %v1545_v39 = vpop.f32.mrf.mxu0 }
 0x170   : > { %v1245_v25 = vpop.f32.mrf.mxu1 }
 0x171   : > { %4970 = vst [vmem:[#allocation13_spill] sm:$0xff] %v4618_v6  ;;  %v4621_v48 = vadd.f32 %v3696_v27, %v1288_v42  ;;  %v1286_v50 = vadd.f32 %v1245_v25, %v4528_v40  ;;  %v4624_v14 = vpop.f32.mrf.mxu0 }
 0x172   : > { %v3701_v28 = vpop.f32.mrf.mxu1 }
 0x173   : > { %4971 = vst [vmem:[#allocation14_spill] sm:$0xff] %v4621_v48  ;;  %v4626_v54 = vadd.f32 %v1545_v39, %v1286_v50  ;;  %v4628_v60 = vpop.f32.mrf.mxu0 }
 0x174   : > { %v1730_v2 = vpop.f32.mrf.mxu1 }
 0x175   : > { %4972 = vst [vmem:[#allocation15_spill] sm:$0xff] %v4626_v54  ;;  %v4630_v53 = vpop.f32.mrf.mxu0 }
 0x176   : > { %v4632_v23 = vpop.f32.mrf.mxu1 }
 0x177   : > { %v4634_v9 = vpop.f32.mrf.mxu0 }
 0x178   : > { %v4636_v8 = vpop.f32.mrf.mxu1 }
 0x179   : > { %v4638_v7 = vpop.f32.mrf.mxu0 }
 0x17a   : > { %v4640_v35 = vpop.f32.mrf.mxu1 }
 0x17b   : > { %v4642_v40 = vpop.f32.mrf.mxu0 }
 0x17c   : > { %v4644_v26 = vpop.f32.mrf.mxu1 }
 0x17d   : > { %v4646_v22 = vpop.f32.mrf.mxu0 }
 0x17e   : > { %v4648_v45 = vpop.f32.mrf.mxu1 }
 0x17f   : > { %v4650_v44 = vpop.f32.mrf.mxu0 }
 0x180   : > { %v4652_v29 = vpop.f32.mrf.mxu1 }
 0x181   : > { %v4654_v49 = vpop.f32.mrf.mxu0 }
 0x182   : > { %v4656_v11 = vpop.f32.mrf.mxu1 }
 0x183   : > { %v4658_v10 = vpop.f32.mrf.mxu0 }
 0x184   : > { %v4660_v55 = vpop.f32.mrf.mxu1 }
 0x185   : > { %v4662_v57 = vpop.f32.mrf.mxu0 }
 0x186   : > { %v4664_v37 = vpop.f32.mrf.mxu1 }
 0x187   : > { %v4666_v20 = vpop.f32.mrf.mxu0 }
 0x188   : > { %v4668_v5 = vpop.f32.mrf.mxu1 }
 0x189   : > { %v4670_v62 = vpop.f32.mrf.mxu0 }
 0x18a   : > { %v4672_v30 = vpop.f32.mrf.mxu1 }
 0x18b   : > { %v4674_v27 = vpop.f32.mrf.mxu0 }
 0x18c   : > { %v4676_v17 = vpop.f32.mrf.mxu1 }
 0x18d   : > { %v4678_v42 = vpop.f32.mrf.mxu0 }
 0x18e   : > { %v4680_v39 = vpop.f32.mrf.mxu1 }
 0x18f   : > { %v4682_v25 = vpop.f32.mrf.mxu0 }
 0x190   : > { %v4684_v50 = vpop.f32.mrf.mxu1 }
 0x191   : > { %v4686_v54 = vpop.f32.mrf.mxu0 }
 0x192   : > { %v4688_v48 = vpop.f32.mrf.mxu1 }
 0x193   : > { %v4690_v6 = vpop.f32.mrf.mxu0 }
 0x194   : > { %4973 = vst [vmem:[#allocation16_spill] sm:$0xff] %v4690_v6  ;;  %v4692_v38 = vpop.f32.mrf.mxu1 }
 0x195   : > { %v4694_v33 = vpop.f32.mrf.mxu0 }
 0x196   : > { %4974 = vst [vmem:[#allocation17_spill] sm:$0xff] %v4694_v33  ;;  %v4696_v24 = vpop.f32.mrf.mxu1 }
 0x197   : > { %4975 = vst [vmem:[#allocation18_spill] sm:$0xff] %v4696_v24  ;;  %v4698_v63 = vpop.f32.mrf.mxu0 }
 0x198   : > { %4976 = vst [vmem:[#allocation19_spill] sm:$0xff] %v4698_v63  ;;  %v4700_v21 = vpop.f32.mrf.mxu1 }
 0x199   : > { %4977 = vst [vmem:[#allocation20_spill] sm:$0xff] %v4700_v21  ;;  %v4702_v18 = vpop.f32.mrf.mxu0 }
 0x19a   : > { %4978 = vst [vmem:[#allocation21_spill] sm:$0xff] %v4702_v18  ;;  %v4704_v1 = vpop.f32.mrf.mxu1 }
 0x19b   : > { %4979 = vst [vmem:[#allocation22_spill] sm:$0xff] %v4704_v1  ;;  %v4706_v47 = vpop.f32.mrf.mxu0 }
 0x19c   : > { %4980 = vst [vmem:[#allocation23_spill] sm:$0xff] %v4706_v47  ;;  %v4708_v59 = vpop.f32.mrf.mxu1 }
 0x19d   : > { %4981 = vst [vmem:[#allocation24_spill] sm:$0xff] %v4708_v59  ;;  %v4710_v13 = vpop.f32.mrf.mxu0 }
 0x19e   : > { %4982 = vst [vmem:[#allocation25_spill] sm:$0xff] %v4710_v13  ;;  %v4712_v6 = vpop.f32.mrf.mxu1 }
 0x19f   : > { %v4714_v33 = vpop.f32.mrf.mxu0 }
 0x1a0   : > { %4983 = vst [vmem:[#allocation26_spill] sm:$0xff] %v4714_v33  ;;  %v4716_v24 = vpop.f32.mrf.mxu1 }
 0x1a1   : > { %4984 = vst [vmem:[#allocation27_spill] sm:$0xff] %v4716_v24  ;;  %v4718_v63 = vpop.f32.mrf.mxu0 }
 0x1a2   : > { %4985 = vst [vmem:[#allocation28_spill] sm:$0xff] %v4718_v63  ;;  %v4720_v21 = vpop.f32.mrf.mxu1 }
 0x1a3   : > { %4986 = vst [vmem:[#allocation29_spill] sm:$0xff] %v4720_v21  ;;  %v4722_v18 = vpop.f32.mrf.mxu0 }
 0x1a4   : > { %4987 = vst [vmem:[#allocation30_spill] sm:$0xff] %v4722_v18  ;;  %v4724_v52 = vpop.f32.mrf.mxu1 }
 0x1a5   : > { %4988 = vst [vmem:[#allocation31_spill] sm:$0xff] %v4724_v52  ;;  %v4726_v1 = vpop.f32.mrf.mxu0  ;;  %v1859_v52 = vadd.f32 %v3701_v28, %v4531_v46  ;;  %v1858_v28 = vadd.f32 %v4636_v8, %v4540_v41  ;;  %v1861_v41 = vadd.f32 %v4644_v26, %v4546_v19  ;;  %v1864_v19 = vadd.f32 %v4648_v45, %v4549_v32 }
 0x1a6   : > { %4989 = vst [vmem:[#allocation32_spill] sm:$0xff] %v4726_v1  ;;  %v4728_v47 = vpop.f32.mrf.mxu1 }
 0x1a7   : > { %4990 = vst [vmem:[#allocation33_spill] sm:$0xff] %v4728_v47  ;;  %v4730_v59 = vpop.f32.mrf.mxu0 }
 0x1a8   : > { %4991 = vst [vmem:[#allocation34_spill] sm:$0xff] %v4730_v59  ;;  %v4732_v13 = vpop.f32.mrf.mxu1  ;;  %v1857_v59 = vadd.f32 %v1730_v2, %v4534_v15  ;;  %v1863_v2 = vadd.f32 %v4640_v35, %v4543_v61 }
 0x1a9   : > { %4992 = vst [vmem:[#allocation35_spill] sm:$0xff] %v4732_v13  ;;  %v4736_v33 = vpop.f32.mrf.mxu0 }
 0x1aa   : > { %4993 = vst [vmem:[#allocation36_spill] sm:$0xff] %v4736_v33  ;;  %v4738_v24 = vpop.f32.mrf.mxu1  ;;  %v2159_v33 = vadd.f32 %v4624_v14, %v1859_v52  ;;  %v2157_v46 = vadd.f32 %v4628_v60, %v1857_v59  ;;  %v4765_v52 = vld [vmem:[%s4957_s2] ss:$0 sm:$0xff]  ;;  %v2163_v60 = vadd.f32 %v4638_v7, %v1863_v2  ;;  %v1867_v2 = vadd.f32 %v4656_v11, %v4555_v4 }
 0x1ab   : > { %4994 = vst [vmem:[#allocation37_spill] sm:$0xff] %v4738_v24  ;;  %v4740_v63 = vpop.f32.mrf.mxu0 }
 0x1ac   : > { %4995 = vst [vmem:[#allocation38_spill] sm:$0xff] %v4740_v63  ;;  %v4742_v18 = vpop.f32.mrf.mxu1  ;;  %v1860_v63 = vadd.f32 %v4632_v23, %v4537_v51 }
 0x1ad   : > { %4996 = vst [vmem:[#allocation39_spill] sm:$0xff] %v4742_v18  ;;  %v4745_v1 = vpop.f32.mrf.mxu0 }
 0x1ae   : > { %4997 = vst [vmem:[#allocation40_spill] sm:$0xff] %v4745_v1  ;;  %v4747_v47 = vpop.f32.mrf.mxu1  ;;  %v2160_v51 = vadd.f32 %v4630_v53, %v1860_v63 }
 0x1af   : > { %v4750_v13 = vpop.f32.mrf.mxu0 }
 0x1b0   : > { %4998 = vst [vmem:[#allocation41_spill] sm:$0xff] %v4750_v13  ;;  %v4752_v21 = vpop.f32.mrf.mxu1 }
 0x1b1   : > { %v3803_v24 = vpop.f32.mrf.mxu0 }
 0x1b2   : > { %v3769_v18 = vpop.f32.mrf.mxu1 }
 0x1b3   : > { %v2459_v1 = vadd.f32 %v3769_v18, %v2159_v33  ;;  %v2630_v15 = vpop.f32.mrf.mxu0  ;;  %v2158_v18 = vadd.f32 %v4634_v9, %v1858_v28 }
 0x1b4   : > { %v2330_v14 = vpop.f32.mrf.mxu1 }
 0x1b5   : > { %v2759_v23 = vadd.f32 %v3803_v24, %v2459_v1  ;;  %v2457_v13 = vadd.f32 %v2330_v14, %v2157_v46  ;;  %v3804_v59 = vpop.f32.mrf.mxu0  ;;  %v2161_v46 = vadd.f32 %v4642_v40, %v1861_v41 }
 0x1b6   : > { %v3770_v61 = vpop.f32.mrf.mxu1 }
 0x1b7   : > { %v2798_v33 = vadd.f32 %v4765_v52, %v2759_v23  ;;  %v2757_v63 = vadd.f32 %v2630_v15, %v2457_v13  ;;  %v2460_v1 = vadd.f32 %v3770_v61, %v2160_v51  ;;  %v2633_v24 = vpop.f32.mrf.mxu0  ;;  %v1862_v13 = vadd.f32 %v4652_v29, %v4552_v36 }
 0x1b8   : > { %v2333_v53 = vpop.f32.mrf.mxu1  ;;  %v2164_v51 = vadd.f32 %v4646_v22, %v1864_v19  ;;  %v1866_v19 = vadd.f32 %v4668_v5, %v4564_v43 }
 0x1b9   : > { %2831 = vst.msk [vmem:[%s4773_s16 + $0x10] sm:$0xff] %vm2828_vm1, %v2798_v33  ;;  %v2796_v8 = vadd.f32 %v4765_v52, %v2757_v63  ;;  %v2760_v35 = vadd.f32 %v3804_v59, %v2460_v1  ;;  %v2458_v26 = vadd.f32 %v2333_v53, %v2158_v18  ;;  %v3807_v9 = vpop.f32.mrf.mxu0  ;;  %v1865_v59 = vadd.f32 %v4660_v55, %v4558_v31 }
 0x1ba   : > { %v3773_v28 = vpop.f32.mrf.mxu1  ;;  %v2162_v61 = vadd.f32 %v4650_v44, %v1862_v13  ;;  %v2167_v33 = vadd.f32 %v4654_v49, %v1867_v2  ;;  %v1868_v1 = vadd.f32 %v4664_v37, %v4561_v58  ;;  %v1872_v2 = vadd.f32 %v4680_v39, %v4573_v3 }
 0x1bb   : > { %2829 = vst.msk [vmem:[%s4773_s16] sm:$0xff] %vm2828_vm1, %v2796_v8  ;;  %v2799_v7 = vadd.f32 %v4765_v52, %v2760_v35  ;;  %v2758_v32 = vadd.f32 %v2633_v24, %v2458_v26  ;;  %v2463_v45 = vadd.f32 %v3773_v28, %v2163_v60  ;;  %v2646_v15 = vpop.f32.mrf.mxu0  ;;  %v2165_v60 = vadd.f32 %v4658_v10, %v1865_v59 }
 0x1bc   : > { %v2346_v14 = vpop.f32.mrf.mxu1  ;;  %v1871_v35 = vadd.f32 %v4672_v30, %v4567_v56  ;;  %v1869_v28 = vadd.f32 %v4676_v17, %v4570_v16 }
 0x1bd   : > { %2832 = vst.msk [vmem:[%s4773_s16 + $0x18] sm:$0xff] %vm2828_vm1, %v2799_v7  ;;  %v2797_v40 = vadd.f32 %v4765_v52, %v2758_v32  ;;  %v2763_v36 = vadd.f32 %v3807_v9, %v2463_v45  ;;  %v2461_v29 = vadd.f32 %v2346_v14, %v2161_v46  ;;  %v3808_v23 = vpop.f32.mrf.mxu0  ;;  %v2168_v9 = vadd.f32 %v4662_v57, %v1868_v1  ;;  %v4999_v1 = vld [vmem:[#allocation2_spill] sm:$0xff] }
 0x1be   : > { %v3774_v41 = vpop.f32.mrf.mxu1  ;;  %v2166_v7 = vadd.f32 %v4666_v20, %v1866_v19  ;;  %v2171_v45 = vadd.f32 %v4670_v62, %v1871_v35  ;;  %v5002_v19 = vld [vmem:[#allocation3_spill] sm:$0xff] }
 0x1bf   : > { %2830 = vst.msk [vmem:[%s4773_s16 + $0x8] sm:$0xff] %vm2828_vm1, %v2797_v40  ;;  %v2802_v4 = vadd.f32 %v4765_v52, %v2763_v36  ;;  %v2761_v22 = vadd.f32 %v2646_v15, %v2461_v29  ;;  %v2464_v11 = vadd.f32 %v3774_v41, %v2164_v51  ;;  %v2649_v18 = vpop.f32.mrf.mxu0  ;;  %v2169_v51 = vadd.f32 %v4674_v27, %v1869_v28 }
 0x1c0   : > { %v2349_v63 = vpop.f32.mrf.mxu1  ;;  %v1870_v36 = vadd.f32 %v4684_v50, %v4576_v12  ;;  %v2172_v41 = vadd.f32 %v4678_v42, %v1872_v2 }
 0x1c1   : > { %2835 = vst.msk [vmem:[%s4773_s16 + $0x30] sm:$0xff] %vm2828_vm1, %v2802_v4  ;;  %v2800_v31 = vadd.f32 %v4765_v52, %v2761_v22  ;;  %v2764_v44 = vadd.f32 %v3808_v23, %v2464_v11  ;;  %v2462_v55 = vadd.f32 %v2349_v63, %v2162_v61  ;;  %v3811_v24 = vpop.f32.mrf.mxu0  ;;  %v1875_v23 = vadd.f32 %v4688_v48, %v4579_v0 }
 0x1c2   : > { %v3777_v53 = vpop.f32.mrf.mxu1  ;;  %v1873_v4 = vadd.f32 %v4692_v38, %v4582_v34  ;;  %v2170_v11 = vadd.f32 %v4682_v25, %v1870_v36 }
 0x1c3   : > { %2833 = vst.msk [vmem:[%s4773_s16 + $0x20] sm:$0xff] %vm2828_vm1, %v2800_v31  ;;  %v2803_v49 = vadd.f32 %v4765_v52, %v2764_v44  ;;  %v2762_v58 = vadd.f32 %v2649_v18, %v2462_v55  ;;  %v2467_v37 = vadd.f32 %v3777_v53, %v2167_v33  ;;  %v2662_v8 = vpop.f32.mrf.mxu0  ;;  %v2175_v33 = vadd.f32 %v4686_v54, %v1875_v23  ;;  %v5000_v31 = vld [vmem:[#allocation18_spill] sm:$0xff] }
 0x1c4   : > { %v2362_v26 = vpop.f32.mrf.mxu1  ;;  %v1876_v44 = vadd.f32 %v5000_v31, %v4999_v1 }
 0x1c5   : > { %2836 = vst.msk [vmem:[%s4773_s16 + $0x38] sm:$0xff] %vm2828_vm1, %v2803_v49  ;;  %v2801_v10 = vadd.f32 %v4765_v52, %v2762_v58  ;;  %v2767_v43 = vadd.f32 %v3811_v24, %v2467_v37  ;;  %v2465_v5 = vadd.f32 %v2362_v26, %v2165_v60  ;;  %v3812_v46 = vpop.f32.mrf.mxu0  ;;  %v5001_v24 = vld [vmem:[#allocation16_spill] sm:$0xff] }
 0x1c6   : > { %v3778_v13 = vpop.f32.mrf.mxu1  ;;  %v2173_v60 = vadd.f32 %v5001_v24, %v1873_v4  ;;  %v5003_v49 = vld [vmem:[#allocation20_spill] sm:$0xff] }
 0x1c7   : > { %2834 = vst.msk [vmem:[%s4773_s16 + $0x28] sm:$0xff] %vm2828_vm1, %v2801_v10  ;;  %v2806_v56 = vadd.f32 %v4765_v52, %v2767_v43  ;;  %v2765_v57 = vadd.f32 %v2662_v8, %v2465_v5  ;;  %v2468_v30 = vadd.f32 %v3778_v13, %v2168_v9  ;;  %v2665_v32 = vpop.f32.mrf.mxu0  ;;  %v1874_v58 = vadd.f32 %v5003_v49, %v5002_v19  ;;  %v5004_v26 = vld [vmem:[#allocation4_spill] sm:$0xff]  ;;  %v5005_v9 = vld [vmem:[#allocation22_spill] sm:$0xff]  ;;  %v5006_v5 = vld [vmem:[#allocation17_spill] sm:$0xff] }
 0x1c8   : > { %v2365_v15 = vpop.f32.mrf.mxu1  ;;  %v1879_v10 = vadd.f32 %v5005_v9, %v5004_v26  ;;  %v5022_v9 = vld [vmem:[#allocation10_spill] sm:$0xff] }
 0x1c9   : > { %2839 = vst.msk [vmem:[%s4773_s16 + $0x50] sm:$0xff] %vm2828_vm1, %v2806_v56  ;;  %v2804_v16 = vadd.f32 %v4765_v52, %v2765_v57  ;;  %v2768_v20 = vadd.f32 %v3812_v46, %v2468_v30  ;;  %v2466_v17 = vadd.f32 %v2365_v15, %v2166_v7  ;;  %v3815_v14 = vpop.f32.mrf.mxu0  ;;  %v2176_v46 = vadd.f32 %v5006_v5, %v1876_v44  ;;  %v5007_v57 = vld [vmem:[#allocation5_spill] sm:$0xff]  ;;  %v5008_v30 = vld [vmem:[#allocation24_spill] sm:$0xff]  ;;  %v5009_v15 = vld [vmem:[#allocation19_spill] sm:$0xff] }
 0x1ca   : > { %v3781_v40 = vpop.f32.mrf.mxu1  ;;  %v2174_v2 = vadd.f32 %v5009_v15, %v1874_v58 }
 0x1cb   : > { %2837 = vst.msk [vmem:[%s4773_s16 + $0x40] sm:$0xff] %vm2828_vm1, %v2804_v16  ;;  %v2807_v62 = vadd.f32 %v4765_v52, %v2768_v20  ;;  %v2766_v3 = vadd.f32 %v2665_v32, %v2466_v17  ;;  %v2471_v39 = vadd.f32 %v3781_v40, %v2171_v45  ;;  %v2678_v29 = vpop.f32.mrf.mxu0  ;;  %v1877_v32 = vadd.f32 %v5008_v30, %v5007_v57  ;;  %v5025_v30 = vld [vmem:[#allocation11_spill] sm:$0xff] }
 0x1cc   : > { %v2378_v59 = vpop.f32.mrf.mxu1 }
 0x1cd   : > { %2840 = vst.msk [vmem:[%s4773_s16 + $0x58] sm:$0xff] %vm2828_vm1, %v2807_v62  ;;  %v2805_v27 = vadd.f32 %v4765_v52, %v2766_v3  ;;  %v2771_v12 = vadd.f32 %v3815_v14, %v2471_v39  ;;  %v2469_v50 = vadd.f32 %v2378_v59, %v2169_v51  ;;  %v3816_v61 = vpop.f32.mrf.mxu0  ;;  %v5010_v51 = vld [vmem:[#allocation21_spill] sm:$0xff]  ;;  %v5011_v62 = vld [vmem:[#allocation6_spill] sm:$0xff] }
 0x1ce   : > { %v3782_v22 = vpop.f32.mrf.mxu1  ;;  %v2179_v40 = vadd.f32 %v5010_v51, %v1879_v10  ;;  %v1880_v3 = vadd.f32 %v4712_v6, %v5011_v62  ;;  %v5023_v10 = vld [vmem:[#allocation33_spill] sm:$0xff] }
 0x1cf   : > { %2838 = vst.msk [vmem:[%s4773_s16 + $0x48] sm:$0xff] %vm2828_vm1, %v2805_v27  ;;  %v2810_v0 = vadd.f32 %v4765_v52, %v2771_v12  ;;  %v2769_v48 = vadd.f32 %v2678_v29, %v2469_v50  ;;  %v2472_v42 = vadd.f32 %v3782_v22, %v2172_v41  ;;  %v2681_v18 = vpop.f32.mrf.mxu0  ;;  %v5012_v41 = vld [vmem:[#allocation23_spill] sm:$0xff] }
 0x1d0   : > { %v2381_v63 = vpop.f32.mrf.mxu1  ;;  %v2177_v27 = vadd.f32 %v5012_v41, %v1877_v32  ;;  %v5013_v50 = vld [vmem:[#allocation7_spill] sm:$0xff] }
 0x1d1   : > { %2843 = vst.msk [vmem:[%s4773_s16 + $0x70] sm:$0xff] %vm2828_vm1, %v2810_v0  ;;  %v2808_v34 = vadd.f32 %v4765_v52, %v2769_v48  ;;  %v2772_v38 = vadd.f32 %v3816_v61, %v2472_v42  ;;  %v2470_v25 = vadd.f32 %v2381_v63, %v2170_v11  ;;  %v3819_v55 = vpop.f32.mrf.mxu0  ;;  %v5014_v61 = vld [vmem:[#allocation27_spill] sm:$0xff]  ;;  %v5015_v48 = vld [vmem:[#allocation8_spill] sm:$0xff]  ;;  %v5016_v42 = vld [vmem:[#allocation29_spill] sm:$0xff] }
 0x1d2   : > { %v3785_v53 = vpop.f32.mrf.mxu1  ;;  %v1878_v4 = vadd.f32 %v5014_v61, %v5013_v50  ;;  %v5017_v63 = vld [vmem:[#allocation25_spill] sm:$0xff]  ;;  %v5026_v32 = vld [vmem:[#allocation35_spill] sm:$0xff]  ;;  %v5032_v50 = vld [vmem:[#allocation34_spill] sm:$0xff] }
 0x1d3   : > { %2841 = vst.msk [vmem:[%s4773_s16 + $0x60] sm:$0xff] %vm2828_vm1, %v2808_v34  ;;  %v2811_v54 = vadd.f32 %v4765_v52, %v2772_v38  ;;  %v2770_v37 = vadd.f32 %v2681_v18, %v2470_v25  ;;  %v2475_v8 = vadd.f32 %v3785_v53, %v2175_v33  ;;  %v2694_v35 = vpop.f32.mrf.mxu0  ;;  %v1883_v18 = vadd.f32 %v5016_v42, %v5015_v48  ;;  %v5018_v25 = vld [vmem:[#allocation9_spill] sm:$0xff]  ;;  %v5020_v53 = vld [vmem:[#allocation26_spill] sm:$0xff]  ;;  %v5031_v41 = vld [vmem:[#allocation39_spill] sm:$0xff] }
 0x1d4   : > { %v2394_v43 = vpop.f32.mrf.mxu1  ;;  %v2180_v1 = vadd.f32 %v5017_v63, %v1880_v3  ;;  %v2178_v19 = vadd.f32 %v5020_v53, %v1878_v4 }
 0x1d5   : > { %2844 = vst.msk [vmem:[%s4773_s16 + $0x78] sm:$0xff] %vm2828_vm1, %v2811_v54  ;;  %v2809_v28 = vadd.f32 %v4765_v52, %v2770_v37  ;;  %v2775_v13 = vadd.f32 %v3819_v55, %v2475_v8  ;;  %v2473_v7 = vadd.f32 %v2394_v43, %v2173_v60  ;;  %v3820_v56 = vpop.f32.mrf.mxu0  ;;  %v5019_v55 = vld [vmem:[#allocation31_spill] sm:$0xff]  ;;  %v5021_v8 = vld [vmem:[#allocation28_spill] sm:$0xff]  ;;  %v1884_v43 = vadd.f32 %v5023_v10, %v5022_v9  ;;  %v5038_v9 = vld [vmem:[#allocation41_spill] sm:$0xff] }
 0x1d6   : > { %v3786_v45 = vpop.f32.mrf.mxu1  ;;  %v1881_v24 = vadd.f32 %v5019_v55, %v5018_v25  ;;  %v5036_v55 = vld [vmem:[#allocation15_spill] sm:$0xff] }
 0x1d7   : > { %2842 = vst.msk [vmem:[%s4773_s16 + $0x68] sm:$0xff] %vm2828_vm1, %v2809_v28  ;;  %v2814_v16 = vadd.f32 %v4765_v52, %v2775_v13  ;;  %v2773_v20 = vadd.f32 %v2694_v35, %v2473_v7  ;;  %v2476_v17 = vadd.f32 %v3786_v45, %v2176_v46  ;;  %v2697_v14 = vpop.f32.mrf.mxu0  ;;  %v2183_v35 = vadd.f32 %v5021_v8, %v1883_v18  ;;  %v5024_v7 = vld [vmem:[#allocation30_spill] sm:$0xff] }
 0x1d8   : > { %v2397_v36 = vpop.f32.mrf.mxu1  ;;  %v1882_v45 = vadd.f32 %v5026_v32, %v5025_v30  ;;  %v5034_v18 = vld [vmem:[#allocation14_spill] sm:$0xff] }
 0x1d9   : > { %2847 = vst.msk [vmem:[%s4773_s16 + $0x90] sm:$0xff] %vm2828_vm1, %v2814_v16  ;;  %v2812_v39 = vadd.f32 %v4765_v52, %v2773_v20  ;;  %v2776_v29 = vadd.f32 %v3820_v56, %v2476_v17  ;;  %v2474_v23 = vadd.f32 %v2397_v36, %v2174_v2  ;;  %v3823_v59 = vpop.f32.mrf.mxu0  ;;  %v2181_v56 = vadd.f32 %v5024_v7, %v1881_v24  ;;  %v5027_v17 = vld [vmem:[#allocation12_spill] sm:$0xff] }
 0x1da   : > { %v3789_v12 = vpop.f32.mrf.mxu1  ;;  %v5029_v36 = vld [vmem:[#allocation32_spill] sm:$0xff]  ;;  %v2182_v61 = vadd.f32 %v5032_v50, %v1882_v45  ;;  %v1886_v24 = vadd.f32 %v4752_v21, %v5036_v55 }
 0x1db   : > { %2845 = vst.msk [vmem:[%s4773_s16 + $0x80] sm:$0xff] %vm2828_vm1, %v2812_v39  ;;  %v2815_v22 = vadd.f32 %v4765_v52, %v2776_v29  ;;  %v2774_v6 = vadd.f32 %v2697_v14, %v2474_v23  ;;  %v2479_v11 = vadd.f32 %v3789_v12, %v2179_v40  ;;  %v2710_v0 = vpop.f32.mrf.mxu0  ;;  %v5028_v14 = vld [vmem:[#allocation37_spill] sm:$0xff]  ;;  %v2184_v62 = vadd.f32 %v5029_v36, %v1884_v43 }
 0x1dc   : > { %v2410_v33 = vpop.f32.mrf.mxu1  ;;  %v1887_v51 = vadd.f32 %v5028_v14, %v5027_v17  ;;  %v2186_v10 = vadd.f32 %v5038_v9, %v1886_v24 }
 0x1dd   : > { %2848 = vst.msk [vmem:[%s4773_s16 + $0x98] sm:$0xff] %vm2828_vm1, %v2815_v22  ;;  %v2813_v31 = vadd.f32 %v4765_v52, %v2774_v6  ;;  %v2779_v44 = vadd.f32 %v3823_v59, %v2479_v11  ;;  %v2477_v34 = vadd.f32 %v2410_v33, %v2177_v27  ;;  %v3824_v38 = vpop.f32.mrf.mxu0  ;;  %v5030_v59 = vld [vmem:[#allocation13_spill] sm:$0xff]  ;;  %v1888_v33 = vadd.f32 %v4747_v47, %v5034_v18 }
 0x1de   : > { %v3790_v60 = vpop.f32.mrf.mxu1  ;;  %v1885_v27 = vadd.f32 %v5031_v41, %v5030_v59 }
 0x1df   : > { %2846 = vst.msk [vmem:[%s4773_s16 + $0x88] sm:$0xff] %vm2828_vm1, %v2813_v31  ;;  %v2818_v49 = vadd.f32 %v4765_v52, %v2779_v44  ;;  %v2777_v58 = vadd.f32 %v2710_v0, %v2477_v34  ;;  %v2480_v54 = vadd.f32 %v3790_v60, %v2180_v1  ;;  %v2713_v37 = vpop.f32.mrf.mxu0  ;;  %v5033_v0 = vld [vmem:[#allocation36_spill] sm:$0xff]  ;;  %v5035_v34 = vld [vmem:[#allocation38_spill] sm:$0xff] }
 0x1e0   : > { %v2413_v26 = vpop.f32.mrf.mxu1  ;;  %v2187_v48 = vadd.f32 %v5033_v0, %v1887_v51 }
 0x1e1   : > { %2851 = vst.msk [vmem:[%s4773_s16 + $0xb0] sm:$0xff] %vm2828_vm1, %v2818_v49  ;;  %v2816_v5 = vadd.f32 %v4765_v52, %v2777_v58  ;;  %v2780_v46 = vadd.f32 %v3824_v38, %v2480_v54  ;;  %v2478_v28 = vadd.f32 %v2413_v26, %v2178_v19  ;;  %v3827_v13 = vpop.f32.mrf.mxu0  ;;  %v2185_v38 = vadd.f32 %v5035_v34, %v1885_v27  ;;  %v5037_v58 = vld [vmem:[#allocation40_spill] sm:$0xff] }
 0x1e2   : > { %v3793_v57 = vpop.f32.mrf.mxu1  ;;  %v2188_v54 = vadd.f32 %v5037_v58, %v1888_v33 }
 0x1e3   : > { %2849 = vst.msk [vmem:[%s4773_s16 + $0xa0] sm:$0xff] %vm2828_vm1, %v2816_v5  ;;  %v2819_v15 = vadd.f32 %v4765_v52, %v2780_v46  ;;  %v2778_v2 = vadd.f32 %v2713_v37, %v2478_v28  ;;  %v2483_v16 = vadd.f32 %v3793_v57, %v2183_v35  ;;  %v2726_v20 = vpop.f32.mrf.mxu0 }
 0x1e4   : > { %v2426_v40 = vpop.f32.mrf.mxu1 }
 0x1e5   : > { %2852 = vst.msk [vmem:[%s4773_s16 + $0xb8] sm:$0xff] %vm2828_vm1, %v2819_v15  ;;  %v2817_v3 = vadd.f32 %v4765_v52, %v2778_v2  ;;  %v2783_v39 = vadd.f32 %v3827_v13, %v2483_v16  ;;  %v2481_v29 = vadd.f32 %v2426_v40, %v2181_v56  ;;  %v3828_v23 = vpop.f32.mrf.mxu0 }
 0x1e6   : > { %v3794_v12 = vpop.f32.mrf.mxu1 }
 0x1e7   : > { %2850 = vst.msk [vmem:[%s4773_s16 + $0xa8] sm:$0xff] %vm2828_vm1, %v2817_v3  ;;  %v2822_v4 = vadd.f32 %v4765_v52, %v2783_v39  ;;  %v2781_v22 = vadd.f32 %v2726_v20, %v2481_v29  ;;  %v2484_v6 = vadd.f32 %v3794_v12, %v2184_v62  ;;  %v2729_v11 = vpop.f32.mrf.mxu0 }
 0x1e8   : > { %v2429_v42 = vpop.f32.mrf.mxu1 }
 0x1e9   : > { %2855 = vst.msk [vmem:[%s4773_s16 + $0xd0] sm:$0xff] %vm2828_vm1, %v2822_v4  ;;  %v2820_v63 = vadd.f32 %v4765_v52, %v2781_v22  ;;  %v2784_v1 = vadd.f32 %v3828_v23, %v2484_v6  ;;  %v2482_v31 = vadd.f32 %v2429_v42, %v2182_v61  ;;  %v3831_v44 = vpop.f32.mrf.mxu0 }
 0x1ea   : > { %v3797_v25 = vpop.f32.mrf.mxu1 }
 0x1eb   : > { %2853 = vst.msk [vmem:[%s4773_s16 + $0xc0] sm:$0xff] %vm2828_vm1, %v2820_v63  ;;  %v2823_v60 = vadd.f32 %v4765_v52, %v2784_v1  ;;  %v2782_v47 = vadd.f32 %v2729_v11, %v2482_v31  ;;  %v2487_v53 = vadd.f32 %v3797_v25, %v2187_v48  ;;  %v2742_v19 = vpop.f32.mrf.mxu0 }
 0x1ec   : > { %v2442_v49 = vpop.f32.mrf.mxu1 }
 0x1ed   : > { %2856 = vst.msk [vmem:[%s4773_s16 + $0xd8] sm:$0xff] %vm2828_vm1, %v2823_v60  ;;  %v2821_v37 = vadd.f32 %v4765_v52, %v2782_v47  ;;  %v2787_v8 = vadd.f32 %v3831_v44, %v2487_v53  ;;  %v2485_v35 = vadd.f32 %v2442_v49, %v2185_v38  ;;  %v3832_v21 = vpop.f32.mrf.mxu0 }
 0x1ee   : > { %v3798_v26 = vpop.f32.mrf.mxu1 }
 0x1ef   : > { %2854 = vst.msk [vmem:[%s4773_s16 + $0xc8] sm:$0xff] %vm2828_vm1, %v2821_v37  ;;  %v2826_v43 = vadd.f32 %v4765_v52, %v2787_v8  ;;  %v2785_v5 = vadd.f32 %v2742_v19, %v2485_v35  ;;  %v2488_v46 = vadd.f32 %v3798_v26, %v2188_v54  ;;  %v2745_v57 = vpop.f32.mrf.mxu0 }
 0x1f0   : > { %v2445_v28 = vpop.f32.mrf.mxu1 }
 0x1f1   : > { %2859 = vst.msk [vmem:[%s4773_s16 + $0xf0] sm:$0xff] %vm2828_vm1, %v2826_v43  ;;  %v2824_v13 = vadd.f32 %v4765_v52, %v2785_v5  ;;  %v2788_v7 = vadd.f32 %v3832_v21, %v2488_v46  ;;  %v2486_v56 = vadd.f32 %v2445_v28, %v2186_v10 }
 0x1f3   : > { %2857 = vst.msk [vmem:[%s4773_s16 + $0xe0] sm:$0xff] %vm2828_vm1, %v2824_v13  ;;  %v2827_v30 = vadd.f32 %v4765_v52, %v2788_v7  ;;  %v2786_v32 = vadd.f32 %v2745_v57, %v2486_v56 }
 0x1f5   : > { %2860 = vst.msk [vmem:[%s4773_s16 + $0xf8] sm:$0xff] %vm2828_vm1, %v2827_v30  ;;  %v2825_v45 = vadd.f32 %v4765_v52, %v2786_v32 }
 0x1f7   : > { %2858 = vst.msk [vmem:[%s4773_s16 + $0xe8] sm:$0xff] %vm2828_vm1, %v2825_v45 }
 0x1f8 PF: > { %s13_s12 = sadd.s32 1, %s3858_s12  }
 0x1f9   : > { %p10_p4 = scmp.ge.s32.totalorder %s13_s12, 5  }
 0x1fb   :  { %12 = sbr.rel (!%p10_p4) target bundleno = 1 (0x1), region = 76 }

// kernel: inception_a_forward.12
= control target key start
LH: loop header
LB: loop body
LE: loop exit
PB: predicated region body
PF: predicated region fallthrough
CT: control target
= control target key end

     0   :  { %s4008_s12 = smov 0   ;;  %s5135_s0 = inlined_call_operand.vmem [shape: f32[808,24], index: 0, kind: input, shape index: {}]   ;;  %s5136_s1 = inlined_call_operand.vmem [shape: bf16[9,24,24], index: 1, kind: input, shape index: {}]   ;;  %s5137_s2 = inlined_call_operand.vmem [shape: f32[1,24], index: 2, kind: input, shape index: {}]   ;;  %s5138_s3 = inlined_call_operand.vmem [shape: f32[768,24], index: 3, kind: output, shape index: {}]  }
   0x1 LB: > { %s2994_s13 = sadd.s32 4294967295, %s3986_s12   ;;  %p2997_p0 = scmp.ge.s32.totalorder %s3986_s12, 1  ;;  %s3986_s12 = sphi %s4008_s12, %s13_s12  }
   0x2   : > { %p127_p1 = scmp.lt.s32.totalorder %s3986_s12, 4 }
   0x4   : > { %p128_p2 = pnand %p2997_p0, %p127_p1 }
   0x6   : > { %131 = sbr.rel (%p128_p2) target bundleno = 506 (0x1fa), region = 32 }
   0xb   : > { %v3962_v0 = vld [vmem:[%s5136_s1 + $0x14] ss:$0 sps:$4 sm:$0xff]   ;;  %vm318_vm0 = vcmask 1043456   ;;  %v3963_v1 = vld [vmem:[%s5136_s1 + $0xc] sm:$0xff]   ;;  %s3000_s18 = sshll.u32 %s2994_s13, 8  ;;  %vm269_vm1 = vcmask 195584  }
   0xc   : > { %3944 = vmatprep.subr.msk.bf16.mxu0 %vm318_vm0, %v3962_v0  ;;  %3945 = vmatprep.subr.msk.bf16.mxu1 %vm318_vm0, %v3962_v0  ;;  %v320_v2 = vsel %vm318_vm0, %v3962_v0, 0  ;;  %s4030_s21 = scalar_lea.vmem %s5135_s0, %s3000_s18  ;;  %v3964_v3 = vld [vmem:[%s5136_s1 + $0x8] ss:$0 sps:$4 sm:$0xff]   ;;  %v3965_v16 = vld [vmem:[%s5136_s1 + $0x20] ss:$0 sps:$4 sm:$0xff]   ;;  %v3967_v34 = vld [vmem:[%s5136_s1 + $0x18] sm:$0xff]  }
   0xd   : > { %3617 = vmatpush3.bf16.msra.mxu0 %v320_v2  ;;  %3942 = vmatpush3.bf16.msra.mxu1 %v320_v2  ;;  %v3002_v4 = vld [vmem:[%s4030_s21 + $0x1] sm:$0xff]  ;;  %v3003_v5 = vld [vmem:[%s4030_s21 + $0x9] sm:$0xff]  ;;  %v3004_v9 = vld [vmem:[%s4030_s21 + $0x11] sm:$0xff]  ;;  %v541_v21 = vsel %vm318_vm0, %v3964_v3, 0  ;;  %v816_v22 = vsel %vm318_vm0, %v3965_v16, 0 }
   0xe   : > { %v3018_v6 = vld [vmem:[%s4030_s21 + $0x81] sm:$0xff]  ;;  %3618 = vmatprep.subr.bf16.mxu0 %v3963_v1  ;;  %3941 = vmatprep.subr.bf16.mxu1 %v3963_v1  ;;  %v240_v7 = vpack.c.bf16 %v3003_v5, %v3002_v4  ;;  %v3019_v8 = vld [vmem:[%s4030_s21 + $0x89] sm:$0xff]  ;;  %v3005_v10 = vld [vmem:[%s4030_s21 + $0x19] sm:$0xff] }
   0xf   : > { %v248_v11 = vpack.c.bf16 %v3019_v8, %v3018_v6  ;;  %v3020_v12 = vld [vmem:[%s4030_s21 + $0x91] sm:$0xff]  ;;  %v3021_v13 = vld [vmem:[%s4030_s21 + $0x99] sm:$0xff]  ;;  %v241_v14 = vpack.c.bf16 %v3005_v10, %v3004_v9  ;;  %v3006_v17 = vld [vmem:[%s4030_s21 + $0x21] sm:$0xff] }
  0x10   : > { %3620 = vmatprep.mubr.msk.bf16.mxu0 %vm269_vm1, %v240_v7  ;;  %v249_v15 = vpack.c.bf16 %v3021_v13, %v3020_v12  ;;  %v3007_v18 = vld [vmem:[%s4030_s21 + $0x29] sm:$0xff]  ;;  %v3022_v19 = vld [vmem:[%s4030_s21 + $0xa1] sm:$0xff]  ;;  %v3008_v26 = vld [vmem:[%s4030_s21 + $0x31] sm:$0xff] }
  0x11   : > { %3619 = vmatpush3.bf16.msra.mxu0 %v3963_v1  ;;  %3943 = vmatpush3.bf16.msra.mxu1 %v3963_v1  ;;  %v3023_v20 = vld [vmem:[%s4030_s21 + $0xa9] sm:$0xff]  ;;  %v242_v23 = vpack.c.bf16 %v3007_v18, %v3006_v17  ;;  %v3966_v25 = vld [vmem:[%s5136_s1] sm:$0xff]   ;;  %v3024_v28 = vld [vmem:[%s4030_s21 + $0xb1] sm:$0xff] }
  0x12   : > { %3636 = vmatprep.mubr.msk.bf16.mxu1 %vm269_vm1, %v248_v11  ;;  %3946 = vmatprep.subr.msk.bf16.mxu1 %vm318_vm0, %v3964_v3  ;;  %v250_v24 = vpack.c.bf16 %v3023_v20, %v3022_v19  ;;  %v3009_v27 = vld [vmem:[%s4030_s21 + $0x39] sm:$0xff]  ;;  %v3010_v30 = vld [vmem:[%s4030_s21 + $0x41] sm:$0xff]  ;;  %v3011_v31 = vld [vmem:[%s4030_s21 + $0x49] sm:$0xff] }
  0x13   : > { %3947 = vmatprep.subr.msk.bf16.mxu0 %vm318_vm0, %v3965_v16  ;;  %v3025_v29 = vld [vmem:[%s4030_s21 + $0xb9] sm:$0xff]  ;;  %v3026_v32 = vld [vmem:[%s4030_s21 + $0xc1] sm:$0xff]  ;;  %v3027_v33 = vld [vmem:[%s4030_s21 + $0xc9] sm:$0xff]  ;;  %v243_v35 = vpack.c.bf16 %v3009_v27, %v3008_v26  ;;  %v244_v37 = vpack.c.bf16 %v3011_v31, %v3010_v30 }
  0x14   : > { %3621 = vmatmul.mubr.msk.bf16.vlgmr.msra.gmra.mxu0 %vm269_vm1, %v241_v14  ;;  %3637 = vmatmul.mubr.msk.bf16.vlgmr.msra.gmra.mxu1 %vm269_vm1, %v249_v15  ;;  %v251_v36 = vpack.c.bf16 %v3025_v29, %v3024_v28  ;;  %v252_v38 = vpack.c.bf16 %v3027_v33, %v3026_v32  ;;  %v3012_v39 = vld [vmem:[%s4030_s21 + $0x51] sm:$0xff]  ;;  %v3013_v40 = vld [vmem:[%s4030_s21 + $0x59] sm:$0xff]  ;;  %v3014_v43 = vld [vmem:[%s4030_s21 + $0x61] sm:$0xff] }
  0x15   : > { %3653 = vmatpush3.bf16.msra.mxu1 %v541_v21  ;;  %3689 = vmatpush3.bf16.msra.mxu0 %v816_v22  ;;  %v3028_v41 = vld [vmem:[%s4030_s21 + $0xd1] sm:$0xff]  ;;  %v3029_v42 = vld [vmem:[%s4030_s21 + $0xd9] sm:$0xff]  ;;  %v3968_v44 = vld [vmem:[%s5136_s1 + $0x2c] ss:$0 sps:$4 sm:$0xff]   ;;  %v245_v49 = vpack.c.bf16 %v3013_v40, %v3012_v39 }
  0x16   : > { %3624 = vmatprep.mubr.msk.bf16.mxu0 %vm269_vm1, %v242_v23  ;;  %3640 = vmatprep.mubr.msk.bf16.mxu1 %vm269_vm1, %v250_v24  ;;  %v3969_v45 = vld [vmem:[%s5136_s1 + $0x38] ss:$0 sps:$4 sm:$0xff]   ;;  %v3015_v46 = vld [vmem:[%s4030_s21 + $0x69] sm:$0xff]  ;;  %v3030_v47 = vld [vmem:[%s4030_s21 + $0xe1] sm:$0xff]  ;;  %v253_v50 = vpack.c.bf16 %v3029_v42, %v3028_v41  ;;  %v1123_v11 = vsel %vm318_vm0, %v3968_v44, 0 }
  0x17   : > { %3654 = vmatprep.subr.bf16.mxu1 %v3966_v25  ;;  %3690 = vmatprep.subr.bf16.mxu0 %v3967_v34  ;;  %v3031_v48 = vld [vmem:[%s4030_s21 + $0xe9] sm:$0xff]  ;;  %v246_v51 = vpack.c.bf16 %v3015_v46, %v3014_v43  ;;  %v3016_v53 = vld [vmem:[%s4030_s21 + $0x71] sm:$0xff]  ;;  %v3017_v54 = vld [vmem:[%s4030_s21 + $0x79] sm:$0xff]  ;;  %v1430_v12 = vsel %vm318_vm0, %v3969_v45, 0 }
  0x18   : > { %v254_v52 = vpack.c.bf16 %v3031_v48, %v3030_v47  ;;  %v3032_v55 = vld [vmem:[%s4030_s21 + $0xf1] sm:$0xff]  ;;  %v3033_v56 = vld [vmem:[%s4030_s21 + $0xf9] sm:$0xff]  ;;  %v156_v58 = vld [vmem:[%s4030_s21 + $0x8] sm:$0xff]  ;;  %v247_v61 = vpack.c.bf16 %v3017_v54, %v3016_v53 }
  0x19   : > { %3655 = vmatpush3.bf16.msra.mxu1 %v3966_v25  ;;  %3691 = vmatpush3.bf16.msra.mxu0 %v3967_v34  ;;  %v155_v57 = vld [vmem:[%s4030_s21] sm:$0xff]  ;;  %v3075_v60 = vld [vmem:[%s4030_s21 + $0xa] sm:$0xff]  ;;  %v255_v62 = vpack.c.bf16 %v3033_v56, %v3032_v55  ;;  %v158_v2 = vld [vmem:[%s4030_s21 + $0x18] sm:$0xff] }
  0x1a   : > { %3948 = vmatprep.subr.msk.bf16.mxu1 %vm318_vm0, %v3968_v44  ;;  %3949 = vmatprep.subr.msk.bf16.mxu0 %vm318_vm0, %v3969_v45  ;;  %v3074_v59 = vld [vmem:[%s4030_s21 + $0x2] sm:$0xff]  ;;  %v187_v63 = vpack.c.bf16 %v156_v58, %v155_v57  ;;  %v157_v1 = vld [vmem:[%s4030_s21 + $0x10] sm:$0xff]  ;;  %v3077_v4 = vld [vmem:[%s4030_s21 + $0x1a] sm:$0xff] }
  0x1b   : > { %v738_v0 = vpack.c.bf16 %v3075_v60, %v3074_v59  ;;  %v3076_v3 = vld [vmem:[%s4030_s21 + $0x12] sm:$0xff]  ;;  %v159_v5 = vld [vmem:[%s4030_s21 + $0x20] sm:$0xff]  ;;  %v160_v6 = vld [vmem:[%s4030_s21 + $0x28] sm:$0xff]  ;;  %v188_v9 = vpack.c.bf16 %v158_v2, %v157_v1 }
  0x1c   : > { %3625 = vmatmul.mubr.msk.bf16.gmra.mxu0 %vm269_vm1, %v243_v35  ;;  %3641 = vmatmul.mubr.msk.bf16.gmra.mxu1 %vm269_vm1, %v251_v36  ;;  %v3078_v7 = vld [vmem:[%s4030_s21 + $0x22] sm:$0xff]  ;;  %v3079_v8 = vld [vmem:[%s4030_s21 + $0x2a] sm:$0xff]  ;;  %v4118_v10 = vpack.c.bf16 %v3077_v4, %v3076_v3  ;;  %v189_v13 = vpack.c.bf16 %v160_v6, %v159_v5  ;;  %v162_v16 = vld [vmem:[%s4030_s21 + $0x38] sm:$0xff] }
  0x1d   : > { %3628 = vmatprep.mubr.msk.bf16.mxu0 %vm269_vm1, %v244_v37  ;;  %3644 = vmatprep.mubr.msk.bf16.mxu1 %vm269_vm1, %v252_v38  ;;  %v4122_v14 = vpack.c.bf16 %v3079_v8, %v3078_v7  ;;  %v161_v15 = vld [vmem:[%s4030_s21 + $0x30] sm:$0xff]  ;;  %v3970_v18 = vld [vmem:[%s5136_s1 + $0x24] sm:$0xff]   ;;  %v3081_v20 = vld [vmem:[%s4030_s21 + $0x3a] sm:$0xff] }
  0x1e   : > { %v3080_v17 = vld [vmem:[%s4030_s21 + $0x32] sm:$0xff]  ;;  %v163_v21 = vld [vmem:[%s4030_s21 + $0x40] sm:$0xff]  ;;  %v164_v22 = vld [vmem:[%s4030_s21 + $0x48] sm:$0xff]  ;;  %v190_v27 = vpack.c.bf16 %v162_v16, %v161_v15 }
  0x1f   : > { %v3971_v19 = vld [vmem:[%s5136_s1 + $0x30] sm:$0xff]   ;;  %v3082_v23 = vld [vmem:[%s4030_s21 + $0x42] sm:$0xff]  ;;  %v4154_v28 = vpack.c.bf16 %v3081_v20, %v3080_v17  ;;  %v191_v29 = vpack.c.bf16 %v164_v22, %v163_v21  ;;  %v166_v32 = vld [vmem:[%s4030_s21 + $0x58] sm:$0xff] }
  0x20   : > { %v3083_v24 = vld [vmem:[%s4030_s21 + $0x4a] sm:$0xff]  ;;  %v4147_v25 = vld [vmem:[%s5136_s1 + $0x44] ss:$0 sps:$4 sm:$0xff]   ;;  %v3084_v33 = vld [vmem:[%s4030_s21 + $0x52] sm:$0xff] }
  0x21   : > { %v4152_v26 = vld [vmem:[%s5136_s1 + $0x50] ss:$0 sps:$4 sm:$0xff]   ;;  %v4156_v30 = vpack.c.bf16 %v3083_v24, %v3082_v23  ;;  %v3085_v34 = vld [vmem:[%s4030_s21 + $0x5a] sm:$0xff]  ;;  %v168_v36 = vld [vmem:[%s4030_s21 + $0x68] sm:$0xff] }
  0x22   : > { %v165_v31 = vld [vmem:[%s4030_s21 + $0x50] sm:$0xff]  ;;  %v167_v35 = vld [vmem:[%s4030_s21 + $0x60] sm:$0xff]  ;;  %v4176_v40 = vpack.c.bf16 %v3085_v34, %v3084_v33  ;;  %v170_v44 = vld [vmem:[%s4030_s21 + $0x78] sm:$0xff] }
  0x23   : > { %v3086_v37 = vld [vmem:[%s4030_s21 + $0x62] sm:$0xff]  ;;  %v3087_v38 = vld [vmem:[%s4030_s21 + $0x6a] sm:$0xff]  ;;  %v192_v39 = vpack.c.bf16 %v166_v32, %v165_v31  ;;  %v193_v41 = vpack.c.bf16 %v168_v36, %v167_v35  ;;  %v3088_v45 = vld [vmem:[%s4030_s21 + $0x72] sm:$0xff] }
  0x24   : > { %3629 = vmatmul.mubr.msk.bf16.gmra.mxu0 %vm269_vm1, %v245_v49  ;;  %3645 = vmatmul.mubr.msk.bf16.gmra.mxu1 %vm269_vm1, %v253_v50  ;;  %v4178_v42 = vpack.c.bf16 %v3087_v38, %v3086_v37  ;;  %v169_v43 = vld [vmem:[%s4030_s21 + $0x70] sm:$0xff]  ;;  %v3089_v46 = vld [vmem:[%s4030_s21 + $0x7a] sm:$0xff]  ;;  %v172_v48 = vld [vmem:[%s4030_s21 + $0x88] sm:$0xff] }
  0x25   : > { %3632 = vmatprep.mubr.msk.bf16.mxu0 %vm269_vm1, %v246_v51  ;;  %3648 = vmatprep.mubr.msk.bf16.mxu1 %vm269_vm1, %v254_v52  ;;  %v171_v47 = vld [vmem:[%s4030_s21 + $0x80] sm:$0xff]  ;;  %v3091_v50 = vld [vmem:[%s4030_s21 + $0x8a] sm:$0xff]  ;;  %v194_v51 = vpack.c.bf16 %v170_v44, %v169_v43  ;;  %v4194_v52 = vpack.c.bf16 %v3089_v46, %v3088_v45  ;;  %v174_v56 = vld [vmem:[%s4030_s21 + $0x98] sm:$0xff] }
  0x26   : > { %v3090_v49 = vld [vmem:[%s4030_s21 + $0x82] sm:$0xff]  ;;  %v195_v53 = vpack.c.bf16 %v172_v48, %v171_v47  ;;  %v173_v55 = vld [vmem:[%s4030_s21 + $0x90] sm:$0xff]  ;;  %v3093_v58 = vld [vmem:[%s4030_s21 + $0x9a] sm:$0xff] }
  0x27   : > { %v4196_v54 = vpack.c.bf16 %v3091_v50, %v3090_v49  ;;  %v3092_v57 = vld [vmem:[%s4030_s21 + $0x92] sm:$0xff]  ;;  %v175_v59 = vld [vmem:[%s4030_s21 + $0xa0] sm:$0xff]  ;;  %v176_v60 = vld [vmem:[%s4030_s21 + $0xa8] sm:$0xff]  ;;  %v1737_v49 = vsel %vm318_vm0, %v4147_v25, 0  ;;  %v2044_v50 = vsel %vm318_vm0, %v4152_v26, 0 }
  0x28   : > { %v197_v1 = vpack.c.bf16 %v176_v60, %v175_v59  ;;  %v177_v3 = vld [vmem:[%s4030_s21 + $0xb0] sm:$0xff]  ;;  %v178_v4 = vld [vmem:[%s4030_s21 + $0xb8] sm:$0xff]  ;;  %v179_v7 = vld [vmem:[%s4030_s21 + $0xc0] sm:$0xff] }
  0x29   : > { %v3096_v5 = vld [vmem:[%s4030_s21 + $0xb2] sm:$0xff]  ;;  %v3097_v6 = vld [vmem:[%s4030_s21 + $0xba] sm:$0xff]  ;;  %v180_v8 = vld [vmem:[%s4030_s21 + $0xc8] sm:$0xff] }
  0x2a   : > { %v199_v15 = vpack.c.bf16 %v180_v8, %v179_v7  ;;  %v181_v17 = vld [vmem:[%s4030_s21 + $0xd0] sm:$0xff]  ;;  %v3101_v20 = vld [vmem:[%s4030_s21 + $0xda] sm:$0xff]  ;;  %v184_v22 = vld [vmem:[%s4030_s21 + $0xe8] sm:$0xff] }
  0x2b   : > { %v183_v21 = vld [vmem:[%s4030_s21 + $0xe0] sm:$0xff]  ;;  %v3103_v24 = vld [vmem:[%s4030_s21 + $0xea] sm:$0xff]  ;;  %v186_v34 = vld [vmem:[%s4030_s21 + $0xf8] sm:$0xff] }
  0x2c   : > { %3633 = vmatmul.mubr.msk.bf16.gmra.mxu0 %vm269_vm1, %v247_v61  ;;  %3649 = vmatmul.mubr.msk.bf16.gmra.mxu1 %vm269_vm1, %v255_v62  ;;  %v3094_v61 = vld [vmem:[%s4030_s21 + $0xa2] sm:$0xff]  ;;  %v3095_v62 = vld [vmem:[%s4030_s21 + $0xaa] sm:$0xff]  ;;  %v201_v31 = vpack.c.bf16 %v184_v22, %v183_v21  ;;  %v3104_v35 = vld [vmem:[%s4030_s21 + $0xf2] sm:$0xff] }
  0x2d   : > { %3656 = vmatprep.mubr.msk.bf16.mxu1 %vm269_vm1, %v187_v63  ;;  %3692 = vmatprep.mubr.msk.bf16.mxu0 %vm269_vm1, %v738_v0  ;;  %v196_v63 = vpack.c.bf16 %v174_v56, %v173_v55  ;;  %v4212_v0 = vpack.c.bf16 %v3093_v58, %v3092_v57  ;;  %v4214_v2 = vpack.c.bf16 %v3095_v62, %v3094_v61  ;;  %v3102_v23 = vld [vmem:[%s4030_s21 + $0xe2] sm:$0xff]  ;;  %v185_v33 = vld [vmem:[%s4030_s21 + $0xf0] sm:$0xff]  ;;  %v3105_v36 = vld [vmem:[%s4030_s21 + $0xfa] sm:$0xff] }
  0x2e   : > { %v4250_v32 = vpack.c.bf16 %v3103_v24, %v3102_v23  ;;  %v3182_v37 = vld [vmem:[%s4030_s21 + $0x13] sm:$0xff]  ;;  %v3183_v38 = vld [vmem:[%s4030_s21 + $0x1b] sm:$0xff]  ;;  %v3184_v44 = vld [vmem:[%s4030_s21 + $0x23] sm:$0xff] }
  0x2f   : > { %v1352_v43 = vpack.c.bf16 %v3183_v38, %v3182_v37  ;;  %v3185_v45 = vld [vmem:[%s4030_s21 + $0x2b] sm:$0xff]  ;;  %v3186_v46 = vld [vmem:[%s4030_s21 + $0x33] sm:$0xff]  ;;  %v3187_v47 = vld [vmem:[%s4030_s21 + $0x3b] sm:$0xff] }
  0x30   : > { %v1353_v48 = vpack.c.bf16 %v3185_v45, %v3184_v44  ;;  %v3189_v55 = vld [vmem:[%s4030_s21 + $0x4b] sm:$0xff]  ;;  %v3190_v56 = vld [vmem:[%s4030_s21 + $0x53] sm:$0xff]  ;;  %v4299_v57 = vld [vmem:[%s5136_s1 + $0x5c] ss:$0 sps:$4 sm:$0xff]  }
  0x31   : > { %v3192_v59 = vld [vmem:[%s4030_s21 + $0x63] sm:$0xff]  ;;  %v3193_v60 = vld [vmem:[%s4030_s21 + $0x6b] sm:$0xff]  ;;  %v3194_v61 = vld [vmem:[%s4030_s21 + $0x73] sm:$0xff]  ;;  %v2351_v45 = vsel %vm318_vm0, %v4299_v57, 0 }
  0x32   : > { %v3195_v62 = vld [vmem:[%s4030_s21 + $0x7b] sm:$0xff]  ;;  %v3202_v7 = vld [vmem:[%s4030_s21 + $0xb3] sm:$0xff]  ;;  %v3159_v23 = vld [vmem:[%s4030_s21 + $0x10a] sm:$0xff] }
  0x33   : > { %v3203_v8 = vld [vmem:[%s4030_s21 + $0xbb] sm:$0xff]  ;;  %v3212_v24 = vld [vmem:[%s4030_s21 + $0x103] sm:$0xff] }
  0x34   : > { %3657 = vmatmul.mubr.msk.bf16.vlgmr.msra.gmra.mxu1 %vm269_vm1, %v188_v9  ;;  %3693 = vmatmul.mubr.msk.bf16.vlgmr.msra.gmra.mxu0 %vm269_vm1, %v4118_v10  ;;  %v3098_v9 = vld [vmem:[%s4030_s21 + $0xc2] sm:$0xff]  ;;  %v3292_v38 = vld [vmem:[%s4030_s21 + $0x34] sm:$0xff] }
  0x35   : > { %3725 = vmatpush3.bf16.msra.mxu1 %v1123_v11  ;;  %3761 = vmatpush3.bf16.msra.mxu0 %v1430_v12  ;;  %v3099_v11 = vld [vmem:[%s4030_s21 + $0xca] sm:$0xff]  ;;  %v198_v12 = vpack.c.bf16 %v178_v4, %v177_v3  ;;  %v3198_v3 = vld [vmem:[%s4030_s21 + $0x93] sm:$0xff]  ;;  %v3199_v4 = vld [vmem:[%s4030_s21 + $0x9b] sm:$0xff] }
  0x36   : > { %3660 = vmatprep.mubr.msk.bf16.mxu1 %vm269_vm1, %v189_v13  ;;  %3696 = vmatprep.mubr.msk.bf16.mxu0 %vm269_vm1, %v4122_v14  ;;  %v4230_v13 = vpack.c.bf16 %v3097_v6, %v3096_v5  ;;  %v4232_v16 = vpack.c.bf16 %v3099_v11, %v3098_v9  ;;  %v1360_v6 = vpack.c.bf16 %v3199_v4, %v3198_v3  ;;  %v3310_v3 = vld [vmem:[%s4030_s21 + $0xc4] sm:$0xff]  ;;  %v3311_v4 = vld [vmem:[%s4030_s21 + $0xcc] sm:$0xff] }
  0x37   : > { %3726 = vmatprep.subr.bf16.mxu1 %v3970_v18  ;;  %3762 = vmatprep.subr.bf16.mxu0 %v3971_v19  ;;  %v1362_v11 = vpack.c.bf16 %v3203_v8, %v3202_v7  ;;  %v3312_v7 = vld [vmem:[%s4030_s21 + $0xd4] sm:$0xff]  ;;  %v3313_v8 = vld [vmem:[%s4030_s21 + $0xdc] sm:$0xff] }
  0x39   : > { %3727 = vmatpush3.bf16.msra.mxu1 %v3970_v18  ;;  %3763 = vmatpush3.bf16.msra.mxu0 %v3971_v19  ;;  %v182_v18 = vld [vmem:[%s4030_s21 + $0xd8] sm:$0xff] }
  0x3a   : > { %3950 = vmatprep.subr.msk.bf16.mxu1 %vm318_vm0, %v4147_v25  ;;  %3951 = vmatprep.subr.msk.bf16.mxu0 %vm318_vm0, %v4152_v26  ;;  %v3100_v19 = vld [vmem:[%s4030_s21 + $0xd2] sm:$0xff]  ;;  %v3188_v25 = vld [vmem:[%s4030_s21 + $0x43] sm:$0xff]  ;;  %v3191_v26 = vld [vmem:[%s4030_s21 + $0x5b] sm:$0xff] }
  0x3b   : > { %v1356_v58 = vpack.c.bf16 %v3191_v26, %v3190_v56  ;;  %v3300_v56 = vld [vmem:[%s4030_s21 + $0x74] sm:$0xff]  ;;  %v3301_v26 = vld [vmem:[%s4030_s21 + $0x7c] sm:$0xff] }
  0x3c   : > { %3661 = vmatmul.mubr.msk.bf16.gmra.mxu1 %vm269_vm1, %v190_v27  ;;  %3697 = vmatmul.mubr.msk.bf16.gmra.mxu0 %vm269_vm1, %v4154_v28  ;;  %v200_v27 = vpack.c.bf16 %v182_v18, %v181_v17 }
  0x3d   : > { %3664 = vmatprep.mubr.msk.bf16.mxu1 %vm269_vm1, %v191_v29  ;;  %3700 = vmatprep.mubr.msk.bf16.mxu0 %vm269_vm1, %v4156_v30  ;;  %v4248_v29 = vpack.c.bf16 %v3101_v20, %v3100_v19  ;;  %v3210_v19 = vld [vmem:[%s4030_s21 + $0xf3] sm:$0xff]  ;;  %v3211_v20 = vld [vmem:[%s4030_s21 + $0xfb] sm:$0xff] }
  0x3e   : > { %v1366_v22 = vpack.c.bf16 %v3211_v20, %v3210_v19 }
  0x44   : > { %3665 = vmatmul.mubr.msk.bf16.gmra.mxu1 %vm269_vm1, %v192_v39  ;;  %3701 = vmatmul.mubr.msk.bf16.gmra.mxu0 %vm269_vm1, %v4176_v40  ;;  %v202_v39 = vpack.c.bf16 %v186_v34, %v185_v33  ;;  %v3290_v33 = vld [vmem:[%s4030_s21 + $0x24] sm:$0xff]  ;;  %v3291_v34 = vld [vmem:[%s4030_s21 + $0x2c] sm:$0xff] }
  0x45   : > { %3668 = vmatprep.mubr.msk.bf16.mxu1 %vm269_vm1, %v193_v41  ;;  %3704 = vmatprep.mubr.msk.bf16.mxu0 %vm269_vm1, %v4178_v42  ;;  %v4264_v41 = vpack.c.bf16 %v3105_v36, %v3104_v35  ;;  %v1966_v37 = vpack.c.bf16 %v3291_v34, %v3290_v33 }
  0x4c   : > { %3669 = vmatmul.mubr.msk.bf16.gmra.mxu1 %vm269_vm1, %v194_v51  ;;  %3705 = vmatmul.mubr.msk.bf16.gmra.mxu0 %vm269_vm1, %v4194_v52  ;;  %v1354_v51 = vpack.c.bf16 %v3187_v47, %v3186_v46 }
  0x4d   : > { %3672 = vmatprep.mubr.msk.bf16.mxu1 %vm269_vm1, %v195_v53  ;;  %3708 = vmatprep.mubr.msk.bf16.mxu0 %vm269_vm1, %v4196_v54  ;;  %v3975_v53 = vld [vmem:[%s5136_s1 + $0x48] sm:$0xff]  }
  0x54   : > { %3673 = vmatmul.mubr.msk.bf16.gmra.mxu1 %vm269_vm1, %v196_v63  ;;  %3709 = vmatmul.mubr.msk.bf16.gmra.mxu0 %vm269_vm1, %v4212_v0  ;;  %v1357_v63 = vpack.c.bf16 %v3193_v60, %v3192_v59  ;;  %v3304_v59 = vld [vmem:[%s4030_s21 + $0x94] sm:$0xff]  ;;  %v3305_v60 = vld [vmem:[%s4030_s21 + $0x9c] sm:$0xff] }
  0x55   : > { %3676 = vmatprep.mubr.msk.bf16.mxu1 %vm269_vm1, %v197_v1  ;;  %3712 = vmatprep.mubr.msk.bf16.mxu0 %vm269_vm1, %v4214_v2  ;;  %v1358_v1 = vpack.c.bf16 %v3195_v62, %v3194_v61  ;;  %v3306_v61 = vld [vmem:[%s4030_s21 + $0xa4] sm:$0xff]  ;;  %v3307_v62 = vld [vmem:[%s4030_s21 + $0xac] sm:$0xff] }
  0x5c   : > { %3677 = vmatmul.mubr.msk.bf16.gmra.mxu1 %vm269_vm1, %v198_v12  ;;  %3713 = vmatmul.mubr.msk.bf16.gmra.mxu0 %vm269_vm1, %v4230_v13  ;;  %v3206_v12 = vld [vmem:[%s4030_s21 + $0xd3] sm:$0xff] }
  0x5d   : > { %3680 = vmatprep.mubr.msk.bf16.mxu1 %vm269_vm1, %v199_v15  ;;  %3716 = vmatprep.mubr.msk.bf16.mxu0 %vm269_vm1, %v4232_v16  ;;  %v3207_v15 = vld [vmem:[%s4030_s21 + $0xdb] sm:$0xff] }
  0x5e   : > { %v1364_v18 = vpack.c.bf16 %v3207_v15, %v3206_v12 }
  0x64   : > { %3681 = vmatmul.mubr.msk.bf16.gmra.mxu1 %vm269_vm1, %v200_v27  ;;  %3717 = vmatmul.mubr.msk.bf16.gmra.mxu0 %vm269_vm1, %v4248_v29  ;;  %v3213_v27 = vld [vmem:[%s4030_s21 + $0x10b] sm:$0xff] }
  0x65   : > { %3684 = vmatprep.mubr.msk.bf16.mxu1 %vm269_vm1, %v201_v31  ;;  %3720 = vmatprep.mubr.msk.bf16.mxu0 %vm269_vm1, %v4250_v32  ;;  %v3237_v31 = vld [vmem:[%s4030_s21 + $0x1c] sm:$0xff]  ;;  %v1367_v35 = vpack.c.bf16 %v3213_v27, %v3212_v24  ;;  %v3318_v24 = vld [vmem:[%s4030_s21 + $0x104] sm:$0xff]  ;;  %v3319_v27 = vld [vmem:[%s4030_s21 + $0x10c] sm:$0xff] }
  0x66   : > { %v1980_v34 = vpack.c.bf16 %v3319_v27, %v3318_v24  ;;  %v3352_v24 = vld [vmem:[%s4030_s21 + $0x65] sm:$0xff] }
  0x6c   : > { %3685 = vmatmul.mubr.msk.bf16.gmra.mxu1 %vm269_vm1, %v202_v39  ;;  %3721 = vmatmul.mubr.msk.bf16.gmra.mxu0 %vm269_vm1, %v4264_v41  ;;  %v3293_v39 = vld [vmem:[%s4030_s21 + $0x3c] sm:$0xff] }
  0x6d   : > { %3728 = vmatprep.mubr.msk.bf16.mxu1 %vm269_vm1, %v4118_v10  ;;  %3764 = vmatprep.mubr.msk.bf16.mxu0 %vm269_vm1, %v1352_v43  ;;  %v3974_v10 = vld [vmem:[%s5136_s1 + $0x3c] sm:$0xff]   ;;  %v3295_v43 = vld [vmem:[%s4030_s21 + $0x4c] sm:$0xff]  ;;  %v1967_v44 = vpack.c.bf16 %v3293_v39, %v3292_v38  ;;  %v3320_v38 = vld [vmem:[%s4030_s21 + $0x114] sm:$0xff] }
  0x6e   : > { %v3321_v39 = vld [vmem:[%s4030_s21 + $0x11c] sm:$0xff] }
  0x74   : > { %3729 = vmatmul.mubr.msk.bf16.vlgmr.msra.gmra.mxu1 %vm269_vm1, %v4122_v14  ;;  %3765 = vmatmul.mubr.msk.bf16.vlgmr.msra.gmra.mxu0 %vm269_vm1, %v1353_v48  ;;  %v4304_v14 = vld [vmem:[%s5136_s1 + $0x68] ss:$0 sps:$4 sm:$0xff]   ;;  %v3978_v48 = vld [vmem:[%s5136_s1 + $0x54] sm:$0xff]  }
  0x75   : > { %3797 = vmatpush3.bf16.msra.mxu1 %v1737_v49  ;;  %3833 = vmatpush3.bf16.msra.mxu0 %v2044_v50  ;;  %v2658_v46 = vsel %vm318_vm0, %v4304_v14, 0  ;;  %v3979_v49 = vld [vmem:[%s5136_s1 + $0x60] sm:$0xff]   ;;  %v3296_v50 = vld [vmem:[%s4030_s21 + $0x54] sm:$0xff] }
  0x76   : > { %3732 = vmatprep.mubr.msk.bf16.mxu1 %vm269_vm1, %v4154_v28  ;;  %3768 = vmatprep.mubr.msk.bf16.mxu0 %vm269_vm1, %v1354_v51  ;;  %v1355_v28 = vpack.c.bf16 %v3189_v55, %v3188_v25  ;;  %v3297_v51 = vld [vmem:[%s4030_s21 + $0x5c] sm:$0xff] }
  0x77   : > { %3798 = vmatprep.subr.bf16.mxu1 %v3974_v10  ;;  %3834 = vmatprep.subr.bf16.mxu0 %v3975_v53  ;;  %v1969_v25 = vpack.c.bf16 %v3297_v51, %v3296_v50  ;;  %v1981_v50 = vpack.c.bf16 %v3321_v39, %v3320_v38  ;;  %v3406_v38 = vld [vmem:[%s4030_s21 + $0x66] sm:$0xff]  ;;  %v3407_v39 = vld [vmem:[%s4030_s21 + $0x6e] sm:$0xff] }
  0x79   : > { %3799 = vmatpush3.bf16.msra.mxu1 %v3974_v10  ;;  %3835 = vmatpush3.bf16.msra.mxu0 %v3975_v53  ;;  %v3298_v10 = vld [vmem:[%s4030_s21 + $0x64] sm:$0xff]  ;;  %v3299_v53 = vld [vmem:[%s4030_s21 + $0x6c] sm:$0xff] }
  0x7a   : > { %3952 = vmatprep.subr.msk.bf16.mxu1 %vm318_vm0, %v4299_v57  ;;  %3953 = vmatprep.subr.msk.bf16.mxu0 %vm318_vm0, %v4304_v14  ;;  %v1970_v55 = vpack.c.bf16 %v3299_v53, %v3298_v10  ;;  %v3302_v57 = vld [vmem:[%s4030_s21 + $0x84] sm:$0xff]  ;;  %v3303_v14 = vld [vmem:[%s4030_s21 + $0x8c] sm:$0xff] }
  0x7c   : > { %3733 = vmatmul.mubr.msk.bf16.gmra.mxu1 %vm269_vm1, %v4156_v30  ;;  %3769 = vmatmul.mubr.msk.bf16.gmra.mxu0 %vm269_vm1, %v1355_v28  ;;  %v3196_v30 = vld [vmem:[%s4030_s21 + $0x83] sm:$0xff]  ;;  %v1971_v28 = vpack.c.bf16 %v3301_v26, %v3300_v56  ;;  %v3346_v26 = vld [vmem:[%s4030_s21 + $0x35] sm:$0xff] }
  0x7d   : > { %3736 = vmatprep.mubr.msk.bf16.mxu1 %vm269_vm1, %v4176_v40  ;;  %3772 = vmatprep.mubr.msk.bf16.mxu0 %vm269_vm1, %v1356_v58  ;;  %v3197_v40 = vld [vmem:[%s4030_s21 + $0x8b] sm:$0xff]  ;;  %v1972_v58 = vpack.c.bf16 %v3303_v14, %v3302_v57  ;;  %v3347_v57 = vld [vmem:[%s4030_s21 + $0x3d] sm:$0xff] }
  0x7e   : > { %v1359_v5 = vpack.c.bf16 %v3197_v40, %v3196_v30  ;;  %v3308_v30 = vld [vmem:[%s4030_s21 + $0xb4] sm:$0xff]  ;;  %v3309_v40 = vld [vmem:[%s4030_s21 + $0xbc] sm:$0xff] }
  0x7f   : > { %v3400_v14 = vld [vmem:[%s4030_s21 + $0x36] sm:$0xff] }
  0x84   : > { %3737 = vmatmul.mubr.msk.bf16.gmra.mxu1 %vm269_vm1, %v4178_v42  ;;  %3773 = vmatmul.mubr.msk.bf16.gmra.mxu0 %vm269_vm1, %v1357_v63  ;;  %v3200_v42 = vld [vmem:[%s4030_s21 + $0xa3] sm:$0xff]  ;;  %v1973_v63 = vpack.c.bf16 %v3305_v60, %v3304_v59 }
  0x85   : > { %3740 = vmatprep.mubr.msk.bf16.mxu1 %vm269_vm1, %v4194_v52  ;;  %3776 = vmatprep.mubr.msk.bf16.mxu0 %vm269_vm1, %v1358_v1  ;;  %v3201_v52 = vld [vmem:[%s4030_s21 + $0xab] sm:$0xff]  ;;  %v1974_v1 = vpack.c.bf16 %v3307_v62, %v3306_v61 }
  0x86   : > { %v1361_v9 = vpack.c.bf16 %v3201_v52, %v3200_v42  ;;  %v3349_v61 = vld [vmem:[%s4030_s21 + $0x4d] sm:$0xff] }
  0x87   : > { %v3402_v62 = vld [vmem:[%s4030_s21 + $0x46] sm:$0xff] }
  0x8c   : > { %3741 = vmatmul.mubr.msk.bf16.gmra.mxu1 %vm269_vm1, %v4196_v54  ;;  %3777 = vmatmul.mubr.msk.bf16.gmra.mxu0 %vm269_vm1, %v1359_v5  ;;  %v3204_v54 = vld [vmem:[%s4030_s21 + $0xc3] sm:$0xff]  ;;  %v1975_v5 = vpack.c.bf16 %v3309_v40, %v3308_v30  ;;  %v2274_v40 = vpack.c.bf16 %v3347_v57, %v3346_v26  ;;  %v2584_v57 = vpack.c.bf16 %v3407_v39, %v3406_v38 }
  0x8d   : > { %3744 = vmatprep.mubr.msk.bf16.mxu1 %vm269_vm1, %v4212_v0  ;;  %3780 = vmatprep.mubr.msk.bf16.mxu0 %vm269_vm1, %v1360_v6  ;;  %v3205_v0 = vld [vmem:[%s4030_s21 + $0xcb] sm:$0xff]  ;;  %v1976_v6 = vpack.c.bf16 %v3311_v4, %v3310_v3 }
  0x8e   : > { %v1363_v17 = vpack.c.bf16 %v3205_v0, %v3204_v54  ;;  %v3314_v54 = vld [vmem:[%s4030_s21 + $0xe4] sm:$0xff]  ;;  %v3315_v0 = vld [vmem:[%s4030_s21 + $0xec] sm:$0xff] }
  0x94   : > { %3745 = vmatmul.mubr.msk.bf16.gmra.mxu1 %vm269_vm1, %v4214_v2  ;;  %3781 = vmatmul.mubr.msk.bf16.gmra.mxu0 %vm269_vm1, %v1361_v9  ;;  %v3208_v2 = vld [vmem:[%s4030_s21 + $0xe3] sm:$0xff] }
  0x95   : > { %3748 = vmatprep.mubr.msk.bf16.mxu1 %vm269_vm1, %v4230_v13  ;;  %3784 = vmatprep.mubr.msk.bf16.mxu0 %vm269_vm1, %v1362_v11  ;;  %v3209_v13 = vld [vmem:[%s4030_s21 + $0xeb] sm:$0xff] }
  0x96   : > { %v1365_v21 = vpack.c.bf16 %v3209_v13, %v3208_v2 }
  0x9c   : > { %3749 = vmatmul.mubr.msk.bf16.gmra.mxu1 %vm269_vm1, %v4232_v16  ;;  %3785 = vmatmul.mubr.msk.bf16.gmra.mxu0 %vm269_vm1, %v1363_v17  ;;  %v3158_v16 = vld [vmem:[%s4030_s21 + $0x102] sm:$0xff]  ;;  %v1977_v17 = vpack.c.bf16 %v3313_v8, %v3312_v7 }
  0x9d   : > { %3752 = vmatprep.mubr.msk.bf16.mxu1 %vm269_vm1, %v4248_v29  ;;  %3788 = vmatprep.mubr.msk.bf16.mxu0 %vm269_vm1, %v1364_v18  ;;  %v3236_v29 = vld [vmem:[%s4030_s21 + $0x14] sm:$0xff]  ;;  %v1978_v18 = vpack.c.bf16 %v3315_v0, %v3314_v54 }
  0x9e   : > { %v1659_v36 = vpack.c.bf16 %v3237_v31, %v3236_v29  ;;  %v3350_v0 = vld [vmem:[%s4030_s21 + $0x55] sm:$0xff] }
  0xa4   : > { %3753 = vmatmul.mubr.msk.bf16.gmra.mxu1 %vm269_vm1, %v4250_v32  ;;  %3789 = vmatmul.mubr.msk.bf16.gmra.mxu0 %vm269_vm1, %v1365_v21  ;;  %v1060_v32 = vpack.c.bf16 %v3159_v23, %v3158_v16  ;;  %v3316_v21 = vld [vmem:[%s4030_s21 + $0xf4] sm:$0xff] }
  0xa5   : > { %3756 = vmatprep.mubr.msk.bf16.mxu1 %vm269_vm1, %v4264_v41  ;;  %3792 = vmatprep.mubr.msk.bf16.mxu0 %vm269_vm1, %v1366_v22  ;;  %v3294_v41 = vld [vmem:[%s4030_s21 + $0x44] sm:$0xff]  ;;  %v3317_v22 = vld [vmem:[%s4030_s21 + $0xfc] sm:$0xff] }
  0xa6   : > { %v1968_v47 = vpack.c.bf16 %v3295_v43, %v3294_v41  ;;  %v1979_v33 = vpack.c.bf16 %v3317_v22, %v3316_v21  ;;  %v3344_v41 = vld [vmem:[%s4030_s21 + $0x25] sm:$0xff]  ;;  %v3404_v21 = vld [vmem:[%s4030_s21 + $0x56] sm:$0xff] }
  0xa7   : > { %v3405_v22 = vld [vmem:[%s4030_s21 + $0x5e] sm:$0xff] }
  0xac   : > { %3757 = vmatmul.mubr.msk.bf16.gmra.mxu1 %vm269_vm1, %v1060_v32  ;;  %3793 = vmatmul.mubr.msk.bf16.gmra.mxu0 %vm269_vm1, %v1367_v35 }
  0xad   : > { %3800 = vmatprep.mubr.msk.bf16.mxu1 %vm269_vm1, %v1659_v36  ;;  %3836 = vmatprep.mubr.msk.bf16.mxu0 %vm269_vm1, %v1966_v37 }
  0xb4   : > { %3801 = vmatmul.mubr.msk.bf16.vlgmr.msra.gmra.mxu1 %vm269_vm1, %v1966_v37  ;;  %3837 = vmatmul.mubr.msk.bf16.vlgmr.msra.gmra.mxu0 %vm269_vm1, %v1967_v44 }
  0xb5   : > { %3869 = vmatpush3.bf16.msra.mxu1 %v2351_v45  ;;  %3905 = vmatpush3.bf16.msra.mxu0 %v2658_v46  ;;  %v3345_v45 = vld [vmem:[%s4030_s21 + $0x2d] sm:$0xff] }
  0xb6   : > { %3804 = vmatprep.mubr.msk.bf16.mxu1 %vm269_vm1, %v1967_v44  ;;  %3840 = vmatprep.mubr.msk.bf16.mxu0 %vm269_vm1, %v1968_v47  ;;  %v3398_v46 = vld [vmem:[%s4030_s21 + $0x26] sm:$0xff]  ;;  %v2273_v51 = vpack.c.bf16 %v3345_v45, %v3344_v41 }
  0xb7   : > { %3870 = vmatprep.subr.bf16.mxu1 %v3978_v48  ;;  %3906 = vmatprep.subr.bf16.mxu0 %v3979_v49 }
  0xb9   : > { %3871 = vmatpush3.bf16.msra.mxu1 %v3978_v48  ;;  %3907 = vmatpush3.bf16.msra.mxu0 %v3979_v49 }
  0xbc   : > { %3805 = vmatmul.mubr.msk.bf16.gmra.mxu1 %vm269_vm1, %v1968_v47  ;;  %3841 = vmatmul.mubr.msk.bf16.gmra.mxu0 %vm269_vm1, %v1969_v25  ;;  %v3399_v47 = vld [vmem:[%s4030_s21 + $0x2e] sm:$0xff] }
  0xbd   : > { %3808 = vmatprep.mubr.msk.bf16.mxu1 %vm269_vm1, %v1969_v25  ;;  %3844 = vmatprep.mubr.msk.bf16.mxu0 %vm269_vm1, %v1970_v55  ;;  %v2580_v10 = vpack.c.bf16 %v3399_v47, %v3398_v46 }
  0xc4   : > { %3809 = vmatmul.mubr.msk.bf16.gmra.mxu1 %vm269_vm1, %v1970_v55  ;;  %3845 = vmatmul.mubr.msk.bf16.gmra.mxu0 %vm269_vm1, %v1971_v28 }
  0xc5   : > { %3812 = vmatprep.mubr.msk.bf16.mxu1 %vm269_vm1, %v1971_v28  ;;  %3848 = vmatprep.mubr.msk.bf16.mxu0 %vm269_vm1, %v1972_v58  ;;  %v3401_v28 = vld [vmem:[%s4030_s21 + $0x3e] sm:$0xff] }
  0xc6   : > { %v2581_v3 = vpack.c.bf16 %v3401_v28, %v3400_v14 }
  0xcc   : > { %3813 = vmatmul.mubr.msk.bf16.gmra.mxu1 %vm269_vm1, %v1972_v58  ;;  %3849 = vmatmul.mubr.msk.bf16.gmra.mxu0 %vm269_vm1, %v1973_v63  ;;  %v3348_v58 = vld [vmem:[%s4030_s21 + $0x45] sm:$0xff] }
  0xcd   : > { %3816 = vmatprep.mubr.msk.bf16.mxu1 %vm269_vm1, %v1973_v63  ;;  %3852 = vmatprep.mubr.msk.bf16.mxu0 %vm269_vm1, %v1974_v1  ;;  %v3403_v63 = vld [vmem:[%s4030_s21 + $0x4e] sm:$0xff]  ;;  %v2275_v4 = vpack.c.bf16 %v3349_v61, %v3348_v58 }
  0xd4   : > { %v4424_v42 = vpop.f32.mrf.mxu0  ;;  %v4426_v52 = vpop.f32.mrf.mxu1  ;;  %3817 = vmatmul.mubr.msk.bf16.gmra.mxu1 %vm269_vm1, %v1974_v1  ;;  %3853 = vmatmul.mubr.msk.bf16.gmra.mxu0 %vm269_vm1, %v1975_v5 }
  0xd5   : > { %3820 = vmatprep.mubr.msk.bf16.mxu1 %vm269_vm1, %v1975_v5  ;;  %3856 = vmatprep.mubr.msk.bf16.mxu0 %vm269_vm1, %v1976_v6  ;;  %v2582_v5 = vpack.c.bf16 %v3403_v63, %v3402_v62  ;;  %v3355_v63 = vld [vmem:[%s4030_s21 + $0x7d] sm:$0xff] }
  0xd6   : > { %v4434_v9 = vpop.f32.mrf.mxu0  ;;  %v4436_v11 = vpop.f32.mrf.mxu1 }
  0xd8   : > { %v4440_v12 = vpop.f32.mrf.mxu0  ;;  %v4442_v15 = vpop.f32.mrf.mxu1 }
  0xda   : > { %v4444_v2 = vpop.f32.mrf.mxu0  ;;  %v4446_v13 = vpop.f32.mrf.mxu1 }
  0xdc   : > { %v4448_v19 = vpop.f32.mrf.mxu0  ;;  %v4450_v20 = vpop.f32.mrf.mxu1  ;;  %3821 = vmatmul.mubr.msk.bf16.gmra.mxu1 %vm269_vm1, %v1976_v6  ;;  %3857 = vmatmul.mubr.msk.bf16.gmra.mxu0 %vm269_vm1, %v1977_v17 }
  0xdd   : > { %3824 = vmatprep.mubr.msk.bf16.mxu1 %vm269_vm1, %v1977_v17  ;;  %3860 = vmatprep.mubr.msk.bf16.mxu0 %vm269_vm1, %v1978_v18  ;;  %v3351_v17 = vld [vmem:[%s4030_s21 + $0x5d] sm:$0xff] }
  0xde   : > { %v4458_v16 = vpop.f32.mrf.mxu0  ;;  %v4460_v23 = vpop.f32.mrf.mxu1 }
  0xe0   : > { %v4464_v29 = vpop.f32.mrf.mxu0  ;;  %v4466_v31 = vpop.f32.mrf.mxu1 }
  0xe2   : > { %v4468_v32 = vpop.f32.mrf.mxu0  ;;  %v4470_v35 = vpop.f32.mrf.mxu1 }
  0xe4   : > { %v4472_v36 = vpop.f32.mrf.mxu0  ;;  %v4474_v37 = vpop.f32.mrf.mxu1  ;;  %3825 = vmatmul.mubr.msk.bf16.gmra.mxu1 %vm269_vm1, %v1978_v18  ;;  %3861 = vmatmul.mubr.msk.bf16.gmra.mxu0 %vm269_vm1, %v1979_v33 }
  0xe5   : > { %3828 = vmatprep.mubr.msk.bf16.mxu1 %vm269_vm1, %v1979_v33  ;;  %3864 = vmatprep.mubr.msk.bf16.mxu0 %vm269_vm1, %v1980_v34 }
  0xe6   : > { %v4483_v43 = vpop.f32.mrf.mxu0  ;;  %v4485_v44 = vpop.f32.mrf.mxu1 }
  0xe8   : > { %v4490_v48 = vpop.f32.mrf.mxu0  ;;  %v4492_v49 = vpop.f32.mrf.mxu1 }
  0xea   : > { %v4494_v53 = vpop.f32.mrf.mxu0  ;;  %v4496_v25 = vpop.f32.mrf.mxu1 }
  0xec   : > { %v4498_v55 = vpop.f32.mrf.mxu0  ;;  %v4500_v56 = vpop.f32.mrf.mxu1  ;;  %3829 = vmatmul.mubr.msk.bf16.gmra.mxu1 %vm269_vm1, %v1980_v34  ;;  %3865 = vmatmul.mubr.msk.bf16.gmra.mxu0 %vm269_vm1, %v1981_v50  ;;  %v3353_v34 = vld [vmem:[%s4030_s21 + $0x6d] sm:$0xff]  ;;  %v2583_v50 = vpack.c.bf16 %v3405_v22, %v3404_v21 }
  0xed   : > { %3872 = vmatprep.mubr.msk.bf16.mxu1 %vm269_vm1, %v2273_v51  ;;  %3908 = vmatprep.mubr.msk.bf16.mxu0 %vm269_vm1, %v2580_v10  ;;  %v2277_v26 = vpack.c.bf16 %v3353_v34, %v3352_v24 }
  0xee   : > { %v4511_v59 = vpop.f32.mrf.mxu0  ;;  %v4513_v60 = vpop.f32.mrf.mxu1 }
  0xf0   : > { %v4518_v1 = vpop.f32.mrf.mxu0  ;;  %v4520_v30 = vpop.f32.mrf.mxu1 }
  0xf2   : > { %v4522_v6 = vpop.f32.mrf.mxu0  ;;  %v4524_v7 = vpop.f32.mrf.mxu1 }
  0xf4   : > { %v3658_v8 = vpop.f32.mrf.mxu1  ;;  %v3694_v54 = vpop.f32.mrf.mxu0  ;;  %3873 = vmatmul.mubr.msk.bf16.vlgmr.msra.gmra.mxu1 %vm269_vm1, %v2274_v40  ;;  %3909 = vmatmul.mubr.msk.bf16.vlgmr.msra.gmra.mxu0 %vm269_vm1, %v2581_v3 }
  0xf5   : > { %v586_v18 = vadd.f32 %v3658_v8, %v4424_v42  ;;  %3876 = vmatprep.mubr.msk.bf16.mxu1 %vm269_vm1, %v2275_v4  ;;  %3912 = vmatprep.mubr.msk.bf16.mxu0 %vm269_vm1, %v2582_v5  ;;  %v2276_v42 = vpack.c.bf16 %v3351_v17, %v3350_v0  ;;  %v3409_v4 = vld [vmem:[%s4030_s21 + $0x7e] sm:$0xff]  ;;  %v3357_v0 = vld [vmem:[%s4030_s21 + $0x8d] sm:$0xff] }
  0xf6   : > { %v577_v27 = vpop.f32.mrf.mxu1  ;;  %v852_v33 = vpop.f32.mrf.mxu0  ;;  %v3356_v5 = vld [vmem:[%s4030_s21 + $0x85] sm:$0xff] }
  0xf7   : > { %v4539_v41 = vadd.f32 %v3694_v54, %v586_v18  ;;  %v578_v45 = vadd.f32 %v577_v27, %v4434_v9  ;;  %v3410_v17 = vld [vmem:[%s4030_s21 + $0x86] sm:$0xff]  ;;  %v3411_v18 = vld [vmem:[%s4030_s21 + $0x8e] sm:$0xff]  ;;  %v2279_v39 = vpack.c.bf16 %v3357_v0, %v3356_v5 }
  0xf8   : > { %v3659_v46 = vpop.f32.mrf.mxu1  ;;  %v3695_v47 = vpop.f32.mrf.mxu0 }
  0xf9   : > { %v4542_v51 = vadd.f32 %v852_v33, %v578_v45  ;;  %v589_v10 = vadd.f32 %v3659_v46, %v4440_v12  ;;  %v3354_v12 = vld [vmem:[%s4030_s21 + $0x75] sm:$0xff]  ;;  %v2586_v45 = vpack.c.bf16 %v3411_v18, %v3410_v17 }
  0xfa   : > { %v580_v14 = vpop.f32.mrf.mxu1  ;;  %v855_v28 = vpop.f32.mrf.mxu0 }
  0xfb   : > { %v4545_v58 = vadd.f32 %v3695_v47, %v589_v10  ;;  %v581_v9 = vadd.f32 %v580_v14, %v4444_v2  ;;  %v3408_v2 = vld [vmem:[%s4030_s21 + $0x76] sm:$0xff] }
  0xfc   : > { %v3662_v61 = vpop.f32.mrf.mxu1  ;;  %v3698_v62 = vpop.f32.mrf.mxu0  ;;  %3877 = vmatmul.mubr.msk.bf16.gmra.mxu1 %vm269_vm1, %v2276_v42  ;;  %3913 = vmatmul.mubr.msk.bf16.gmra.mxu0 %vm269_vm1, %v2583_v50  ;;  %v2585_v33 = vpack.c.bf16 %v3409_v4, %v3408_v2 }
  0xfd   : > { %v4552_v40 = vadd.f32 %v855_v28, %v581_v9  ;;  %v602_v3 = vadd.f32 %v3662_v61, %v4448_v19  ;;  %3880 = vmatprep.mubr.msk.bf16.mxu1 %vm269_vm1, %v2277_v26  ;;  %3916 = vmatprep.mubr.msk.bf16.mxu0 %vm269_vm1, %v2584_v57  ;;  %v2278_v19 = vpack.c.bf16 %v3355_v63, %v3354_v12  ;;  %v3359_v26 = vld [vmem:[%s4030_s21 + $0x9d] sm:$0xff]  ;;  %v3360_v9 = vld [vmem:[%s4030_s21 + $0xa5] sm:$0xff]  ;;  %v3361_v12 = vld [vmem:[%s4030_s21 + $0xad] sm:$0xff] }
  0xfe   : > { %v593_v8 = vpop.f32.mrf.mxu1  ;;  %v868_v54 = vpop.f32.mrf.mxu0  ;;  %v3413_v28 = vld [vmem:[%s4030_s21 + $0x9e] sm:$0xff]  ;;  %v3414_v63 = vld [vmem:[%s4030_s21 + $0xa6] sm:$0xff]  ;;  %v2281_v18 = vpack.c.bf16 %v3361_v12, %v3360_v9 }
  0xff   : > { %v4563_v21 = vadd.f32 %v3698_v62, %v602_v3  ;;  %v594_v22 = vadd.f32 %v593_v8, %v4458_v16  ;;  %v3415_v3 = vld [vmem:[%s4030_s21 + $0xae] sm:$0xff] }
 0x100   : > { %v3663_v24 = vpop.f32.mrf.mxu1  ;;  %v3699_v27 = vpop.f32.mrf.mxu0 }
 0x101   : > { %v4566_v34 = vadd.f32 %v868_v54, %v594_v22  ;;  %v605_v38 = vadd.f32 %v3663_v24, %v4464_v29  ;;  %v3358_v29 = vld [vmem:[%s4030_s21 + $0x95] sm:$0xff]  ;;  %v2588_v22 = vpack.c.bf16 %v3415_v3, %v3414_v63 }
 0x102   : > { %v596_v46 = vpop.f32.mrf.mxu1  ;;  %v871_v47 = vpop.f32.mrf.mxu0 }
 0x103   : > { %v4569_v42 = vadd.f32 %v3699_v27, %v605_v38  ;;  %v597_v16 = vadd.f32 %v596_v46, %v4468_v32  ;;  %v3412_v32 = vld [vmem:[%s4030_s21 + $0x96] sm:$0xff] }
 0x104   : > { %v3666_v50 = vpop.f32.mrf.mxu1  ;;  %v3702_v10 = vpop.f32.mrf.mxu0  ;;  %3881 = vmatmul.mubr.msk.bf16.gmra.mxu1 %vm269_vm1, %v2278_v19  ;;  %3917 = vmatmul.mubr.msk.bf16.gmra.mxu0 %vm269_vm1, %v2585_v33  ;;  %v2587_v54 = vpack.c.bf16 %v3413_v28, %v3412_v32 }
 0x105   : > { %v4576_v57 = vadd.f32 %v871_v47, %v597_v16  ;;  %v618_v14 = vadd.f32 %v3666_v50, %v4472_v36  ;;  %3884 = vmatprep.mubr.msk.bf16.mxu1 %vm269_vm1, %v2279_v39  ;;  %3920 = vmatprep.mubr.msk.bf16.mxu0 %vm269_vm1, %v2586_v45  ;;  %v2280_v36 = vpack.c.bf16 %v3359_v26, %v3358_v29  ;;  %v3363_v39 = vld [vmem:[%s4030_s21 + $0xbd] sm:$0xff]  ;;  %v3364_v16 = vld [vmem:[%s4030_s21 + $0xc5] sm:$0xff]  ;;  %v3365_v29 = vld [vmem:[%s4030_s21 + $0xcd] sm:$0xff] }
 0x106   : > { %v609_v61 = vpop.f32.mrf.mxu1  ;;  %v884_v62 = vpop.f32.mrf.mxu0  ;;  %v3417_v47 = vld [vmem:[%s4030_s21 + $0xbe] sm:$0xff]  ;;  %v3418_v26 = vld [vmem:[%s4030_s21 + $0xc6] sm:$0xff]  ;;  %v2283_v3 = vpack.c.bf16 %v3365_v29, %v3364_v16 }
 0x107   : > { %v4587_v2 = vadd.f32 %v3702_v10, %v618_v14  ;;  %v610_v4 = vadd.f32 %v609_v61, %v4483_v43  ;;  %v3419_v14 = vld [vmem:[%s4030_s21 + $0xce] sm:$0xff] }
 0x108   : > { %v3667_v5 = vpop.f32.mrf.mxu1  ;;  %v3703_v8 = vpop.f32.mrf.mxu0 }
 0x109   : > { %v4590_v0 = vadd.f32 %v884_v62, %v610_v4  ;;  %v621_v17 = vadd.f32 %v3667_v5, %v4490_v48  ;;  %v3362_v48 = vld [vmem:[%s4030_s21 + $0xb5] sm:$0xff]  ;;  %v2590_v4 = vpack.c.bf16 %v3419_v14, %v3418_v26 }
 0x10a   : > { %v612_v24 = vpop.f32.mrf.mxu1  ;;  %v887_v27 = vpop.f32.mrf.mxu0 }
 0x10b   : > { %v4593_v19 = vadd.f32 %v3703_v8, %v621_v17  ;;  %v613_v43 = vadd.f32 %v612_v24, %v4494_v53  ;;  %v3416_v53 = vld [vmem:[%s4030_s21 + $0xb6] sm:$0xff] }
 0x10c   : > { %v3670_v33 = vpop.f32.mrf.mxu1  ;;  %v3706_v38 = vpop.f32.mrf.mxu0  ;;  %3885 = vmatmul.mubr.msk.bf16.gmra.mxu1 %vm269_vm1, %v2280_v36  ;;  %3921 = vmatmul.mubr.msk.bf16.gmra.mxu0 %vm269_vm1, %v2587_v54  ;;  %v2589_v62 = vpack.c.bf16 %v3417_v47, %v3416_v53 }
 0x10d   : > { %v4600_v45 = vadd.f32 %v887_v27, %v613_v43  ;;  %v634_v46 = vadd.f32 %v3670_v33, %v4498_v55  ;;  %3888 = vmatprep.mubr.msk.bf16.mxu1 %vm269_vm1, %v2281_v18  ;;  %3924 = vmatprep.mubr.msk.bf16.mxu0 %vm269_vm1, %v2588_v22  ;;  %v2282_v55 = vpack.c.bf16 %v3363_v39, %v3362_v48  ;;  %v3367_v18 = vld [vmem:[%s4030_s21 + $0xdd] sm:$0xff]  ;;  %v3368_v43 = vld [vmem:[%s4030_s21 + $0xe5] sm:$0xff]  ;;  %v3369_v48 = vld [vmem:[%s4030_s21 + $0xed] sm:$0xff] }
 0x10e   : > { %v625_v50 = vpop.f32.mrf.mxu1  ;;  %v900_v10 = vpop.f32.mrf.mxu0  ;;  %v3421_v27 = vld [vmem:[%s4030_s21 + $0xde] sm:$0xff]  ;;  %v3422_v39 = vld [vmem:[%s4030_s21 + $0xe6] sm:$0xff]  ;;  %v2285_v14 = vpack.c.bf16 %v3369_v48, %v3368_v43 }
 0x10f   : > { %v4611_v32 = vadd.f32 %v3706_v38, %v634_v46  ;;  %v626_v28 = vadd.f32 %v625_v50, %v4511_v59  ;;  %v3423_v46 = vld [vmem:[%s4030_s21 + $0xee] sm:$0xff] }
 0x110   : > { %v3671_v9 = vpop.f32.mrf.mxu1  ;;  %v3707_v61 = vpop.f32.mrf.mxu0 }
 0x111   : > { %v4614_v12 = vadd.f32 %v900_v10, %v626_v28  ;;  %v637_v63 = vadd.f32 %v3671_v9, %v4518_v1  ;;  %v3366_v1 = vld [vmem:[%s4030_s21 + $0xd5] sm:$0xff]  ;;  %v2592_v28 = vpack.c.bf16 %v3423_v46, %v3422_v39 }
 0x112   : > { %v628_v5 = vpop.f32.mrf.mxu1  ;;  %v903_v8 = vpop.f32.mrf.mxu0 }
 0x113   : > { %v4617_v36 = vadd.f32 %v3707_v61, %v637_v63  ;;  %v629_v59 = vadd.f32 %v628_v5, %v4522_v6  ;;  %v3420_v6 = vld [vmem:[%s4030_s21 + $0xd6] sm:$0xff] }
 0x114   : > { %v3674_v54 = vpop.f32.mrf.mxu1  ;;  %v3710_v17 = vpop.f32.mrf.mxu0  ;;  %3889 = vmatmul.mubr.msk.bf16.gmra.mxu1 %vm269_vm1, %v2282_v55  ;;  %3925 = vmatmul.mubr.msk.bf16.gmra.mxu0 %vm269_vm1, %v2589_v62  ;;  %v2591_v10 = vpack.c.bf16 %v3421_v27, %v3420_v6 }
 0x115   : > { %v4624_v22 = vadd.f32 %v903_v8, %v629_v59  ;;  %v650_v24 = vadd.f32 %v3674_v54, %v4426_v52  ;;  %3892 = vmatprep.mubr.msk.bf16.mxu1 %vm269_vm1, %v2283_v3  ;;  %3928 = vmatprep.mubr.msk.bf16.mxu0 %vm269_vm1, %v2590_v4  ;;  %v2284_v52 = vpack.c.bf16 %v3367_v18, %v3366_v1  ;;  %v3371_v3 = vld [vmem:[%s4030_s21 + $0xfd] sm:$0xff]  ;;  %v3372_v59 = vld [vmem:[%s4030_s21 + $0x105] sm:$0xff]  ;;  %v3373_v1 = vld [vmem:[%s4030_s21 + $0x10d] sm:$0xff] }
 0x116   : > { %v641_v33 = vpop.f32.mrf.mxu1  ;;  %v916_v38 = vpop.f32.mrf.mxu0  ;;  %v3425_v8 = vld [vmem:[%s4030_s21 + $0xfe] sm:$0xff]  ;;  %v3426_v18 = vld [vmem:[%s4030_s21 + $0x106] sm:$0xff]  ;;  %v2287_v46 = vpack.c.bf16 %v3373_v1, %v3372_v59 }
 0x117   : > { %v4635_v53 = vadd.f32 %v3710_v17, %v650_v24  ;;  %v642_v47 = vadd.f32 %v641_v33, %v4436_v11  ;;  %v3427_v24 = vld [vmem:[%s4030_s21 + $0x10e] sm:$0xff] }
 0x118   : > { %v3675_v16 = vpop.f32.mrf.mxu1  ;;  %v3711_v50 = vpop.f32.mrf.mxu0 }
 0x119   : > { %v4638_v29 = vadd.f32 %v916_v38, %v642_v47  ;;  %v653_v26 = vadd.f32 %v3675_v16, %v4442_v15  ;;  %v3370_v15 = vld [vmem:[%s4030_s21 + $0xf5] sm:$0xff]  ;;  %v2594_v47 = vpack.c.bf16 %v3427_v24, %v3426_v18 }
 0x11a   : > { %v644_v9 = vpop.f32.mrf.mxu1  ;;  %v919_v61 = vpop.f32.mrf.mxu0 }
 0x11b   : > { %v4641_v55 = vadd.f32 %v3711_v50, %v653_v26  ;;  %v645_v11 = vadd.f32 %v644_v9, %v4446_v13  ;;  %v3424_v13 = vld [vmem:[%s4030_s21 + $0xf6] sm:$0xff] }
 0x11c   : > { %v3678_v62 = vpop.f32.mrf.mxu1  ;;  %v3714_v63 = vpop.f32.mrf.mxu0  ;;  %3893 = vmatmul.mubr.msk.bf16.gmra.mxu1 %vm269_vm1, %v2284_v52  ;;  %3929 = vmatmul.mubr.msk.bf16.gmra.mxu0 %vm269_vm1, %v2591_v10  ;;  %v2593_v38 = vpack.c.bf16 %v3425_v8, %v3424_v13  ;;  %v3375_v9 = vld [vmem:[%s4030_s21 + $0x11d] sm:$0xff] }
 0x11d   : > { %v4648_v4 = vadd.f32 %v919_v61, %v645_v11  ;;  %v666_v5 = vadd.f32 %v3678_v62, %v4450_v20  ;;  %3896 = vmatprep.mubr.msk.bf16.mxu1 %vm269_vm1, %v2285_v14  ;;  %3932 = vmatprep.mubr.msk.bf16.mxu0 %vm269_vm1, %v2592_v28  ;;  %v2286_v20 = vpack.c.bf16 %v3371_v3, %v3370_v15  ;;  %v3374_v14 = vld [vmem:[%s4030_s21 + $0x115] sm:$0xff]  ;;  %v3429_v11 = vld [vmem:[%s4030_s21 + $0x11e] sm:$0xff] }
 0x11e   : > { %v657_v54 = vpop.f32.mrf.mxu1  ;;  %v932_v17 = vpop.f32.mrf.mxu0  ;;  %v3428_v61 = vld [vmem:[%s4030_s21 + $0x116] sm:$0xff]  ;;  %v2288_v13 = vpack.c.bf16 %v3375_v9, %v3374_v14  ;;  %s2998_s21 = sshll.u32 %s2994_s13, 5 }
 0x11f   : > { %v4659_v6 = vadd.f32 %v3714_v63, %v666_v5  ;;  %v658_v27 = vadd.f32 %v657_v54, %v4460_v23  ;;  %v2595_v8 = vpack.c.bf16 %v3429_v11, %v3428_v61  ;;  %p147_p3 = scmp.lt.s32.totalorder %s2998_s21, 95 }
 0x120   : > { %v3679_v43 = vpop.f32.mrf.mxu1  ;;  %v3715_v33 = vpop.f32.mrf.mxu0 }
 0x121   : > { %v4662_v48 = vadd.f32 %v932_v17, %v658_v27  ;;  %v669_v39 = vadd.f32 %v3679_v43, %v4466_v31  ;;  %s5220_s21 = smov (!%p147_p3, %s2998_s21), 95 }
 0x122   : > { %v660_v16 = vpop.f32.mrf.mxu1  ;;  %v935_v50 = vpop.f32.mrf.mxu0  ;;  %s2999_s13 = sshll.u32 %s5220_s21, 3 }
 0x123   : > { %v4665_v52 = vadd.f32 %v3715_v33, %v669_v39  ;;  %v661_v23 = vadd.f32 %v660_v16, %v4470_v35  ;;  %s4953_s7 = scalar_lea.vmem %s5138_s3, %s2999_s13 }
 0x124   : > { %v3682_v10 = vpop.f32.mrf.mxu1  ;;  %v3718_v26 = vpop.f32.mrf.mxu0  ;;  %3897 = vmatmul.mubr.msk.bf16.gmra.mxu1 %vm269_vm1, %v2286_v20  ;;  %3933 = vmatmul.mubr.msk.bf16.gmra.mxu0 %vm269_vm1, %v2593_v38 }
 0x125   : > { %v4671_v28 = vadd.f32 %v935_v50, %v661_v23  ;;  %v682_v31 = vadd.f32 %v3682_v10, %v4474_v37  ;;  %3900 = vmatprep.mubr.msk.bf16.mxu1 %vm269_vm1, %v2287_v46  ;;  %3936 = vmatprep.mubr.msk.bf16.mxu0 %vm269_vm1, %v2594_v47 }
 0x126   : > { %v673_v62 = vpop.f32.mrf.mxu1  ;;  %v948_v35 = vpop.f32.mrf.mxu0 }
 0x127   : > { %v4679_v63 = vadd.f32 %v3718_v26, %v682_v31  ;;  %v674_v15 = vadd.f32 %v673_v62, %v4485_v44 }
 0x128   : > { %v3683_v3 = vpop.f32.mrf.mxu1  ;;  %v3719_v5 = vpop.f32.mrf.mxu0 }
 0x129   : > { %v4682_v59 = vadd.f32 %v948_v35, %v674_v15  ;;  %v685_v37 = vadd.f32 %v3683_v3, %v4492_v49 }
 0x12a   : > { %v676_v54 = vpop.f32.mrf.mxu1  ;;  %v951_v17 = vpop.f32.mrf.mxu0 }
 0x12b   : > { %v4685_v1 = vadd.f32 %v3719_v5, %v685_v37  ;;  %v677_v18 = vadd.f32 %v676_v54, %v4496_v25 }
 0x12c   : > { %v3686_v24 = vpop.f32.mrf.mxu1  ;;  %v3722_v27 = vpop.f32.mrf.mxu0  ;;  %3901 = vmatmul.mubr.msk.bf16.gmra.mxu1 %vm269_vm1, %v2288_v13  ;;  %3937 = vmatmul.mubr.msk.bf16.gmra.mxu0 %vm269_vm1, %v2595_v8 }
 0x12d   : > { %v4690_v44 = vadd.f32 %v951_v17, %v677_v18  ;;  %v698_v43 = vadd.f32 %v3686_v24, %v4500_v56 }
 0x12e   : > { %v689_v33 = vpop.f32.mrf.mxu1  ;;  %v964_v20 = vpop.f32.mrf.mxu0 }
 0x12f   : > { %v4693_v38 = vadd.f32 %v3722_v27, %v698_v43  ;;  %v690_v49 = vadd.f32 %v689_v33, %v4513_v60 }
 0x130   : > { %v3687_v39 = vpop.f32.mrf.mxu1  ;;  %v3723_v46 = vpop.f32.mrf.mxu0 }
 0x131   : > { %v4696_v47 = vadd.f32 %v964_v20, %v690_v49  ;;  %v701_v25 = vadd.f32 %v3687_v39, %v4520_v30 }
 0x132   : > { %v692_v16 = vpop.f32.mrf.mxu1  ;;  %v967_v50 = vpop.f32.mrf.mxu0 }
 0x133   : > { %v4699_v23 = vadd.f32 %v3723_v46, %v701_v25  ;;  %v693_v10 = vadd.f32 %v692_v16, %v4524_v7 }
 0x134   : > { %v3730_v26 = vpop.f32.mrf.mxu1  ;;  %v3766_v56 = vpop.f32.mrf.mxu0 }
 0x135   : > { %v4702_v14 = vadd.f32 %v967_v50, %v693_v10  ;;  %v1288_v31 = vadd.f32 %v3730_v26, %v4539_v41 }
 0x136   : > { %v1159_v9 = vpop.f32.mrf.mxu1  ;;  %v1466_v60 = vpop.f32.mrf.mxu0 }
 0x137   : > { %v4705_v61 = vadd.f32 %v3766_v56, %v1288_v31  ;;  %v1286_v11 = vadd.f32 %v1159_v9, %v4542_v51 }
 0x138   : > { %v3731_v62 = vpop.f32.mrf.mxu1  ;;  %v3767_v30 = vpop.f32.mrf.mxu0 }
 0x139   : > { %v4708_v35 = vadd.f32 %v1466_v60, %v1286_v11  ;;  %v1289_v15 = vadd.f32 %v3731_v62, %v4545_v58 }
 0x13a   : > { %v1162_v3 = vpop.f32.mrf.mxu1  ;;  %v1469_v7 = vpop.f32.mrf.mxu0 }
 0x13b   : > { %v4711_v5 = vadd.f32 %v3767_v30, %v1289_v15  ;;  %v1287_v13 = vadd.f32 %v1162_v3, %v4552_v40 }
 0x13c   : > { %v3734_v8 = vpop.f32.mrf.mxu1  ;;  %v3770_v41 = vpop.f32.mrf.mxu0 }
 0x13d   : > { %v4714_v37 = vadd.f32 %v1469_v7, %v1287_v13  ;;  %v1292_v54 = vadd.f32 %v3734_v8, %v4563_v21 }
 0x13e   : > { %v1175_v17 = vpop.f32.mrf.mxu1  ;;  %v1482_v51 = vpop.f32.mrf.mxu0 }
 0x13f   : > { %v4717_v18 = vadd.f32 %v3770_v41, %v1292_v54  ;;  %v1290_v24 = vadd.f32 %v1175_v17, %v4566_v34 }
 0x140   : > { %v3735_v27 = vpop.f32.mrf.mxu1  ;;  %v3771_v58 = vpop.f32.mrf.mxu0 }
 0x141   : > { %v4720_v43 = vadd.f32 %v1482_v51, %v1290_v24  ;;  %v1293_v33 = vadd.f32 %v3735_v27, %v4569_v42 }
 0x142   : > { %v1178_v20 = vpop.f32.mrf.mxu1  ;;  %v1485_v40 = vpop.f32.mrf.mxu0 }
 0x143   : > { %v4723_v49 = vadd.f32 %v3771_v58, %v1293_v33  ;;  %v1291_v39 = vadd.f32 %v1178_v20, %v4576_v57 }
 0x144   : > { %v3738_v46 = vpop.f32.mrf.mxu1  ;;  %v3774_v21 = vpop.f32.mrf.mxu0 }
 0x145   : > { %v4726_v25 = vadd.f32 %v1485_v40, %v1291_v39  ;;  %v1296_v16 = vadd.f32 %v3738_v46, %v4587_v2 }
 0x146   : > { %v1191_v50 = vpop.f32.mrf.mxu1  ;;  %v1498_v34 = vpop.f32.mrf.mxu0 }
 0x147   : > { %v4729_v10 = vadd.f32 %v3774_v21, %v1296_v16  ;;  %v1294_v26 = vadd.f32 %v1191_v50, %v4590_v0 }
 0x148   : > { %v3739_v56 = vpop.f32.mrf.mxu1  ;;  %v3775_v42 = vpop.f32.mrf.mxu0 }
 0x149   : > { %v4732_v31 = vadd.f32 %v1498_v34, %v1294_v26  ;;  %v1297_v9 = vadd.f32 %v3739_v56, %v4593_v19 }
 0x14a   : > { %v1194_v60 = vpop.f32.mrf.mxu1  ;;  %v1501_v57 = vpop.f32.mrf.mxu0 }
 0x14b   : > { %v4735_v11 = vadd.f32 %v3775_v42, %v1297_v9  ;;  %v1295_v62 = vadd.f32 %v1194_v60, %v4600_v45 }
 0x14c   : > { %v3742_v30 = vpop.f32.mrf.mxu1  ;;  %v3778_v2 = vpop.f32.mrf.mxu0 }
 0x14d   : > { %v4738_v15 = vadd.f32 %v1501_v57, %v1295_v62  ;;  %v1300_v3 = vadd.f32 %v3742_v30, %v4611_v32 }
 0x14e   : > { %v1207_v7 = vpop.f32.mrf.mxu1  ;;  %v1514_v0 = vpop.f32.mrf.mxu0 }
 0x14f   : > { %v4741_v13 = vadd.f32 %v3778_v2, %v1300_v3  ;;  %v1298_v8 = vadd.f32 %v1207_v7, %v4614_v12 }
 0x150   : > { %v3743_v41 = vpop.f32.mrf.mxu1  ;;  %v3779_v19 = vpop.f32.mrf.mxu0 }
 0x151   : > { %v4744_v54 = vadd.f32 %v1514_v0, %v1298_v8  ;;  %v1301_v17 = vadd.f32 %v3743_v41, %v4617_v36 }
 0x152   : > { %v1210_v51 = vpop.f32.mrf.mxu1  ;;  %v1517_v45 = vpop.f32.mrf.mxu0 }
 0x153   : > { %v4747_v24 = vadd.f32 %v3779_v19, %v1301_v17  ;;  %v1299_v27 = vadd.f32 %v1210_v51, %v4624_v22 }
 0x154   : > { %v3746_v58 = vpop.f32.mrf.mxu1  ;;  %v3782_v32 = vpop.f32.mrf.mxu0 }
 0x155   : > { %v4750_v33 = vadd.f32 %v1517_v45, %v1299_v27  ;;  %v1304_v20 = vadd.f32 %v3746_v58, %v4635_v53 }
 0x156   : > { %v1223_v40 = vpop.f32.mrf.mxu1  ;;  %v1530_v12 = vpop.f32.mrf.mxu0 }
 0x157   : > { %v4753_v39 = vadd.f32 %v3782_v32, %v1304_v20  ;;  %v1302_v46 = vadd.f32 %v1223_v40, %v4638_v29 }
 0x158   : > { %v3747_v21 = vpop.f32.mrf.mxu1  ;;  %v3783_v36 = vpop.f32.mrf.mxu0 }
 0x159   : > { %v4756_v16 = vadd.f32 %v1530_v12, %v1302_v46  ;;  %v1305_v50 = vadd.f32 %v3747_v21, %v4641_v55 }
 0x15a   : > { %v1226_v34 = vpop.f32.mrf.mxu1  ;;  %v1533_v22 = vpop.f32.mrf.mxu0 }
 0x15b   : > { %v4759_v26 = vadd.f32 %v3783_v36, %v1305_v50  ;;  %v1303_v56 = vadd.f32 %v1226_v34, %v4648_v4 }
 0x15c   : > { %v3750_v42 = vpop.f32.mrf.mxu1  ;;  %v3786_v53 = vpop.f32.mrf.mxu0 }
 0x15d   : > { %5139 = vst [vmem:[#allocation2_spill] sm:$0xff] %v4759_v26  ;;  %v4762_v9 = vadd.f32 %v1533_v22, %v1303_v56  ;;  %v1308_v60 = vadd.f32 %v3750_v42, %v4659_v6 }
 0x15e   : > { %v1239_v57 = vpop.f32.mrf.mxu1  ;;  %v1546_v29 = vpop.f32.mrf.mxu0 }
 0x15f   : > { %5140 = vst [vmem:[#allocation3_spill] sm:$0xff] %v4762_v9  ;;  %v4765_v62 = vadd.f32 %v3786_v53, %v1308_v60  ;;  %v1306_v30 = vadd.f32 %v1239_v57, %v4662_v48 }
 0x160   : > { %v3751_v2 = vpop.f32.mrf.mxu1  ;;  %v3787_v55 = vpop.f32.mrf.mxu0 }
 0x161   : > { %5141 = vst [vmem:[#allocation4_spill] sm:$0xff] %v4765_v62  ;;  %v4768_v3 = vadd.f32 %v1546_v29, %v1306_v30  ;;  %v1309_v7 = vadd.f32 %v3751_v2, %v4665_v52 }
 0x162   : > { %v1242_v0 = vpop.f32.mrf.mxu1  ;;  %v1549_v4 = vpop.f32.mrf.mxu0 }
 0x163   : > { %5142 = vst [vmem:[#allocation5_spill] sm:$0xff] %v4768_v3  ;;  %v4771_v8 = vadd.f32 %v3787_v55, %v1309_v7  ;;  %v1307_v41 = vadd.f32 %v1242_v0, %v4671_v28 }
 0x164   : > { %v3754_v19 = vpop.f32.mrf.mxu1  ;;  %v3790_v6 = vpop.f32.mrf.mxu0 }
 0x165   : > { %5143 = vst [vmem:[#allocation6_spill] sm:$0xff] %v4771_v8  ;;  %v4774_v17 = vadd.f32 %v1549_v4, %v1307_v41  ;;  %v1312_v51 = vadd.f32 %v3754_v19, %v4679_v63 }
 0x166   : > { %v1255_v45 = vpop.f32.mrf.mxu1  ;;  %v1562_v48 = vpop.f32.mrf.mxu0 }
 0x167   : > { %5144 = vst [vmem:[#allocation7_spill] sm:$0xff] %v4774_v17  ;;  %v4777_v27 = vadd.f32 %v3790_v6, %v1312_v51  ;;  %v1310_v58 = vadd.f32 %v1255_v45, %v4682_v59 }
 0x168   : > { %v3755_v32 = vpop.f32.mrf.mxu1  ;;  %v3791_v52 = vpop.f32.mrf.mxu0 }
 0x169   : > { %5145 = vst [vmem:[#allocation8_spill] sm:$0xff] %v4777_v27  ;;  %v4780_v20 = vadd.f32 %v1562_v48, %v1310_v58  ;;  %v1313_v40 = vadd.f32 %v3755_v32, %v4685_v1 }
 0x16a   : > { %v1258_v12 = vpop.f32.mrf.mxu1  ;;  %v1565_v28 = vpop.f32.mrf.mxu0 }
 0x16b   : > { %5146 = vst [vmem:[#allocation9_spill] sm:$0xff] %v4780_v20  ;;  %v4783_v46 = vadd.f32 %v3791_v52, %v1313_v40  ;;  %v1311_v21 = vadd.f32 %v1258_v12, %v4690_v44 }
 0x16c   : > { %v3758_v36 = vpop.f32.mrf.mxu1  ;;  %v3794_v63 = vpop.f32.mrf.mxu0 }
 0x16d   : > { %5147 = vst [vmem:[#allocation10_spill] sm:$0xff] %v4783_v46  ;;  %v4786_v50 = vadd.f32 %v1565_v28, %v1311_v21  ;;  %v1316_v34 = vadd.f32 %v3758_v36, %v4693_v38 }
 0x16e   : > { %v1271_v22 = vpop.f32.mrf.mxu1  ;;  %v1578_v59 = vpop.f32.mrf.mxu0 }
 0x16f   : > { %5148 = vst [vmem:[#allocation11_spill] sm:$0xff] %v4786_v50  ;;  %v4789_v56 = vadd.f32 %v3794_v63, %v1316_v34  ;;  %v1314_v42 = vadd.f32 %v1271_v22, %v4696_v47 }
 0x170   : > { %v3759_v53 = vpop.f32.mrf.mxu1  ;;  %v3795_v1 = vpop.f32.mrf.mxu0 }
 0x171   : > { %5149 = vst [vmem:[#allocation12_spill] sm:$0xff] %v4789_v56  ;;  %v4792_v60 = vadd.f32 %v1578_v59, %v1314_v42  ;;  %v1317_v57 = vadd.f32 %v3759_v53, %v4699_v23 }
 0x172   : > { %v1274_v29 = vpop.f32.mrf.mxu1  ;;  %v1581_v44 = vpop.f32.mrf.mxu0 }
 0x173   : > { %5150 = vst [vmem:[#allocation13_spill] sm:$0xff] %v4792_v60  ;;  %v4795_v30 = vadd.f32 %v3795_v1, %v1317_v57  ;;  %v1315_v2 = vadd.f32 %v1274_v29, %v4702_v14 }
 0x174   : > { %v4798_v55 = vpop.f32.mrf.mxu1  ;;  %v4800_v38 = vpop.f32.mrf.mxu0 }
 0x175   : > { %5151 = vst [vmem:[#allocation14_spill] sm:$0xff] %v4795_v30  ;;  %v4802_v7 = vadd.f32 %v1581_v44, %v1315_v2 }
 0x176   : > { %v4804_v0 = vpop.f32.mrf.mxu1  ;;  %v4806_v47 = vpop.f32.mrf.mxu0 }
 0x177   : > { %5152 = vst [vmem:[#allocation15_spill] sm:$0xff] %v4802_v7 }
 0x178   : > { %v4808_v4 = vpop.f32.mrf.mxu1  ;;  %v4810_v41 = vpop.f32.mrf.mxu0 }
 0x17a   : > { %v4812_v23 = vpop.f32.mrf.mxu1  ;;  %v4814_v19 = vpop.f32.mrf.mxu0 }
 0x17c   : > { %v4816_v6 = vpop.f32.mrf.mxu1  ;;  %v4818_v14 = vpop.f32.mrf.mxu0 }
 0x17e   : > { %v4820_v51 = vpop.f32.mrf.mxu1  ;;  %v4822_v45 = vpop.f32.mrf.mxu0 }
 0x180   : > { %v4824_v48 = vpop.f32.mrf.mxu1  ;;  %v4826_v58 = vpop.f32.mrf.mxu0 }
 0x182   : > { %v4828_v32 = vpop.f32.mrf.mxu1  ;;  %v4830_v52 = vpop.f32.mrf.mxu0 }
 0x184   : > { %v4832_v40 = vpop.f32.mrf.mxu1  ;;  %v4834_v12 = vpop.f32.mrf.mxu0 }
 0x186   : > { %v4836_v28 = vpop.f32.mrf.mxu1  ;;  %v4838_v21 = vpop.f32.mrf.mxu0 }
 0x188   : > { %v4840_v36 = vpop.f32.mrf.mxu1  ;;  %v4842_v63 = vpop.f32.mrf.mxu0 }
 0x18a   : > { %v4844_v34 = vpop.f32.mrf.mxu1  ;;  %v4846_v22 = vpop.f32.mrf.mxu0 }
 0x18c   : > { %v4848_v59 = vpop.f32.mrf.mxu1  ;;  %v4850_v42 = vpop.f32.mrf.mxu0 }
 0x18e   : > { %v4852_v53 = vpop.f32.mrf.mxu1  ;;  %v4854_v1 = vpop.f32.mrf.mxu0 }
 0x190   : > { %v4856_v57 = vpop.f32.mrf.mxu1  ;;  %v4858_v29 = vpop.f32.mrf.mxu0 }
 0x192   : > { %v4860_v44 = vpop.f32.mrf.mxu1  ;;  %v4862_v2 = vpop.f32.mrf.mxu0 }
 0x194   : > { %v4864_v7 = vpop.f32.mrf.mxu1  ;;  %v4866_v30 = vpop.f32.mrf.mxu0 }
 0x196   : > { %v4868_v60 = vpop.f32.mrf.mxu1  ;;  %v4870_v56 = vpop.f32.mrf.mxu0 }
 0x197   : > { %5153 = vst [vmem:[#allocation16_spill] sm:$0xff] %v4870_v56 }
 0x198   : > { %v4872_v50 = vpop.f32.mrf.mxu1  ;;  %v4874_v46 = vpop.f32.mrf.mxu0 }
 0x199   : > { %5154 = vst [vmem:[#allocation17_spill] sm:$0xff] %v4872_v50  ;;  %5155 = vst [vmem:[#allocation18_spill] sm:$0xff] %v4874_v46 }
 0x19a   : > { %v4876_v20 = vpop.f32.mrf.mxu1  ;;  %v4878_v27 = vpop.f32.mrf.mxu0 }
 0x19b   : > { %5156 = vst [vmem:[#allocation19_spill] sm:$0xff] %v4876_v20  ;;  %5157 = vst [vmem:[#allocation20_spill] sm:$0xff] %v4878_v27 }
 0x19c   : > { %v4880_v17 = vpop.f32.mrf.mxu1  ;;  %v4882_v8 = vpop.f32.mrf.mxu0 }
 0x19d   : > { %5158 = vst [vmem:[#allocation21_spill] sm:$0xff] %v4880_v17  ;;  %5159 = vst [vmem:[#allocation22_spill] sm:$0xff] %v4882_v8 }
 0x19e   : > { %v4884_v3 = vpop.f32.mrf.mxu1  ;;  %v4886_v62 = vpop.f32.mrf.mxu0 }
 0x19f   : > { %5160 = vst [vmem:[#allocation23_spill] sm:$0xff] %v4884_v3  ;;  %5161 = vst [vmem:[#allocation24_spill] sm:$0xff] %v4886_v62 }
 0x1a0   : > { %v4888_v9 = vpop.f32.mrf.mxu1  ;;  %v4890_v56 = vpop.f32.mrf.mxu0 }
 0x1a1   : > { %5162 = vst [vmem:[#allocation25_spill] sm:$0xff] %v4888_v9  ;;  %5163 = vst [vmem:[#allocation26_spill] sm:$0xff] %v4890_v56 }
 0x1a2   : > { %v4892_v50 = vpop.f32.mrf.mxu1  ;;  %v4894_v46 = vpop.f32.mrf.mxu0 }
 0x1a3   : > { %5164 = vst [vmem:[#allocation27_spill] sm:$0xff] %v4894_v46 }
 0x1a4   : > { %v4896_v20 = vpop.f32.mrf.mxu1  ;;  %v4898_v27 = vpop.f32.mrf.mxu0 }
 0x1a5   : > { %5165 = vst [vmem:[#allocation28_spill] sm:$0xff] %v4896_v20  ;;  %5166 = vst [vmem:[#allocation29_spill] sm:$0xff] %v4898_v27 }
 0x1a6   : > { %v4900_v17 = vpop.f32.mrf.mxu1  ;;  %v4902_v26 = vpop.f32.mrf.mxu0 }
 0x1a7   : > { %5167 = vst [vmem:[#allocation30_spill] sm:$0xff] %v4900_v17  ;;  %5168 = vst [vmem:[#allocation31_spill] sm:$0xff] %v4902_v26  ;;  %v1902_v26 = vadd.f32 %v4798_v55, %v4705_v61  ;;  %v1901_v55 = vadd.f32 %v4812_v23, %v4714_v37 }
 0x1a8   : > { %v4904_v8 = vpop.f32.mrf.mxu1  ;;  %v4906_v3 = vpop.f32.mrf.mxu0 }
 0x1a9   : > { %5169 = vst [vmem:[#allocation32_spill] sm:$0xff] %v4904_v8  ;;  %5170 = vst [vmem:[#allocation33_spill] sm:$0xff] %v4906_v3 }
 0x1aa   : > { %v4908_v62 = vpop.f32.mrf.mxu1  ;;  %v4910_v9 = vpop.f32.mrf.mxu0 }
 0x1ab   : > { %5171 = vst [vmem:[#allocation34_spill] sm:$0xff] %v4908_v62  ;;  %5172 = vst [vmem:[#allocation35_spill] sm:$0xff] %v4910_v9  ;;  %v1900_v9 = vadd.f32 %v4804_v0, %v4708_v35  ;;  %v1906_v35 = vadd.f32 %v4816_v6, %v4717_v18  ;;  %v4945_v0 = vld [vmem:[%s5137_s2] ss:$0 sm:$0xff] }
 0x1ac   : > { %v4914_v56 = vpop.f32.mrf.mxu1  ;;  %v4916_v46 = vpop.f32.mrf.mxu0 }
 0x1ad   : > { %5173 = vst [vmem:[#allocation36_spill] sm:$0xff] %v4914_v56  ;;  %5174 = vst [vmem:[#allocation37_spill] sm:$0xff] %v4916_v46  ;;  %v2209_v46 = vadd.f32 %v4800_v38, %v1902_v26  ;;  %v2207_v61 = vadd.f32 %v4806_v47, %v1900_v9  ;;  %v1904_v9 = vadd.f32 %v4820_v51, %v4720_v43 }
 0x1ae   : > { %v4918_v27 = vpop.f32.mrf.mxu1  ;;  %v4920_v17 = vpop.f32.mrf.mxu0  ;;  %v1907_v43 = vadd.f32 %v4824_v48, %v4723_v49 }
 0x1af   : > { %5175 = vst [vmem:[#allocation38_spill] sm:$0xff] %v4918_v27  ;;  %5176 = vst [vmem:[#allocation39_spill] sm:$0xff] %v4920_v17  ;;  %v1903_v17 = vadd.f32 %v4808_v4, %v4711_v5 }
 0x1b0   : > { %v4924_v8 = vpop.f32.mrf.mxu1  ;;  %v4926_v3 = vpop.f32.mrf.mxu0 }
 0x1b1   : > { %5177 = vst [vmem:[#allocation40_spill] sm:$0xff] %v4926_v3  ;;  %v2210_v5 = vadd.f32 %v4810_v41, %v1903_v17 }
 0x1b2   : > { %v4930_v62 = vpop.f32.mrf.mxu1  ;;  %v4932_v56 = vpop.f32.mrf.mxu0 }
 0x1b3   : > { %5178 = vst [vmem:[#allocation41_spill] sm:$0xff] %v4932_v56 }
 0x1b4   : > { %v3874_v27 = vpop.f32.mrf.mxu1  ;;  %v3910_v20 = vpop.f32.mrf.mxu0 }
 0x1b5   : > { %v2516_v3 = vadd.f32 %v3874_v27, %v2209_v46  ;;  %v2208_v27 = vadd.f32 %v4814_v19, %v1901_v55  ;;  %v2211_v19 = vadd.f32 %v4822_v45, %v1904_v9 }
 0x1b6   : > { %v2387_v26 = vpop.f32.mrf.mxu1  ;;  %v2694_v38 = vpop.f32.mrf.mxu0 }
 0x1b7   : > { %v2823_v4 = vadd.f32 %v3910_v20, %v2516_v3  ;;  %v2514_v56 = vadd.f32 %v2387_v26, %v2207_v61  ;;  %v2213_v3 = vadd.f32 %v4818_v14, %v1906_v35  ;;  %v1910_v35 = vadd.f32 %v4832_v40, %v4729_v10 }
 0x1b8   : > { %v3875_v37 = vpop.f32.mrf.mxu1  ;;  %v3911_v18 = vpop.f32.mrf.mxu0 }
 0x1b9   : > { %v2862_v46 = vadd.f32 %v4945_v0, %v2823_v4  ;;  %v2821_v47 = vadd.f32 %v2694_v38, %v2514_v56  ;;  %v2517_v17 = vadd.f32 %v3875_v37, %v2210_v5  ;;  %v1905_v56 = vadd.f32 %v4828_v32, %v4726_v25 }
 0x1ba   : > { %v2390_v20 = vpop.f32.mrf.mxu1  ;;  %v2697_v41 = vpop.f32.mrf.mxu0  ;;  %v2214_v5 = vadd.f32 %v4826_v58, %v1907_v43  ;;  %v1908_v4 = vadd.f32 %v4836_v28, %v4732_v31  ;;  %v1909_v43 = vadd.f32 %v4844_v34, %v4738_v15 }
 0x1bb   : > { %2894 = vst.msk [vmem:[%s4953_s7 + $0x10] sm:$0xff] %vm269_vm1, %v2862_v46  ;;  %v2860_v23 = vadd.f32 %v4945_v0, %v2821_v47  ;;  %v2824_v6 = vadd.f32 %v3911_v18, %v2517_v17  ;;  %v2515_v51 = vadd.f32 %v2390_v20, %v2208_v27  ;;  %v2212_v18 = vadd.f32 %v4830_v52, %v1905_v56 }
 0x1bc   : > { %v3878_v61 = vpop.f32.mrf.mxu1  ;;  %v3914_v55 = vpop.f32.mrf.mxu0  ;;  %v2217_v27 = vadd.f32 %v4834_v12, %v1910_v35  ;;  %v1911_v17 = vadd.f32 %v4840_v36, %v4735_v11 }
 0x1bd   : > { %2892 = vst.msk [vmem:[%s4953_s7] sm:$0xff] %vm269_vm1, %v2860_v23  ;;  %v2863_v14 = vadd.f32 %v4945_v0, %v2824_v6  ;;  %v2822_v49 = vadd.f32 %v2697_v41, %v2515_v51  ;;  %v2520_v48 = vadd.f32 %v3878_v61, %v2213_v3  ;;  %v2215_v3 = vadd.f32 %v4838_v21, %v1908_v4 }
 0x1be   : > { %v2403_v26 = vpop.f32.mrf.mxu1  ;;  %v2710_v38 = vpop.f32.mrf.mxu0  ;;  %v1914_v23 = vadd.f32 %v4848_v59, %v4741_v13  ;;  %v1912_v61 = vadd.f32 %v4852_v53, %v4744_v54 }
 0x1bf   : > { %2895 = vst.msk [vmem:[%s4953_s7 + $0x18] sm:$0xff] %vm269_vm1, %v2863_v14  ;;  %v2861_v45 = vadd.f32 %v4945_v0, %v2822_v49  ;;  %v2827_v25 = vadd.f32 %v3914_v55, %v2520_v48  ;;  %v2518_v32 = vadd.f32 %v2403_v26, %v2211_v19  ;;  %v2218_v19 = vadd.f32 %v4842_v63, %v1911_v17  ;;  %v5179_v17 = vld [vmem:[#allocation2_spill] sm:$0xff] }
 0x1c0   : > { %v3879_v9 = vpop.f32.mrf.mxu1  ;;  %v3915_v37 = vpop.f32.mrf.mxu0  ;;  %v2216_v14 = vadd.f32 %v4846_v22, %v1909_v43  ;;  %v2221_v49 = vadd.f32 %v4850_v42, %v1914_v23  ;;  %v1915_v26 = vadd.f32 %v4856_v57, %v4747_v24  ;;  %v5182_v43 = vld [vmem:[#allocation3_spill] sm:$0xff] }
 0x1c1   : > { %2893 = vst.msk [vmem:[%s4953_s7 + $0x8] sm:$0xff] %vm269_vm1, %v2861_v45  ;;  %v2866_v10 = vadd.f32 %v4945_v0, %v2827_v25  ;;  %v2825_v58 = vadd.f32 %v2710_v38, %v2518_v32  ;;  %v2521_v40 = vadd.f32 %v3879_v9, %v2214_v5  ;;  %v2219_v38 = vadd.f32 %v4854_v1, %v1912_v61 }
 0x1c2   : > { %v2406_v46 = vpop.f32.mrf.mxu1  ;;  %v2713_v47 = vpop.f32.mrf.mxu0  ;;  %v1913_v25 = vadd.f32 %v4860_v44, %v4750_v33  ;;  %v1918_v32 = vadd.f32 %v4864_v7, %v4753_v39 }
 0x1c3   : > { %2898 = vst.msk [vmem:[%s4953_s7 + $0x30] sm:$0xff] %vm269_vm1, %v2866_v10  ;;  %v2864_v31 = vadd.f32 %v4945_v0, %v2825_v58  ;;  %v2828_v52 = vadd.f32 %v3915_v37, %v2521_v40  ;;  %v2519_v28 = vadd.f32 %v2406_v46, %v2212_v18  ;;  %v2222_v37 = vadd.f32 %v4858_v29, %v1915_v26 }
 0x1c4   : > { %v3882_v20 = vpop.f32.mrf.mxu1  ;;  %v3918_v41 = vpop.f32.mrf.mxu0  ;;  %v1916_v18 = vadd.f32 %v4868_v60, %v4756_v16  ;;  %v2220_v40 = vadd.f32 %v4862_v2, %v1913_v25 }
 0x1c5   : > { %2896 = vst.msk [vmem:[%s4953_s7 + $0x20] sm:$0xff] %vm269_vm1, %v2864_v31  ;;  %v2867_v12 = vadd.f32 %v4945_v0, %v2828_v52  ;;  %v2826_v11 = vadd.f32 %v2713_v47, %v2519_v28  ;;  %v2524_v36 = vadd.f32 %v3882_v20, %v2217_v27  ;;  %v2225_v27 = vadd.f32 %v4866_v30, %v1918_v32  ;;  %v5180_v31 = vld [vmem:[#allocation17_spill] sm:$0xff]  ;;  %v5181_v28 = vld [vmem:[#allocation16_spill] sm:$0xff] }
 0x1c6   : > { %v2419_v6 = vpop.f32.mrf.mxu1  ;;  %v2726_v51 = vpop.f32.mrf.mxu0  ;;  %v1919_v52 = vadd.f32 %v5180_v31, %v5179_v17  ;;  %v5197_v17 = vld [vmem:[#allocation26_spill] sm:$0xff] }
 0x1c7   : > { %2899 = vst.msk [vmem:[%s4953_s7 + $0x38] sm:$0xff] %vm269_vm1, %v2867_v12  ;;  %v2865_v21 = vadd.f32 %v4945_v0, %v2826_v11  ;;  %v2831_v15 = vadd.f32 %v3918_v41, %v2524_v36  ;;  %v2522_v34 = vadd.f32 %v2419_v6, %v2215_v3  ;;  %v2223_v3 = vadd.f32 %v5181_v28, %v1916_v18  ;;  %v5183_v12 = vld [vmem:[#allocation19_spill] sm:$0xff]  ;;  %v5184_v6 = vld [vmem:[#allocation4_spill] sm:$0xff] }
 0x1c8   : > { %v3883_v55 = vpop.f32.mrf.mxu1  ;;  %v3919_v56 = vpop.f32.mrf.mxu0  ;;  %v1917_v11 = vadd.f32 %v5183_v12, %v5182_v43  ;;  %v5194_v18 = vld [vmem:[#allocation7_spill] sm:$0xff] }
 0x1c9   : > { %2897 = vst.msk [vmem:[%s4953_s7 + $0x28] sm:$0xff] %vm269_vm1, %v2865_v21  ;;  %v2870_v13 = vadd.f32 %v4945_v0, %v2831_v15  ;;  %v2829_v63 = vadd.f32 %v2726_v51, %v2522_v34  ;;  %v2525_v59 = vadd.f32 %v3883_v55, %v2218_v19  ;;  %v5185_v51 = vld [vmem:[#allocation21_spill] sm:$0xff]  ;;  %v5186_v34 = vld [vmem:[#allocation18_spill] sm:$0xff] }
 0x1ca   : > { %v2422_v48 = vpop.f32.mrf.mxu1  ;;  %v2729_v35 = vpop.f32.mrf.mxu0  ;;  %v1922_v19 = vadd.f32 %v5185_v51, %v5184_v6  ;;  %v2226_v61 = vadd.f32 %v5186_v34, %v1919_v52 }
 0x1cb   : > { %2902 = vst.msk [vmem:[%s4953_s7 + $0x50] sm:$0xff] %vm269_vm1, %v2870_v13  ;;  %v2868_v54 = vadd.f32 %v4945_v0, %v2829_v63  ;;  %v2832_v22 = vadd.f32 %v3919_v56, %v2525_v59  ;;  %v2523_v53 = vadd.f32 %v2422_v48, %v2216_v14  ;;  %v5187_v13 = vld [vmem:[#allocation5_spill] sm:$0xff]  ;;  %v5188_v63 = vld [vmem:[#allocation23_spill] sm:$0xff] }
 0x1cc   : > { %v3886_v5 = vpop.f32.mrf.mxu1  ;;  %v3922_v45 = vpop.f32.mrf.mxu0  ;;  %v1920_v59 = vadd.f32 %v5188_v63, %v5187_v13 }
 0x1cd   : > { %2900 = vst.msk [vmem:[%s4953_s7 + $0x40] sm:$0xff] %vm269_vm1, %v2868_v54  ;;  %v2871_v42 = vadd.f32 %v4945_v0, %v2832_v22  ;;  %v2830_v24 = vadd.f32 %v2729_v35, %v2523_v53  ;;  %v2528_v57 = vadd.f32 %v3886_v5, %v2221_v49  ;;  %v5189_v35 = vld [vmem:[#allocation20_spill] sm:$0xff] }
 0x1ce   : > { %v2435_v4 = vpop.f32.mrf.mxu1  ;;  %v2742_v9 = vpop.f32.mrf.mxu0  ;;  %v2224_v26 = vadd.f32 %v5189_v35, %v1917_v11 }
 0x1cf   : > { %2903 = vst.msk [vmem:[%s4953_s7 + $0x58] sm:$0xff] %vm269_vm1, %v2871_v42  ;;  %v2869_v1 = vadd.f32 %v4945_v0, %v2830_v24  ;;  %v2835_v33 = vadd.f32 %v3922_v45, %v2528_v57  ;;  %v2526_v44 = vadd.f32 %v2435_v4, %v2219_v38  ;;  %v5190_v38 = vld [vmem:[#allocation22_spill] sm:$0xff]  ;;  %v5192_v24 = vld [vmem:[#allocation25_spill] sm:$0xff] }
 0x1d0   : > { %v3887_v10 = vpop.f32.mrf.mxu1  ;;  %v3923_v58 = vpop.f32.mrf.mxu0  ;;  %v2229_v5 = vadd.f32 %v5190_v38, %v1922_v19  ;;  %v5191_v42 = vld [vmem:[#allocation6_spill] sm:$0xff] }
 0x1d1   : > { %2901 = vst.msk [vmem:[%s4953_s7 + $0x48] sm:$0xff] %vm269_vm1, %v2869_v1  ;;  %v2874_v39 = vadd.f32 %v4945_v0, %v2835_v33  ;;  %v2833_v7 = vadd.f32 %v2742_v9, %v2526_v44  ;;  %v2529_v29 = vadd.f32 %v3887_v10, %v2222_v37  ;;  %v1923_v57 = vadd.f32 %v5192_v24, %v5191_v42  ;;  %v5193_v37 = vld [vmem:[#allocation24_spill] sm:$0xff]  ;;  %v5202_v19 = vld [vmem:[#allocation10_spill] sm:$0xff] }
 0x1d2   : > { %v2438_v46 = vpop.f32.mrf.mxu1  ;;  %v2745_v47 = vpop.f32.mrf.mxu0  ;;  %v2227_v1 = vadd.f32 %v5193_v37, %v1920_v59  ;;  %v1921_v10 = vadd.f32 %v4892_v50, %v5194_v18  ;;  %v5205_v59 = vld [vmem:[#allocation11_spill] sm:$0xff] }
 0x1d3   : > { %2906 = vst.msk [vmem:[%s4953_s7 + $0x70] sm:$0xff] %vm269_vm1, %v2874_v39  ;;  %v2872_v16 = vadd.f32 %v4945_v0, %v2833_v7  ;;  %v2836_v60 = vadd.f32 %v3923_v58, %v2529_v29  ;;  %v2527_v2 = vadd.f32 %v2438_v46, %v2220_v40  ;;  %v5195_v7 = vld [vmem:[#allocation8_spill] sm:$0xff]  ;;  %v2230_v31 = vadd.f32 %v5197_v17, %v1923_v57 }
 0x1d4   : > { %v3890_v20 = vpop.f32.mrf.mxu1  ;;  %v3926_v41 = vpop.f32.mrf.mxu0  ;;  %v5196_v29 = vld [vmem:[#allocation28_spill] sm:$0xff] }
 0x1d5   : > { %2904 = vst.msk [vmem:[%s4953_s7 + $0x60] sm:$0xff] %vm269_vm1, %v2872_v16  ;;  %v2875_v30 = vadd.f32 %v4945_v0, %v2836_v60  ;;  %v2834_v36 = vadd.f32 %v2745_v47, %v2527_v2  ;;  %v2532_v23 = vadd.f32 %v3890_v20, %v2225_v27  ;;  %v1926_v27 = vadd.f32 %v5196_v29, %v5195_v7  ;;  %v5198_v60 = vld [vmem:[#allocation9_spill] sm:$0xff]  ;;  %v5199_v2 = vld [vmem:[#allocation30_spill] sm:$0xff] }
 0x1d6   : > { %v2451_v21 = vpop.f32.mrf.mxu1  ;;  %v2758_v15 = vpop.f32.mrf.mxu0  ;;  %v1924_v28 = vadd.f32 %v5199_v2, %v5198_v60 }
 0x1d7   : > { %2907 = vst.msk [vmem:[%s4953_s7 + $0x78] sm:$0xff] %vm269_vm1, %v2875_v30  ;;  %v2873_v55 = vadd.f32 %v4945_v0, %v2834_v36  ;;  %v2839_v56 = vadd.f32 %v3926_v41, %v2532_v23  ;;  %v2530_v14 = vadd.f32 %v2451_v21, %v2223_v3  ;;  %v5200_v41 = vld [vmem:[#allocation27_spill] sm:$0xff]  ;;  %v5201_v36 = vld [vmem:[#allocation29_spill] sm:$0xff]  ;;  %v5203_v21 = vld [vmem:[#allocation32_spill] sm:$0xff] }
 0x1d8   : > { %v3891_v49 = vpop.f32.mrf.mxu1  ;;  %v3927_v48 = vpop.f32.mrf.mxu0  ;;  %v2228_v43 = vadd.f32 %v5200_v41, %v1921_v10  ;;  %v2233_v23 = vadd.f32 %v5201_v36, %v1926_v27 }
 0x1d9   : > { %2905 = vst.msk [vmem:[%s4953_s7 + $0x68] sm:$0xff] %vm269_vm1, %v2873_v55  ;;  %v2878_v54 = vadd.f32 %v4945_v0, %v2839_v56  ;;  %v2837_v22 = vadd.f32 %v2758_v15, %v2530_v14  ;;  %v2533_v53 = vadd.f32 %v3891_v49, %v2226_v61  ;;  %v1927_v15 = vadd.f32 %v5203_v21, %v5202_v19  ;;  %v5204_v56 = vld [vmem:[#allocation31_spill] sm:$0xff]  ;;  %v5206_v49 = vld [vmem:[#allocation34_spill] sm:$0xff]  ;;  %v5218_v19 = vld [vmem:[#allocation41_spill] sm:$0xff] }
 0x1da   : > { %v2454_v45 = vpop.f32.mrf.mxu1  ;;  %v2761_v25 = vpop.f32.mrf.mxu0  ;;  %v2231_v14 = vadd.f32 %v5204_v56, %v1924_v28  ;;  %v5216_v28 = vld [vmem:[#allocation15_spill] sm:$0xff] }
 0x1db   : > { %2910 = vst.msk [vmem:[%s4953_s7 + $0x90] sm:$0xff] %vm269_vm1, %v2878_v54  ;;  %v2876_v32 = vadd.f32 %v4945_v0, %v2837_v22  ;;  %v2840_v4 = vadd.f32 %v3927_v48, %v2533_v53  ;;  %v2531_v9 = vadd.f32 %v2454_v45, %v2224_v26  ;;  %v1925_v48 = vadd.f32 %v5206_v49, %v5205_v59  ;;  %v5207_v22 = vld [vmem:[#allocation12_spill] sm:$0xff] }
 0x1dc   : > { %v3894_v33 = vpop.f32.mrf.mxu1  ;;  %v3930_v44 = vpop.f32.mrf.mxu0  ;;  %v5208_v53 = vld [vmem:[#allocation36_spill] sm:$0xff] }
 0x1dd   : > { %2908 = vst.msk [vmem:[%s4953_s7 + $0x80] sm:$0xff] %vm269_vm1, %v2876_v32  ;;  %v2879_v58 = vadd.f32 %v4945_v0, %v2840_v4  ;;  %v2838_v40 = vadd.f32 %v2761_v25, %v2531_v9  ;;  %v2536_v39 = vadd.f32 %v3894_v33, %v2229_v5  ;;  %v1930_v38 = vadd.f32 %v5208_v53, %v5207_v22  ;;  %v5209_v25 = vld [vmem:[#allocation33_spill] sm:$0xff]  ;;  %v5211_v9 = vld [vmem:[#allocation38_spill] sm:$0xff] }
 0x1de   : > { %v2467_v46 = vpop.f32.mrf.mxu1  ;;  %v2774_v47 = vpop.f32.mrf.mxu0  ;;  %v2234_v42 = vadd.f32 %v5209_v25, %v1927_v15  ;;  %v5210_v4 = vld [vmem:[#allocation13_spill] sm:$0xff] }
 0x1df   : > { %2911 = vst.msk [vmem:[%s4953_s7 + $0x98] sm:$0xff] %vm269_vm1, %v2879_v58  ;;  %v2877_v52 = vadd.f32 %v4945_v0, %v2838_v40  ;;  %v2843_v50 = vadd.f32 %v3930_v44, %v2536_v39  ;;  %v2534_v16 = vadd.f32 %v2467_v46, %v2227_v1  ;;  %v1928_v37 = vadd.f32 %v5211_v9, %v5210_v4  ;;  %v5212_v44 = vld [vmem:[#allocation35_spill] sm:$0xff]  ;;  %v5213_v39 = vld [vmem:[#allocation37_spill] sm:$0xff]  ;;  %v5214_v46 = vld [vmem:[#allocation14_spill] sm:$0xff] }
 0x1e0   : > { %v3895_v3 = vpop.f32.mrf.mxu1  ;;  %v3931_v20 = vpop.f32.mrf.mxu0  ;;  %v2232_v18 = vadd.f32 %v5212_v44, %v1925_v48  ;;  %v2237_v7 = vadd.f32 %v5213_v39, %v1930_v38 }
 0x1e1   : > { %2909 = vst.msk [vmem:[%s4953_s7 + $0x88] sm:$0xff] %vm269_vm1, %v2877_v52  ;;  %v2882_v12 = vadd.f32 %v4945_v0, %v2843_v50  ;;  %v2841_v11 = vadd.f32 %v2774_v47, %v2534_v16  ;;  %v2537_v30 = vadd.f32 %v3895_v3, %v2230_v31  ;;  %v1931_v47 = vadd.f32 %v4924_v8, %v5214_v46  ;;  %v5215_v50 = vld [vmem:[#allocation39_spill] sm:$0xff] }
 0x1e2   : > { %v2470_v6 = vpop.f32.mrf.mxu1  ;;  %v2777_v51 = vpop.f32.mrf.mxu0  ;;  %v2235_v16 = vadd.f32 %v5215_v50, %v1928_v37  ;;  %v1929_v3 = vadd.f32 %v4930_v62, %v5216_v28 }
 0x1e3   : > { %2914 = vst.msk [vmem:[%s4953_s7 + $0xb0] sm:$0xff] %vm269_vm1, %v2882_v12  ;;  %v2880_v34 = vadd.f32 %v4945_v0, %v2841_v11  ;;  %v2844_v61 = vadd.f32 %v3931_v20, %v2537_v30  ;;  %v2535_v55 = vadd.f32 %v2470_v6, %v2228_v43  ;;  %v5217_v11 = vld [vmem:[#allocation40_spill] sm:$0xff] }
 0x1e4   : > { %v3898_v13 = vpop.f32.mrf.mxu1  ;;  %v3934_v63 = vpop.f32.mrf.mxu0  ;;  %v2238_v30 = vadd.f32 %v5217_v11, %v1931_v47  ;;  %v2236_v21 = vadd.f32 %v5218_v19, %v1929_v3 }
 0x1e5   : > { %2912 = vst.msk [vmem:[%s4953_s7 + $0xa0] sm:$0xff] %vm269_vm1, %v2880_v34  ;;  %v2883_v35 = vadd.f32 %v4945_v0, %v2844_v61  ;;  %v2842_v26 = vadd.f32 %v2777_v51, %v2535_v55  ;;  %v2540_v54 = vadd.f32 %v3898_v13, %v2233_v23 }
 0x1e6   : > { %v2483_v5 = vpop.f32.mrf.mxu1  ;;  %v2790_v45 = vpop.f32.mrf.mxu0 }
 0x1e7   : > { %2915 = vst.msk [vmem:[%s4953_s7 + $0xb8] sm:$0xff] %vm269_vm1, %v2883_v35  ;;  %v2881_v24 = vadd.f32 %v4945_v0, %v2842_v26  ;;  %v2847_v57 = vadd.f32 %v3934_v63, %v2540_v54  ;;  %v2538_v32 = vadd.f32 %v2483_v5, %v2231_v14 }
 0x1e8   : > { %v3899_v1 = vpop.f32.mrf.mxu1  ;;  %v3935_v33 = vpop.f32.mrf.mxu0 }
 0x1e9   : > { %2913 = vst.msk [vmem:[%s4953_s7 + $0xa8] sm:$0xff] %vm269_vm1, %v2881_v24  ;;  %v2886_v10 = vadd.f32 %v4945_v0, %v2847_v57  ;;  %v2845_v58 = vadd.f32 %v2790_v45, %v2538_v32  ;;  %v2541_v40 = vadd.f32 %v3899_v1, %v2234_v42 }
 0x1ea   : > { %v2486_v29 = vpop.f32.mrf.mxu1  ;;  %v2793_v27 = vpop.f32.mrf.mxu0 }
 0x1eb   : > { %2918 = vst.msk [vmem:[%s4953_s7 + $0xd0] sm:$0xff] %vm269_vm1, %v2886_v10  ;;  %v2884_v17 = vadd.f32 %v4945_v0, %v2845_v58  ;;  %v2848_v31 = vadd.f32 %v3935_v33, %v2541_v40  ;;  %v2539_v52 = vadd.f32 %v2486_v29, %v2232_v18 }
 0x1ec   : > { %v3902_v60 = vpop.f32.mrf.mxu1  ;;  %v3938_v2 = vpop.f32.mrf.mxu0 }
 0x1ed   : > { %2916 = vst.msk [vmem:[%s4953_s7 + $0xc0] sm:$0xff] %vm269_vm1, %v2884_v17  ;;  %v2887_v20 = vadd.f32 %v4945_v0, %v2848_v31  ;;  %v2846_v8 = vadd.f32 %v2793_v27, %v2539_v52  ;;  %v2544_v41 = vadd.f32 %v3902_v60, %v2237_v7 }
 0x1ee   : > { %v2499_v43 = vpop.f32.mrf.mxu1  ;;  %v2806_v12 = vpop.f32.mrf.mxu0 }
 0x1ef   : > { %2919 = vst.msk [vmem:[%s4953_s7 + $0xd8] sm:$0xff] %vm269_vm1, %v2887_v20  ;;  %v2885_v36 = vadd.f32 %v4945_v0, %v2846_v8  ;;  %v2851_v23 = vadd.f32 %v3938_v2, %v2544_v41  ;;  %v2542_v6 = vadd.f32 %v2499_v43, %v2235_v16 }
 0x1f0   : > { %v3903_v51 = vpop.f32.mrf.mxu1  ;;  %v3939_v62 = vpop.f32.mrf.mxu0 }
 0x1f1   : > { %2917 = vst.msk [vmem:[%s4953_s7 + $0xc8] sm:$0xff] %vm269_vm1, %v2885_v36  ;;  %v2890_v15 = vadd.f32 %v4945_v0, %v2851_v23  ;;  %v2849_v34 = vadd.f32 %v2806_v12, %v2542_v6  ;;  %v2545_v61 = vadd.f32 %v3903_v51, %v2238_v30 }
 0x1f2   : > { %v2502_v55 = vpop.f32.mrf.mxu1  ;;  %v2809_v63 = vpop.f32.mrf.mxu0 }
 0x1f3   : > { %2922 = vst.msk [vmem:[%s4953_s7 + $0xf0] sm:$0xff] %vm269_vm1, %v2890_v15  ;;  %v2888_v56 = vadd.f32 %v4945_v0, %v2849_v34  ;;  %v2852_v14 = vadd.f32 %v3939_v62, %v2545_v61  ;;  %v2543_v13 = vadd.f32 %v2502_v55, %v2236_v21 }
 0x1f5   : > { %2920 = vst.msk [vmem:[%s4953_s7 + $0xe0] sm:$0xff] %vm269_vm1, %v2888_v56  ;;  %v2891_v59 = vadd.f32 %v4945_v0, %v2852_v14  ;;  %v2850_v49 = vadd.f32 %v2809_v63, %v2543_v13 }
 0x1f7   : > { %2923 = vst.msk [vmem:[%s4953_s7 + $0xf8] sm:$0xff] %vm269_vm1, %v2891_v59  ;;  %v2889_v48 = vadd.f32 %v4945_v0, %v2850_v49 }
 0x1f9   : > { %2921 = vst.msk [vmem:[%s4953_s7 + $0xe8] sm:$0xff] %vm269_vm1, %v2889_v48 }
 0x1fa PF: > { %s13_s12 = sadd.s32 1, %s3986_s12  }
 0x1fb   : > { %p10_p4 = scmp.ge.s32.totalorder %s13_s12, 5  }
 0x1fd   :  { %12 = sbr.rel (!%p10_p4) target bundleno = 1 (0x1), region = 76 }

// kernel: inception_a_forward.9
= control target key start
LH: loop header
LB: loop body
LE: loop exit
PB: predicated region body
PF: predicated region fallthrough
CT: control target
= control target key end

     0   :  { %s10392_s12 = smov 0   ;;  %s13115_s0 = inlined_call_operand.vmem [shape: f32[1112,16], index: 0, kind: input, shape index: {}]   ;;  %s13116_s1 = inlined_call_operand.vmem [shape: bf16[25,16,24], index: 1, kind: input, shape index: {}]   ;;  %s13117_s2 = inlined_call_operand.vmem [shape: f32[1,24], index: 2, kind: input, shape index: {}]   ;;  %s13118_s3 = inlined_call_operand.vmem [shape: f32[1024,24], index: 3, kind: output, shape index: {}]  }
   0x1 LB: > { %s7779_s13 = sadd.s32 4294967295, %s10370_s12   ;;  %p7782_p0 = scmp.ge.s32.totalorder %s10370_s12, 1  ;;  %s10370_s12 = sphi %s10392_s12, %s13_s12  }
   0x2   : > { %p127_p1 = scmp.lt.s32.totalorder %s10370_s12, 5 }
   0x4   : > { %p128_p2 = pnand %p7782_p0, %p127_p1 }
   0x6   : > { %131 = sbr.rel (%p128_p2) target bundleno = 1016 (0x3f8), region = 32 }
   0xb   : > { %v10339_v0 = vld [vmem:[%s13116_s1 + $0x8] sm:$0xff]   ;;  %s7785_s16 = sshll.u32 %s7779_s13, 8  ;;  %v10340_v1 = vld [vmem:[%s13116_s1] sm:$0xff]   ;;  %vm264_vm0 = vcmask 130048   ;;  %v10341_v14 = vld [vmem:[%s13116_s1 + $0x10] sm:$0xff]   ;;  %vm7628_vm1 = vcmask 195584  }
   0xc   : > { %s10408_s19 = scalar_lea.vmem %s13115_s0, %s7785_s16  ;;  %9479 = vmatprep.subr.bf16.mxu0 %v10339_v0  ;;  %10329 = vmatprep.subr.bf16.mxu1 %v10339_v0  ;;  %v10342_v41 = vld [vmem:[%s13116_s1 + $0x18] sm:$0xff]   ;;  %v10343_v43 = vld [vmem:[%s13116_s1 + $0x20] sm:$0xff]  }
   0xd   : > { %v7787_v2 = vld [vmem:[%s10408_s19 + $0x1] sm:$0xff]  ;;  %v7788_v3 = vld [vmem:[%s10408_s19 + $0x9] sm:$0xff]  ;;  %9480 = vmatpush3.bf16.msra.mxu0 %v10339_v0  ;;  %10330 = vmatpush3.bf16.msra.mxu1 %v10339_v0  ;;  %v7789_v7 = vld [vmem:[%s10408_s19 + $0x11] sm:$0xff] }
   0xe   : > { %v7803_v4 = vld [vmem:[%s10408_s19 + $0x81] sm:$0xff]  ;;  %v239_v5 = vpack.c.bf16 %v7788_v3, %v7787_v2  ;;  %v7804_v6 = vld [vmem:[%s10408_s19 + $0x89] sm:$0xff]  ;;  %v7790_v8 = vld [vmem:[%s10408_s19 + $0x19] sm:$0xff]  ;;  %9513 = vmatprep.subr.bf16.mxu1 %v10340_v1  ;;  %9547 = vmatprep.subr.bf16.mxu0 %v10341_v14 }
   0xf   : > { %v247_v9 = vpack.c.bf16 %v7804_v6, %v7803_v4  ;;  %v240_v10 = vpack.c.bf16 %v7790_v8, %v7789_v7  ;;  %v7805_v11 = vld [vmem:[%s10408_s19 + $0x91] sm:$0xff]  ;;  %v7806_v12 = vld [vmem:[%s10408_s19 + $0x99] sm:$0xff]  ;;  %v7791_v15 = vld [vmem:[%s10408_s19 + $0x21] sm:$0xff] }
  0x10   : > { %9481 = vmatprep.mubr.msk.bf16.mxu0 %vm264_vm0, %v239_v5  ;;  %v248_v13 = vpack.c.bf16 %v7806_v12, %v7805_v11  ;;  %v7792_v16 = vld [vmem:[%s10408_s19 + $0x29] sm:$0xff]  ;;  %v7807_v17 = vld [vmem:[%s10408_s19 + $0xa1] sm:$0xff]  ;;  %v7793_v21 = vld [vmem:[%s10408_s19 + $0x31] sm:$0xff] }
  0x11   : > { %9497 = vmatprep.mubr.msk.bf16.mxu1 %vm264_vm0, %v247_v9  ;;  %9482 = vmatmul.mubr.msk.bf16.vlgmr.msra.gmra.mxu0 %vm264_vm0, %v240_v10  ;;  %v7808_v18 = vld [vmem:[%s10408_s19 + $0xa9] sm:$0xff]  ;;  %v241_v19 = vpack.c.bf16 %v7792_v16, %v7791_v15  ;;  %v7794_v22 = vld [vmem:[%s10408_s19 + $0x39] sm:$0xff]  ;;  %v7809_v23 = vld [vmem:[%s10408_s19 + $0xb1] sm:$0xff] }
  0x12   : > { %9498 = vmatmul.mubr.msk.bf16.vlgmr.msra.gmra.mxu1 %vm264_vm0, %v248_v13  ;;  %v249_v20 = vpack.c.bf16 %v7808_v18, %v7807_v17  ;;  %9548 = vmatpush3.bf16.msra.mxu0 %v10341_v14  ;;  %v7810_v24 = vld [vmem:[%s10408_s19 + $0xb9] sm:$0xff]  ;;  %v7795_v25 = vld [vmem:[%s10408_s19 + $0x41] sm:$0xff]  ;;  %v7796_v26 = vld [vmem:[%s10408_s19 + $0x49] sm:$0xff]  ;;  %v242_v29 = vpack.c.bf16 %v7794_v22, %v7793_v21 }
  0x13   : > { %9514 = vmatpush3.bf16.msra.mxu1 %v10340_v1  ;;  %9485 = vmatprep.mubr.msk.bf16.mxu0 %vm264_vm0, %v241_v19  ;;  %v7811_v27 = vld [vmem:[%s10408_s19 + $0xc1] sm:$0xff]  ;;  %v7812_v28 = vld [vmem:[%s10408_s19 + $0xc9] sm:$0xff]  ;;  %v250_v30 = vpack.c.bf16 %v7810_v24, %v7809_v23  ;;  %v243_v31 = vpack.c.bf16 %v7796_v26, %v7795_v25  ;;  %v7797_v33 = vld [vmem:[%s10408_s19 + $0x51] sm:$0xff] }
  0x14   : > { %9501 = vmatprep.mubr.msk.bf16.mxu1 %vm264_vm0, %v249_v20  ;;  %v251_v32 = vpack.c.bf16 %v7812_v28, %v7811_v27  ;;  %v7798_v34 = vld [vmem:[%s10408_s19 + $0x59] sm:$0xff]  ;;  %v7813_v35 = vld [vmem:[%s10408_s19 + $0xd1] sm:$0xff]  ;;  %v7799_v37 = vld [vmem:[%s10408_s19 + $0x61] sm:$0xff]  ;;  %9581 = vmatprep.subr.bf16.mxu1 %v10342_v41 }
  0x15   : > { %v7814_v36 = vld [vmem:[%s10408_s19 + $0xd9] sm:$0xff]  ;;  %v7800_v38 = vld [vmem:[%s10408_s19 + $0x69] sm:$0xff]  ;;  %v7815_v39 = vld [vmem:[%s10408_s19 + $0xe1] sm:$0xff]  ;;  %v244_v42 = vpack.c.bf16 %v7798_v34, %v7797_v33  ;;  %9615 = vmatprep.subr.bf16.mxu0 %v10343_v43 }
  0x16   : > { %v7816_v40 = vld [vmem:[%s10408_s19 + $0xe9] sm:$0xff]  ;;  %v252_v44 = vpack.c.bf16 %v7814_v36, %v7813_v35  ;;  %v245_v45 = vpack.c.bf16 %v7800_v38, %v7799_v37  ;;  %v7801_v47 = vld [vmem:[%s10408_s19 + $0x71] sm:$0xff]  ;;  %v7802_v48 = vld [vmem:[%s10408_s19 + $0x79] sm:$0xff] }
  0x17   : > { %v253_v46 = vpack.c.bf16 %v7816_v40, %v7815_v39  ;;  %v7817_v49 = vld [vmem:[%s10408_s19 + $0xf1] sm:$0xff]  ;;  %v7818_v50 = vld [vmem:[%s10408_s19 + $0xf9] sm:$0xff]  ;;  %v7856_v51 = vld [vmem:[%s10408_s19 + $0x2] sm:$0xff]  ;;  %v246_v55 = vpack.c.bf16 %v7802_v48, %v7801_v47 }
  0x18   : > { %v7857_v52 = vld [vmem:[%s10408_s19 + $0xa] sm:$0xff]  ;;  %v155_v53 = vld [vmem:[%s10408_s19] sm:$0xff]  ;;  %v254_v56 = vpack.c.bf16 %v7818_v50, %v7817_v49  ;;  %v7858_v59 = vld [vmem:[%s10408_s19 + $0x12] sm:$0xff] }
  0x19   : > { %9486 = vmatmul.mubr.msk.bf16.gmra.mxu0 %vm264_vm0, %v242_v29  ;;  %v156_v54 = vld [vmem:[%s10408_s19 + $0x8] sm:$0xff]  ;;  %v723_v57 = vpack.c.bf16 %v7857_v52, %v7856_v51  ;;  %v7859_v60 = vld [vmem:[%s10408_s19 + $0x1a] sm:$0xff]  ;;  %v157_v61 = vld [vmem:[%s10408_s19 + $0x10] sm:$0xff] }
  0x1a   : > { %9502 = vmatmul.mubr.msk.bf16.gmra.mxu1 %vm264_vm0, %v250_v30  ;;  %9489 = vmatprep.mubr.msk.bf16.mxu0 %vm264_vm0, %v243_v31  ;;  %v187_v58 = vpack.c.bf16 %v156_v54, %v155_v53  ;;  %v158_v62 = vld [vmem:[%s10408_s19 + $0x18] sm:$0xff]  ;;  %v159_v63 = vld [vmem:[%s10408_s19 + $0x20] sm:$0xff]  ;;  %v160_v0 = vld [vmem:[%s10408_s19 + $0x28] sm:$0xff]  ;;  %v724_v1 = vpack.c.bf16 %v7859_v60, %v7858_v59 }
  0x1b   : > { %9505 = vmatprep.mubr.msk.bf16.mxu1 %vm264_vm0, %v251_v32  ;;  %v7860_v2 = vld [vmem:[%s10408_s19 + $0x22] sm:$0xff]  ;;  %v7861_v3 = vld [vmem:[%s10408_s19 + $0x2a] sm:$0xff]  ;;  %v188_v4 = vpack.c.bf16 %v158_v62, %v157_v61  ;;  %v189_v5 = vpack.c.bf16 %v160_v0, %v159_v63  ;;  %v162_v8 = vld [vmem:[%s10408_s19 + $0x38] sm:$0xff] }
  0x1c   : > { %v725_v6 = vpack.c.bf16 %v7861_v3, %v7860_v2  ;;  %v161_v7 = vld [vmem:[%s10408_s19 + $0x30] sm:$0xff]  ;;  %v7863_v10 = vld [vmem:[%s10408_s19 + $0x3a] sm:$0xff]  ;;  %v7864_v12 = vld [vmem:[%s10408_s19 + $0x42] sm:$0xff] }
  0x1d   : > { %v7862_v9 = vld [vmem:[%s10408_s19 + $0x32] sm:$0xff]  ;;  %v163_v11 = vld [vmem:[%s10408_s19 + $0x40] sm:$0xff]  ;;  %v7865_v13 = vld [vmem:[%s10408_s19 + $0x4a] sm:$0xff]  ;;  %v190_v18 = vpack.c.bf16 %v162_v8, %v161_v7 }
  0x1e   : > { %v10497_v14 = vld [vmem:[%s13116_s1 + $0x28] sm:$0xff]   ;;  %v10504_v16 = vld [vmem:[%s13116_s1 + $0x30] sm:$0xff]   ;;  %v726_v17 = vpack.c.bf16 %v7863_v10, %v7862_v9  ;;  %v727_v19 = vpack.c.bf16 %v7865_v13, %v7864_v12  ;;  %v7867_v23 = vld [vmem:[%s10408_s19 + $0x5a] sm:$0xff] }
  0x1f   : > { %v164_v15 = vld [vmem:[%s10408_s19 + $0x48] sm:$0xff]  ;;  %v165_v21 = vld [vmem:[%s10408_s19 + $0x50] sm:$0xff]  ;;  %v166_v24 = vld [vmem:[%s10408_s19 + $0x58] sm:$0xff] }
  0x20   : > { %v191_v20 = vpack.c.bf16 %v164_v15, %v163_v11  ;;  %v7866_v22 = vld [vmem:[%s10408_s19 + $0x52] sm:$0xff]  ;;  %v7868_v25 = vld [vmem:[%s10408_s19 + $0x62] sm:$0xff]  ;;  %v7869_v26 = vld [vmem:[%s10408_s19 + $0x6a] sm:$0xff]  ;;  %v192_v30 = vpack.c.bf16 %v166_v24, %v165_v21 }
  0x21   : > { %9490 = vmatmul.mubr.msk.bf16.gmra.mxu0 %vm264_vm0, %v244_v42  ;;  %v167_v27 = vld [vmem:[%s10408_s19 + $0x60] sm:$0xff]  ;;  %v168_v28 = vld [vmem:[%s10408_s19 + $0x68] sm:$0xff]  ;;  %v728_v29 = vpack.c.bf16 %v7867_v23, %v7866_v22  ;;  %v729_v31 = vpack.c.bf16 %v7869_v26, %v7868_v25  ;;  %v169_v33 = vld [vmem:[%s10408_s19 + $0x70] sm:$0xff] }
  0x22   : > { %9506 = vmatmul.mubr.msk.bf16.gmra.mxu1 %vm264_vm0, %v252_v44  ;;  %9493 = vmatprep.mubr.msk.bf16.mxu0 %vm264_vm0, %v245_v45  ;;  %v193_v32 = vpack.c.bf16 %v168_v28, %v167_v27  ;;  %v7870_v34 = vld [vmem:[%s10408_s19 + $0x72] sm:$0xff]  ;;  %v7871_v35 = vld [vmem:[%s10408_s19 + $0x7a] sm:$0xff]  ;;  %v7872_v37 = vld [vmem:[%s10408_s19 + $0x82] sm:$0xff] }
  0x23   : > { %9509 = vmatprep.mubr.msk.bf16.mxu1 %vm264_vm0, %v253_v46  ;;  %v170_v36 = vld [vmem:[%s10408_s19 + $0x78] sm:$0xff]  ;;  %v7873_v38 = vld [vmem:[%s10408_s19 + $0x8a] sm:$0xff]  ;;  %v171_v39 = vld [vmem:[%s10408_s19 + $0x80] sm:$0xff] }
  0x24   : > { %v172_v40 = vld [vmem:[%s10408_s19 + $0x88] sm:$0xff]  ;;  %v194_v42 = vpack.c.bf16 %v170_v36, %v169_v33  ;;  %v173_v45 = vld [vmem:[%s10408_s19 + $0x90] sm:$0xff]  ;;  %v7875_v47 = vld [vmem:[%s10408_s19 + $0x9a] sm:$0xff] }
  0x25   : > { %v195_v44 = vpack.c.bf16 %v172_v40, %v171_v39  ;;  %v7874_v46 = vld [vmem:[%s10408_s19 + $0x92] sm:$0xff]  ;;  %v7876_v49 = vld [vmem:[%s10408_s19 + $0xa2] sm:$0xff]  ;;  %v7877_v50 = vld [vmem:[%s10408_s19 + $0xaa] sm:$0xff] }
  0x26   : > { %v174_v48 = vld [vmem:[%s10408_s19 + $0x98] sm:$0xff]  ;;  %v175_v51 = vld [vmem:[%s10408_s19 + $0xa0] sm:$0xff]  ;;  %v176_v52 = vld [vmem:[%s10408_s19 + $0xa8] sm:$0xff]  ;;  %v732_v53 = vpack.c.bf16 %v7875_v47, %v7874_v46 }
  0x27   : > { %v196_v54 = vpack.c.bf16 %v174_v48, %v173_v45  ;;  %v177_v59 = vld [vmem:[%s10408_s19 + $0xb0] sm:$0xff]  ;;  %v178_v60 = vld [vmem:[%s10408_s19 + $0xb8] sm:$0xff]  ;;  %v7880_v61 = vld [vmem:[%s10408_s19 + $0xc2] sm:$0xff] }
  0x28   : > { %v7881_v62 = vld [vmem:[%s10408_s19 + $0xca] sm:$0xff]  ;;  %v179_v63 = vld [vmem:[%s10408_s19 + $0xc0] sm:$0xff]  ;;  %v198_v2 = vpack.c.bf16 %v178_v60, %v177_v59  ;;  %v182_v8 = vld [vmem:[%s10408_s19 + $0xd8] sm:$0xff] }
  0x29   : > { %9494 = vmatmul.mubr.msk.bf16.gmra.mxu0 %vm264_vm0, %v246_v55  ;;  %v733_v55 = vpack.c.bf16 %v7877_v50, %v7876_v49  ;;  %v180_v0 = vld [vmem:[%s10408_s19 + $0xc8] sm:$0xff]  ;;  %v735_v3 = vpack.c.bf16 %v7881_v62, %v7880_v61  ;;  %v181_v7 = vld [vmem:[%s10408_s19 + $0xd0] sm:$0xff]  ;;  %v183_v11 = vld [vmem:[%s10408_s19 + $0xe0] sm:$0xff] }
  0x2a   : > { %9510 = vmatmul.mubr.msk.bf16.gmra.mxu1 %vm264_vm0, %v254_v56  ;;  %9549 = vmatprep.mubr.msk.bf16.mxu0 %vm264_vm0, %v723_v57  ;;  %v197_v56 = vpack.c.bf16 %v176_v52, %v175_v51  ;;  %v7878_v57 = vld [vmem:[%s10408_s19 + $0xb2] sm:$0xff]  ;;  %v7884_v9 = vld [vmem:[%s10408_s19 + $0xe2] sm:$0xff]  ;;  %v7885_v10 = vld [vmem:[%s10408_s19 + $0xea] sm:$0xff]  ;;  %v200_v15 = vpack.c.bf16 %v182_v8, %v181_v7 }
  0x2b   : > { %9515 = vmatprep.mubr.msk.bf16.mxu1 %vm264_vm0, %v187_v58  ;;  %v7879_v58 = vld [vmem:[%s10408_s19 + $0xba] sm:$0xff]  ;;  %v184_v12 = vld [vmem:[%s10408_s19 + $0xe8] sm:$0xff] }
  0x2c   : > { %v7887_v21 = vld [vmem:[%s10408_s19 + $0xfa] sm:$0xff]  ;;  %v7960_v23 = vld [vmem:[%s10408_s19 + $0x4] sm:$0xff]  ;;  %v7961_v24 = vld [vmem:[%s10408_s19 + $0xc] sm:$0xff] }
  0x2d   : > { %v186_v22 = vld [vmem:[%s10408_s19 + $0xf8] sm:$0xff]  ;;  %v7908_v25 = vld [vmem:[%s10408_s19 + $0x3] sm:$0xff]  ;;  %v7909_v26 = vld [vmem:[%s10408_s19 + $0xb] sm:$0xff] }
  0x2e   : > { %v7910_v33 = vld [vmem:[%s10408_s19 + $0x13] sm:$0xff]  ;;  %v7913_v36 = vld [vmem:[%s10408_s19 + $0x2b] sm:$0xff]  ;;  %v7967_v47 = vld [vmem:[%s10408_s19 + $0x3c] sm:$0xff] }
  0x2f   : > { %v7965_v39 = vld [vmem:[%s10408_s19 + $0x2c] sm:$0xff]  ;;  %v7966_v46 = vld [vmem:[%s10408_s19 + $0x34] sm:$0xff]  ;;  %v7968_v49 = vld [vmem:[%s10408_s19 + $0x44] sm:$0xff] }
  0x30   : > { %v7914_v45 = vld [vmem:[%s10408_s19 + $0x33] sm:$0xff]  ;;  %v7915_v48 = vld [vmem:[%s10408_s19 + $0x3b] sm:$0xff]  ;;  %v7916_v51 = vld [vmem:[%s10408_s19 + $0x43] sm:$0xff] }
  0x31   : > { %9550 = vmatmul.mubr.msk.bf16.vlgmr.msra.gmra.mxu0 %vm264_vm0, %v724_v1  ;;  %v734_v1 = vpack.c.bf16 %v7879_v58, %v7878_v57  ;;  %v7969_v50 = vld [vmem:[%s10408_s19 + $0x4c] sm:$0xff]  ;;  %v1026_v52 = vpack.c.bf16 %v7915_v48, %v7914_v45  ;;  %v7971_v57 = vld [vmem:[%s10408_s19 + $0x5c] sm:$0xff]  ;;  %v7972_v59 = vld [vmem:[%s10408_s19 + $0x64] sm:$0xff] }
  0x32   : > { %9516 = vmatmul.mubr.msk.bf16.vlgmr.msra.gmra.mxu1 %vm264_vm0, %v188_v4  ;;  %9616 = vmatpush3.bf16.msra.mxu0 %v10343_v43  ;;  %v731_v43 = vpack.c.bf16 %v7873_v38, %v7872_v37  ;;  %v199_v4 = vpack.c.bf16 %v180_v0, %v179_v63  ;;  %v7964_v38 = vld [vmem:[%s10408_s19 + $0x24] sm:$0xff]  ;;  %v7919_v58 = vld [vmem:[%s10408_s19 + $0x5b] sm:$0xff]  ;;  %v7973_v60 = vld [vmem:[%s10408_s19 + $0x6c] sm:$0xff] }
  0x33   : > { %9582 = vmatpush3.bf16.msra.mxu1 %v10342_v41  ;;  %9519 = vmatprep.mubr.msk.bf16.mxu1 %vm264_vm0, %v189_v5  ;;  %v730_v41 = vpack.c.bf16 %v7871_v35, %v7870_v34  ;;  %v7882_v5 = vld [vmem:[%s10408_s19 + $0xd2] sm:$0xff]  ;;  %v7911_v34 = vld [vmem:[%s10408_s19 + $0x1b] sm:$0xff]  ;;  %v7912_v35 = vld [vmem:[%s10408_s19 + $0x23] sm:$0xff] }
  0x34   : > { %9553 = vmatprep.mubr.msk.bf16.mxu0 %vm264_vm0, %v725_v6  ;;  %9649 = vmatprep.subr.bf16.mxu1 %v10497_v14  ;;  %v7883_v6 = vld [vmem:[%s10408_s19 + $0xda] sm:$0xff]  ;;  %v1024_v40 = vpack.c.bf16 %v7911_v34, %v7910_v33  ;;  %v7920_v61 = vld [vmem:[%s10408_s19 + $0x63] sm:$0xff]  ;;  %v7921_v62 = vld [vmem:[%s10408_s19 + $0x6b] sm:$0xff] }
  0x35   : > { %9683 = vmatprep.subr.bf16.mxu0 %v10504_v16  ;;  %v736_v13 = vpack.c.bf16 %v7883_v6, %v7882_v5  ;;  %v7975_v5 = vld [vmem:[%s10408_s19 + $0x7c] sm:$0xff]  ;;  %v7976_v7 = vld [vmem:[%s10408_s19 + $0x84] sm:$0xff]  ;;  %v7977_v8 = vld [vmem:[%s10408_s19 + $0x8c] sm:$0xff] }
  0x36   : > { %v7923_v6 = vld [vmem:[%s10408_s19 + $0x7b] sm:$0xff]  ;;  %v7984_v33 = vld [vmem:[%s10408_s19 + $0xc4] sm:$0xff]  ;;  %v7985_v34 = vld [vmem:[%s10408_s19 + $0xcc] sm:$0xff] }
  0x37   : > { %v7934_v45 = vld [vmem:[%s10408_s19 + $0xd3] sm:$0xff]  ;;  %v7935_v48 = vld [vmem:[%s10408_s19 + $0xdb] sm:$0xff] }
  0x39   : > { %9554 = vmatmul.mubr.msk.bf16.gmra.mxu0 %vm264_vm0, %v726_v17  ;;  %v737_v17 = vpack.c.bf16 %v7885_v10, %v7884_v9  ;;  %v7924_v9 = vld [vmem:[%s10408_s19 + $0x83] sm:$0xff]  ;;  %v7925_v10 = vld [vmem:[%s10408_s19 + $0x8b] sm:$0xff] }
  0x3a   : > { %9520 = vmatmul.mubr.msk.bf16.gmra.mxu1 %vm264_vm0, %v190_v18  ;;  %9557 = vmatprep.mubr.msk.bf16.mxu0 %vm264_vm0, %v727_v19  ;;  %v201_v18 = vpack.c.bf16 %v184_v12, %v183_v11  ;;  %v185_v19 = vld [vmem:[%s10408_s19 + $0xf0] sm:$0xff] }
  0x3b   : > { %9523 = vmatprep.mubr.msk.bf16.mxu1 %vm264_vm0, %v191_v20  ;;  %v7886_v20 = vld [vmem:[%s10408_s19 + $0xf2] sm:$0xff]  ;;  %v202_v28 = vpack.c.bf16 %v186_v22, %v185_v19  ;;  %v7979_v19 = vld [vmem:[%s10408_s19 + $0x9c] sm:$0xff] }
  0x3c   : > { %v738_v27 = vpack.c.bf16 %v7887_v21, %v7886_v20  ;;  %v7927_v20 = vld [vmem:[%s10408_s19 + $0x9b] sm:$0xff]  ;;  %v7980_v21 = vld [vmem:[%s10408_s19 + $0xa4] sm:$0xff]  ;;  %v7981_v22 = vld [vmem:[%s10408_s19 + $0xac] sm:$0xff] }
  0x41   : > { %9558 = vmatmul.mubr.msk.bf16.gmra.mxu0 %vm264_vm0, %v728_v29  ;;  %v1323_v29 = vpack.c.bf16 %v7961_v24, %v7960_v23  ;;  %v7928_v23 = vld [vmem:[%s10408_s19 + $0xa3] sm:$0xff]  ;;  %v7929_v24 = vld [vmem:[%s10408_s19 + $0xab] sm:$0xff] }
  0x42   : > { %9524 = vmatmul.mubr.msk.bf16.gmra.mxu1 %vm264_vm0, %v192_v30  ;;  %9561 = vmatprep.mubr.msk.bf16.mxu0 %vm264_vm0, %v729_v31  ;;  %v1023_v30 = vpack.c.bf16 %v7909_v26, %v7908_v25  ;;  %v7962_v31 = vld [vmem:[%s10408_s19 + $0x14] sm:$0xff] }
  0x43   : > { %9527 = vmatprep.mubr.msk.bf16.mxu1 %vm264_vm0, %v193_v32  ;;  %v7963_v32 = vld [vmem:[%s10408_s19 + $0x1c] sm:$0xff] }
  0x44   : > { %v10590_v37 = vpack.c.bf16 %v7963_v32, %v7962_v31  ;;  %v7983_v31 = vld [vmem:[%s10408_s19 + $0xbc] sm:$0xff] }
  0x45   : > { %v7931_v32 = vld [vmem:[%s10408_s19 + $0xbb] sm:$0xff] }
  0x49   : > { %9562 = vmatmul.mubr.msk.bf16.gmra.mxu0 %vm264_vm0, %v730_v41  ;;  %v1025_v41 = vpack.c.bf16 %v7913_v36, %v7912_v35  ;;  %v7932_v35 = vld [vmem:[%s10408_s19 + $0xc3] sm:$0xff]  ;;  %v7933_v36 = vld [vmem:[%s10408_s19 + $0xcb] sm:$0xff] }
  0x4a   : > { %9528 = vmatmul.mubr.msk.bf16.gmra.mxu1 %vm264_vm0, %v194_v42  ;;  %9565 = vmatprep.mubr.msk.bf16.mxu0 %vm264_vm0, %v731_v43  ;;  %v10594_v42 = vpack.c.bf16 %v7965_v39, %v7964_v38  ;;  %v10599_v43 = vld [vmem:[%s13116_s1 + $0x38] sm:$0xff]  }
  0x4b   : > { %9531 = vmatprep.mubr.msk.bf16.mxu1 %vm264_vm0, %v195_v44  ;;  %v10606_v44 = vld [vmem:[%s13116_s1 + $0x40] sm:$0xff]  }
  0x51   : > { %9566 = vmatmul.mubr.msk.bf16.gmra.mxu0 %vm264_vm0, %v732_v53  ;;  %v10626_v53 = vpack.c.bf16 %v7969_v50, %v7968_v49  ;;  %v7988_v49 = vld [vmem:[%s10408_s19 + $0xe4] sm:$0xff]  ;;  %v7989_v50 = vld [vmem:[%s10408_s19 + $0xec] sm:$0xff] }
  0x52   : > { %9532 = vmatmul.mubr.msk.bf16.gmra.mxu1 %vm264_vm0, %v196_v54  ;;  %9569 = vmatprep.mubr.msk.bf16.mxu0 %vm264_vm0, %v733_v55  ;;  %v7918_v55 = vld [vmem:[%s10408_s19 + $0x53] sm:$0xff] }
  0x53   : > { %9535 = vmatprep.mubr.msk.bf16.mxu1 %vm264_vm0, %v197_v56  ;;  %v7970_v56 = vld [vmem:[%s10408_s19 + $0x54] sm:$0xff]  ;;  %v1028_v0 = vpack.c.bf16 %v7919_v58, %v7918_v55  ;;  %v10716_v55 = vpack.c.bf16 %v7989_v50, %v7988_v49 }
  0x54   : > { %v10642_v63 = vpack.c.bf16 %v7971_v57, %v7970_v56  ;;  %v7938_v57 = vld [vmem:[%s10408_s19 + $0xf3] sm:$0xff] }
  0x55   : > { %v7990_v58 = vld [vmem:[%s10408_s19 + $0xf4] sm:$0xff] }
  0x59   : > { %9570 = vmatmul.mubr.msk.bf16.gmra.mxu0 %vm264_vm0, %v734_v1  ;;  %v10644_v1 = vpack.c.bf16 %v7973_v60, %v7972_v59  ;;  %v7991_v59 = vld [vmem:[%s10408_s19 + $0xfc] sm:$0xff] }
  0x5a   : > { %9536 = vmatmul.mubr.msk.bf16.gmra.mxu1 %vm264_vm0, %v198_v2  ;;  %9573 = vmatprep.mubr.msk.bf16.mxu0 %vm264_vm0, %v735_v3  ;;  %v1029_v2 = vpack.c.bf16 %v7921_v62, %v7920_v61  ;;  %v7922_v3 = vld [vmem:[%s10408_s19 + $0x73] sm:$0xff]  ;;  %v7939_v60 = vld [vmem:[%s10408_s19 + $0xfb] sm:$0xff] }
  0x5b   : > { %9539 = vmatprep.mubr.msk.bf16.mxu1 %vm264_vm0, %v199_v4  ;;  %v7974_v4 = vld [vmem:[%s10408_s19 + $0x74] sm:$0xff]  ;;  %v1030_v12 = vpack.c.bf16 %v7923_v6, %v7922_v3  ;;  %v8065_v62 = vld [vmem:[%s10408_s19 + $0x1d] sm:$0xff] }
  0x5c   : > { %v10660_v11 = vpack.c.bf16 %v7975_v5, %v7974_v4  ;;  %v8064_v61 = vld [vmem:[%s10408_s19 + $0x15] sm:$0xff]  ;;  %v8066_v4 = vld [vmem:[%s10408_s19 + $0x25] sm:$0xff]  ;;  %v8067_v5 = vld [vmem:[%s10408_s19 + $0x2d] sm:$0xff] }
  0x5d   : > { %v1923_v3 = vpack.c.bf16 %v8065_v62, %v8064_v61  ;;  %v1924_v6 = vpack.c.bf16 %v8067_v5, %v8066_v4  ;;  %v8042_v4 = vld [vmem:[%s10408_s19 + $0x104] sm:$0xff] }
  0x5e   : > { %v8094_v5 = vld [vmem:[%s10408_s19 + $0x105] sm:$0xff] }
  0x61   : > { %9574 = vmatmul.mubr.msk.bf16.gmra.mxu0 %vm264_vm0, %v736_v13  ;;  %v10662_v13 = vpack.c.bf16 %v7977_v8, %v7976_v7  ;;  %v8068_v7 = vld [vmem:[%s10408_s19 + $0x35] sm:$0xff]  ;;  %v8069_v8 = vld [vmem:[%s10408_s19 + $0x3d] sm:$0xff] }
  0x62   : > { %9540 = vmatmul.mubr.msk.bf16.gmra.mxu1 %vm264_vm0, %v200_v15  ;;  %9577 = vmatprep.mubr.msk.bf16.mxu0 %vm264_vm0, %v737_v17  ;;  %v1031_v15 = vpack.c.bf16 %v7925_v10, %v7924_v9  ;;  %v7926_v17 = vld [vmem:[%s10408_s19 + $0x93] sm:$0xff]  ;;  %v1925_v9 = vpack.c.bf16 %v8069_v8, %v8068_v7  ;;  %v10745_v10 = vld [vmem:[%s13116_s1 + $0x48] sm:$0xff]  }
  0x63   : > { %9543 = vmatprep.mubr.msk.bf16.mxu1 %vm264_vm0, %v201_v18  ;;  %v7978_v18 = vld [vmem:[%s10408_s19 + $0x94] sm:$0xff]  ;;  %v1032_v26 = vpack.c.bf16 %v7927_v20, %v7926_v17  ;;  %v8077_v20 = vld [vmem:[%s10408_s19 + $0x7d] sm:$0xff]  ;;  %v8043_v8 = vld [vmem:[%s10408_s19 + $0x10c] sm:$0xff] }
  0x64   : > { %v10678_v25 = vpack.c.bf16 %v7979_v19, %v7978_v18  ;;  %v8072_v17 = vld [vmem:[%s10408_s19 + $0x55] sm:$0xff]  ;;  %v8073_v18 = vld [vmem:[%s10408_s19 + $0x5d] sm:$0xff] }
  0x65   : > { %v8076_v19 = vld [vmem:[%s10408_s19 + $0x75] sm:$0xff] }
  0x69   : > { %9578 = vmatmul.mubr.msk.bf16.gmra.mxu0 %vm264_vm0, %v738_v27  ;;  %v10680_v27 = vpack.c.bf16 %v7981_v22, %v7980_v21  ;;  %v1929_v22 = vpack.c.bf16 %v8077_v20, %v8076_v19 }
  0x6a   : > { %9544 = vmatmul.mubr.msk.bf16.gmra.mxu1 %vm264_vm0, %v202_v28  ;;  %9617 = vmatprep.mubr.msk.bf16.mxu0 %vm264_vm0, %v1323_v29  ;;  %v1033_v28 = vpack.c.bf16 %v7929_v24, %v7928_v23  ;;  %v7930_v29 = vld [vmem:[%s10408_s19 + $0xb3] sm:$0xff]  ;;  %v8081_v24 = vld [vmem:[%s10408_s19 + $0x9d] sm:$0xff] }
  0x6b   : > { %9583 = vmatprep.mubr.msk.bf16.mxu1 %vm264_vm0, %v1023_v30  ;;  %v7982_v30 = vld [vmem:[%s10408_s19 + $0xb4] sm:$0xff]  ;;  %v1034_v39 = vpack.c.bf16 %v7931_v32, %v7930_v29 }
  0x6c   : > { %v10696_v38 = vpack.c.bf16 %v7983_v31, %v7982_v30  ;;  %v8079_v23 = vld [vmem:[%s10408_s19 + $0x8d] sm:$0xff]  ;;  %v8085_v30 = vld [vmem:[%s10408_s19 + $0xbd] sm:$0xff] }
  0x6d   : > { %v8083_v29 = vld [vmem:[%s10408_s19 + $0xad] sm:$0xff] }
  0x71   : > { %9618 = vmatmul.mubr.msk.bf16.vlgmr.msra.gmra.mxu0 %vm264_vm0, %v10590_v37 }
  0x72   : > { %9584 = vmatmul.mubr.msk.bf16.vlgmr.msra.gmra.mxu1 %vm264_vm0, %v1024_v40  ;;  %9684 = vmatpush3.bf16.msra.mxu0 %v10504_v16  ;;  %v7917_v16 = vld [vmem:[%s10408_s19 + $0x4b] sm:$0xff]  ;;  %v10698_v40 = vpack.c.bf16 %v7985_v34, %v7984_v33 }
  0x73   : > { %9650 = vmatpush3.bf16.msra.mxu1 %v10497_v14  ;;  %9587 = vmatprep.mubr.msk.bf16.mxu1 %vm264_vm0, %v1025_v41  ;;  %v10623_v14 = vpack.c.bf16 %v7967_v47, %v7966_v46  ;;  %v1027_v54 = vpack.c.bf16 %v7917_v16, %v7916_v51  ;;  %v1035_v41 = vpack.c.bf16 %v7933_v36, %v7932_v35  ;;  %v7986_v46 = vld [vmem:[%s10408_s19 + $0xd4] sm:$0xff]  ;;  %v7987_v47 = vld [vmem:[%s10408_s19 + $0xdc] sm:$0xff]  ;;  %v7937_v16 = vld [vmem:[%s10408_s19 + $0xeb] sm:$0xff] }
  0x74   : > { %9621 = vmatprep.mubr.msk.bf16.mxu0 %vm264_vm0, %v10594_v42  ;;  %9717 = vmatprep.subr.bf16.mxu1 %v10599_v43  ;;  %v7936_v51 = vld [vmem:[%s10408_s19 + $0xe3] sm:$0xff]  ;;  %v8087_v35 = vld [vmem:[%s10408_s19 + $0xcd] sm:$0xff] }
  0x75   : > { %9751 = vmatprep.subr.bf16.mxu0 %v10606_v44  ;;  %v1037_v56 = vpack.c.bf16 %v7937_v16, %v7936_v51  ;;  %v8090_v51 = vld [vmem:[%s10408_s19 + $0xe5] sm:$0xff]  ;;  %v8091_v16 = vld [vmem:[%s10408_s19 + $0xed] sm:$0xff] }
  0x79   : > { %9622 = vmatmul.mubr.msk.bf16.gmra.mxu0 %vm264_vm0, %v10623_v14 }
  0x7a   : > { %9588 = vmatmul.mubr.msk.bf16.gmra.mxu1 %vm264_vm0, %v1026_v52  ;;  %9625 = vmatprep.mubr.msk.bf16.mxu0 %vm264_vm0, %v10626_v53  ;;  %v10714_v52 = vpack.c.bf16 %v7987_v47, %v7986_v46 }
  0x7b   : > { %9591 = vmatprep.mubr.msk.bf16.mxu1 %vm264_vm0, %v1027_v54  ;;  %v1036_v54 = vpack.c.bf16 %v7935_v48, %v7934_v45 }
  0x81   : > { %9626 = vmatmul.mubr.msk.bf16.gmra.mxu0 %vm264_vm0, %v10642_v63 }
  0x82   : > { %9592 = vmatmul.mubr.msk.bf16.gmra.mxu1 %vm264_vm0, %v1028_v0  ;;  %9629 = vmatprep.mubr.msk.bf16.mxu0 %vm264_vm0, %v10644_v1  ;;  %v10730_v0 = vpack.c.bf16 %v7991_v59, %v7990_v58 }
  0x83   : > { %9595 = vmatprep.mubr.msk.bf16.mxu1 %vm264_vm0, %v1029_v2  ;;  %v1038_v2 = vpack.c.bf16 %v7939_v60, %v7938_v57  ;;  %v8093_v57 = vld [vmem:[%s10408_s19 + $0xfd] sm:$0xff] }
  0x89   : > { %9630 = vmatmul.mubr.msk.bf16.gmra.mxu0 %vm264_vm0, %v10660_v11 }
  0x8a   : > { %9596 = vmatmul.mubr.msk.bf16.gmra.mxu1 %vm264_vm0, %v1030_v12  ;;  %9633 = vmatprep.mubr.msk.bf16.mxu0 %vm264_vm0, %v10662_v13  ;;  %v10751_v12 = vld [vmem:[%s13116_s1 + $0x50] sm:$0xff]  }
  0x8b   : > { %9599 = vmatprep.mubr.msk.bf16.mxu1 %vm264_vm0, %v1031_v15  ;;  %v8071_v15 = vld [vmem:[%s10408_s19 + $0x4d] sm:$0xff] }
  0x91   : > { %9634 = vmatmul.mubr.msk.bf16.gmra.mxu0 %vm264_vm0, %v10678_v25 }
  0x92   : > { %9600 = vmatmul.mubr.msk.bf16.gmra.mxu1 %vm264_vm0, %v1032_v26  ;;  %9637 = vmatprep.mubr.msk.bf16.mxu0 %vm264_vm0, %v10680_v27 }
  0x93   : > { %9603 = vmatprep.mubr.msk.bf16.mxu1 %vm264_vm0, %v1033_v28 }
  0x99   : > { %9638 = vmatmul.mubr.msk.bf16.gmra.mxu0 %vm264_vm0, %v10696_v38 }
  0x9a   : > { %9604 = vmatmul.mubr.msk.bf16.gmra.mxu1 %vm264_vm0, %v1034_v39  ;;  %9641 = vmatprep.mubr.msk.bf16.mxu0 %vm264_vm0, %v10698_v40  ;;  %v8089_v39 = vld [vmem:[%s10408_s19 + $0xdd] sm:$0xff] }
  0x9b   : > { %9607 = vmatprep.mubr.msk.bf16.mxu1 %vm264_vm0, %v1035_v41 }
  0xa1   : > { %9642 = vmatmul.mubr.msk.bf16.gmra.mxu0 %vm264_vm0, %v10714_v52 }
  0xa2   : > { %9608 = vmatmul.mubr.msk.bf16.gmra.mxu1 %vm264_vm0, %v1036_v54  ;;  %9645 = vmatprep.mubr.msk.bf16.mxu0 %vm264_vm0, %v10716_v55 }
  0xa3   : > { %9611 = vmatprep.mubr.msk.bf16.mxu1 %vm264_vm0, %v1037_v56  ;;  %v8092_v56 = vld [vmem:[%s10408_s19 + $0xf5] sm:$0xff] }
  0xa4   : > { %v1937_v61 = vpack.c.bf16 %v8093_v57, %v8092_v56  ;;  %v10915_v56 = vld [vmem:[%s13116_s1 + $0x60] sm:$0xff]  }
  0xa9   : > { %9646 = vmatmul.mubr.msk.bf16.gmra.mxu0 %vm264_vm0, %v10730_v0 }
  0xaa   : > { %9612 = vmatmul.mubr.msk.bf16.gmra.mxu1 %vm264_vm0, %v1038_v2  ;;  %9685 = vmatprep.mubr.msk.bf16.mxu0 %vm264_vm0, %v1923_v3 }
  0xab   : > { %9651 = vmatprep.mubr.msk.bf16.mxu1 %vm264_vm0, %v10590_v37  ;;  %v8070_v37 = vld [vmem:[%s10408_s19 + $0x45] sm:$0xff] }
  0xb1   : > { %9686 = vmatmul.mubr.msk.bf16.vlgmr.msra.gmra.mxu0 %vm264_vm0, %v1924_v6  ;;  %v8095_v6 = vld [vmem:[%s10408_s19 + $0x10d] sm:$0xff] }
  0xb2   : > { %9652 = vmatmul.mubr.msk.bf16.vlgmr.msra.gmra.mxu1 %vm264_vm0, %v10594_v42  ;;  %9752 = vmatpush3.bf16.msra.mxu0 %v10606_v44  ;;  %v1926_v42 = vpack.c.bf16 %v8071_v15, %v8070_v37  ;;  %v1927_v44 = vpack.c.bf16 %v8073_v18, %v8072_v17  ;;  %v8169_v37 = vld [vmem:[%s10408_s19 + $0x1f] sm:$0xff]  ;;  %v8116_v17 = vld [vmem:[%s10408_s19 + $0x16] sm:$0xff] }
  0xb3   : > { %9718 = vmatpush3.bf16.msra.mxu1 %v10599_v43  ;;  %9655 = vmatprep.mubr.msk.bf16.mxu1 %vm264_vm0, %v10623_v14  ;;  %v8074_v43 = vld [vmem:[%s10408_s19 + $0x65] sm:$0xff]  ;;  %v8075_v14 = vld [vmem:[%s10408_s19 + $0x6d] sm:$0xff] }
  0xb4   : > { %9689 = vmatprep.mubr.msk.bf16.mxu0 %vm264_vm0, %v1925_v9  ;;  %9785 = vmatprep.subr.bf16.mxu1 %v10745_v10  ;;  %v1928_v21 = vpack.c.bf16 %v8075_v14, %v8074_v43  ;;  %v8168_v9 = vld [vmem:[%s10408_s19 + $0x17] sm:$0xff]  ;;  %v1638_v43 = vpack.c.bf16 %v8043_v8, %v8042_v4  ;;  %v8175_v4 = vld [vmem:[%s10408_s19 + $0x4f] sm:$0xff] }
  0xb5   : > { %9819 = vmatprep.subr.bf16.mxu0 %v10751_v12  ;;  %v8117_v18 = vld [vmem:[%s10408_s19 + $0x1e] sm:$0xff]  ;;  %v2523_v14 = vpack.c.bf16 %v8169_v37, %v8168_v9  ;;  %v8123_v8 = vld [vmem:[%s10408_s19 + $0x4e] sm:$0xff] }
  0xb6   : > { %v2223_v19 = vpack.c.bf16 %v8117_v18, %v8116_v17  ;;  %v8176_v9 = vld [vmem:[%s10408_s19 + $0x57] sm:$0xff]  ;;  %v8177_v37 = vld [vmem:[%s10408_s19 + $0x5f] sm:$0xff] }
  0xb7   : > { %v8124_v18 = vld [vmem:[%s10408_s19 + $0x56] sm:$0xff] }
  0xb9   : > { %9690 = vmatmul.mubr.msk.bf16.gmra.mxu0 %vm264_vm0, %v1926_v42  ;;  %v1938_v42 = vpack.c.bf16 %v8095_v6, %v8094_v5 }
  0xba   : > { %9656 = vmatmul.mubr.msk.bf16.gmra.mxu1 %vm264_vm0, %v10626_v53  ;;  %9693 = vmatprep.mubr.msk.bf16.mxu0 %vm264_vm0, %v1927_v44  ;;  %v8078_v53 = vld [vmem:[%s10408_s19 + $0x85] sm:$0xff] }
  0xbb   : > { %9659 = vmatprep.mubr.msk.bf16.mxu1 %vm264_vm0, %v10642_v63  ;;  %v8080_v63 = vld [vmem:[%s10408_s19 + $0x95] sm:$0xff]  ;;  %v1930_v26 = vpack.c.bf16 %v8079_v23, %v8078_v53  ;;  %v8170_v53 = vld [vmem:[%s10408_s19 + $0x27] sm:$0xff] }
  0xbc   : > { %v1931_v28 = vpack.c.bf16 %v8081_v24, %v8080_v63  ;;  %v8171_v23 = vld [vmem:[%s10408_s19 + $0x2f] sm:$0xff]  ;;  %v8118_v24 = vld [vmem:[%s10408_s19 + $0x26] sm:$0xff] }
  0xc1   : > { %9694 = vmatmul.mubr.msk.bf16.gmra.mxu0 %vm264_vm0, %v1928_v21 }
  0xc2   : > { %9660 = vmatmul.mubr.msk.bf16.gmra.mxu1 %vm264_vm0, %v10644_v1  ;;  %9697 = vmatprep.mubr.msk.bf16.mxu0 %vm264_vm0, %v1929_v22  ;;  %v8082_v1 = vld [vmem:[%s10408_s19 + $0xa5] sm:$0xff] }
  0xc3   : > { %9663 = vmatprep.mubr.msk.bf16.mxu1 %vm264_vm0, %v10660_v11  ;;  %v8084_v11 = vld [vmem:[%s10408_s19 + $0xb5] sm:$0xff]  ;;  %v1932_v31 = vpack.c.bf16 %v8083_v29, %v8082_v1  ;;  %v8121_v29 = vld [vmem:[%s10408_s19 + $0x3e] sm:$0xff] }
  0xc4   : > { %v1933_v32 = vpack.c.bf16 %v8085_v30, %v8084_v11  ;;  %v8120_v1 = vld [vmem:[%s10408_s19 + $0x36] sm:$0xff]  ;;  %v2524_v30 = vpack.c.bf16 %v8171_v23, %v8170_v53  ;;  %v2527_v53 = vpack.c.bf16 %v8177_v37, %v8176_v9 }
  0xc9   : > { %9698 = vmatmul.mubr.msk.bf16.gmra.mxu0 %vm264_vm0, %v1930_v26  ;;  %v8119_v26 = vld [vmem:[%s10408_s19 + $0x2e] sm:$0xff] }
  0xca   : > { %9664 = vmatmul.mubr.msk.bf16.gmra.mxu1 %vm264_vm0, %v10662_v13  ;;  %9701 = vmatprep.mubr.msk.bf16.mxu0 %vm264_vm0, %v1931_v28  ;;  %v8086_v13 = vld [vmem:[%s10408_s19 + $0xc5] sm:$0xff] }
  0xcb   : > { %9667 = vmatprep.mubr.msk.bf16.mxu1 %vm264_vm0, %v10678_v25  ;;  %v8088_v25 = vld [vmem:[%s10408_s19 + $0xd5] sm:$0xff] }
  0xcc   : > { %v1935_v47 = vpack.c.bf16 %v8089_v39, %v8088_v25  ;;  %v2225_v39 = vpack.c.bf16 %v8121_v29, %v8120_v1 }
  0xd1   : > { %v10796_v33 = vpop.f32.mrf.mxu0  ;;  %9702 = vmatmul.mubr.msk.bf16.gmra.mxu0 %vm264_vm0, %v1932_v31  ;;  %v8172_v31 = vld [vmem:[%s10408_s19 + $0x37] sm:$0xff] }
  0xd2   : > { %v10799_v34 = vpop.f32.mrf.mxu1  ;;  %9668 = vmatmul.mubr.msk.bf16.gmra.mxu1 %vm264_vm0, %v10680_v27  ;;  %9705 = vmatprep.mubr.msk.bf16.mxu0 %vm264_vm0, %v1933_v32  ;;  %v1934_v27 = vpack.c.bf16 %v8087_v35, %v8086_v13  ;;  %v8173_v32 = vld [vmem:[%s10408_s19 + $0x3f] sm:$0xff]  ;;  %v2224_v35 = vpack.c.bf16 %v8119_v26, %v8118_v24 }
  0xd3   : > { %v10806_v36 = vpop.f32.mrf.mxu0  ;;  %9671 = vmatprep.mubr.msk.bf16.mxu1 %vm264_vm0, %v10696_v38 }
  0xd4   : > { %v10812_v41 = vpop.f32.mrf.mxu1 }
  0xd5   : > { %v10814_v45 = vpop.f32.mrf.mxu0 }
  0xd6   : > { %v10816_v46 = vpop.f32.mrf.mxu1 }
  0xd7   : > { %v10818_v48 = vpop.f32.mrf.mxu0 }
  0xd8   : > { %v10820_v49 = vpop.f32.mrf.mxu1 }
  0xd9   : > { %v10822_v50 = vpop.f32.mrf.mxu0  ;;  %9706 = vmatmul.mubr.msk.bf16.gmra.mxu0 %vm264_vm0, %v1934_v27 }
  0xda   : > { %v10825_v38 = vpop.f32.mrf.mxu1  ;;  %9672 = vmatmul.mubr.msk.bf16.gmra.mxu1 %vm264_vm0, %v10698_v40  ;;  %9709 = vmatprep.mubr.msk.bf16.mxu0 %vm264_vm0, %v1935_v47  ;;  %v1936_v40 = vpack.c.bf16 %v8091_v16, %v8090_v51  ;;  %v2525_v47 = vpack.c.bf16 %v8173_v32, %v8172_v31  ;;  %v10909_v51 = vld [vmem:[%s13116_s1 + $0x58] sm:$0xff]  }
  0xdb   : > { %v10832_v54 = vpop.f32.mrf.mxu0  ;;  %9675 = vmatprep.mubr.msk.bf16.mxu1 %vm264_vm0, %v10714_v52 }
  0xdc   : > { %v10838_v58 = vpop.f32.mrf.mxu1 }
  0xdd   : > { %v10840_v59 = vpop.f32.mrf.mxu0 }
  0xde   : > { %v10842_v60 = vpop.f32.mrf.mxu1 }
  0xdf   : > { %v10844_v62 = vpop.f32.mrf.mxu0 }
  0xe0   : > { %v10846_v2 = vpop.f32.mrf.mxu1 }
  0xe1   : > { %v10848_v52 = vpop.f32.mrf.mxu0  ;;  %9710 = vmatmul.mubr.msk.bf16.gmra.mxu0 %vm264_vm0, %v1936_v40  ;;  %v8122_v40 = vld [vmem:[%s10408_s19 + $0x46] sm:$0xff] }
  0xe2   : > { %v10851_v3 = vpop.f32.mrf.mxu1  ;;  %9676 = vmatmul.mubr.msk.bf16.gmra.mxu1 %vm264_vm0, %v10716_v55  ;;  %9713 = vmatprep.mubr.msk.bf16.mxu0 %vm264_vm0, %v1937_v61  ;;  %v8174_v61 = vld [vmem:[%s10408_s19 + $0x47] sm:$0xff] }
  0xe3   : > { %v10859_v7 = vpop.f32.mrf.mxu0  ;;  %9679 = vmatprep.mubr.msk.bf16.mxu1 %vm264_vm0, %v10730_v0 }
  0xe4   : > { %v10866_v15 = vpop.f32.mrf.mxu1 }
  0xe5   : > { %v10870_v55 = vpop.f32.mrf.mxu0 }
  0xe6   : > { %v10872_v44 = vpop.f32.mrf.mxu1 }
  0xe7   : > { %v10874_v0 = vpop.f32.mrf.mxu0 }
  0xe8   : > { %v10876_v20 = vpop.f32.mrf.mxu1 }
  0xe9   : > { %v10878_v21 = vpop.f32.mrf.mxu0  ;;  %9714 = vmatmul.mubr.msk.bf16.gmra.mxu0 %vm264_vm0, %v1938_v42  ;;  %v8125_v42 = vld [vmem:[%s10408_s19 + $0x5e] sm:$0xff] }
  0xea   : > { %v10881_v22 = vpop.f32.mrf.mxu1  ;;  %9680 = vmatmul.mubr.msk.bf16.gmra.mxu1 %vm264_vm0, %v1638_v43  ;;  %9753 = vmatprep.mubr.msk.bf16.mxu0 %vm264_vm0, %v2523_v14  ;;  %v2526_v14 = vpack.c.bf16 %v8175_v4, %v8174_v61  ;;  %v2227_v1 = vpack.c.bf16 %v8125_v42, %v8124_v18  ;;  %v8181_v61 = vld [vmem:[%s10408_s19 + $0x7f] sm:$0xff] }
  0xeb   : > { %v10887_v63 = vpop.f32.mrf.mxu0  ;;  %9719 = vmatprep.mubr.msk.bf16.mxu1 %vm264_vm0, %v2223_v19  ;;  %v2226_v19 = vpack.c.bf16 %v8123_v8, %v8122_v40  ;;  %v8180_v40 = vld [vmem:[%s10408_s19 + $0x77] sm:$0xff] }
  0xec   : > { %v10892_v28 = vpop.f32.mrf.mxu1 }
  0xed   : > { %v10896_v11 = vpop.f32.mrf.mxu0 }
  0xee   : > { %v10900_v13 = vpop.f32.mrf.mxu1 }
  0xef   : > { %v10902_v25 = vpop.f32.mrf.mxu0 }
  0xf0   : > { %v10904_v27 = vpop.f32.mrf.mxu1 }
  0xf1   : > { %v9551_v16 = vpop.f32.mrf.mxu0  ;;  %9754 = vmatmul.mubr.msk.bf16.vlgmr.msra.gmra.mxu0 %vm264_vm0, %v2524_v30 }
  0xf2   : > { %v9517_v57 = vpop.f32.mrf.mxu1  ;;  %9720 = vmatmul.mubr.msk.bf16.vlgmr.msra.gmra.mxu1 %vm264_vm0, %v2224_v35  ;;  %9820 = vmatpush3.bf16.msra.mxu0 %v10751_v12  ;;  %v8178_v35 = vld [vmem:[%s10408_s19 + $0x67] sm:$0xff] }
  0xf3   : > { %v571_v5 = vadd.f32 %v9517_v57, %v10796_v33  ;;  %9786 = vmatpush3.bf16.msra.mxu1 %v10745_v10  ;;  %v830_v6 = vpop.f32.mrf.mxu0  ;;  %9723 = vmatprep.mubr.msk.bf16.mxu1 %vm264_vm0, %v2225_v39  ;;  %v8179_v39 = vld [vmem:[%s10408_s19 + $0x6f] sm:$0xff] }
  0xf4   : > { %v562_v17 = vpop.f32.mrf.mxu1  ;;  %9757 = vmatprep.mubr.msk.bf16.mxu0 %vm264_vm0, %v2525_v47  ;;  %9853 = vmatprep.subr.bf16.mxu1 %v10909_v51 }
  0xf5   : > { %v10932_v12 = vadd.f32 %v9551_v16, %v571_v5  ;;  %v563_v43 = vadd.f32 %v562_v17, %v10806_v36  ;;  %v9552_v33 = vpop.f32.mrf.mxu0  ;;  %9887 = vmatprep.subr.bf16.mxu0 %v10915_v56  ;;  %v8128_v5 = vld [vmem:[%s10408_s19 + $0x76] sm:$0xff]  ;;  %v2528_v17 = vpack.c.bf16 %v8179_v39, %v8178_v35  ;;  %v8185_v35 = vld [vmem:[%s10408_s19 + $0x9f] sm:$0xff] }
  0xf6   : > { %v9518_v10 = vpop.f32.mrf.mxu1 }
  0xf7   : > { %v10936_v23 = vadd.f32 %v830_v6, %v563_v43  ;;  %v574_v24 = vadd.f32 %v9518_v10, %v10814_v45  ;;  %v833_v26 = vpop.f32.mrf.mxu0  ;;  %v8126_v45 = vld [vmem:[%s10408_s19 + $0x66] sm:$0xff]  ;;  %v8129_v6 = vld [vmem:[%s10408_s19 + $0x7e] sm:$0xff] }
  0xf8   : > { %v565_v29 = vpop.f32.mrf.mxu1  ;;  %v2229_v10 = vpack.c.bf16 %v8129_v6, %v8128_v5 }
  0xf9   : > { %v10939_v36 = vadd.f32 %v9552_v33, %v574_v24  ;;  %v566_v30 = vadd.f32 %v565_v29, %v10818_v48  ;;  %v9555_v31 = vpop.f32.mrf.mxu0  ;;  %9758 = vmatmul.mubr.msk.bf16.gmra.mxu0 %vm264_vm0, %v2526_v14  ;;  %v8127_v48 = vld [vmem:[%s10408_s19 + $0x6e] sm:$0xff] }
  0xfa   : > { %v9521_v32 = vpop.f32.mrf.mxu1  ;;  %9724 = vmatmul.mubr.msk.bf16.gmra.mxu1 %vm264_vm0, %v2226_v19  ;;  %9761 = vmatprep.mubr.msk.bf16.mxu0 %vm264_vm0, %v2527_v53  ;;  %v2228_v42 = vpack.c.bf16 %v8127_v48, %v8126_v45  ;;  %v8183_v29 = vld [vmem:[%s10408_s19 + $0x8f] sm:$0xff]  ;;  %v8184_v45 = vld [vmem:[%s10408_s19 + $0x97] sm:$0xff] }
  0xfb   : > { %v10948_v47 = vadd.f32 %v833_v26, %v566_v30  ;;  %v587_v16 = vadd.f32 %v9521_v32, %v10822_v50  ;;  %v846_v57 = vpop.f32.mrf.mxu0  ;;  %9727 = vmatprep.mubr.msk.bf16.mxu1 %vm264_vm0, %v2227_v1  ;;  %v2529_v50 = vpack.c.bf16 %v8181_v61, %v8180_v40  ;;  %v8182_v1 = vld [vmem:[%s10408_s19 + $0x87] sm:$0xff] }
  0xfc   : > { %v578_v4 = vpop.f32.mrf.mxu1 }
  0xfd   : > { %v10957_v8 = vadd.f32 %v9555_v31, %v587_v16  ;;  %v579_v9 = vadd.f32 %v578_v4, %v10832_v54  ;;  %v9556_v37 = vpop.f32.mrf.mxu0  ;;  %v8132_v16 = vld [vmem:[%s10408_s19 + $0x96] sm:$0xff]  ;;  %v2530_v4 = vpack.c.bf16 %v8183_v29, %v8182_v1  ;;  %v8189_v1 = vld [vmem:[%s10408_s19 + $0xbf] sm:$0xff] }
  0xfe   : > { %v9522_v18 = vpop.f32.mrf.mxu1 }
  0xff   : > { %v10960_v43 = vadd.f32 %v846_v57, %v579_v9  ;;  %v590_v33 = vadd.f32 %v9522_v18, %v10840_v59  ;;  %v849_v14 = vpop.f32.mrf.mxu0  ;;  %v8130_v59 = vld [vmem:[%s10408_s19 + $0x86] sm:$0xff]  ;;  %v8133_v57 = vld [vmem:[%s10408_s19 + $0x9e] sm:$0xff] }
 0x100   : > { %v581_v19 = vpop.f32.mrf.mxu1  ;;  %v2231_v18 = vpack.c.bf16 %v8133_v57, %v8132_v16 }
 0x101   : > { %v10963_v53 = vadd.f32 %v9556_v37, %v590_v33  ;;  %v582_v54 = vadd.f32 %v581_v19, %v10844_v62  ;;  %v9559_v24 = vpop.f32.mrf.mxu0  ;;  %9762 = vmatmul.mubr.msk.bf16.gmra.mxu0 %vm264_vm0, %v2528_v17  ;;  %v8131_v62 = vld [vmem:[%s10408_s19 + $0x8e] sm:$0xff] }
 0x102   : > { %v9525_v26 = vpop.f32.mrf.mxu1  ;;  %9728 = vmatmul.mubr.msk.bf16.gmra.mxu1 %vm264_vm0, %v2228_v42  ;;  %9765 = vmatprep.mubr.msk.bf16.mxu0 %vm264_vm0, %v2529_v50  ;;  %v2230_v6 = vpack.c.bf16 %v8131_v62, %v8130_v59  ;;  %v8187_v19 = vld [vmem:[%s10408_s19 + $0xaf] sm:$0xff]  ;;  %v8188_v59 = vld [vmem:[%s10408_s19 + $0xb7] sm:$0xff] }
 0x103   : > { %v10972_v30 = vadd.f32 %v849_v14, %v582_v54  ;;  %v603_v31 = vadd.f32 %v9525_v26, %v10848_v52  ;;  %v862_v32 = vpop.f32.mrf.mxu0  ;;  %9731 = vmatprep.mubr.msk.bf16.mxu1 %vm264_vm0, %v2229_v10  ;;  %v2531_v52 = vpack.c.bf16 %v8185_v35, %v8184_v45  ;;  %v8186_v10 = vld [vmem:[%s10408_s19 + $0xa7] sm:$0xff] }
 0x104   : > { %v594_v39 = vpop.f32.mrf.mxu1 }
 0x105   : > { %v10981_v48 = vadd.f32 %v9559_v24, %v603_v31  ;;  %v595_v40 = vadd.f32 %v594_v39, %v10859_v7  ;;  %v9560_v61 = vpop.f32.mrf.mxu0  ;;  %v8136_v31 = vld [vmem:[%s10408_s19 + $0xb6] sm:$0xff]  ;;  %v2532_v39 = vpack.c.bf16 %v8187_v19, %v8186_v10  ;;  %v8193_v10 = vld [vmem:[%s10408_s19 + $0xdf] sm:$0xff] }
 0x106   : > { %v9526_v5 = vpop.f32.mrf.mxu1 }
 0x107   : > { %v10984_v9 = vadd.f32 %v862_v32, %v595_v40  ;;  %v606_v37 = vadd.f32 %v9526_v5, %v10870_v55  ;;  %v865_v17 = vpop.f32.mrf.mxu0  ;;  %v8134_v55 = vld [vmem:[%s10408_s19 + $0xa6] sm:$0xff]  ;;  %v8137_v32 = vld [vmem:[%s10408_s19 + $0xbe] sm:$0xff] }
 0x108   : > { %v597_v42 = vpop.f32.mrf.mxu1  ;;  %v2233_v5 = vpack.c.bf16 %v8137_v32, %v8136_v31 }
 0x109   : > { %v10987_v50 = vadd.f32 %v9560_v61, %v606_v37  ;;  %v598_v7 = vadd.f32 %v597_v42, %v10874_v0  ;;  %v9563_v33 = vpop.f32.mrf.mxu0  ;;  %9766 = vmatmul.mubr.msk.bf16.gmra.mxu0 %vm264_vm0, %v2530_v4  ;;  %v8135_v0 = vld [vmem:[%s10408_s19 + $0xae] sm:$0xff] }
 0x10a   : > { %v9529_v14 = vpop.f32.mrf.mxu1  ;;  %9732 = vmatmul.mubr.msk.bf16.gmra.mxu1 %vm264_vm0, %v2230_v6  ;;  %9769 = vmatprep.mubr.msk.bf16.mxu0 %vm264_vm0, %v2531_v52  ;;  %v2232_v57 = vpack.c.bf16 %v8135_v0, %v8134_v55  ;;  %v8191_v42 = vld [vmem:[%s10408_s19 + $0xcf] sm:$0xff]  ;;  %v8192_v55 = vld [vmem:[%s10408_s19 + $0xd7] sm:$0xff] }
 0x10b   : > { %v10996_v54 = vadd.f32 %v865_v17, %v598_v7  ;;  %v619_v24 = vadd.f32 %v9529_v14, %v10878_v21  ;;  %v878_v26 = vpop.f32.mrf.mxu0  ;;  %9735 = vmatprep.mubr.msk.bf16.mxu1 %vm264_vm0, %v2231_v18  ;;  %v2533_v21 = vpack.c.bf16 %v8189_v1, %v8188_v59  ;;  %v8190_v18 = vld [vmem:[%s10408_s19 + $0xc7] sm:$0xff] }
 0x10c   : > { %v610_v29 = vpop.f32.mrf.mxu1 }
 0x10d   : > { %v11005_v62 = vadd.f32 %v9563_v33, %v619_v24  ;;  %v611_v45 = vadd.f32 %v610_v29, %v10887_v63  ;;  %v9564_v35 = vpop.f32.mrf.mxu0  ;;  %v8140_v24 = vld [vmem:[%s10408_s19 + $0xd6] sm:$0xff]  ;;  %v2534_v29 = vpack.c.bf16 %v8191_v42, %v8190_v18  ;;  %v8197_v18 = vld [vmem:[%s10408_s19 + $0xff] sm:$0xff] }
 0x10e   : > { %v9530_v16 = vpop.f32.mrf.mxu1 }
 0x10f   : > { %v11008_v40 = vadd.f32 %v878_v26, %v611_v45  ;;  %v622_v61 = vadd.f32 %v9530_v16, %v10896_v11  ;;  %v881_v4 = vpop.f32.mrf.mxu0  ;;  %v8138_v11 = vld [vmem:[%s10408_s19 + $0xc6] sm:$0xff]  ;;  %v8141_v26 = vld [vmem:[%s10408_s19 + $0xde] sm:$0xff] }
 0x110   : > { %v613_v6 = vpop.f32.mrf.mxu1  ;;  %v2235_v16 = vpack.c.bf16 %v8141_v26, %v8140_v24 }
 0x111   : > { %v11011_v52 = vadd.f32 %v9564_v35, %v622_v61  ;;  %v614_v63 = vadd.f32 %v613_v6, %v10902_v25  ;;  %v9567_v37 = vpop.f32.mrf.mxu0  ;;  %9770 = vmatmul.mubr.msk.bf16.gmra.mxu0 %vm264_vm0, %v2532_v39  ;;  %v8139_v25 = vld [vmem:[%s10408_s19 + $0xce] sm:$0xff] }
 0x112   : > { %v9533_v17 = vpop.f32.mrf.mxu1  ;;  %9736 = vmatmul.mubr.msk.bf16.gmra.mxu1 %vm264_vm0, %v2232_v57  ;;  %9773 = vmatprep.mubr.msk.bf16.mxu0 %vm264_vm0, %v2533_v21  ;;  %v2234_v32 = vpack.c.bf16 %v8139_v25, %v8138_v11  ;;  %v8195_v6 = vld [vmem:[%s10408_s19 + $0xef] sm:$0xff]  ;;  %v8196_v11 = vld [vmem:[%s10408_s19 + $0xf7] sm:$0xff] }
 0x113   : > { %v11020_v7 = vadd.f32 %v881_v4, %v614_v63  ;;  %v635_v33 = vadd.f32 %v9533_v17, %v10799_v34  ;;  %v894_v14 = vpop.f32.mrf.mxu0  ;;  %9739 = vmatprep.mubr.msk.bf16.mxu1 %vm264_vm0, %v2233_v5  ;;  %v2535_v34 = vpack.c.bf16 %v8193_v10, %v8192_v55  ;;  %v8194_v5 = vld [vmem:[%s10408_s19 + $0xe7] sm:$0xff] }
 0x114   : > { %v626_v19 = vpop.f32.mrf.mxu1 }
 0x115   : > { %v11029_v0 = vadd.f32 %v9567_v37, %v635_v33  ;;  %v627_v59 = vadd.f32 %v626_v19, %v10812_v41  ;;  %v9568_v1 = vpop.f32.mrf.mxu0  ;;  %v8144_v33 = vld [vmem:[%s10408_s19 + $0xf6] sm:$0xff]  ;;  %v2536_v19 = vpack.c.bf16 %v8195_v6, %v8194_v5 }
 0x116   : > { %v9534_v31 = vpop.f32.mrf.mxu1  ;;  %v8273_v5 = vld [vmem:[%s10408_s19 + $0x30] sm:$0xff] }
 0x117   : > { %v11032_v45 = vadd.f32 %v894_v14, %v627_v59  ;;  %v638_v35 = vadd.f32 %v9534_v31, %v10816_v46  ;;  %v897_v39 = vpop.f32.mrf.mxu0  ;;  %v8142_v46 = vld [vmem:[%s10408_s19 + $0xe6] sm:$0xff]  ;;  %v8145_v14 = vld [vmem:[%s10408_s19 + $0xfe] sm:$0xff] }
 0x118   : > { %v629_v57 = vpop.f32.mrf.mxu1  ;;  %v2237_v31 = vpack.c.bf16 %v8145_v14, %v8144_v33 }
 0x119   : > { %v11035_v21 = vadd.f32 %v9568_v1, %v638_v35  ;;  %v630_v41 = vadd.f32 %v629_v57, %v10820_v49  ;;  %v9571_v61 = vpop.f32.mrf.mxu0  ;;  %9774 = vmatmul.mubr.msk.bf16.gmra.mxu0 %vm264_vm0, %v2534_v29  ;;  %v8143_v49 = vld [vmem:[%s10408_s19 + $0xee] sm:$0xff] }
 0x11a   : > { %v9537_v4 = vpop.f32.mrf.mxu1  ;;  %9740 = vmatmul.mubr.msk.bf16.gmra.mxu1 %vm264_vm0, %v2234_v32  ;;  %9777 = vmatprep.mubr.msk.bf16.mxu0 %vm264_vm0, %v2535_v34  ;;  %v2236_v26 = vpack.c.bf16 %v8143_v49, %v8142_v46  ;;  %v8199_v57 = vld [vmem:[%s10408_s19 + $0x10f] sm:$0xff] }
 0x11b   : > { %v11044_v63 = vadd.f32 %v897_v39, %v630_v41  ;;  %v651_v37 = vadd.f32 %v9537_v4, %v10825_v38  ;;  %v910_v17 = vpop.f32.mrf.mxu0  ;;  %9743 = vmatprep.mubr.msk.bf16.mxu1 %vm264_vm0, %v2235_v16  ;;  %v2537_v38 = vpack.c.bf16 %v8197_v18, %v8196_v11  ;;  %v8198_v16 = vld [vmem:[%s10408_s19 + $0x107] sm:$0xff] }
 0x11c   : > { %v642_v42 = vpop.f32.mrf.mxu1  ;;  %v8272_v46 = vld [vmem:[%s10408_s19 + $0x28] sm:$0xff] }
 0x11d   : > { %v11053_v25 = vadd.f32 %v9571_v61, %v651_v37  ;;  %v643_v55 = vadd.f32 %v642_v42, %v10838_v58  ;;  %v9572_v10 = vpop.f32.mrf.mxu0  ;;  %v8220_v37 = vld [vmem:[%s10408_s19 + $0x18] sm:$0xff]  ;;  %v2538_v42 = vpack.c.bf16 %v8199_v57, %v8198_v16 }
 0x11e   : > { %v9538_v24 = vpop.f32.mrf.mxu1 }
 0x11f   : > { %v11056_v59 = vadd.f32 %v910_v17, %v643_v55  ;;  %v654_v1 = vadd.f32 %v9538_v24, %v10842_v60  ;;  %v913_v29 = vpop.f32.mrf.mxu0  ;;  %v8146_v60 = vld [vmem:[%s10408_s19 + $0x106] sm:$0xff] }
 0x120   : > { %v645_v32 = vpop.f32.mrf.mxu1  ;;  %v8221_v17 = vld [vmem:[%s10408_s19 + $0x20] sm:$0xff] }
 0x121   : > { %v11059_v34 = vadd.f32 %v9572_v10, %v654_v1  ;;  %v646_v58 = vadd.f32 %v645_v32, %v10846_v2  ;;  %v9575_v35 = vpop.f32.mrf.mxu0  ;;  %9778 = vmatmul.mubr.msk.bf16.gmra.mxu0 %vm264_vm0, %v2536_v19  ;;  %v8147_v2 = vld [vmem:[%s10408_s19 + $0x10e] sm:$0xff]  ;;  %v2823_v24 = vpack.c.bf16 %v8221_v17, %v8220_v37  ;;  %v8275_v32 = vld [vmem:[%s10408_s19 + $0x40] sm:$0xff] }
 0x122   : > { %v9541_v39 = vpop.f32.mrf.mxu1  ;;  %9744 = vmatmul.mubr.msk.bf16.gmra.mxu1 %vm264_vm0, %v2236_v26  ;;  %9781 = vmatprep.mubr.msk.bf16.mxu0 %vm264_vm0, %v2537_v38  ;;  %v2238_v14 = vpack.c.bf16 %v8147_v2, %v8146_v60  ;;  %v11106_v17 = vld [vmem:[%s13116_s1 + $0x68] sm:$0xff]  }
 0x123   : > { %v11068_v41 = vadd.f32 %v913_v29, %v646_v58  ;;  %v667_v61 = vadd.f32 %v9541_v39, %v10851_v3  ;;  %v926_v4 = vpop.f32.mrf.mxu0  ;;  %9747 = vmatprep.mubr.msk.bf16.mxu1 %vm264_vm0, %v2237_v31  ;;  %v3123_v3 = vpack.c.bf16 %v8273_v5, %v8272_v46  ;;  %v8274_v31 = vld [vmem:[%s10408_s19 + $0x38] sm:$0xff] }
 0x124   : > { %v658_v6 = vpop.f32.mrf.mxu1  ;;  %v3124_v57 = vpack.c.bf16 %v8275_v32, %v8274_v31 }
 0x125   : > { %v11077_v49 = vadd.f32 %v9575_v35, %v667_v61  ;;  %v659_v11 = vadd.f32 %v658_v6, %v10866_v15  ;;  %v9576_v18 = vpop.f32.mrf.mxu0  ;;  %v8276_v61 = vld [vmem:[%s10408_s19 + $0x48] sm:$0xff] }
 0x126   : > { %v9542_v33 = vpop.f32.mrf.mxu1 }
 0x127   : > { %v11080_v55 = vadd.f32 %v926_v4, %v659_v11  ;;  %v670_v10 = vadd.f32 %v9542_v33, %v10872_v44  ;;  %v929_v19 = vpop.f32.mrf.mxu0  ;;  %v8277_v4 = vld [vmem:[%s10408_s19 + $0x50] sm:$0xff]  ;;  %v8278_v33 = vld [vmem:[%s10408_s19 + $0x58] sm:$0xff] }
 0x128   : > { %v661_v26 = vpop.f32.mrf.mxu1  ;;  %v3125_v37 = vpack.c.bf16 %v8277_v4, %v8276_v61  ;;  %v8283_v61 = vld [vmem:[%s10408_s19 + $0x80] sm:$0xff] }
 0x129   : > { %v11083_v38 = vadd.f32 %v9576_v18, %v670_v10  ;;  %v662_v1 = vadd.f32 %v661_v26, %v10876_v20  ;;  %v9579_v29 = vpop.f32.mrf.mxu0  ;;  %9782 = vmatmul.mubr.msk.bf16.gmra.mxu0 %vm264_vm0, %v2538_v42  ;;  %v8281_v26 = vld [vmem:[%s10408_s19 + $0x70] sm:$0xff] }
 0x12a   : > { %v9545_v15 = vpop.f32.mrf.mxu1  ;;  %9748 = vmatmul.mubr.msk.bf16.gmra.mxu1 %vm264_vm0, %v2238_v14  ;;  %9821 = vmatprep.mubr.msk.bf16.mxu0 %vm264_vm0, %v3123_v3  ;;  %v8279_v14 = vld [vmem:[%s10408_s19 + $0x60] sm:$0xff] }
 0x12b   : > { %v11091_v44 = vadd.f32 %v929_v19, %v662_v1  ;;  %v683_v58 = vadd.f32 %v9545_v15, %v10881_v22  ;;  %v942_v35 = vpop.f32.mrf.mxu0  ;;  %9787 = vmatprep.mubr.msk.bf16.mxu1 %vm264_vm0, %v2823_v24  ;;  %v8280_v24 = vld [vmem:[%s10408_s19 + $0x68] sm:$0xff]  ;;  %v3126_v15 = vpack.c.bf16 %v8279_v14, %v8278_v33 }
 0x12c   : > { %v674_v20 = vpop.f32.mrf.mxu1 }
 0x12d   : > { %v11095_v39 = vadd.f32 %v9579_v29, %v683_v58  ;;  %v675_v60 = vadd.f32 %v674_v20, %v10892_v28  ;;  %v9580_v16 = vpop.f32.mrf.mxu0 }
 0x12e   : > { %v9546_v2 = vpop.f32.mrf.mxu1 }
 0x12f   : > { %v11100_v46 = vadd.f32 %v942_v35, %v675_v60  ;;  %v686_v5 = vadd.f32 %v9546_v2, %v10900_v13  ;;  %v945_v22 = vpop.f32.mrf.mxu0  ;;  %v11115_v13 = vld [vmem:[%s13116_s1 + $0x70] sm:$0xff]  }
 0x130   : > { %v677_v6 = vpop.f32.mrf.mxu1 }
 0x131   : > { %v11108_v28 = vadd.f32 %v9580_v16, %v686_v5  ;;  %v678_v11 = vadd.f32 %v677_v6, %v10904_v27  ;;  %v9619_v18 = vpop.f32.mrf.mxu0  ;;  %9822 = vmatmul.mubr.msk.bf16.vlgmr.msra.gmra.mxu0 %vm264_vm0, %v3124_v57  ;;  %v8284_v5 = vld [vmem:[%s10408_s19 + $0x88] sm:$0xff] }
 0x132   : > { %v9585_v42 = vpop.f32.mrf.mxu1  ;;  %9788 = vmatmul.mubr.msk.bf16.vlgmr.msra.gmra.mxu1 %vm264_vm0, %v3123_v3  ;;  %9888 = vmatpush3.bf16.msra.mxu0 %v10915_v56 }
 0x133   : > { %v11121_v10 = vadd.f32 %v945_v22, %v678_v11  ;;  %v1259_v19 = vadd.f32 %v9585_v42, %v10932_v12  ;;  %9854 = vmatpush3.bf16.msra.mxu1 %v10909_v51  ;;  %v1430_v27 = vpop.f32.mrf.mxu0  ;;  %9791 = vmatprep.mubr.msk.bf16.mxu1 %vm264_vm0, %v3124_v57  ;;  %v3127_v12 = vpack.c.bf16 %v8281_v26, %v8280_v24  ;;  %v8282_v57 = vld [vmem:[%s10408_s19 + $0x78] sm:$0xff]  ;;  %v8285_v22 = vld [vmem:[%s10408_s19 + $0x90] sm:$0xff] }
 0x134   : > { %v1130_v1 = vpop.f32.mrf.mxu1  ;;  %9825 = vmatprep.mubr.msk.bf16.mxu0 %vm264_vm0, %v3125_v37  ;;  %9921 = vmatprep.subr.bf16.mxu1 %v11106_v17  ;;  %v3129_v33 = vpack.c.bf16 %v8285_v22, %v8284_v5 }
 0x135   : > { %v11130_v3 = vadd.f32 %v9619_v18, %v1259_v19  ;;  %v1257_v56 = vadd.f32 %v1130_v1, %v10936_v23  ;;  %v9620_v29 = vpop.f32.mrf.mxu0  ;;  %9955 = vmatprep.subr.bf16.mxu0 %v11115_v13  ;;  %v3128_v18 = vpack.c.bf16 %v8283_v61, %v8282_v57 }
 0x136   : > { %v9586_v51 = vpop.f32.mrf.mxu1 }
 0x137   : > { %v11134_v31 = vadd.f32 %v1430_v27, %v1257_v56  ;;  %v1260_v32 = vadd.f32 %v9586_v51, %v10939_v36  ;;  %v1433_v58 = vpop.f32.mrf.mxu0  ;;  %v8286_v56 = vld [vmem:[%s10408_s19 + $0x98] sm:$0xff] }
 0x138   : > { %v1133_v35 = vpop.f32.mrf.mxu1 }
 0x139   : > { %v11137_v20 = vadd.f32 %v9620_v29, %v1260_v32  ;;  %v1258_v23 = vadd.f32 %v1133_v35, %v10948_v47  ;;  %v9623_v60 = vpop.f32.mrf.mxu0  ;;  %9826 = vmatmul.mubr.msk.bf16.gmra.mxu0 %vm264_vm0, %v3126_v15  ;;  %v8287_v29 = vld [vmem:[%s10408_s19 + $0xa0] sm:$0xff]  ;;  %v8288_v32 = vld [vmem:[%s10408_s19 + $0xa8] sm:$0xff] }
 0x13a   : > { %v9589_v16 = vpop.f32.mrf.mxu1  ;;  %9792 = vmatmul.mubr.msk.bf16.gmra.mxu1 %vm264_vm0, %v3125_v37  ;;  %9829 = vmatprep.mubr.msk.bf16.mxu0 %vm264_vm0, %v3127_v12 }
 0x13b   : > { %v11145_v4 = vadd.f32 %v1433_v58, %v1258_v23  ;;  %v1263_v36 = vadd.f32 %v9589_v16, %v10957_v8  ;;  %v1446_v2 = vpop.f32.mrf.mxu0  ;;  %9795 = vmatprep.mubr.msk.bf16.mxu1 %vm264_vm0, %v3126_v15  ;;  %v8289_v58 = vld [vmem:[%s10408_s19 + $0xb0] sm:$0xff] }
 0x13c   : > { %v1146_v47 = vpop.f32.mrf.mxu1  ;;  %v3131_v57 = vpack.c.bf16 %v8289_v58, %v8288_v32 }
 0x13d   : > { %v11151_v6 = vadd.f32 %v9623_v60, %v1263_v36  ;;  %v1261_v11 = vadd.f32 %v1146_v47, %v10960_v43  ;;  %v9624_v37 = vpop.f32.mrf.mxu0  ;;  %v3130_v60 = vpack.c.bf16 %v8287_v29, %v8286_v56 }
 0x13e   : > { %v9590_v42 = vpop.f32.mrf.mxu1 }
 0x13f   : > { %v11154_v14 = vadd.f32 %v1446_v2, %v1261_v11  ;;  %v1264_v8 = vadd.f32 %v9590_v42, %v10963_v53  ;;  %v1449_v19 = vpop.f32.mrf.mxu0  ;;  %v8290_v11 = vld [vmem:[%s10408_s19 + $0xb8] sm:$0xff] }
 0x140   : > { %v1149_v27 = vpop.f32.mrf.mxu1 }
 0x141   : > { %v11157_v24 = vadd.f32 %v9624_v37, %v1264_v8  ;;  %v1262_v26 = vadd.f32 %v1149_v27, %v10972_v30  ;;  %v9627_v1 = vpop.f32.mrf.mxu0  ;;  %9830 = vmatmul.mubr.msk.bf16.gmra.mxu0 %vm264_vm0, %v3128_v18  ;;  %v8291_v37 = vld [vmem:[%s10408_s19 + $0xc0] sm:$0xff]  ;;  %v8292_v8 = vld [vmem:[%s10408_s19 + $0xc8] sm:$0xff] }
 0x142   : > { %v9593_v43 = vpop.f32.mrf.mxu1  ;;  %9796 = vmatmul.mubr.msk.bf16.gmra.mxu1 %vm264_vm0, %v3127_v12  ;;  %9833 = vmatprep.mubr.msk.bf16.mxu0 %vm264_vm0, %v3129_v33 }
 0x143   : > { %v11165_v15 = vadd.f32 %v1449_v19, %v1262_v26  ;;  %v1267_v53 = vadd.f32 %v9593_v43, %v10981_v48  ;;  %v1462_v51 = vpop.f32.mrf.mxu0  ;;  %9799 = vmatprep.mubr.msk.bf16.mxu1 %vm264_vm0, %v3128_v18  ;;  %v8293_v19 = vld [vmem:[%s10408_s19 + $0xd0] sm:$0xff] }
 0x144   : > { %v1162_v30 = vpop.f32.mrf.mxu1  ;;  %v3133_v56 = vpack.c.bf16 %v8293_v19, %v8292_v8 }
 0x145   : > { %v11171_v35 = vadd.f32 %v9627_v1, %v1267_v53  ;;  %v1265_v23 = vadd.f32 %v1162_v30, %v10984_v9  ;;  %v9628_v12 = vpop.f32.mrf.mxu0  ;;  %v3132_v1 = vpack.c.bf16 %v8291_v37, %v8290_v11 }
 0x146   : > { %v9594_v16 = vpop.f32.mrf.mxu1 }
 0x147   : > { %v11174_v61 = vadd.f32 %v1462_v51, %v1265_v23  ;;  %v1268_v48 = vadd.f32 %v9594_v16, %v10987_v50  ;;  %v1465_v36 = vpop.f32.mrf.mxu0  ;;  %v8294_v23 = vld [vmem:[%s10408_s19 + $0xd8] sm:$0xff] }
 0x148   : > { %v1165_v2 = vpop.f32.mrf.mxu1 }
 0x149   : > { %v11177_v5 = vadd.f32 %v9628_v12, %v1268_v48  ;;  %v1266_v22 = vadd.f32 %v1165_v2, %v10996_v54  ;;  %v9631_v47 = vpop.f32.mrf.mxu0  ;;  %9834 = vmatmul.mubr.msk.bf16.gmra.mxu0 %vm264_vm0, %v3130_v60  ;;  %v8295_v12 = vld [vmem:[%s10408_s19 + $0xe0] sm:$0xff]  ;;  %v8296_v48 = vld [vmem:[%s10408_s19 + $0xe8] sm:$0xff] }
 0x14a   : > { %v9597_v9 = vpop.f32.mrf.mxu1  ;;  %9800 = vmatmul.mubr.msk.bf16.gmra.mxu1 %vm264_vm0, %v3129_v33  ;;  %9837 = vmatprep.mubr.msk.bf16.mxu0 %vm264_vm0, %v3131_v57 }
 0x14b   : > { %v11185_v18 = vadd.f32 %v1465_v36, %v1266_v22  ;;  %v1271_v50 = vadd.f32 %v9597_v9, %v11005_v62  ;;  %v1478_v42 = vpop.f32.mrf.mxu0  ;;  %9803 = vmatprep.mubr.msk.bf16.mxu1 %vm264_vm0, %v3130_v60  ;;  %v8297_v36 = vld [vmem:[%s10408_s19 + $0xf0] sm:$0xff] }
 0x14c   : > { %v1178_v54 = vpop.f32.mrf.mxu1  ;;  %v3135_v11 = vpack.c.bf16 %v8297_v36, %v8296_v48 }
 0x14d   : > { %v11191_v27 = vadd.f32 %v9631_v47, %v1271_v50  ;;  %v1269_v26 = vadd.f32 %v1178_v54, %v11008_v40  ;;  %v9632_v33 = vpop.f32.mrf.mxu0  ;;  %v3134_v47 = vpack.c.bf16 %v8295_v12, %v8294_v23 }
 0x14e   : > { %v9598_v43 = vpop.f32.mrf.mxu1 }
 0x14f   : > { %v11194_v29 = vadd.f32 %v1478_v42, %v1269_v26  ;;  %v1272_v62 = vadd.f32 %v9598_v43, %v11011_v52  ;;  %v1481_v53 = vpop.f32.mrf.mxu0  ;;  %v8298_v26 = vld [vmem:[%s10408_s19 + $0xf8] sm:$0xff] }
 0x150   : > { %v1181_v51 = vpop.f32.mrf.mxu1 }
 0x151   : > { %v11197_v32 = vadd.f32 %v9632_v33, %v1272_v62  ;;  %v1270_v58 = vadd.f32 %v1181_v51, %v11020_v7  ;;  %v9635_v30 = vpop.f32.mrf.mxu0  ;;  %9838 = vmatmul.mubr.msk.bf16.gmra.mxu0 %vm264_vm0, %v3132_v1  ;;  %v8299_v33 = vld [vmem:[%s10408_s19 + $0x100] sm:$0xff]  ;;  %v8300_v62 = vld [vmem:[%s10408_s19 + $0x108] sm:$0xff] }
 0x152   : > { %v9601_v40 = vpop.f32.mrf.mxu1  ;;  %9804 = vmatmul.mubr.msk.bf16.gmra.mxu1 %vm264_vm0, %v3131_v57  ;;  %9841 = vmatprep.mubr.msk.bf16.mxu0 %vm264_vm0, %v3133_v56 }
 0x153   : > { %v11205_v60 = vadd.f32 %v1481_v53, %v1270_v58  ;;  %v1275_v52 = vadd.f32 %v9601_v40, %v11029_v0  ;;  %v1494_v16 = vpop.f32.mrf.mxu0  ;;  %9807 = vmatprep.mubr.msk.bf16.mxu1 %vm264_vm0, %v3132_v1  ;;  %v8301_v53 = vld [vmem:[%s10408_s19 + $0x110] sm:$0xff] }
 0x154   : > { %v1194_v7 = vpop.f32.mrf.mxu1  ;;  %v3137_v23 = vpack.c.bf16 %v8301_v53, %v8300_v62 }
 0x155   : > { %v11211_v2 = vadd.f32 %v9635_v30, %v1275_v52  ;;  %v1273_v22 = vadd.f32 %v1194_v7, %v11032_v45  ;;  %v9636_v57 = vpop.f32.mrf.mxu0  ;;  %v3136_v30 = vpack.c.bf16 %v8299_v33, %v8298_v26 }
 0x156   : > { %v9602_v9 = vpop.f32.mrf.mxu1 }
 0x157   : > { %v11214_v37 = vadd.f32 %v1494_v16, %v1273_v22  ;;  %v1276_v0 = vadd.f32 %v9602_v9, %v11035_v21  ;;  %v1497_v50 = vpop.f32.mrf.mxu0  ;;  %v8302_v22 = vld [vmem:[%s10408_s19 + $0x118] sm:$0xff] }
 0x158   : > { %v1197_v42 = vpop.f32.mrf.mxu1 }
 0x159   : > { %v11217_v8 = vadd.f32 %v9636_v57, %v1276_v0  ;;  %v1274_v19 = vadd.f32 %v1197_v42, %v11044_v63  ;;  %v9639_v54 = vpop.f32.mrf.mxu0  ;;  %9842 = vmatmul.mubr.msk.bf16.gmra.mxu0 %vm264_vm0, %v3134_v47  ;;  %v8376_v0 = vld [vmem:[%s10408_s19 + $0x2a] sm:$0xff] }
 0x15a   : > { %v9605_v45 = vpop.f32.mrf.mxu1  ;;  %9808 = vmatmul.mubr.msk.bf16.gmra.mxu1 %vm264_vm0, %v3133_v56  ;;  %9845 = vmatprep.mubr.msk.bf16.mxu0 %vm264_vm0, %v3135_v11  ;;  %v8324_v42 = vld [vmem:[%s10408_s19 + $0x29] sm:$0xff] }
 0x15b   : > { %v11225_v1 = vadd.f32 %v1497_v50, %v1274_v19  ;;  %v1279_v21 = vadd.f32 %v9605_v45, %v11053_v25  ;;  %v1510_v43 = vpop.f32.mrf.mxu0  ;;  %9811 = vmatprep.mubr.msk.bf16.mxu1 %vm264_vm0, %v3134_v47  ;;  %v8325_v19 = vld [vmem:[%s10408_s19 + $0x31] sm:$0xff] }
 0x15c   : > { %v1210_v63 = vpop.f32.mrf.mxu1  ;;  %v3423_v53 = vpack.c.bf16 %v8325_v19, %v8324_v42 }
 0x15d   : > { %v11231_v51 = vadd.f32 %v9639_v54, %v1279_v21  ;;  %v1277_v58 = vadd.f32 %v1210_v63, %v11056_v59  ;;  %v9640_v56 = vpop.f32.mrf.mxu0 }
 0x15e   : > { %v9606_v40 = vpop.f32.mrf.mxu1 }
 0x15f   : > { %v11234_v12 = vadd.f32 %v1510_v43, %v1277_v58  ;;  %v1280_v25 = vadd.f32 %v9606_v40, %v11059_v34  ;;  %v1513_v52 = vpop.f32.mrf.mxu0  ;;  %v8303_v34 = vld [vmem:[%s10408_s19 + $0x120] sm:$0xff] }
 0x160   : > { %v1213_v16 = vpop.f32.mrf.mxu1  ;;  %v3138_v26 = vpack.c.bf16 %v8303_v34, %v8302_v22  ;;  %v8379_v40 = vld [vmem:[%s10408_s19 + $0x42] sm:$0xff]  ;;  %v8329_v22 = vld [vmem:[%s10408_s19 + $0x51] sm:$0xff] }
 0x161   : > { %v11237_v48 = vadd.f32 %v9640_v56, %v1280_v25  ;;  %v1278_v36 = vadd.f32 %v1213_v16, %v11068_v41  ;;  %v9643_v59 = vpop.f32.mrf.mxu0  ;;  %9846 = vmatmul.mubr.msk.bf16.gmra.mxu0 %vm264_vm0, %v3136_v30  ;;  %v8377_v41 = vld [vmem:[%s10408_s19 + $0x32] sm:$0xff] }
 0x162   : > { %v9609_v7 = vpop.f32.mrf.mxu1  ;;  %9812 = vmatmul.mubr.msk.bf16.gmra.mxu1 %vm264_vm0, %v3135_v11  ;;  %9849 = vmatprep.mubr.msk.bf16.mxu0 %vm264_vm0, %v3137_v23  ;;  %v3723_v21 = vpack.c.bf16 %v8377_v41, %v8376_v0  ;;  %v8380_v0 = vld [vmem:[%s10408_s19 + $0x4a] sm:$0xff]  ;;  %v8381_v41 = vld [vmem:[%s10408_s19 + $0x52] sm:$0xff] }
 0x163   : > { %v11245_v57 = vadd.f32 %v1513_v52, %v1278_v36  ;;  %v1283_v47 = vadd.f32 %v9609_v7, %v11077_v49  ;;  %v1526_v9 = vpop.f32.mrf.mxu0  ;;  %9815 = vmatprep.mubr.msk.bf16.mxu1 %vm264_vm0, %v3136_v30  ;;  %v8327_v36 = vld [vmem:[%s10408_s19 + $0x41] sm:$0xff]  ;;  %v8328_v7 = vld [vmem:[%s10408_s19 + $0x49] sm:$0xff] }
 0x164   : > { %v1226_v50 = vpop.f32.mrf.mxu1 }
 0x165   : > { %v11253_v54 = vadd.f32 %v9643_v59, %v1283_v47  ;;  %v1281_v11 = vadd.f32 %v1226_v50, %v11080_v55  ;;  %v9644_v45 = vpop.f32.mrf.mxu0 }
 0x166   : > { %v9610_v33 = vpop.f32.mrf.mxu1 }
 0x167   : > { %v11256_v43 = vadd.f32 %v1526_v9, %v1281_v11  ;;  %v1284_v49 = vadd.f32 %v9610_v33, %v11083_v38  ;;  %v1529_v62 = vpop.f32.mrf.mxu0  ;;  %v8378_v38 = vld [vmem:[%s10408_s19 + $0x3a] sm:$0xff]  ;;  %v3725_v33 = vpack.c.bf16 %v8381_v41, %v8380_v0 }
 0x168   : > { %v1229_v63 = vpop.f32.mrf.mxu1  ;;  %v3724_v9 = vpack.c.bf16 %v8379_v40, %v8378_v38  ;;  %v8331_v40 = vld [vmem:[%s10408_s19 + $0x61] sm:$0xff] }
 0x169   : > { %v11259_v58 = vadd.f32 %v9644_v45, %v1284_v49  ;;  %v1282_v55 = vadd.f32 %v1229_v63, %v11091_v44  ;;  %v9647_v56 = vpop.f32.mrf.mxu0  ;;  %9850 = vmatmul.mubr.msk.bf16.gmra.mxu0 %vm264_vm0, %v3138_v26  ;;  %v8326_v44 = vld [vmem:[%s10408_s19 + $0x39] sm:$0xff]  ;;  %v3425_v45 = vpack.c.bf16 %v8329_v22, %v8328_v7 }
 0x16a   : > { %v9613_v30 = vpop.f32.mrf.mxu1  ;;  %9816 = vmatmul.mubr.msk.bf16.gmra.mxu1 %vm264_vm0, %v3137_v23  ;;  %9889 = vmatprep.mubr.msk.bf16.mxu0 %vm264_vm0, %v3723_v21  ;;  %v3424_v42 = vpack.c.bf16 %v8327_v36, %v8326_v44  ;;  %v8330_v63 = vld [vmem:[%s10408_s19 + $0x59] sm:$0xff]  ;;  %v8332_v36 = vld [vmem:[%s10408_s19 + $0x69] sm:$0xff] }
 0x16b   : > { %v11267_v25 = vadd.f32 %v1529_v62, %v1282_v55  ;;  %v1287_v52 = vadd.f32 %v9613_v30, %v11095_v39  ;;  %v1542_v16 = vpop.f32.mrf.mxu0  ;;  %9855 = vmatprep.mubr.msk.bf16.mxu1 %vm264_vm0, %v3423_v53  ;;  %v8382_v55 = vld [vmem:[%s10408_s19 + $0x5a] sm:$0xff] }
 0x16c   : > { %v1242_v59 = vpop.f32.mrf.mxu1 }
 0x16d   : > { %v11275_v34 = vadd.f32 %v9647_v56, %v1287_v52  ;;  %v1285_v23 = vadd.f32 %v1242_v59, %v11100_v46  ;;  %v9648_v47 = vpop.f32.mrf.mxu0  ;;  %v11286_v46 = vld [vmem:[%s13116_s1 + $0x78] sm:$0xff]   ;;  %v8384_v52 = vld [vmem:[%s10408_s19 + $0x6a] sm:$0xff] }
 0x16e   : > { %v9614_v50 = vpop.f32.mrf.mxu1 }
 0x16f   : > { %v11280_v39 = vadd.f32 %v1542_v16, %v1285_v23  ;;  %v1288_v19 = vadd.f32 %v9614_v50, %v11108_v28  ;;  %v1545_v11 = vpop.f32.mrf.mxu0  ;;  %v11295_v28 = vld [vmem:[%s13116_s1 + $0x80] sm:$0xff]   ;;  %v8385_v16 = vld [vmem:[%s10408_s19 + $0x72] sm:$0xff]  ;;  %v3426_v23 = vpack.c.bf16 %v8331_v40, %v8330_v63  ;;  %v8388_v63 = vld [vmem:[%s10408_s19 + $0x8a] sm:$0xff] }
 0x170   : > { %v1245_v26 = vpop.f32.mrf.mxu1 }
 0x171   : > { %v11288_v21 = vadd.f32 %v9648_v47, %v1288_v19  ;;  %v1286_v49 = vadd.f32 %v1245_v26, %v11121_v10  ;;  %v9687_v62 = vpop.f32.mrf.mxu0  ;;  %9890 = vmatmul.mubr.msk.bf16.vlgmr.msra.gmra.mxu0 %vm264_vm0, %v3724_v9  ;;  %v8383_v10 = vld [vmem:[%s10408_s19 + $0x62] sm:$0xff]  ;;  %v3727_v47 = vpack.c.bf16 %v8385_v16, %v8384_v52  ;;  %v8386_v26 = vld [vmem:[%s10408_s19 + $0x7a] sm:$0xff] }
 0x172   : > { %v9653_v53 = vpop.f32.mrf.mxu1  ;;  %9856 = vmatmul.mubr.msk.bf16.vlgmr.msra.gmra.mxu1 %vm264_vm0, %v3424_v42  ;;  %9956 = vmatpush3.bf16.msra.mxu0 %v11115_v13  ;;  %v8333_v13 = vld [vmem:[%s10408_s19 + $0x71] sm:$0xff]  ;;  %v3726_v22 = vpack.c.bf16 %v8383_v10, %v8382_v55 }
 0x173   : > { %v11302_v56 = vadd.f32 %v1545_v11, %v1286_v49  ;;  %v1859_v30 = vadd.f32 %v9653_v53, %v11130_v3  ;;  %9922 = vmatpush3.bf16.msra.mxu1 %v11106_v17  ;;  %v2030_v38 = vpop.f32.mrf.mxu0  ;;  %9859 = vmatprep.mubr.msk.bf16.mxu1 %vm264_vm0, %v3425_v45  ;;  %v3427_v50 = vpack.c.bf16 %v8333_v13, %v8332_v36  ;;  %v8389_v55 = vld [vmem:[%s10408_s19 + $0x92] sm:$0xff] }
 0x174   : > { %v1730_v44 = vpop.f32.mrf.mxu1  ;;  %9893 = vmatprep.mubr.msk.bf16.mxu0 %vm264_vm0, %v3725_v33  ;;  %9989 = vmatprep.subr.bf16.mxu1 %v11286_v46  ;;  %v8387_v33 = vld [vmem:[%s10408_s19 + $0x82] sm:$0xff] }
 0x175   : > { %v11314_v59 = vadd.f32 %v9687_v62, %v1859_v30  ;;  %v1857_v7 = vadd.f32 %v1730_v44, %v11134_v31  ;;  %v9688_v3 = vpop.f32.mrf.mxu0  ;;  %10023 = vmatprep.subr.bf16.mxu0 %v11295_v28  ;;  %v8336_v30 = vld [vmem:[%s10408_s19 + $0x89] sm:$0xff]  ;;  %v3728_v44 = vpack.c.bf16 %v8387_v33, %v8386_v26  ;;  %v8393_v26 = vld [vmem:[%s10408_s19 + $0xb2] sm:$0xff] }
 0x176   : > { %v9654_v17 = vpop.f32.mrf.mxu1 }
 0x177   : > { %v11318_v9 = vadd.f32 %v2030_v38, %v1857_v7  ;;  %v1860_v0 = vadd.f32 %v9654_v17, %v11137_v20  ;;  %v2033_v41 = vpop.f32.mrf.mxu0  ;;  %v8334_v20 = vld [vmem:[%s10408_s19 + $0x79] sm:$0xff]  ;;  %v8337_v38 = vld [vmem:[%s10408_s19 + $0x91] sm:$0xff] }
 0x178   : > { %v1733_v42 = vpop.f32.mrf.mxu1  ;;  %v3429_v17 = vpack.c.bf16 %v8337_v38, %v8336_v30 }
 0x179   : > { %v11321_v31 = vadd.f32 %v9688_v3, %v1860_v0  ;;  %v1858_v19 = vadd.f32 %v1733_v42, %v11145_v4  ;;  %v9691_v11 = vpop.f32.mrf.mxu0  ;;  %9894 = vmatmul.mubr.msk.bf16.gmra.mxu0 %vm264_vm0, %v3726_v22  ;;  %v8335_v4 = vld [vmem:[%s10408_s19 + $0x81] sm:$0xff] }
 0x17a   : > { %v9657_v45 = vpop.f32.mrf.mxu1  ;;  %9860 = vmatmul.mubr.msk.bf16.gmra.mxu1 %vm264_vm0, %v3426_v23  ;;  %9897 = vmatprep.mubr.msk.bf16.mxu0 %vm264_vm0, %v3727_v47  ;;  %v3428_v13 = vpack.c.bf16 %v8335_v4, %v8334_v20  ;;  %v8391_v42 = vld [vmem:[%s10408_s19 + $0xa2] sm:$0xff]  ;;  %v8392_v20 = vld [vmem:[%s10408_s19 + $0xaa] sm:$0xff] }
 0x17b   : > { %v11330_v49 = vadd.f32 %v2033_v41, %v1858_v19  ;;  %v1863_v62 = vadd.f32 %v9657_v45, %v11151_v6  ;;  %v2046_v53 = vpop.f32.mrf.mxu0  ;;  %9863 = vmatprep.mubr.msk.bf16.mxu1 %vm264_vm0, %v3427_v50  ;;  %v3729_v6 = vpack.c.bf16 %v8389_v55, %v8388_v63  ;;  %v8390_v50 = vld [vmem:[%s10408_s19 + $0x9a] sm:$0xff] }
 0x17c   : > { %v1746_v10 = vpop.f32.mrf.mxu1 }
 0x17d   : > { %v11339_v40 = vadd.f32 %v9691_v11, %v1863_v62  ;;  %v1861_v52 = vadd.f32 %v1746_v10, %v11154_v14  ;;  %v9692_v16 = vpop.f32.mrf.mxu0  ;;  %v8340_v62 = vld [vmem:[%s10408_s19 + $0xa9] sm:$0xff]  ;;  %v3730_v10 = vpack.c.bf16 %v8391_v42, %v8390_v50  ;;  %v8397_v50 = vld [vmem:[%s10408_s19 + $0xd2] sm:$0xff] }
 0x17e   : > { %v9658_v36 = vpop.f32.mrf.mxu1 }
 0x17f   : > { %v11342_v7 = vadd.f32 %v2046_v53, %v1861_v52  ;;  %v1864_v3 = vadd.f32 %v9658_v36, %v11157_v24  ;;  %v2049_v22 = vpop.f32.mrf.mxu0  ;;  %v8338_v24 = vld [vmem:[%s10408_s19 + $0x99] sm:$0xff]  ;;  %v8341_v53 = vld [vmem:[%s10408_s19 + $0xb1] sm:$0xff] }
 0x180   : > { %v1749_v23 = vpop.f32.mrf.mxu1  ;;  %v3431_v36 = vpack.c.bf16 %v8341_v53, %v8340_v62 }
 0x181   : > { %v11345_v47 = vadd.f32 %v9692_v16, %v1864_v3  ;;  %v1862_v14 = vadd.f32 %v1749_v23, %v11165_v15  ;;  %v9695_v0 = vpop.f32.mrf.mxu0  ;;  %9898 = vmatmul.mubr.msk.bf16.gmra.mxu0 %vm264_vm0, %v3728_v44  ;;  %v8339_v15 = vld [vmem:[%s10408_s19 + $0xa1] sm:$0xff] }
 0x182   : > { %v9661_v41 = vpop.f32.mrf.mxu1  ;;  %9864 = vmatmul.mubr.msk.bf16.gmra.mxu1 %vm264_vm0, %v3428_v13  ;;  %9901 = vmatprep.mubr.msk.bf16.mxu0 %vm264_vm0, %v3729_v6  ;;  %v3430_v38 = vpack.c.bf16 %v8339_v15, %v8338_v24  ;;  %v8395_v23 = vld [vmem:[%s10408_s19 + $0xc2] sm:$0xff]  ;;  %v8396_v24 = vld [vmem:[%s10408_s19 + $0xca] sm:$0xff] }
 0x183   : > { %v11354_v19 = vadd.f32 %v2049_v22, %v1862_v14  ;;  %v1867_v11 = vadd.f32 %v9661_v41, %v11171_v35  ;;  %v2062_v45 = vpop.f32.mrf.mxu0  ;;  %9867 = vmatprep.mubr.msk.bf16.mxu1 %vm264_vm0, %v3429_v17  ;;  %v3731_v35 = vpack.c.bf16 %v8393_v26, %v8392_v20  ;;  %v8394_v17 = vld [vmem:[%s10408_s19 + $0xba] sm:$0xff] }
 0x184   : > { %v1762_v33 = vpop.f32.mrf.mxu1 }
 0x185   : > { %v11363_v4 = vadd.f32 %v9695_v0, %v1867_v11  ;;  %v1865_v63 = vadd.f32 %v1762_v33, %v11174_v61  ;;  %v9696_v55 = vpop.f32.mrf.mxu0  ;;  %v8344_v11 = vld [vmem:[%s10408_s19 + $0xc9] sm:$0xff]  ;;  %v3732_v33 = vpack.c.bf16 %v8395_v23, %v8394_v17  ;;  %v8401_v17 = vld [vmem:[%s10408_s19 + $0xf2] sm:$0xff] }
 0x186   : > { %v9662_v30 = vpop.f32.mrf.mxu1 }
 0x187   : > { %v11366_v52 = vadd.f32 %v2062_v45, %v1865_v63  ;;  %v1868_v16 = vadd.f32 %v9662_v30, %v11177_v5  ;;  %v2065_v44 = vpop.f32.mrf.mxu0  ;;  %v8342_v5 = vld [vmem:[%s10408_s19 + $0xb9] sm:$0xff]  ;;  %v8345_v45 = vld [vmem:[%s10408_s19 + $0xd1] sm:$0xff] }
 0x188   : > { %v1765_v13 = vpop.f32.mrf.mxu1  ;;  %v3433_v30 = vpack.c.bf16 %v8345_v45, %v8344_v11 }
 0x189   : > { %v11369_v6 = vadd.f32 %v9696_v55, %v1868_v16  ;;  %v1866_v61 = vadd.f32 %v1765_v13, %v11185_v18  ;;  %v9699_v3 = vpop.f32.mrf.mxu0  ;;  %9902 = vmatmul.mubr.msk.bf16.gmra.mxu0 %vm264_vm0, %v3730_v10  ;;  %v8343_v18 = vld [vmem:[%s10408_s19 + $0xc1] sm:$0xff] }
 0x18a   : > { %v9665_v22 = vpop.f32.mrf.mxu1  ;;  %9868 = vmatmul.mubr.msk.bf16.gmra.mxu1 %vm264_vm0, %v3430_v38  ;;  %9905 = vmatprep.mubr.msk.bf16.mxu0 %vm264_vm0, %v3731_v35  ;;  %v3432_v53 = vpack.c.bf16 %v8343_v18, %v8342_v5  ;;  %v8399_v13 = vld [vmem:[%s10408_s19 + $0xe2] sm:$0xff]  ;;  %v8400_v5 = vld [vmem:[%s10408_s19 + $0xea] sm:$0xff] }
 0x18b   : > { %v11378_v14 = vadd.f32 %v2065_v44, %v1866_v61  ;;  %v1871_v0 = vadd.f32 %v9665_v22, %v11191_v27  ;;  %v2078_v41 = vpop.f32.mrf.mxu0  ;;  %9871 = vmatprep.mubr.msk.bf16.mxu1 %vm264_vm0, %v3431_v36  ;;  %v3733_v27 = vpack.c.bf16 %v8397_v50, %v8396_v24  ;;  %v8398_v36 = vld [vmem:[%s10408_s19 + $0xda] sm:$0xff] }
 0x18c   : > { %v1778_v42 = vpop.f32.mrf.mxu1 }
 0x18d   : > { %v11387_v15 = vadd.f32 %v9699_v3, %v1871_v0  ;;  %v1869_v20 = vadd.f32 %v1778_v42, %v11194_v29  ;;  %v9700_v26 = vpop.f32.mrf.mxu0  ;;  %v8348_v0 = vld [vmem:[%s10408_s19 + $0xe9] sm:$0xff]  ;;  %v3734_v42 = vpack.c.bf16 %v8399_v13, %v8398_v36  ;;  %v8405_v36 = vld [vmem:[%s10408_s19 + $0x112] sm:$0xff] }
 0x18e   : > { %v9666_v62 = vpop.f32.mrf.mxu1 }
 0x18f   : > { %v11390_v63 = vadd.f32 %v2078_v41, %v1869_v20  ;;  %v1872_v55 = vadd.f32 %v9666_v62, %v11197_v32  ;;  %v2081_v10 = vpop.f32.mrf.mxu0  ;;  %v8346_v32 = vld [vmem:[%s10408_s19 + $0xd9] sm:$0xff]  ;;  %v8349_v41 = vld [vmem:[%s10408_s19 + $0xf1] sm:$0xff] }
 0x190   : > { %v1781_v38 = vpop.f32.mrf.mxu1  ;;  %v3435_v62 = vpack.c.bf16 %v8349_v41, %v8348_v0 }
 0x191   : > { %v11393_v35 = vadd.f32 %v9700_v26, %v1872_v55  ;;  %v1870_v29 = vadd.f32 %v1781_v38, %v11205_v60  ;;  %v9703_v16 = vpop.f32.mrf.mxu0  ;;  %9906 = vmatmul.mubr.msk.bf16.gmra.mxu0 %vm264_vm0, %v3732_v33  ;;  %v8347_v60 = vld [vmem:[%s10408_s19 + $0xe1] sm:$0xff] }
 0x192   : > { %v9669_v44 = vpop.f32.mrf.mxu1  ;;  %9872 = vmatmul.mubr.msk.bf16.gmra.mxu1 %vm264_vm0, %v3432_v53  ;;  %9909 = vmatprep.mubr.msk.bf16.mxu0 %vm264_vm0, %v3733_v27  ;;  %v3434_v45 = vpack.c.bf16 %v8347_v60, %v8346_v32  ;;  %v8403_v38 = vld [vmem:[%s10408_s19 + $0x102] sm:$0xff]  ;;  %v8404_v32 = vld [vmem:[%s10408_s19 + $0x10a] sm:$0xff] }
 0x193   : > { %v11402_v61 = vadd.f32 %v2081_v10, %v1870_v29  ;;  %v1875_v3 = vadd.f32 %v9669_v44, %v11211_v2  ;;  %v2094_v22 = vpop.f32.mrf.mxu0  ;;  %9875 = vmatprep.mubr.msk.bf16.mxu1 %vm264_vm0, %v3433_v30  ;;  %v3735_v2 = vpack.c.bf16 %v8401_v17, %v8400_v5  ;;  %v8402_v30 = vld [vmem:[%s10408_s19 + $0xfa] sm:$0xff] }
 0x194   : > { %v1794_v23 = vpop.f32.mrf.mxu1 }
 0x195   : > { %v11411_v18 = vadd.f32 %v9703_v16, %v1875_v3  ;;  %v1873_v24 = vadd.f32 %v1794_v23, %v11214_v37  ;;  %v9704_v50 = vpop.f32.mrf.mxu0  ;;  %v8352_v3 = vld [vmem:[%s10408_s19 + $0x109] sm:$0xff]  ;;  %v3736_v23 = vpack.c.bf16 %v8403_v38, %v8402_v30  ;;  %v8481_v30 = vld [vmem:[%s10408_s19 + $0x34] sm:$0xff] }
 0x196   : > { %v9670_v11 = vpop.f32.mrf.mxu1 }
 0x197   : > { %v11414_v20 = vadd.f32 %v2094_v22, %v1873_v24  ;;  %v1876_v26 = vadd.f32 %v9670_v11, %v11217_v8  ;;  %v2097_v33 = vpop.f32.mrf.mxu0  ;;  %v8350_v8 = vld [vmem:[%s10408_s19 + $0xf9] sm:$0xff]  ;;  %v8353_v22 = vld [vmem:[%s10408_s19 + $0x111] sm:$0xff] }
 0x198   : > { %v1797_v53 = vpop.f32.mrf.mxu1  ;;  %v3437_v11 = vpack.c.bf16 %v8353_v22, %v8352_v3 }
 0x199   : > { %v11417_v27 = vadd.f32 %v9704_v50, %v1876_v26  ;;  %v1874_v37 = vadd.f32 %v1797_v53, %v11225_v1  ;;  %v9707_v55 = vpop.f32.mrf.mxu0  ;;  %9910 = vmatmul.mubr.msk.bf16.gmra.mxu0 %vm264_vm0, %v3734_v42  ;;  %v8351_v1 = vld [vmem:[%s10408_s19 + $0x101] sm:$0xff] }
 0x19a   : > { %v9673_v10 = vpop.f32.mrf.mxu1  ;;  %9876 = vmatmul.mubr.msk.bf16.gmra.mxu1 %vm264_vm0, %v3434_v45  ;;  %9913 = vmatprep.mubr.msk.bf16.mxu0 %vm264_vm0, %v3735_v2  ;;  %v3436_v41 = vpack.c.bf16 %v8351_v1, %v8350_v8  ;;  %v8407_v53 = vld [vmem:[%s10408_s19 + $0x122] sm:$0xff]  ;;  %v8480_v8 = vld [vmem:[%s10408_s19 + $0x2c] sm:$0xff] }
 0x19b   : > { %v11426_v29 = vadd.f32 %v2097_v33, %v1874_v37  ;;  %v1879_v16 = vadd.f32 %v9673_v10, %v11231_v51  ;;  %v2110_v44 = vpop.f32.mrf.mxu0  ;;  %9879 = vmatprep.mubr.msk.bf16.mxu1 %vm264_vm0, %v3435_v62  ;;  %v3737_v51 = vpack.c.bf16 %v8405_v36, %v8404_v32  ;;  %v8406_v62 = vld [vmem:[%s10408_s19 + $0x11a] sm:$0xff] }
 0x19c   : > { %v1810_v13 = vpop.f32.mrf.mxu1 }
 0x19d   : > { %v11435_v60 = vadd.f32 %v9707_v55, %v1879_v16  ;;  %v1877_v5 = vadd.f32 %v1810_v13, %v11234_v12  ;;  %v9708_v17 = vpop.f32.mrf.mxu0  ;;  %v8428_v16 = vld [vmem:[%s10408_s19 + $0x2b] sm:$0xff]  ;;  %v3738_v13 = vpack.c.bf16 %v8407_v53, %v8406_v62  ;;  %v8433_v53 = vld [vmem:[%s10408_s19 + $0x53] sm:$0xff] }
 0x19e   : > { %v9674_v0 = vpop.f32.mrf.mxu1  ;;  %v8432_v62 = vld [vmem:[%s10408_s19 + $0x4b] sm:$0xff] }
 0x19f   : > { %v11438_v24 = vadd.f32 %v2110_v44, %v1877_v5  ;;  %v1880_v50 = vadd.f32 %v9674_v0, %v11237_v48  ;;  %v2113_v42 = vpop.f32.mrf.mxu0  ;;  %v8354_v48 = vld [vmem:[%s10408_s19 + $0x119] sm:$0xff] }
 0x1a0   : > { %v1813_v45 = vpop.f32.mrf.mxu1  ;;  %v8429_v44 = vld [vmem:[%s10408_s19 + $0x33] sm:$0xff] }
 0x1a1   : > { %v11441_v2 = vadd.f32 %v9708_v17, %v1880_v50  ;;  %v1878_v12 = vadd.f32 %v1813_v45, %v11245_v57  ;;  %v9711_v26 = vpop.f32.mrf.mxu0  ;;  %9914 = vmatmul.mubr.msk.bf16.gmra.mxu0 %vm264_vm0, %v3736_v23  ;;  %v8355_v57 = vld [vmem:[%s10408_s19 + $0x121] sm:$0xff]  ;;  %v4023_v0 = vpack.c.bf16 %v8429_v44, %v8428_v16 }
 0x1a2   : > { %v9677_v33 = vpop.f32.mrf.mxu1  ;;  %9880 = vmatmul.mubr.msk.bf16.gmra.mxu1 %vm264_vm0, %v3436_v41  ;;  %9917 = vmatprep.mubr.msk.bf16.mxu0 %vm264_vm0, %v3737_v51  ;;  %v3438_v22 = vpack.c.bf16 %v8355_v57, %v8354_v48 }
 0x1a3   : > { %v11450_v37 = vadd.f32 %v2113_v42, %v1878_v12  ;;  %v1883_v55 = vadd.f32 %v9677_v33, %v11253_v54  ;;  %v2126_v10 = vpop.f32.mrf.mxu0  ;;  %9883 = vmatprep.mubr.msk.bf16.mxu1 %vm264_vm0, %v3437_v11  ;;  %v4323_v54 = vpack.c.bf16 %v8481_v30, %v8480_v8  ;;  %v8483_v11 = vld [vmem:[%s10408_s19 + $0x44] sm:$0xff]  ;;  %v8484_v30 = vld [vmem:[%s10408_s19 + $0x4c] sm:$0xff] }
 0x1a4   : > { %v1826_v38 = vpop.f32.mrf.mxu1  ;;  %v8431_v33 = vld [vmem:[%s10408_s19 + $0x43] sm:$0xff] }
 0x1a5   : > { %v11459_v1 = vadd.f32 %v9711_v26, %v1883_v55  ;;  %v1881_v32 = vadd.f32 %v1826_v38, %v11256_v43  ;;  %v9712_v36 = vpop.f32.mrf.mxu0  ;;  %v8485_v38 = vld [vmem:[%s10408_s19 + $0x54] sm:$0xff] }
 0x1a6   : > { %v9678_v3 = vpop.f32.mrf.mxu1 }
 0x1a7   : > { %v11462_v5 = vadd.f32 %v2126_v10, %v1881_v32  ;;  %v1884_v17 = vadd.f32 %v9678_v3, %v11259_v58  ;;  %v2129_v23 = vpop.f32.mrf.mxu0  ;;  %v8482_v58 = vld [vmem:[%s10408_s19 + $0x3c] sm:$0xff] }
 0x1a8   : > { %v1829_v41 = vpop.f32.mrf.mxu1  ;;  %v11484_v8 = vpack.c.bf16 %v8483_v11, %v8482_v58  ;;  %v8435_v11 = vld [vmem:[%s10408_s19 + $0x63] sm:$0xff] }
 0x1a9   : > { %v11465_v51 = vadd.f32 %v9712_v36, %v1884_v17  ;;  %v1882_v43 = vadd.f32 %v1829_v41, %v11267_v25  ;;  %v9715_v50 = vpop.f32.mrf.mxu0  ;;  %9918 = vmatmul.mubr.msk.bf16.gmra.mxu0 %vm264_vm0, %v3738_v13  ;;  %v8430_v25 = vld [vmem:[%s10408_s19 + $0x3b] sm:$0xff]  ;;  %v4025_v13 = vpack.c.bf16 %v8433_v53, %v8432_v62 }
 0x1aa   : > { %v9681_v42 = vpop.f32.mrf.mxu1  ;;  %9884 = vmatmul.mubr.msk.bf16.gmra.mxu1 %vm264_vm0, %v3438_v22  ;;  %9957 = vmatprep.mubr.msk.bf16.mxu0 %vm264_vm0, %v4323_v54  ;;  %v4024_v44 = vpack.c.bf16 %v8431_v33, %v8430_v25  ;;  %v11491_v22 = vpack.c.bf16 %v8485_v38, %v8484_v30  ;;  %v8434_v41 = vld [vmem:[%s10408_s19 + $0x5b] sm:$0xff]  ;;  %v8437_v33 = vld [vmem:[%s10408_s19 + $0x73] sm:$0xff] }
 0x1ab   : > { %v11473_v45 = vadd.f32 %v2129_v23, %v1882_v43  ;;  %v1887_v12 = vadd.f32 %v9681_v42, %v11275_v34  ;;  %v2142_v26 = vpop.f32.mrf.mxu0  ;;  %9923 = vmatprep.mubr.msk.bf16.mxu1 %vm264_vm0, %v4023_v0  ;;  %v8487_v43 = vld [vmem:[%s10408_s19 + $0x64] sm:$0xff] }
 0x1ac   : > { %v1842_v48 = vpop.f32.mrf.mxu1 }
 0x1ad   : > { %v11481_v55 = vadd.f32 %v9715_v50, %v1887_v12  ;;  %v1885_v10 = vadd.f32 %v1842_v48, %v11280_v39  ;;  %v9716_v57 = vpop.f32.mrf.mxu0  ;;  %v11496_v39 = vld [vmem:[%s13116_s1 + $0x88] sm:$0xff]  }
 0x1ae   : > { %v9682_v16 = vpop.f32.mrf.mxu1  ;;  %v8488_v12 = vld [vmem:[%s10408_s19 + $0x6c] sm:$0xff] }
 0x1af   : > { %v11488_v34 = vadd.f32 %v2142_v26, %v1885_v10  ;;  %v1888_v32 = vadd.f32 %v9682_v16, %v11288_v21  ;;  %v2145_v36 = vpop.f32.mrf.mxu0  ;;  %v11506_v21 = vld [vmem:[%s13116_s1 + $0x90] sm:$0xff]   ;;  %v4026_v10 = vpack.c.bf16 %v8435_v11, %v8434_v41 }
 0x1b0   : > { %v1845_v3 = vpop.f32.mrf.mxu1  ;;  %v8489_v26 = vld [vmem:[%s10408_s19 + $0x74] sm:$0xff]  ;;  %v8440_v11 = vld [vmem:[%s10408_s19 + $0x8b] sm:$0xff] }
 0x1b1   : > { %v11498_v54 = vadd.f32 %v9716_v57, %v1888_v32  ;;  %v1886_v17 = vadd.f32 %v1845_v3, %v11302_v56  ;;  %v9755_v23 = vpop.f32.mrf.mxu0  ;;  %9958 = vmatmul.mubr.msk.bf16.vlgmr.msra.gmra.mxu0 %vm264_vm0, %v11484_v8  ;;  %v8486_v56 = vld [vmem:[%s10408_s19 + $0x5c] sm:$0xff]  ;;  %v11532_v57 = vpack.c.bf16 %v8489_v26, %v8488_v12  ;;  %v8441_v12 = vld [vmem:[%s10408_s19 + $0x93] sm:$0xff] }
 0x1b2   : > { %v9721_v0 = vpop.f32.mrf.mxu1  ;;  %9924 = vmatmul.mubr.msk.bf16.vlgmr.msra.gmra.mxu1 %vm264_vm0, %v4024_v44  ;;  %10024 = vmatpush3.bf16.msra.mxu0 %v11295_v28  ;;  %v8436_v28 = vld [vmem:[%s10408_s19 + $0x6b] sm:$0xff] }
 0x1b3   : > { %v11513_v50 = vadd.f32 %v2145_v36, %v1886_v17  ;;  %v2459_v42 = vadd.f32 %v9721_v0, %v11314_v59  ;;  %9990 = vmatpush3.bf16.msra.mxu1 %v11286_v46  ;;  %v2630_v58 = vpop.f32.mrf.mxu0  ;;  %9927 = vmatprep.mubr.msk.bf16.mxu1 %vm264_vm0, %v4025_v13  ;;  %v11529_v46 = vpack.c.bf16 %v8487_v43, %v8486_v56  ;;  %v8490_v17 = vld [vmem:[%s10408_s19 + $0x7c] sm:$0xff]  ;;  %v8492_v43 = vld [vmem:[%s10408_s19 + $0x8c] sm:$0xff] }
 0x1b4   : > { %v2330_v25 = vpop.f32.mrf.mxu1  ;;  %9961 = vmatprep.mubr.msk.bf16.mxu0 %vm264_vm0, %v11491_v22  ;;  %10057 = vmatprep.subr.bf16.mxu1 %v11496_v39  ;;  %v4027_v44 = vpack.c.bf16 %v8437_v33, %v8436_v28  ;;  %v8439_v56 = vld [vmem:[%s10408_s19 + $0x83] sm:$0xff] }
 0x1b5   : > { %v11526_v48 = vadd.f32 %v9755_v23, %v2459_v42  ;;  %v2457_v59 = vadd.f32 %v2330_v25, %v11318_v9  ;;  %v9756_v62 = vpop.f32.mrf.mxu0  ;;  %10091 = vmatprep.subr.bf16.mxu0 %v11506_v21  ;;  %v8491_v23 = vld [vmem:[%s10408_s19 + $0x84] sm:$0xff]  ;;  %v8493_v42 = vld [vmem:[%s10408_s19 + $0x94] sm:$0xff] }
 0x1b6   : > { %v9722_v53 = vpop.f32.mrf.mxu1  ;;  %v11560_v33 = vpack.c.bf16 %v8491_v23, %v8490_v17 }
 0x1b7   : > { %v11534_v30 = vadd.f32 %v2630_v58, %v2457_v59  ;;  %v2460_v38 = vadd.f32 %v9722_v53, %v11321_v31  ;;  %v2633_v16 = vpop.f32.mrf.mxu0  ;;  %v8438_v31 = vld [vmem:[%s10408_s19 + $0x7b] sm:$0xff] }
 0x1b8   : > { %v2333_v9 = vpop.f32.mrf.mxu1 }
 0x1b9   : > { %v11537_v32 = vadd.f32 %v9756_v62, %v2460_v38  ;;  %v2458_v36 = vadd.f32 %v2333_v9, %v11330_v49  ;;  %v9759_v13 = vpop.f32.mrf.mxu0  ;;  %9962 = vmatmul.mubr.msk.bf16.gmra.mxu0 %vm264_vm0, %v11529_v46  ;;  %v11562_v62 = vpack.c.bf16 %v8493_v42, %v8492_v43  ;;  %v8444_v42 = vld [vmem:[%s10408_s19 + $0xab] sm:$0xff] }
 0x1ba   : > { %v9725_v3 = vpop.f32.mrf.mxu1  ;;  %9928 = vmatmul.mubr.msk.bf16.gmra.mxu1 %vm264_vm0, %v4026_v10  ;;  %9965 = vmatprep.mubr.msk.bf16.mxu0 %vm264_vm0, %v11532_v57 }
 0x1bb   : > { %v11548_v0 = vadd.f32 %v2633_v16, %v2458_v36  ;;  %v2463_v41 = vadd.f32 %v9725_v3, %v11339_v40  ;;  %v2646_v49 = vpop.f32.mrf.mxu0  ;;  %9931 = vmatprep.mubr.msk.bf16.mxu1 %vm264_vm0, %v4027_v44  ;;  %v4028_v40 = vpack.c.bf16 %v8439_v56, %v8438_v31  ;;  %v4029_v16 = vpack.c.bf16 %v8441_v12, %v8440_v11  ;;  %v8494_v3 = vld [vmem:[%s10408_s19 + $0x9c] sm:$0xff]  ;;  %v8495_v31 = vld [vmem:[%s10408_s19 + $0xa4] sm:$0xff]  ;;  %v8497_v56 = vld [vmem:[%s10408_s19 + $0xb4] sm:$0xff] }
 0x1bc   : > { %v2346_v58 = vpop.f32.mrf.mxu1 }
 0x1bd   : > { %v11557_v26 = vadd.f32 %v9759_v13, %v2463_v41  ;;  %v2461_v25 = vadd.f32 %v2346_v58, %v11342_v7  ;;  %v9760_v28 = vpop.f32.mrf.mxu0  ;;  %v8443_v41 = vld [vmem:[%s10408_s19 + $0xa3] sm:$0xff]  ;;  %v8445_v58 = vld [vmem:[%s10408_s19 + $0xb3] sm:$0xff] }
 0x1be   : > { %v9726_v59 = vpop.f32.mrf.mxu1 }
 0x1bf   : > { %v11564_v53 = vadd.f32 %v2646_v49, %v2461_v25  ;;  %v2464_v10 = vadd.f32 %v9726_v59, %v11345_v47  ;;  %v2649_v38 = vpop.f32.mrf.mxu0  ;;  %v8442_v47 = vld [vmem:[%s10408_s19 + $0x9b] sm:$0xff]  ;;  %v8496_v49 = vld [vmem:[%s10408_s19 + $0xac] sm:$0xff] }
 0x1c0   : > { %v2349_v44 = vpop.f32.mrf.mxu1 }
 0x1c1   : > { %v11567_v7 = vadd.f32 %v9760_v28, %v2464_v10  ;;  %v2462_v9 = vadd.f32 %v2349_v44, %v11354_v19  ;;  %v9763_v36 = vpop.f32.mrf.mxu0  ;;  %9966 = vmatmul.mubr.msk.bf16.gmra.mxu0 %vm264_vm0, %v11560_v33  ;;  %v11590_v28 = vpack.c.bf16 %v8495_v31, %v8494_v3  ;;  %v4031_v44 = vpack.c.bf16 %v8445_v58, %v8444_v42  ;;  %v8498_v3 = vld [vmem:[%s10408_s19 + $0xbc] sm:$0xff]  ;;  %v8499_v31 = vld [vmem:[%s10408_s19 + $0xc4] sm:$0xff]  ;;  %v8449_v58 = vld [vmem:[%s10408_s19 + $0xd3] sm:$0xff] }
 0x1c2   : > { %v9729_v13 = vpop.f32.mrf.mxu1  ;;  %9932 = vmatmul.mubr.msk.bf16.gmra.mxu1 %vm264_vm0, %v4028_v40  ;;  %9969 = vmatprep.mubr.msk.bf16.mxu0 %vm264_vm0, %v11562_v62  ;;  %v11592_v40 = vpack.c.bf16 %v8497_v56, %v8496_v49  ;;  %v8500_v49 = vld [vmem:[%s10408_s19 + $0xcc] sm:$0xff]  ;;  %v8501_v56 = vld [vmem:[%s10408_s19 + $0xd4] sm:$0xff] }
 0x1c3   : > { %v11578_v17 = vadd.f32 %v2649_v38, %v2462_v9  ;;  %v2467_v23 = vadd.f32 %v9729_v13, %v11363_v4  ;;  %v2662_v19 = vpop.f32.mrf.mxu0  ;;  %9935 = vmatprep.mubr.msk.bf16.mxu1 %vm264_vm0, %v4029_v16  ;;  %v4030_v4 = vpack.c.bf16 %v8443_v41, %v8442_v47  ;;  %v8447_v41 = vld [vmem:[%s10408_s19 + $0xc3] sm:$0xff]  ;;  %v8448_v42 = vld [vmem:[%s10408_s19 + $0xcb] sm:$0xff] }
 0x1c4   : > { %v2362_v43 = vpop.f32.mrf.mxu1 }
 0x1c5   : > { %v11587_v11 = vadd.f32 %v9763_v36, %v2467_v23  ;;  %v2465_v12 = vadd.f32 %v2362_v43, %v11366_v52  ;;  %v9764_v25 = vpop.f32.mrf.mxu0 }
 0x1c6   : > { %v9730_v59 = vpop.f32.mrf.mxu1 }
 0x1c7   : > { %v11594_v10 = vadd.f32 %v2662_v19, %v2465_v12  ;;  %v2468_v38 = vadd.f32 %v9730_v59, %v11369_v6  ;;  %v2665_v16 = vpop.f32.mrf.mxu0  ;;  %v8446_v6 = vld [vmem:[%s10408_s19 + $0xbb] sm:$0xff] }
 0x1c8   : > { %v2365_v9 = vpop.f32.mrf.mxu1 }
 0x1c9   : > { %v11597_v52 = vadd.f32 %v9764_v25, %v2468_v38  ;;  %v2466_v36 = vadd.f32 %v2365_v9, %v11378_v14  ;;  %v9767_v13 = vpop.f32.mrf.mxu0  ;;  %9970 = vmatmul.mubr.msk.bf16.gmra.mxu0 %vm264_vm0, %v11590_v28 }
 0x1ca   : > { %v9733_v47 = vpop.f32.mrf.mxu1  ;;  %9936 = vmatmul.mubr.msk.bf16.gmra.mxu1 %vm264_vm0, %v4030_v4  ;;  %9973 = vmatprep.mubr.msk.bf16.mxu0 %vm264_vm0, %v11592_v40  ;;  %v11620_v4 = vpack.c.bf16 %v8499_v31, %v8498_v3 }
 0x1cb   : > { %v11608_v23 = vadd.f32 %v2665_v16, %v2466_v36  ;;  %v2471_v19 = vadd.f32 %v9733_v47, %v11387_v15  ;;  %v2678_v14 = vpop.f32.mrf.mxu0  ;;  %9939 = vmatprep.mubr.msk.bf16.mxu1 %vm264_vm0, %v4031_v44  ;;  %v4032_v15 = vpack.c.bf16 %v8447_v41, %v8446_v6  ;;  %v11622_v16 = vpack.c.bf16 %v8501_v56, %v8500_v49  ;;  %v8451_v56 = vld [vmem:[%s10408_s19 + $0xe3] sm:$0xff] }
 0x1cc   : > { %v2378_v43 = vpop.f32.mrf.mxu1  ;;  %v4033_v47 = vpack.c.bf16 %v8449_v58, %v8448_v42  ;;  %v8505_v42 = vld [vmem:[%s10408_s19 + $0xf4] sm:$0xff] }
 0x1cd   : > { %v11617_v12 = vadd.f32 %v9767_v13, %v2471_v19  ;;  %v2469_v25 = vadd.f32 %v2378_v43, %v11390_v63  ;;  %v9768_v59 = vpop.f32.mrf.mxu0  ;;  %13122 = vst [vmem:[#allocation2_spill] sm:$0xff] %v11622_v16  ;;  %v8502_v19 = vld [vmem:[%s10408_s19 + $0xdc] sm:$0xff]  ;;  %v8504_v43 = vld [vmem:[%s10408_s19 + $0xec] sm:$0xff] }
 0x1ce   : > { %v9734_v38 = vpop.f32.mrf.mxu1 }
 0x1cf   : > { %v11624_v44 = vadd.f32 %v2678_v14, %v2469_v25  ;;  %v2472_v9 = vadd.f32 %v9734_v38, %v11393_v35  ;;  %v2681_v36 = vpop.f32.mrf.mxu0  ;;  %v8450_v35 = vld [vmem:[%s10408_s19 + $0xdb] sm:$0xff]  ;;  %v8503_v14 = vld [vmem:[%s10408_s19 + $0xe4] sm:$0xff] }
 0x1d0   : > { %v2381_v13 = vpop.f32.mrf.mxu1  ;;  %v8452_v25 = vld [vmem:[%s10408_s19 + $0xeb] sm:$0xff] }
 0x1d1   : > { %v11627_v63 = vadd.f32 %v9768_v59, %v2472_v9  ;;  %v2470_v3 = vadd.f32 %v2381_v13, %v11402_v61  ;;  %v9771_v31 = vpop.f32.mrf.mxu0  ;;  %9974 = vmatmul.mubr.msk.bf16.gmra.mxu0 %vm264_vm0, %v11620_v4  ;;  %v8453_v59 = vld [vmem:[%s10408_s19 + $0xf3] sm:$0xff]  ;;  %v11650_v13 = vpack.c.bf16 %v8503_v14, %v8502_v19 }
 0x1d2   : > { %v9737_v6 = vpop.f32.mrf.mxu1  ;;  %9940 = vmatmul.mubr.msk.bf16.gmra.mxu1 %vm264_vm0, %v4032_v15  ;;  %9977 = vmatprep.mubr.msk.bf16.mxu0 %vm264_vm0, %v11622_v16 }
 0x1d3   : > { %v11638_v41 = vadd.f32 %v2681_v36, %v2470_v3  ;;  %v2475_v49 = vadd.f32 %v9737_v6, %v11411_v18  ;;  %v2694_v61 = vpop.f32.mrf.mxu0  ;;  %9943 = vmatprep.mubr.msk.bf16.mxu1 %vm264_vm0, %v4033_v47  ;;  %v4034_v18 = vpack.c.bf16 %v8451_v56, %v8450_v35  ;;  %v11652_v3 = vpack.c.bf16 %v8505_v42, %v8504_v43  ;;  %v8455_v42 = vld [vmem:[%s10408_s19 + $0x103] sm:$0xff] }
 0x1d4   : > { %v2394_v58 = vpop.f32.mrf.mxu1 }
 0x1d5   : > { %13123 = vst [vmem:[#allocation3_spill] sm:$0xff] %v11638_v41  ;;  %v11647_v38 = vadd.f32 %v9771_v31, %v2475_v49  ;;  %v2473_v15 = vadd.f32 %v2394_v58, %v11414_v20  ;;  %v9772_v9 = vpop.f32.mrf.mxu0  ;;  %13124 = vst [vmem:[#allocation4_spill] sm:$0xff] %v11652_v3  ;;  %v4035_v41 = vpack.c.bf16 %v8453_v59, %v8452_v25  ;;  %v8506_v49 = vld [vmem:[%s10408_s19 + $0xfc] sm:$0xff]  ;;  %v8508_v58 = vld [vmem:[%s10408_s19 + $0x10c] sm:$0xff] }
 0x1d6   : > { %v9738_v36 = vpop.f32.mrf.mxu1  ;;  %v8509_v25 = vld [vmem:[%s10408_s19 + $0x114] sm:$0xff] }
 0x1d7   : > { %v11654_v47 = vadd.f32 %v2694_v61, %v2473_v15  ;;  %v2476_v6 = vadd.f32 %v9738_v36, %v11417_v27  ;;  %v2697_v16 = vpop.f32.mrf.mxu0  ;;  %v8454_v27 = vld [vmem:[%s10408_s19 + $0xfb] sm:$0xff]  ;;  %v8507_v61 = vld [vmem:[%s10408_s19 + $0x104] sm:$0xff] }
 0x1d8   : > { %v2397_v31 = vpop.f32.mrf.mxu1  ;;  %v8456_v15 = vld [vmem:[%s10408_s19 + $0x10b] sm:$0xff] }
 0x1d9   : > { %v11657_v20 = vadd.f32 %v9772_v9, %v2476_v6  ;;  %v2474_v19 = vadd.f32 %v2397_v31, %v11426_v29  ;;  %v9775_v14 = vpop.f32.mrf.mxu0  ;;  %9978 = vmatmul.mubr.msk.bf16.gmra.mxu0 %vm264_vm0, %v11650_v13  ;;  %v8457_v9 = vld [vmem:[%s10408_s19 + $0x113] sm:$0xff]  ;;  %v11680_v31 = vpack.c.bf16 %v8507_v61, %v8506_v49 }
 0x1da   : > { %v9741_v35 = vpop.f32.mrf.mxu1  ;;  %9944 = vmatmul.mubr.msk.bf16.gmra.mxu1 %vm264_vm0, %v4034_v18  ;;  %9981 = vmatprep.mubr.msk.bf16.mxu0 %vm264_vm0, %v11652_v3 }
 0x1db   : > { %v11668_v56 = vadd.f32 %v2697_v16, %v2474_v19  ;;  %v2479_v43 = vadd.f32 %v9741_v35, %v11435_v60  ;;  %v2710_v29 = vpop.f32.mrf.mxu0  ;;  %9947 = vmatprep.mubr.msk.bf16.mxu1 %vm264_vm0, %v4035_v41  ;;  %v4036_v60 = vpack.c.bf16 %v8455_v42, %v8454_v27  ;;  %v11682_v19 = vpack.c.bf16 %v8509_v25, %v8508_v58 }
 0x1dc   : > { %v2410_v59 = vpop.f32.mrf.mxu1 }
 0x1dd   : > { %13125 = vst [vmem:[#allocation5_spill] sm:$0xff] %v11668_v56  ;;  %v11677_v36 = vadd.f32 %v9775_v14, %v2479_v43  ;;  %v2477_v18 = vadd.f32 %v2410_v59, %v11438_v24  ;;  %v9776_v6 = vpop.f32.mrf.mxu0  ;;  %13126 = vst [vmem:[#allocation6_spill] sm:$0xff] %v11682_v19  ;;  %v4037_v56 = vpack.c.bf16 %v8457_v9, %v8456_v15  ;;  %v8510_v43 = vld [vmem:[%s10408_s19 + $0x11c] sm:$0xff]  ;;  %v8585_v15 = vld [vmem:[%s10408_s19 + $0x45] sm:$0xff] }
 0x1de   : > { %v9742_v16 = vpop.f32.mrf.mxu1  ;;  %v8584_v59 = vld [vmem:[%s10408_s19 + $0x3d] sm:$0xff] }
 0x1df   : > { %v11684_v41 = vadd.f32 %v2710_v29, %v2477_v18  ;;  %v2480_v35 = vadd.f32 %v9742_v16, %v11441_v2  ;;  %v2713_v3 = vpop.f32.mrf.mxu0  ;;  %v8458_v2 = vld [vmem:[%s10408_s19 + $0x11b] sm:$0xff]  ;;  %v8511_v29 = vld [vmem:[%s10408_s19 + $0x124] sm:$0xff] }
 0x1e0   : > { %v2413_v14 = vpop.f32.mrf.mxu1 }
 0x1e1   : > { %v11687_v24 = vadd.f32 %v9776_v6, %v2480_v35  ;;  %v2478_v49 = vadd.f32 %v2413_v14, %v11450_v37  ;;  %v9779_v61 = vpop.f32.mrf.mxu0  ;;  %9982 = vmatmul.mubr.msk.bf16.gmra.mxu0 %vm264_vm0, %v11680_v31  ;;  %v8459_v37 = vld [vmem:[%s10408_s19 + $0x123] sm:$0xff]  ;;  %v4923_v14 = vpack.c.bf16 %v8585_v15, %v8584_v59 }
 0x1e2   : > { %v9745_v27 = vpop.f32.mrf.mxu1  ;;  %9948 = vmatmul.mubr.msk.bf16.gmra.mxu1 %vm264_vm0, %v4036_v60  ;;  %9985 = vmatprep.mubr.msk.bf16.mxu0 %vm264_vm0, %v11682_v19  ;;  %v11708_v60 = vpack.c.bf16 %v8511_v29, %v8510_v43  ;;  %v4038_v35 = vpack.c.bf16 %v8459_v37, %v8458_v2  ;;  %v8586_v2 = vld [vmem:[%s10408_s19 + $0x4d] sm:$0xff]  ;;  %v8587_v43 = vld [vmem:[%s10408_s19 + $0x55] sm:$0xff] }
 0x1e3   : > { %v11698_v42 = vadd.f32 %v2713_v3, %v2478_v49  ;;  %v2483_v58 = vadd.f32 %v9745_v27, %v11459_v1  ;;  %v2726_v25 = vpop.f32.mrf.mxu0  ;;  %9951 = vmatprep.mubr.msk.bf16.mxu1 %vm264_vm0, %v4037_v56 }
 0x1e4   : > { %v2426_v9 = vpop.f32.mrf.mxu1 }
 0x1e5   : > { %v11705_v18 = vadd.f32 %v9779_v61, %v2483_v58  ;;  %v2481_v6 = vadd.f32 %v2426_v9, %v11462_v5  ;;  %v9780_v16 = vpop.f32.mrf.mxu0  ;;  %v4924_v9 = vpack.c.bf16 %v8587_v43, %v8586_v2  ;;  %v8591_v2 = vld [vmem:[%s10408_s19 + $0x75] sm:$0xff] }
 0x1e6   : > { %v9746_v3 = vpop.f32.mrf.mxu1 }
 0x1e7   : > { %v11710_v1 = vadd.f32 %v2726_v25, %v2481_v6  ;;  %v2484_v56 = vadd.f32 %v9746_v3, %v11465_v51  ;;  %v2729_v49 = vpop.f32.mrf.mxu0  ;;  %v8588_v6 = vld [vmem:[%s10408_s19 + $0x5d] sm:$0xff] }
 0x1e8   : > { %v2429_v27 = vpop.f32.mrf.mxu1 }
 0x1e9   : > { %v11713_v19 = vadd.f32 %v9780_v16, %v2484_v56  ;;  %v2482_v61 = vadd.f32 %v2429_v27, %v11473_v45  ;;  %v9783_v58 = vpop.f32.mrf.mxu0  ;;  %9986 = vmatmul.mubr.msk.bf16.gmra.mxu0 %vm264_vm0, %v11708_v60  ;;  %v8589_v16 = vld [vmem:[%s10408_s19 + $0x65] sm:$0xff] }
 0x1ea   : > { %v9749_v5 = vpop.f32.mrf.mxu1  ;;  %9952 = vmatmul.mubr.msk.bf16.gmra.mxu1 %vm264_vm0, %v4038_v35  ;;  %10025 = vmatprep.mubr.msk.bf16.mxu0 %vm264_vm0, %v4923_v14 }
 0x1eb   : > { %v11722_v51 = vadd.f32 %v2729_v49, %v2482_v61  ;;  %v2487_v29 = vadd.f32 %v9749_v5, %v11481_v55  ;;  %v2742_v25 = vpop.f32.mrf.mxu0  ;;  %9991 = vmatprep.mubr.msk.bf16.mxu1 %vm264_vm0, %v11484_v8  ;;  %v4925_v49 = vpack.c.bf16 %v8589_v16, %v8588_v6  ;;  %v11738_v8 = vld [vmem:[%s13116_s1 + $0x98] sm:$0xff]   ;;  %v8590_v5 = vld [vmem:[%s10408_s19 + $0x6d] sm:$0xff] }
 0x1ec   : > { %v2442_v45 = vpop.f32.mrf.mxu1 }
 0x1ed   : > { %v11727_v37 = vadd.f32 %v9783_v58, %v2487_v29  ;;  %v2485_v59 = vadd.f32 %v2442_v45, %v11488_v34  ;;  %v9784_v15 = vpop.f32.mrf.mxu0  ;;  %v8593_v45 = vld [vmem:[%s10408_s19 + $0x85] sm:$0xff] }
 0x1ee   : > { %v9750_v3 = vpop.f32.mrf.mxu1 }
 0x1ef   : > { %v11732_v35 = vadd.f32 %v2742_v25, %v2485_v59  ;;  %v2488_v55 = vadd.f32 %v9750_v3, %v11498_v54  ;;  %v2745_v14 = vpop.f32.mrf.mxu0  ;;  %v11747_v54 = vld [vmem:[%s13116_s1 + $0xa0] sm:$0xff]  }
 0x1f0   : > { %v2445_v56 = vpop.f32.mrf.mxu1  ;;  %v8592_v25 = vld [vmem:[%s10408_s19 + $0x7d] sm:$0xff] }
 0x1f1   : > { %v11740_v34 = vadd.f32 %v9784_v15, %v2488_v55  ;;  %v2486_v27 = vadd.f32 %v2445_v56, %v11513_v50  ;;  %v9823_v61 = vpop.f32.mrf.mxu0  ;;  %10026 = vmatmul.mubr.msk.bf16.vlgmr.msra.gmra.mxu0 %vm264_vm0, %v4924_v9  ;;  %v4927_v9 = vpack.c.bf16 %v8593_v45, %v8592_v25 }
 0x1f2   : > { %v9789_v58 = vpop.f32.mrf.mxu1  ;;  %9992 = vmatmul.mubr.msk.bf16.vlgmr.msra.gmra.mxu1 %vm264_vm0, %v11491_v22  ;;  %10092 = vmatpush3.bf16.msra.mxu0 %v11506_v21 }
 0x1f3   : > { %v11754_v43 = vadd.f32 %v2745_v14, %v2486_v27  ;;  %v3059_v50 = vadd.f32 %v9789_v58, %v11526_v48  ;;  %10058 = vmatpush3.bf16.msra.mxu1 %v11496_v39  ;;  %v3230_v29 = vpop.f32.mrf.mxu0  ;;  %9995 = vmatprep.mubr.msk.bf16.mxu1 %vm264_vm0, %v11529_v46  ;;  %v4926_v48 = vpack.c.bf16 %v8591_v2, %v8590_v5  ;;  %v8595_v27 = vld [vmem:[%s10408_s19 + $0x95] sm:$0xff]  ;;  %v8597_v5 = vld [vmem:[%s10408_s19 + $0xa5] sm:$0xff] }
 0x1f4   : > { %v2930_v59 = vpop.f32.mrf.mxu1  ;;  %10029 = vmatprep.mubr.msk.bf16.mxu0 %vm264_vm0, %v4925_v49  ;;  %10125 = vmatprep.subr.bf16.mxu1 %v11738_v8  ;;  %v8594_v49 = vld [vmem:[%s10408_s19 + $0x8d] sm:$0xff] }
 0x1f5   : > { %v11764_v22 = vadd.f32 %v9823_v61, %v3059_v50  ;;  %v3057_v21 = vadd.f32 %v2930_v59, %v11534_v30  ;;  %v9824_v15 = vpop.f32.mrf.mxu0  ;;  %10159 = vmatprep.subr.bf16.mxu0 %v11747_v54  ;;  %v4928_v25 = vpack.c.bf16 %v8595_v27, %v8594_v49 }
 0x1f6   : > { %v9790_v39 = vpop.f32.mrf.mxu1 }
 0x1f7   : > { %v11768_v46 = vadd.f32 %v3230_v29, %v3057_v21  ;;  %v3060_v6 = vadd.f32 %v9790_v39, %v11537_v32  ;;  %v3233_v16 = vpop.f32.mrf.mxu0 }
 0x1f8   : > { %v2933_v3 = vpop.f32.mrf.mxu1 }
 0x1f9   : > { %v11771_v55 = vadd.f32 %v9824_v15, %v3060_v6  ;;  %v3058_v30 = vadd.f32 %v2933_v3, %v11548_v0  ;;  %v9827_v14 = vpop.f32.mrf.mxu0  ;;  %10030 = vmatmul.mubr.msk.bf16.gmra.mxu0 %vm264_vm0, %v4926_v48  ;;  %v8596_v0 = vld [vmem:[%s10408_s19 + $0x9d] sm:$0xff]  ;;  %v8598_v6 = vld [vmem:[%s10408_s19 + $0xad] sm:$0xff] }
 0x1fa   : > { %v9793_v56 = vpop.f32.mrf.mxu1  ;;  %9996 = vmatmul.mubr.msk.bf16.gmra.mxu1 %vm264_vm0, %v11532_v57  ;;  %10033 = vmatprep.mubr.msk.bf16.mxu0 %vm264_vm0, %v4927_v9  ;;  %v4929_v59 = vpack.c.bf16 %v8597_v5, %v8596_v0 }
 0x1fb   : > { %v11780_v32 = vadd.f32 %v3233_v16, %v3058_v30  ;;  %v3063_v61 = vadd.f32 %v9793_v56, %v11557_v26  ;;  %v3246_v58 = vpop.f32.mrf.mxu0  ;;  %9999 = vmatprep.mubr.msk.bf16.mxu1 %vm264_vm0, %v11560_v33  ;;  %v8599_v16 = vld [vmem:[%s10408_s19 + $0xb5] sm:$0xff] }
 0x1fc   : > { %v2946_v2 = vpop.f32.mrf.mxu1 }
 0x1fd   : > { %v11787_v50 = vadd.f32 %v9827_v14, %v3063_v61  ;;  %v3061_v29 = vadd.f32 %v2946_v2, %v11564_v53  ;;  %v9828_v57 = vpop.f32.mrf.mxu0  ;;  %v8601_v14 = vld [vmem:[%s10408_s19 + $0xc5] sm:$0xff]  ;;  %v4930_v61 = vpack.c.bf16 %v8599_v16, %v8598_v6 }
 0x1fe   : > { %v9794_v45 = vpop.f32.mrf.mxu1 }
 0x1ff   : > { %v11790_v21 = vadd.f32 %v3246_v58, %v3061_v29  ;;  %v3064_v26 = vadd.f32 %v9794_v45, %v11567_v7  ;;  %v3249_v15 = vpop.f32.mrf.mxu0  ;;  %v8602_v45 = vld [vmem:[%s10408_s19 + $0xcd] sm:$0xff] }
 0x200   : > { %v2949_v33 = vpop.f32.mrf.mxu1 }
 0x201   : > { %v11793_v48 = vadd.f32 %v9828_v57, %v3064_v26  ;;  %v3062_v39 = vadd.f32 %v2949_v33, %v11578_v17  ;;  %v9831_v9 = vpop.f32.mrf.mxu0  ;;  %10034 = vmatmul.mubr.msk.bf16.gmra.mxu0 %vm264_vm0, %v4928_v25  ;;  %v8600_v17 = vld [vmem:[%s10408_s19 + $0xbd] sm:$0xff]  ;;  %v8605_v33 = vld [vmem:[%s10408_s19 + $0xe5] sm:$0xff] }
 0x202   : > { %v9797_v53 = vpop.f32.mrf.mxu1  ;;  %10000 = vmatmul.mubr.msk.bf16.gmra.mxu1 %vm264_vm0, %v11562_v62  ;;  %10037 = vmatprep.mubr.msk.bf16.mxu0 %vm264_vm0, %v4929_v59  ;;  %v4931_v0 = vpack.c.bf16 %v8601_v14, %v8600_v17  ;;  %v8603_v59 = vld [vmem:[%s10408_s19 + $0xd5] sm:$0xff] }
 0x203   : > { %v11802_v7 = vadd.f32 %v3249_v15, %v3062_v39  ;;  %v3067_v3 = vadd.f32 %v9797_v53, %v11587_v11  ;;  %v3262_v30 = vpop.f32.mrf.mxu0  ;;  %10003 = vmatprep.mubr.msk.bf16.mxu1 %vm264_vm0, %v11590_v28  ;;  %v4932_v6 = vpack.c.bf16 %v8603_v59, %v8602_v45 }
 0x204   : > { %v2962_v56 = vpop.f32.mrf.mxu1 }
 0x205   : > { %v11809_v49 = vadd.f32 %v9831_v9, %v3067_v3  ;;  %v3065_v27 = vadd.f32 %v2962_v56, %v11594_v10  ;;  %v9832_v62 = vpop.f32.mrf.mxu0  ;;  %v13127_v56 = vld [vmem:[#allocation3_spill] sm:$0xff] }
 0x206   : > { %v9798_v58 = vpop.f32.mrf.mxu1 }
 0x207   : > { %v11812_v5 = vadd.f32 %v3262_v30, %v3065_v27  ;;  %v3068_v11 = vadd.f32 %v9798_v58, %v11597_v52  ;;  %v3265_v2 = vpop.f32.mrf.mxu0  ;;  %v8606_v58 = vld [vmem:[%s10408_s19 + $0xed] sm:$0xff] }
 0x208   : > { %v2965_v28 = vpop.f32.mrf.mxu1 }
 0x209   : > { %v11815_v29 = vadd.f32 %v9832_v62, %v3068_v11  ;;  %v3066_v57 = vadd.f32 %v2965_v28, %v11608_v23  ;;  %v9835_v25 = vpop.f32.mrf.mxu0  ;;  %10038 = vmatmul.mubr.msk.bf16.gmra.mxu0 %vm264_vm0, %v4930_v61  ;;  %v8604_v23 = vld [vmem:[%s10408_s19 + $0xdd] sm:$0xff] }
 0x20a   : > { %v9801_v10 = vpop.f32.mrf.mxu1  ;;  %10004 = vmatmul.mubr.msk.bf16.gmra.mxu1 %vm264_vm0, %v11592_v40  ;;  %10041 = vmatprep.mubr.msk.bf16.mxu0 %vm264_vm0, %v4931_v0  ;;  %v4933_v3 = vpack.c.bf16 %v8605_v33, %v8604_v23  ;;  %v13128_v61 = vld [vmem:[#allocation2_spill] sm:$0xff]  ;;  %v8607_v0 = vld [vmem:[%s10408_s19 + $0xf5] sm:$0xff] }
 0x20b   : > { %v11824_v52 = vadd.f32 %v3265_v2, %v3066_v57  ;;  %v3071_v26 = vadd.f32 %v9801_v10, %v11617_v12  ;;  %v3278_v15 = vpop.f32.mrf.mxu0  ;;  %10007 = vmatprep.mubr.msk.bf16.mxu1 %vm264_vm0, %v11620_v4  ;;  %v8608_v28 = vld [vmem:[%s10408_s19 + $0xfd] sm:$0xff]  ;;  %v8609_v57 = vld [vmem:[%s10408_s19 + $0x105] sm:$0xff] }
 0x20c   : > { %v2978_v39 = vpop.f32.mrf.mxu1  ;;  %v4935_v23 = vpack.c.bf16 %v8609_v57, %v8608_v28 }
 0x20d   : > { %v11831_v9 = vadd.f32 %v9835_v25, %v3071_v26  ;;  %v3069_v53 = vadd.f32 %v2978_v39, %v11624_v44  ;;  %v9836_v40 = vpop.f32.mrf.mxu0  ;;  %v4934_v26 = vpack.c.bf16 %v8607_v0, %v8606_v58 }
 0x20e   : > { %v9802_v16 = vpop.f32.mrf.mxu1 }
 0x20f   : > { %v11834_v30 = vadd.f32 %v3278_v15, %v3069_v53  ;;  %v3072_v12 = vadd.f32 %v9802_v16, %v11627_v63  ;;  %v3281_v17 = vpop.f32.mrf.mxu0 }
 0x210   : > { %v2981_v4 = vpop.f32.mrf.mxu1 }
 0x211   : > { %v11837_v14 = vadd.f32 %v9836_v40, %v3072_v12  ;;  %v3070_v27 = vadd.f32 %v2981_v4, %v13127_v56  ;;  %v9839_v62 = vpop.f32.mrf.mxu0  ;;  %10042 = vmatmul.mubr.msk.bf16.gmra.mxu0 %vm264_vm0, %v4932_v6  ;;  %v13129_v40 = vld [vmem:[#allocation5_spill] sm:$0xff]  ;;  %v8610_v12 = vld [vmem:[%s10408_s19 + $0x10d] sm:$0xff] }
 0x212   : > { %v9805_v44 = vpop.f32.mrf.mxu1  ;;  %10008 = vmatmul.mubr.msk.bf16.gmra.mxu1 %vm264_vm0, %v13128_v61  ;;  %10045 = vmatprep.mubr.msk.bf16.mxu0 %vm264_vm0, %v4933_v3  ;;  %v13130_v3 = vld [vmem:[#allocation4_spill] sm:$0xff] }
 0x213   : > { %v11846_v63 = vadd.f32 %v3281_v17, %v3070_v27  ;;  %v3075_v11 = vadd.f32 %v9805_v44, %v11647_v38  ;;  %v3294_v2 = vpop.f32.mrf.mxu0  ;;  %10011 = vmatprep.mubr.msk.bf16.mxu1 %vm264_vm0, %v11650_v13  ;;  %v8611_v17 = vld [vmem:[%s10408_s19 + $0x115] sm:$0xff]  ;;  %v8612_v27 = vld [vmem:[%s10408_s19 + $0x11d] sm:$0xff] }
 0x214   : > { %v2994_v25 = vpop.f32.mrf.mxu1 }
 0x215   : > { %v11853_v10 = vadd.f32 %v9839_v62, %v3075_v11  ;;  %v3073_v45 = vadd.f32 %v2994_v25, %v11654_v47  ;;  %v9840_v59 = vpop.f32.mrf.mxu0  ;;  %v8613_v62 = vld [vmem:[%s10408_s19 + $0x125] sm:$0xff]  ;;  %v4936_v11 = vpack.c.bf16 %v8611_v17, %v8610_v12 }
 0x216   : > { %v9806_v15 = vpop.f32.mrf.mxu1  ;;  %v4937_v28 = vpack.c.bf16 %v8613_v62, %v8612_v27  ;;  %v8637_v12 = vld [vmem:[%s10408_s19 + $0x46] sm:$0xff] }
 0x217   : > { %v11856_v33 = vadd.f32 %v3294_v2, %v3073_v45  ;;  %v3076_v38 = vadd.f32 %v9806_v15, %v11657_v20  ;;  %v3297_v39 = vpop.f32.mrf.mxu0  ;;  %v13131_v15 = vld [vmem:[#allocation6_spill] sm:$0xff] }
 0x218   : > { %v2997_v13 = vpop.f32.mrf.mxu1 }
 0x219   : > { %v11859_v53 = vadd.f32 %v9840_v59, %v3076_v38  ;;  %v3074_v6 = vadd.f32 %v2997_v13, %v13129_v40  ;;  %v9843_v16 = vpop.f32.mrf.mxu0  ;;  %10046 = vmatmul.mubr.msk.bf16.gmra.mxu0 %vm264_vm0, %v4934_v26  ;;  %v8615_v38 = vld [vmem:[%s10408_s19 + $0x135] sm:$0xff] }
 0x21a   : > { %v9809_v47 = vpop.f32.mrf.mxu1  ;;  %10012 = vmatmul.mubr.msk.bf16.gmra.mxu1 %vm264_vm0, %v13130_v3  ;;  %10049 = vmatprep.mubr.msk.bf16.mxu0 %vm264_vm0, %v4935_v23  ;;  %v8614_v23 = vld [vmem:[%s10408_s19 + $0x12d] sm:$0xff]  ;;  %v8636_v3 = vld [vmem:[%s10408_s19 + $0x3e] sm:$0xff] }
 0x21b   : > { %v11868_v20 = vadd.f32 %v3297_v39, %v3074_v6  ;;  %v3079_v4 = vadd.f32 %v9809_v47, %v11677_v36  ;;  %v3310_v56 = vpop.f32.mrf.mxu0  ;;  %10015 = vmatprep.mubr.msk.bf16.mxu1 %vm264_vm0, %v11680_v31  ;;  %v8688_v6 = vld [vmem:[%s10408_s19 + $0x3f] sm:$0xff]  ;;  %v4938_v27 = vpack.c.bf16 %v8615_v38, %v8614_v23 }
 0x21c   : > { %v3010_v44 = vpop.f32.mrf.mxu1  ;;  %v8640_v23 = vld [vmem:[%s10408_s19 + $0x5e] sm:$0xff]  ;;  %v8641_v38 = vld [vmem:[%s10408_s19 + $0x66] sm:$0xff] }
 0x21d   : > { %v11875_v61 = vadd.f32 %v9843_v16, %v3079_v4  ;;  %v3077_v58 = vadd.f32 %v3010_v44, %v11684_v41  ;;  %v9844_v0 = vpop.f32.mrf.mxu0  ;;  %v8689_v16 = vld [vmem:[%s10408_s19 + $0x47] sm:$0xff] }
 0x21e   : > { %v9810_v2 = vpop.f32.mrf.mxu1  ;;  %v5523_v44 = vpack.c.bf16 %v8689_v16, %v8688_v6  ;;  %v8692_v16 = vld [vmem:[%s10408_s19 + $0x5f] sm:$0xff] }
 0x21f   : > { %v11878_v57 = vadd.f32 %v3310_v56, %v3077_v58  ;;  %v3080_v36 = vadd.f32 %v9810_v2, %v11687_v24  ;;  %v3313_v25 = vpop.f32.mrf.mxu0  ;;  %v8562_v24 = vld [vmem:[%s10408_s19 + $0x12c] sm:$0xff] }
 0x220   : > { %v3013_v31 = vpop.f32.mrf.mxu1 }
 0x221   : > { %v11881_v45 = vadd.f32 %v9844_v0, %v3080_v36  ;;  %v3078_v41 = vadd.f32 %v3013_v31, %v11698_v42  ;;  %v9847_v59 = vpop.f32.mrf.mxu0  ;;  %10050 = vmatmul.mubr.msk.bf16.gmra.mxu0 %vm264_vm0, %v4936_v11  ;;  %v8563_v42 = vld [vmem:[%s10408_s19 + $0x134] sm:$0xff]  ;;  %v5223_v11 = vpack.c.bf16 %v8637_v12, %v8636_v3 }
 0x222   : > { %v9813_v26 = vpop.f32.mrf.mxu1  ;;  %10016 = vmatmul.mubr.msk.bf16.gmra.mxu1 %vm264_vm0, %v13131_v15  ;;  %10053 = vmatprep.mubr.msk.bf16.mxu0 %vm264_vm0, %v4937_v28  ;;  %v8691_v31 = vld [vmem:[%s10408_s19 + $0x57] sm:$0xff] }
 0x223   : > { %v11891_v39 = vadd.f32 %v3313_v25, %v3078_v41  ;;  %v3083_v13 = vadd.f32 %v9813_v26, %v11705_v18  ;;  %v3326_v40 = vpop.f32.mrf.mxu0  ;;  %10019 = vmatprep.mubr.msk.bf16.mxu1 %vm264_vm0, %v11708_v60  ;;  %v4638_v18 = vpack.c.bf16 %v8563_v42, %v8562_v24  ;;  %v8639_v15 = vld [vmem:[%s10408_s19 + $0x56] sm:$0xff] }
 0x224   : > { %v3026_v47 = vpop.f32.mrf.mxu1 }
 0x225   : > { %v11901_v17 = vadd.f32 %v9847_v59, %v3083_v13  ;;  %v3081_v4 = vadd.f32 %v3026_v47, %v11710_v1  ;;  %v9848_v56 = vpop.f32.mrf.mxu0  ;;  %v8693_v47 = vld [vmem:[%s10408_s19 + $0x67] sm:$0xff] }
 0x226   : > { %v9814_v62 = vpop.f32.mrf.mxu1 }
 0x227   : > { %v11904_v58 = vadd.f32 %v3326_v40, %v3081_v4  ;;  %v3084_v60 = vadd.f32 %v9814_v62, %v11713_v19  ;;  %v3329_v0 = vpop.f32.mrf.mxu0  ;;  %v8690_v19 = vld [vmem:[%s10408_s19 + $0x4f] sm:$0xff] }
 0x228   : > { %v3029_v2 = vpop.f32.mrf.mxu1  ;;  %v5524_v6 = vpack.c.bf16 %v8691_v31, %v8690_v19  ;;  %v8643_v31 = vld [vmem:[%s10408_s19 + $0x76] sm:$0xff] }
 0x229   : > { %v11907_v28 = vadd.f32 %v9848_v56, %v3084_v60  ;;  %v3082_v1 = vadd.f32 %v3029_v2, %v11722_v51  ;;  %v9851_v36 = vpop.f32.mrf.mxu0  ;;  %10054 = vmatmul.mubr.msk.bf16.gmra.mxu0 %vm264_vm0, %v4938_v27  ;;  %v8638_v51 = vld [vmem:[%s10408_s19 + $0x4e] sm:$0xff]  ;;  %v5225_v27 = vpack.c.bf16 %v8641_v38, %v8640_v23 }
 0x22a   : > { %v9817_v25 = vpop.f32.mrf.mxu1  ;;  %10020 = vmatmul.mubr.msk.bf16.gmra.mxu1 %vm264_vm0, %v4638_v18  ;;  %10093 = vmatprep.mubr.msk.bf16.mxu0 %vm264_vm0, %v5523_v44  ;;  %v5224_v12 = vpack.c.bf16 %v8639_v15, %v8638_v51  ;;  %v5525_v18 = vpack.c.bf16 %v8693_v47, %v8692_v16  ;;  %v8642_v2 = vld [vmem:[%s10408_s19 + $0x6e] sm:$0xff]  ;;  %v8644_v15 = vld [vmem:[%s10408_s19 + $0x7e] sm:$0xff] }
 0x22b   : > { %v11915_v41 = vadd.f32 %v3329_v0, %v3082_v1  ;;  %v3087_v59 = vadd.f32 %v9817_v25, %v11727_v37  ;;  %v3342_v26 = vpop.f32.mrf.mxu0  ;;  %10059 = vmatprep.mubr.msk.bf16.mxu1 %vm264_vm0, %v5223_v11  ;;  %v8694_v1 = vld [vmem:[%s10408_s19 + $0x6f] sm:$0xff] }
 0x22c   : > { %v3042_v24 = vpop.f32.mrf.mxu1 }
 0x22d   : > { %v11923_v13 = vadd.f32 %v9851_v36, %v3087_v59  ;;  %v3085_v40 = vadd.f32 %v3042_v24, %v11732_v35  ;;  %v9852_v42 = vpop.f32.mrf.mxu0  ;;  %v11934_v35 = vld [vmem:[%s13116_s1 + $0xa8] sm:$0xff]   ;;  %v8696_v59 = vld [vmem:[%s10408_s19 + $0x7f] sm:$0xff] }
 0x22e   : > { %v9818_v3 = vpop.f32.mrf.mxu1 }
 0x22f   : > { %v11928_v37 = vadd.f32 %v3342_v26, %v3085_v40  ;;  %v3088_v4 = vadd.f32 %v9818_v3, %v11740_v34  ;;  %v3345_v56 = vpop.f32.mrf.mxu0  ;;  %v11943_v34 = vld [vmem:[%s13116_s1 + $0xb0] sm:$0xff]   ;;  %v8697_v26 = vld [vmem:[%s10408_s19 + $0x87] sm:$0xff]  ;;  %v5226_v40 = vpack.c.bf16 %v8643_v31, %v8642_v2  ;;  %v8700_v2 = vld [vmem:[%s10408_s19 + $0x9f] sm:$0xff] }
 0x230   : > { %v3045_v62 = vpop.f32.mrf.mxu1 }
 0x231   : > { %v11936_v44 = vadd.f32 %v9852_v42, %v3088_v4  ;;  %v3086_v60 = vadd.f32 %v3045_v62, %v11754_v43  ;;  %v9891_v0 = vpop.f32.mrf.mxu0  ;;  %10094 = vmatmul.mubr.msk.bf16.vlgmr.msra.gmra.mxu0 %vm264_vm0, %v5524_v6  ;;  %v8695_v43 = vld [vmem:[%s10408_s19 + $0x77] sm:$0xff]  ;;  %v5527_v42 = vpack.c.bf16 %v8697_v26, %v8696_v59  ;;  %v8698_v62 = vld [vmem:[%s10408_s19 + $0x8f] sm:$0xff] }
 0x232   : > { %v9857_v11 = vpop.f32.mrf.mxu1  ;;  %10060 = vmatmul.mubr.msk.bf16.vlgmr.msra.gmra.mxu1 %vm264_vm0, %v5224_v12  ;;  %10160 = vmatpush3.bf16.msra.mxu0 %v11747_v54  ;;  %v8645_v54 = vld [vmem:[%s10408_s19 + $0x86] sm:$0xff]  ;;  %v5526_v38 = vpack.c.bf16 %v8695_v43, %v8694_v1 }
 0x233   : > { %v11950_v36 = vadd.f32 %v3345_v56, %v3086_v60  ;;  %v3659_v25 = vadd.f32 %v9857_v11, %v11764_v22  ;;  %10126 = vmatpush3.bf16.msra.mxu1 %v11738_v8  ;;  %v3830_v19 = vpop.f32.mrf.mxu0  ;;  %10063 = vmatprep.mubr.msk.bf16.mxu1 %vm264_vm0, %v5225_v27  ;;  %v5227_v3 = vpack.c.bf16 %v8645_v54, %v8644_v15  ;;  %v8701_v1 = vld [vmem:[%s10408_s19 + $0xa7] sm:$0xff] }
 0x234   : > { %v3530_v51 = vpop.f32.mrf.mxu1  ;;  %10097 = vmatprep.mubr.msk.bf16.mxu0 %vm264_vm0, %v5525_v18  ;;  %10193 = vmatprep.subr.bf16.mxu1 %v11934_v35  ;;  %v8699_v18 = vld [vmem:[%s10408_s19 + $0x97] sm:$0xff] }
 0x235   : > { %v11962_v24 = vadd.f32 %v9891_v0, %v3659_v25  ;;  %v3657_v23 = vadd.f32 %v3530_v51, %v11768_v46  ;;  %v9892_v22 = vpop.f32.mrf.mxu0  ;;  %10227 = vmatprep.subr.bf16.mxu0 %v11943_v34  ;;  %v8648_v25 = vld [vmem:[%s10408_s19 + $0x9e] sm:$0xff]  ;;  %v5528_v51 = vpack.c.bf16 %v8699_v18, %v8698_v62  ;;  %v8705_v62 = vld [vmem:[%s10408_s19 + $0xc7] sm:$0xff] }
 0x236   : > { %v9858_v8 = vpop.f32.mrf.mxu1 }
 0x237   : > { %v11966_v6 = vadd.f32 %v3830_v19, %v3657_v23  ;;  %v3660_v16 = vadd.f32 %v9858_v8, %v11771_v55  ;;  %v3833_v47 = vpop.f32.mrf.mxu0  ;;  %v8646_v55 = vld [vmem:[%s10408_s19 + $0x8e] sm:$0xff]  ;;  %v8649_v19 = vld [vmem:[%s10408_s19 + $0xa6] sm:$0xff] }
 0x238   : > { %v3533_v12 = vpop.f32.mrf.mxu1  ;;  %v5229_v8 = vpack.c.bf16 %v8649_v19, %v8648_v25 }
 0x239   : > { %v11969_v46 = vadd.f32 %v9892_v22, %v3660_v16  ;;  %v3658_v4 = vadd.f32 %v3533_v12, %v11780_v32  ;;  %v9895_v56 = vpop.f32.mrf.mxu0  ;;  %10098 = vmatmul.mubr.msk.bf16.gmra.mxu0 %vm264_vm0, %v5526_v38  ;;  %v8647_v32 = vld [vmem:[%s10408_s19 + $0x96] sm:$0xff] }
 0x23a   : > { %v9861_v27 = vpop.f32.mrf.mxu1  ;;  %10064 = vmatmul.mubr.msk.bf16.gmra.mxu1 %vm264_vm0, %v5226_v40  ;;  %10101 = vmatprep.mubr.msk.bf16.mxu0 %vm264_vm0, %v5527_v42  ;;  %v5228_v54 = vpack.c.bf16 %v8647_v32, %v8646_v55  ;;  %v8703_v12 = vld [vmem:[%s10408_s19 + $0xb7] sm:$0xff]  ;;  %v8704_v55 = vld [vmem:[%s10408_s19 + $0xbf] sm:$0xff] }
 0x23b   : > { %v11978_v60 = vadd.f32 %v3833_v47, %v3658_v4  ;;  %v3663_v0 = vadd.f32 %v9861_v27, %v11787_v50  ;;  %v3846_v11 = vpop.f32.mrf.mxu0  ;;  %10067 = vmatprep.mubr.msk.bf16.mxu1 %vm264_vm0, %v5227_v3  ;;  %v5529_v50 = vpack.c.bf16 %v8701_v1, %v8700_v2  ;;  %v8702_v3 = vld [vmem:[%s10408_s19 + $0xaf] sm:$0xff] }
 0x23c   : > { %v3546_v43 = vpop.f32.mrf.mxu1 }
 0x23d   : > { %v11987_v31 = vadd.f32 %v9895_v56, %v3663_v0  ;;  %v3661_v59 = vadd.f32 %v3546_v43, %v11790_v21  ;;  %v9896_v26 = vpop.f32.mrf.mxu0  ;;  %v8652_v0 = vld [vmem:[%s10408_s19 + $0xbe] sm:$0xff]  ;;  %v5530_v43 = vpack.c.bf16 %v8703_v12, %v8702_v3  ;;  %v8709_v3 = vld [vmem:[%s10408_s19 + $0xe7] sm:$0xff] }
 0x23e   : > { %v9862_v15 = vpop.f32.mrf.mxu1 }
 0x23f   : > { %v11990_v23 = vadd.f32 %v3846_v11, %v3661_v59  ;;  %v3664_v22 = vadd.f32 %v9862_v15, %v11793_v48  ;;  %v3849_v38 = vpop.f32.mrf.mxu0  ;;  %v8650_v48 = vld [vmem:[%s10408_s19 + $0xae] sm:$0xff]  ;;  %v8653_v11 = vld [vmem:[%s10408_s19 + $0xc6] sm:$0xff] }
 0x240   : > { %v3549_v40 = vpop.f32.mrf.mxu1  ;;  %v5231_v15 = vpack.c.bf16 %v8653_v11, %v8652_v0 }
 0x241   : > { %v11993_v42 = vadd.f32 %v9896_v26, %v3664_v22  ;;  %v3662_v21 = vadd.f32 %v3549_v40, %v11802_v7  ;;  %v9899_v16 = vpop.f32.mrf.mxu0  ;;  %10102 = vmatmul.mubr.msk.bf16.gmra.mxu0 %vm264_vm0, %v5528_v51  ;;  %v8651_v7 = vld [vmem:[%s10408_s19 + $0xb6] sm:$0xff] }
 0x242   : > { %v9865_v47 = vpop.f32.mrf.mxu1  ;;  %10068 = vmatmul.mubr.msk.bf16.gmra.mxu1 %vm264_vm0, %v5228_v54  ;;  %10105 = vmatprep.mubr.msk.bf16.mxu0 %vm264_vm0, %v5529_v50  ;;  %v5230_v19 = vpack.c.bf16 %v8651_v7, %v8650_v48  ;;  %v8707_v40 = vld [vmem:[%s10408_s19 + $0xd7] sm:$0xff]  ;;  %v8708_v48 = vld [vmem:[%s10408_s19 + $0xdf] sm:$0xff] }
 0x243   : > { %v12002_v4 = vadd.f32 %v3849_v38, %v3662_v21  ;;  %v3667_v56 = vadd.f32 %v9865_v47, %v11809_v49  ;;  %v3862_v27 = vpop.f32.mrf.mxu0  ;;  %10071 = vmatprep.mubr.msk.bf16.mxu1 %vm264_vm0, %v5229_v8  ;;  %v5531_v49 = vpack.c.bf16 %v8705_v62, %v8704_v55  ;;  %v8706_v8 = vld [vmem:[%s10408_s19 + $0xcf] sm:$0xff] }
 0x244   : > { %v3562_v18 = vpop.f32.mrf.mxu1 }
 0x245   : > { %v12011_v32 = vadd.f32 %v9899_v16, %v3667_v56  ;;  %v3665_v2 = vadd.f32 %v3562_v18, %v11812_v5  ;;  %v9900_v1 = vpop.f32.mrf.mxu0  ;;  %v8656_v56 = vld [vmem:[%s10408_s19 + $0xde] sm:$0xff]  ;;  %v5532_v18 = vpack.c.bf16 %v8707_v40, %v8706_v8  ;;  %v8713_v8 = vld [vmem:[%s10408_s19 + $0x107] sm:$0xff] }
 0x246   : > { %v9866_v25 = vpop.f32.mrf.mxu1 }
 0x247   : > { %v12014_v59 = vadd.f32 %v3862_v27, %v3665_v2  ;;  %v3668_v26 = vadd.f32 %v9866_v25, %v11815_v29  ;;  %v3865_v51 = vpop.f32.mrf.mxu0  ;;  %v8654_v29 = vld [vmem:[%s10408_s19 + $0xce] sm:$0xff]  ;;  %v8657_v27 = vld [vmem:[%s10408_s19 + $0xe6] sm:$0xff] }
 0x248   : > { %v3565_v54 = vpop.f32.mrf.mxu1  ;;  %v5233_v25 = vpack.c.bf16 %v8657_v27, %v8656_v56 }
 0x249   : > { %v12017_v50 = vadd.f32 %v9900_v1, %v3668_v26  ;;  %v3666_v5 = vadd.f32 %v3565_v54, %v11824_v52  ;;  %v9903_v22 = vpop.f32.mrf.mxu0  ;;  %10106 = vmatmul.mubr.msk.bf16.gmra.mxu0 %vm264_vm0, %v5530_v43  ;;  %v8655_v52 = vld [vmem:[%s10408_s19 + $0xd6] sm:$0xff] }
 0x24a   : > { %v9869_v38 = vpop.f32.mrf.mxu1  ;;  %10072 = vmatmul.mubr.msk.bf16.gmra.mxu1 %vm264_vm0, %v5230_v19  ;;  %10109 = vmatprep.mubr.msk.bf16.mxu0 %vm264_vm0, %v5531_v49  ;;  %v5232_v11 = vpack.c.bf16 %v8655_v52, %v8654_v29  ;;  %v8711_v54 = vld [vmem:[%s10408_s19 + $0xf7] sm:$0xff]  ;;  %v8712_v29 = vld [vmem:[%s10408_s19 + $0xff] sm:$0xff] }
 0x24b   : > { %v12026_v21 = vadd.f32 %v3865_v51, %v3666_v5  ;;  %v3671_v16 = vadd.f32 %v9869_v38, %v11831_v9  ;;  %v3878_v47 = vpop.f32.mrf.mxu0  ;;  %10075 = vmatprep.mubr.msk.bf16.mxu1 %vm264_vm0, %v5231_v15  ;;  %v5533_v9 = vpack.c.bf16 %v8709_v3, %v8708_v48  ;;  %v8710_v15 = vld [vmem:[%s10408_s19 + $0xef] sm:$0xff] }
 0x24c   : > { %v3578_v12 = vpop.f32.mrf.mxu1 }
 0x24d   : > { %v12035_v7 = vadd.f32 %v9903_v22, %v3671_v16  ;;  %v3669_v55 = vadd.f32 %v3578_v12, %v11834_v30  ;;  %v9904_v62 = vpop.f32.mrf.mxu0  ;;  %v8660_v16 = vld [vmem:[%s10408_s19 + $0xfe] sm:$0xff]  ;;  %v5534_v12 = vpack.c.bf16 %v8711_v54, %v8710_v15  ;;  %v8717_v15 = vld [vmem:[%s10408_s19 + $0x127] sm:$0xff] }
 0x24e   : > { %v9870_v0 = vpop.f32.mrf.mxu1 }
 0x24f   : > { %v12038_v2 = vadd.f32 %v3878_v47, %v3669_v55  ;;  %v3672_v1 = vadd.f32 %v9870_v0, %v11837_v14  ;;  %v3881_v43 = vpop.f32.mrf.mxu0  ;;  %v8658_v14 = vld [vmem:[%s10408_s19 + $0xee] sm:$0xff]  ;;  %v8661_v47 = vld [vmem:[%s10408_s19 + $0x106] sm:$0xff] }
 0x250   : > { %v3581_v19 = vpop.f32.mrf.mxu1  ;;  %v5235_v0 = vpack.c.bf16 %v8661_v47, %v8660_v16 }
 0x251   : > { %v12041_v49 = vadd.f32 %v9904_v62, %v3672_v1  ;;  %v3670_v30 = vadd.f32 %v3581_v19, %v11846_v63  ;;  %v9907_v26 = vpop.f32.mrf.mxu0  ;;  %10110 = vmatmul.mubr.msk.bf16.gmra.mxu0 %vm264_vm0, %v5532_v18  ;;  %v8659_v63 = vld [vmem:[%s10408_s19 + $0xf6] sm:$0xff] }
 0x252   : > { %v9873_v51 = vpop.f32.mrf.mxu1  ;;  %10076 = vmatmul.mubr.msk.bf16.gmra.mxu1 %vm264_vm0, %v5232_v11  ;;  %10113 = vmatprep.mubr.msk.bf16.mxu0 %vm264_vm0, %v5533_v9  ;;  %v5234_v27 = vpack.c.bf16 %v8659_v63, %v8658_v14  ;;  %v8715_v19 = vld [vmem:[%s10408_s19 + $0x117] sm:$0xff]  ;;  %v8716_v14 = vld [vmem:[%s10408_s19 + $0x11f] sm:$0xff] }
 0x253   : > { %v12050_v5 = vadd.f32 %v3881_v43, %v3670_v30  ;;  %v3675_v22 = vadd.f32 %v9873_v51, %v11853_v10  ;;  %v3894_v38 = vpop.f32.mrf.mxu0  ;;  %10079 = vmatprep.mubr.msk.bf16.mxu1 %vm264_vm0, %v5233_v25  ;;  %v5535_v10 = vpack.c.bf16 %v8713_v8, %v8712_v29  ;;  %v8714_v25 = vld [vmem:[%s10408_s19 + $0x10f] sm:$0xff] }
 0x254   : > { %v3594_v40 = vpop.f32.mrf.mxu1 }
 0x255   : > { %v12059_v52 = vadd.f32 %v9907_v26, %v3675_v22  ;;  %v3673_v48 = vadd.f32 %v3594_v40, %v11856_v33  ;;  %v9908_v3 = vpop.f32.mrf.mxu0  ;;  %v8664_v22 = vld [vmem:[%s10408_s19 + $0x11e] sm:$0xff]  ;;  %v5536_v40 = vpack.c.bf16 %v8715_v19, %v8714_v25 }
 0x256   : > { %v9874_v56 = vpop.f32.mrf.mxu1  ;;  %v8793_v25 = vld [vmem:[%s10408_s19 + $0x58] sm:$0xff] }
 0x257   : > { %v12062_v55 = vadd.f32 %v3894_v38, %v3673_v48  ;;  %v3676_v62 = vadd.f32 %v9874_v56, %v11859_v53  ;;  %v3897_v18 = vpop.f32.mrf.mxu0  ;;  %v8662_v53 = vld [vmem:[%s10408_s19 + $0x10e] sm:$0xff]  ;;  %v8665_v38 = vld [vmem:[%s10408_s19 + $0x126] sm:$0xff] }
 0x258   : > { %v3597_v11 = vpop.f32.mrf.mxu1  ;;  %v5237_v56 = vpack.c.bf16 %v8665_v38, %v8664_v22 }
 0x259   : > { %v12065_v9 = vadd.f32 %v9908_v3, %v3676_v62  ;;  %v3674_v33 = vadd.f32 %v3597_v11, %v11868_v20  ;;  %v9911_v1 = vpop.f32.mrf.mxu0  ;;  %10114 = vmatmul.mubr.msk.bf16.gmra.mxu0 %vm264_vm0, %v5534_v12  ;;  %v8663_v20 = vld [vmem:[%s10408_s19 + $0x116] sm:$0xff] }
 0x25a   : > { %v9877_v43 = vpop.f32.mrf.mxu1  ;;  %10080 = vmatmul.mubr.msk.bf16.gmra.mxu1 %vm264_vm0, %v5234_v27  ;;  %10117 = vmatprep.mubr.msk.bf16.mxu0 %vm264_vm0, %v5535_v10  ;;  %v5236_v47 = vpack.c.bf16 %v8663_v20, %v8662_v53  ;;  %v8719_v11 = vld [vmem:[%s10408_s19 + $0x137] sm:$0xff] }
 0x25b   : > { %v12074_v30 = vadd.f32 %v3897_v18, %v3674_v33  ;;  %v3679_v26 = vadd.f32 %v9877_v43, %v11875_v61  ;;  %v3910_v51 = vpop.f32.mrf.mxu0  ;;  %10083 = vmatprep.mubr.msk.bf16.mxu1 %vm264_vm0, %v5235_v0  ;;  %v5537_v61 = vpack.c.bf16 %v8717_v15, %v8716_v14  ;;  %v8718_v0 = vld [vmem:[%s10408_s19 + $0x12f] sm:$0xff] }
 0x25c   : > { %v3610_v54 = vpop.f32.mrf.mxu1  ;;  %v8792_v53 = vld [vmem:[%s10408_s19 + $0x50] sm:$0xff] }
 0x25d   : > { %v12083_v63 = vadd.f32 %v9911_v1, %v3679_v26  ;;  %v3677_v29 = vadd.f32 %v3610_v54, %v11878_v57  ;;  %v9912_v8 = vpop.f32.mrf.mxu0  ;;  %v8740_v26 = vld [vmem:[%s10408_s19 + $0x40] sm:$0xff]  ;;  %v5538_v54 = vpack.c.bf16 %v8719_v11, %v8718_v0 }
 0x25e   : > { %v9878_v16 = vpop.f32.mrf.mxu1 }
 0x25f   : > { %v12086_v48 = vadd.f32 %v3910_v51, %v3677_v29  ;;  %v3680_v3 = vadd.f32 %v9878_v16, %v11881_v45  ;;  %v3913_v12 = vpop.f32.mrf.mxu0  ;;  %v8666_v45 = vld [vmem:[%s10408_s19 + $0x12e] sm:$0xff] }
 0x260   : > { %v3613_v27 = vpop.f32.mrf.mxu1  ;;  %v8741_v51 = vld [vmem:[%s10408_s19 + $0x48] sm:$0xff] }
 0x261   : > { %v12089_v10 = vadd.f32 %v9912_v8, %v3680_v3  ;;  %v3678_v57 = vadd.f32 %v3613_v27, %v11891_v39  ;;  %v9915_v62 = vpop.f32.mrf.mxu0  ;;  %10118 = vmatmul.mubr.msk.bf16.gmra.mxu0 %vm264_vm0, %v5536_v40  ;;  %v8667_v39 = vld [vmem:[%s10408_s19 + $0x136] sm:$0xff]  ;;  %v5823_v16 = vpack.c.bf16 %v8741_v51, %v8740_v26  ;;  %v8795_v27 = vld [vmem:[%s10408_s19 + $0x68] sm:$0xff] }
 0x262   : > { %v9881_v18 = vpop.f32.mrf.mxu1  ;;  %10084 = vmatmul.mubr.msk.bf16.gmra.mxu1 %vm264_vm0, %v5236_v47  ;;  %10121 = vmatprep.mubr.msk.bf16.mxu0 %vm264_vm0, %v5537_v61  ;;  %v5238_v38 = vpack.c.bf16 %v8667_v39, %v8666_v45  ;;  %v12136_v51 = vld [vmem:[%s13116_s1 + $0xb8] sm:$0xff]  }
 0x263   : > { %v12098_v33 = vadd.f32 %v3913_v12, %v3678_v57  ;;  %v3683_v1 = vadd.f32 %v9881_v18, %v11901_v17  ;;  %v3926_v43 = vpop.f32.mrf.mxu0  ;;  %10087 = vmatprep.mubr.msk.bf16.mxu1 %vm264_vm0, %v5237_v56  ;;  %v6123_v17 = vpack.c.bf16 %v8793_v25, %v8792_v53  ;;  %v8794_v56 = vld [vmem:[%s10408_s19 + $0x60] sm:$0xff] }
 0x264   : > { %v3626_v19 = vpop.f32.mrf.mxu1  ;;  %v6124_v11 = vpack.c.bf16 %v8795_v27, %v8794_v56 }
 0x265   : > { %v12107_v20 = vadd.f32 %v9915_v62, %v3683_v1  ;;  %v3681_v14 = vadd.f32 %v3626_v19, %v11904_v58  ;;  %v9916_v15 = vpop.f32.mrf.mxu0  ;;  %v8796_v1 = vld [vmem:[%s10408_s19 + $0x70] sm:$0xff] }
 0x266   : > { %v9882_v22 = vpop.f32.mrf.mxu1 }
 0x267   : > { %v12110_v29 = vadd.f32 %v3926_v43, %v3681_v14  ;;  %v3684_v8 = vadd.f32 %v9882_v22, %v11907_v28  ;;  %v3929_v40 = vpop.f32.mrf.mxu0  ;;  %v8797_v43 = vld [vmem:[%s10408_s19 + $0x78] sm:$0xff]  ;;  %v8798_v22 = vld [vmem:[%s10408_s19 + $0x80] sm:$0xff] }
 0x268   : > { %v3629_v47 = vpop.f32.mrf.mxu1  ;;  %v6125_v26 = vpack.c.bf16 %v8797_v43, %v8796_v1  ;;  %v8803_v1 = vld [vmem:[%s10408_s19 + $0xa8] sm:$0xff] }
 0x269   : > { %v12113_v61 = vadd.f32 %v9916_v15, %v3684_v8  ;;  %v3682_v3 = vadd.f32 %v3629_v47, %v11915_v41  ;;  %v9919_v12 = vpop.f32.mrf.mxu0  ;;  %10122 = vmatmul.mubr.msk.bf16.gmra.mxu0 %vm264_vm0, %v5538_v54  ;;  %v8801_v47 = vld [vmem:[%s10408_s19 + $0x98] sm:$0xff] }
 0x26a   : > { %v9885_v58 = vpop.f32.mrf.mxu1  ;;  %10088 = vmatmul.mubr.msk.bf16.gmra.mxu1 %vm264_vm0, %v5238_v38  ;;  %10161 = vmatprep.mubr.msk.bf16.mxu0 %vm264_vm0, %v6123_v17  ;;  %v8799_v38 = vld [vmem:[%s10408_s19 + $0x88] sm:$0xff] }
 0x26b   : > { %v12121_v28 = vadd.f32 %v3929_v40, %v3682_v3  ;;  %v3687_v57 = vadd.f32 %v9885_v58, %v11923_v13  ;;  %v3942_v62 = vpop.f32.mrf.mxu0  ;;  %10127 = vmatprep.mubr.msk.bf16.mxu1 %vm264_vm0, %v5823_v16  ;;  %v8800_v16 = vld [vmem:[%s10408_s19 + $0x90] sm:$0xff]  ;;  %v6126_v58 = vpack.c.bf16 %v8799_v38, %v8798_v22 }
 0x26c   : > { %v3642_v41 = vpop.f32.mrf.mxu1 }
 0x26d   : > { %v12125_v18 = vadd.f32 %v9919_v12, %v3687_v57  ;;  %v3685_v45 = vadd.f32 %v3642_v41, %v11928_v37  ;;  %v9920_v0 = vpop.f32.mrf.mxu0 }
 0x26e   : > { %v9886_v39 = vpop.f32.mrf.mxu1 }
 0x26f   : > { %v12130_v53 = vadd.f32 %v3942_v62, %v3685_v45  ;;  %v3688_v25 = vadd.f32 %v9886_v39, %v11936_v44  ;;  %v3945_v13 = vpop.f32.mrf.mxu0  ;;  %v12145_v44 = vld [vmem:[%s13116_s1 + $0xc0] sm:$0xff]  }
 0x270   : > { %v3645_v19 = vpop.f32.mrf.mxu1 }
 0x271   : > { %v12138_v37 = vadd.f32 %v9920_v0, %v3688_v25  ;;  %v3686_v14 = vadd.f32 %v3645_v19, %v11950_v36  ;;  %v9959_v15 = vpop.f32.mrf.mxu0  ;;  %10162 = vmatmul.mubr.msk.bf16.vlgmr.msra.gmra.mxu0 %vm264_vm0, %v6124_v11  ;;  %v8804_v25 = vld [vmem:[%s10408_s19 + $0xb0] sm:$0xff] }
 0x272   : > { %v9925_v54 = vpop.f32.mrf.mxu1  ;;  %10128 = vmatmul.mubr.msk.bf16.vlgmr.msra.gmra.mxu1 %vm264_vm0, %v6123_v17  ;;  %10228 = vmatpush3.bf16.msra.mxu0 %v11943_v34 }
 0x273   : > { %v12151_v8 = vadd.f32 %v3945_v13, %v3686_v14  ;;  %v4259_v40 = vadd.f32 %v9925_v54, %v11962_v24  ;;  %10194 = vmatpush3.bf16.msra.mxu1 %v11934_v35  ;;  %v4430_v36 = vpop.f32.mrf.mxu0  ;;  %10131 = vmatprep.mubr.msk.bf16.mxu1 %vm264_vm0, %v6124_v11  ;;  %v6127_v24 = vpack.c.bf16 %v8801_v47, %v8800_v16  ;;  %v8802_v11 = vld [vmem:[%s10408_s19 + $0xa0] sm:$0xff]  ;;  %v8805_v13 = vld [vmem:[%s10408_s19 + $0xb8] sm:$0xff] }
 0x274   : > { %v4130_v3 = vpop.f32.mrf.mxu1  ;;  %10165 = vmatprep.mubr.msk.bf16.mxu0 %vm264_vm0, %v6125_v26  ;;  %10261 = vmatprep.subr.bf16.mxu1 %v12136_v51  ;;  %v6129_v22 = vpack.c.bf16 %v8805_v13, %v8804_v25 }
 0x275   : > { %v12160_v17 = vadd.f32 %v9959_v15, %v4259_v40  ;;  %v4257_v34 = vadd.f32 %v4130_v3, %v11966_v6  ;;  %v9960_v12 = vpop.f32.mrf.mxu0  ;;  %10295 = vmatprep.subr.bf16.mxu0 %v12145_v44  ;;  %v6128_v15 = vpack.c.bf16 %v8803_v1, %v8802_v11 }
 0x276   : > { %v9926_v35 = vpop.f32.mrf.mxu1 }
 0x277   : > { %v12164_v56 = vadd.f32 %v4430_v36, %v4257_v34  ;;  %v4260_v27 = vadd.f32 %v9926_v35, %v11969_v46  ;;  %v4433_v57 = vpop.f32.mrf.mxu0  ;;  %v8806_v34 = vld [vmem:[%s10408_s19 + $0xc0] sm:$0xff] }
 0x278   : > { %v4133_v62 = vpop.f32.mrf.mxu1 }
 0x279   : > { %v12167_v41 = vadd.f32 %v9960_v12, %v4260_v27  ;;  %v4258_v6 = vadd.f32 %v4133_v62, %v11978_v60  ;;  %v9963_v45 = vpop.f32.mrf.mxu0  ;;  %10166 = vmatmul.mubr.msk.bf16.gmra.mxu0 %vm264_vm0, %v6126_v58  ;;  %v8807_v12 = vld [vmem:[%s10408_s19 + $0xc8] sm:$0xff]  ;;  %v8808_v27 = vld [vmem:[%s10408_s19 + $0xd0] sm:$0xff] }
 0x27a   : > { %v9929_v0 = vpop.f32.mrf.mxu1  ;;  %10132 = vmatmul.mubr.msk.bf16.gmra.mxu1 %vm264_vm0, %v6125_v26  ;;  %10169 = vmatprep.mubr.msk.bf16.mxu0 %vm264_vm0, %v6127_v24 }
 0x27b   : > { %v12175_v43 = vadd.f32 %v4433_v57, %v4258_v6  ;;  %v4263_v46 = vadd.f32 %v9929_v0, %v11987_v31  ;;  %v4446_v39 = vpop.f32.mrf.mxu0  ;;  %10135 = vmatprep.mubr.msk.bf16.mxu1 %vm264_vm0, %v6126_v58  ;;  %v8809_v57 = vld [vmem:[%s10408_s19 + $0xd8] sm:$0xff] }
 0x27c   : > { %v4146_v60 = vpop.f32.mrf.mxu1  ;;  %v6131_v11 = vpack.c.bf16 %v8809_v57, %v8808_v27 }
 0x27d   : > { %v12181_v19 = vadd.f32 %v9963_v45, %v4263_v46  ;;  %v4261_v14 = vadd.f32 %v4146_v60, %v11990_v23  ;;  %v9964_v26 = vpop.f32.mrf.mxu0  ;;  %v6130_v45 = vpack.c.bf16 %v8807_v12, %v8806_v34 }
 0x27e   : > { %v9930_v54 = vpop.f32.mrf.mxu1 }
 0x27f   : > { %v12184_v38 = vadd.f32 %v4446_v39, %v4261_v14  ;;  %v4264_v31 = vadd.f32 %v9930_v54, %v11993_v42  ;;  %v4449_v40 = vpop.f32.mrf.mxu0  ;;  %v8810_v14 = vld [vmem:[%s10408_s19 + $0xe0] sm:$0xff] }
 0x280   : > { %v4149_v36 = vpop.f32.mrf.mxu1 }
 0x281   : > { %v12187_v16 = vadd.f32 %v9964_v26, %v4264_v31  ;;  %v4262_v47 = vadd.f32 %v4149_v36, %v12002_v4  ;;  %v9967_v3 = vpop.f32.mrf.mxu0  ;;  %10170 = vmatmul.mubr.msk.bf16.gmra.mxu0 %vm264_vm0, %v6128_v15  ;;  %v8811_v26 = vld [vmem:[%s10408_s19 + $0xe8] sm:$0xff]  ;;  %v8812_v31 = vld [vmem:[%s10408_s19 + $0xf0] sm:$0xff] }
 0x282   : > { %v9933_v23 = vpop.f32.mrf.mxu1  ;;  %10136 = vmatmul.mubr.msk.bf16.gmra.mxu1 %vm264_vm0, %v6127_v24  ;;  %10173 = vmatprep.mubr.msk.bf16.mxu0 %vm264_vm0, %v6129_v22 }
 0x283   : > { %v12195_v58 = vadd.f32 %v4449_v40, %v4262_v47  ;;  %v4267_v42 = vadd.f32 %v9933_v23, %v12011_v32  ;;  %v4462_v35 = vpop.f32.mrf.mxu0  ;;  %10139 = vmatprep.mubr.msk.bf16.mxu1 %vm264_vm0, %v6128_v15  ;;  %v8813_v40 = vld [vmem:[%s10408_s19 + $0xf8] sm:$0xff] }
 0x284   : > { %v4162_v4 = vpop.f32.mrf.mxu1  ;;  %v6133_v34 = vpack.c.bf16 %v8813_v40, %v8812_v31 }
 0x285   : > { %v12201_v62 = vadd.f32 %v9967_v3, %v4267_v42  ;;  %v4265_v6 = vadd.f32 %v4162_v4, %v12014_v59  ;;  %v9968_v24 = vpop.f32.mrf.mxu0  ;;  %v6132_v3 = vpack.c.bf16 %v8811_v26, %v8810_v14 }
 0x286   : > { %v9934_v0 = vpop.f32.mrf.mxu1 }
 0x287   : > { %v12204_v1 = vadd.f32 %v4462_v35, %v4265_v6  ;;  %v4268_v32 = vadd.f32 %v9934_v0, %v12017_v50  ;;  %v4465_v46 = vpop.f32.mrf.mxu0  ;;  %v8814_v6 = vld [vmem:[%s10408_s19 + $0x100] sm:$0xff] }
 0x288   : > { %v4165_v39 = vpop.f32.mrf.mxu1 }
 0x289   : > { %v12207_v25 = vadd.f32 %v9968_v24, %v4268_v32  ;;  %v4266_v13 = vadd.f32 %v4165_v39, %v12026_v21  ;;  %v9971_v60 = vpop.f32.mrf.mxu0  ;;  %10174 = vmatmul.mubr.msk.bf16.gmra.mxu0 %vm264_vm0, %v6130_v45  ;;  %v8815_v24 = vld [vmem:[%s10408_s19 + $0x108] sm:$0xff]  ;;  %v8816_v32 = vld [vmem:[%s10408_s19 + $0x110] sm:$0xff] }
 0x28a   : > { %v9937_v59 = vpop.f32.mrf.mxu1  ;;  %10140 = vmatmul.mubr.msk.bf16.gmra.mxu1 %vm264_vm0, %v6129_v22  ;;  %10177 = vmatprep.mubr.msk.bf16.mxu0 %vm264_vm0, %v6131_v11 }
 0x28b   : > { %v12215_v15 = vadd.f32 %v4465_v46, %v4266_v13  ;;  %v4271_v50 = vadd.f32 %v9937_v59, %v12035_v7  ;;  %v4478_v54 = vpop.f32.mrf.mxu0  ;;  %10143 = vmatprep.mubr.msk.bf16.mxu1 %vm264_vm0, %v6130_v45  ;;  %v8817_v46 = vld [vmem:[%s10408_s19 + $0x118] sm:$0xff] }
 0x28c   : > { %v4178_v21 = vpop.f32.mrf.mxu1  ;;  %v6135_v14 = vpack.c.bf16 %v8817_v46, %v8816_v32 }
 0x28d   : > { %v12221_v36 = vadd.f32 %v9971_v60, %v4271_v50  ;;  %v4269_v47 = vadd.f32 %v4178_v21, %v12038_v2  ;;  %v9972_v22 = vpop.f32.mrf.mxu0  ;;  %v6134_v60 = vpack.c.bf16 %v8815_v24, %v8814_v6 }
 0x28e   : > { %v9938_v23 = vpop.f32.mrf.mxu1 }
 0x28f   : > { %v12224_v12 = vadd.f32 %v4478_v54, %v4269_v47  ;;  %v4272_v7 = vadd.f32 %v9938_v23, %v12041_v49  ;;  %v4481_v42 = vpop.f32.mrf.mxu0  ;;  %v8818_v47 = vld [vmem:[%s10408_s19 + $0x120] sm:$0xff] }
 0x290   : > { %v4181_v35 = vpop.f32.mrf.mxu1 }
 0x291   : > { %v12227_v27 = vadd.f32 %v9972_v22, %v4272_v7  ;;  %v4270_v57 = vadd.f32 %v4181_v35, %v12050_v5  ;;  %v9975_v4 = vpop.f32.mrf.mxu0  ;;  %10178 = vmatmul.mubr.msk.bf16.gmra.mxu0 %vm264_vm0, %v6132_v3  ;;  %v8819_v22 = vld [vmem:[%s10408_s19 + $0x128] sm:$0xff]  ;;  %v8820_v7 = vld [vmem:[%s10408_s19 + $0x130] sm:$0xff] }
 0x292   : > { %v9941_v2 = vpop.f32.mrf.mxu1  ;;  %10144 = vmatmul.mubr.msk.bf16.gmra.mxu1 %vm264_vm0, %v6131_v11  ;;  %10181 = vmatprep.mubr.msk.bf16.mxu0 %vm264_vm0, %v6133_v34 }
 0x293   : > { %v12235_v45 = vadd.f32 %v4481_v42, %v4270_v57  ;;  %v4275_v49 = vadd.f32 %v9941_v2, %v12059_v52  ;;  %v4494_v0 = vpop.f32.mrf.mxu0  ;;  %10147 = vmatprep.mubr.msk.bf16.mxu1 %vm264_vm0, %v6132_v3  ;;  %v8821_v42 = vld [vmem:[%s10408_s19 + $0x138] sm:$0xff] }
 0x294   : > { %v4194_v5 = vpop.f32.mrf.mxu1  ;;  %v6137_v6 = vpack.c.bf16 %v8821_v42, %v8820_v7 }
 0x295   : > { %v12241_v39 = vadd.f32 %v9975_v4, %v4275_v49  ;;  %v4273_v13 = vadd.f32 %v4194_v5, %v12062_v55  ;;  %v9976_v11 = vpop.f32.mrf.mxu0  ;;  %v6136_v4 = vpack.c.bf16 %v8819_v22, %v8818_v47 }
 0x296   : > { %v9942_v59 = vpop.f32.mrf.mxu1 }
 0x297   : > { %v12244_v26 = vadd.f32 %v4494_v0, %v4273_v13  ;;  %v4276_v52 = vadd.f32 %v9942_v59, %v12065_v9  ;;  %v4497_v50 = vpop.f32.mrf.mxu0  ;;  %v8822_v13 = vld [vmem:[%s10408_s19 + $0x140] sm:$0xff] }
 0x298   : > { %v4197_v54 = vpop.f32.mrf.mxu1 }
 0x299   : > { %v12247_v31 = vadd.f32 %v9976_v11, %v4276_v52  ;;  %v4274_v40 = vadd.f32 %v4197_v54, %v12074_v30  ;;  %v9979_v21 = vpop.f32.mrf.mxu0  ;;  %10182 = vmatmul.mubr.msk.bf16.gmra.mxu0 %vm264_vm0, %v6134_v60  ;;  %v8896_v52 = vld [vmem:[%s10408_s19 + $0x52] sm:$0xff] }
 0x29a   : > { %v9945_v55 = vpop.f32.mrf.mxu1  ;;  %10148 = vmatmul.mubr.msk.bf16.gmra.mxu1 %vm264_vm0, %v6133_v34  ;;  %10185 = vmatprep.mubr.msk.bf16.mxu0 %vm264_vm0, %v6135_v14  ;;  %v8844_v54 = vld [vmem:[%s10408_s19 + $0x51] sm:$0xff] }
 0x29b   : > { %v12255_v3 = vadd.f32 %v4497_v50, %v4274_v40  ;;  %v4279_v9 = vadd.f32 %v9945_v55, %v12083_v63  ;;  %v4510_v23 = vpop.f32.mrf.mxu0  ;;  %10151 = vmatprep.mubr.msk.bf16.mxu1 %vm264_vm0, %v6134_v60  ;;  %v8845_v40 = vld [vmem:[%s10408_s19 + $0x59] sm:$0xff] }
 0x29c   : > { %v4210_v30 = vpop.f32.mrf.mxu1  ;;  %v6423_v42 = vpack.c.bf16 %v8845_v40, %v8844_v54 }
 0x29d   : > { %v12261_v35 = vadd.f32 %v9979_v21, %v4279_v9  ;;  %v4277_v57 = vadd.f32 %v4210_v30, %v12086_v48  ;;  %v9980_v34 = vpop.f32.mrf.mxu0 }
 0x29e   : > { %v9946_v2 = vpop.f32.mrf.mxu1 }
 0x29f   : > { %v12264_v24 = vadd.f32 %v4510_v23, %v4277_v57  ;;  %v4280_v63 = vadd.f32 %v9946_v2, %v12089_v10  ;;  %v4513_v49 = vpop.f32.mrf.mxu0  ;;  %v8823_v10 = vld [vmem:[%s10408_s19 + $0x148] sm:$0xff] }
 0x2a0   : > { %v4213_v0 = vpop.f32.mrf.mxu1  ;;  %v6138_v47 = vpack.c.bf16 %v8823_v10, %v8822_v13  ;;  %v8899_v2 = vld [vmem:[%s10408_s19 + $0x6a] sm:$0xff]  ;;  %v8849_v13 = vld [vmem:[%s10408_s19 + $0x79] sm:$0xff] }
 0x2a1   : > { %v12267_v32 = vadd.f32 %v9980_v34, %v4280_v63  ;;  %v4278_v46 = vadd.f32 %v4213_v0, %v12098_v33  ;;  %v9983_v48 = vpop.f32.mrf.mxu0  ;;  %10186 = vmatmul.mubr.msk.bf16.gmra.mxu0 %vm264_vm0, %v6136_v4  ;;  %v8897_v33 = vld [vmem:[%s10408_s19 + $0x5a] sm:$0xff] }
 0x2a2   : > { %v9949_v5 = vpop.f32.mrf.mxu1  ;;  %10152 = vmatmul.mubr.msk.bf16.gmra.mxu1 %vm264_vm0, %v6135_v14  ;;  %10189 = vmatprep.mubr.msk.bf16.mxu0 %vm264_vm0, %v6137_v6  ;;  %v6723_v9 = vpack.c.bf16 %v8897_v33, %v8896_v52  ;;  %v8900_v52 = vld [vmem:[%s10408_s19 + $0x72] sm:$0xff]  ;;  %v8901_v33 = vld [vmem:[%s10408_s19 + $0x7a] sm:$0xff] }
 0x2a3   : > { %v12275_v11 = vadd.f32 %v4513_v49, %v4278_v46  ;;  %v4283_v60 = vadd.f32 %v9949_v5, %v12107_v20  ;;  %v4526_v59 = vpop.f32.mrf.mxu0  ;;  %10155 = vmatprep.mubr.msk.bf16.mxu1 %vm264_vm0, %v6136_v4  ;;  %v8847_v46 = vld [vmem:[%s10408_s19 + $0x69] sm:$0xff]  ;;  %v8848_v5 = vld [vmem:[%s10408_s19 + $0x71] sm:$0xff] }
 0x2a4   : > { %v4226_v50 = vpop.f32.mrf.mxu1 }
 0x2a5   : > { %v12283_v21 = vadd.f32 %v9983_v48, %v4283_v60  ;;  %v4281_v14 = vadd.f32 %v4226_v50, %v12110_v29  ;;  %v9984_v55 = vpop.f32.mrf.mxu0 }
 0x2a6   : > { %v9950_v22 = vpop.f32.mrf.mxu1 }
 0x2a7   : > { %v12286_v23 = vadd.f32 %v4526_v59, %v4281_v14  ;;  %v4284_v20 = vadd.f32 %v9950_v22, %v12113_v61  ;;  %v4529_v7 = vpop.f32.mrf.mxu0  ;;  %v8898_v61 = vld [vmem:[%s10408_s19 + $0x62] sm:$0xff]  ;;  %v6725_v22 = vpack.c.bf16 %v8901_v33, %v8900_v52 }
 0x2a8   : > { %v4229_v30 = vpop.f32.mrf.mxu1  ;;  %v6724_v59 = vpack.c.bf16 %v8899_v2, %v8898_v61  ;;  %v8904_v61 = vld [vmem:[%s10408_s19 + $0x92] sm:$0xff]  ;;  %v8905_v2 = vld [vmem:[%s10408_s19 + $0x9a] sm:$0xff] }
 0x2a9   : > { %v12289_v57 = vadd.f32 %v9984_v55, %v4284_v20  ;;  %v4282_v29 = vadd.f32 %v4229_v30, %v12121_v28  ;;  %v9987_v34 = vpop.f32.mrf.mxu0  ;;  %10190 = vmatmul.mubr.msk.bf16.gmra.mxu0 %vm264_vm0, %v6138_v47  ;;  %v8846_v28 = vld [vmem:[%s10408_s19 + $0x61] sm:$0xff]  ;;  %v6425_v55 = vpack.c.bf16 %v8849_v13, %v8848_v5  ;;  %v8903_v30 = vld [vmem:[%s10408_s19 + $0x8a] sm:$0xff]  ;;  %v6727_v13 = vpack.c.bf16 %v8905_v2, %v8904_v61 }
 0x2aa   : > { %v9953_v4 = vpop.f32.mrf.mxu1  ;;  %10156 = vmatmul.mubr.msk.bf16.gmra.mxu1 %vm264_vm0, %v6137_v6  ;;  %10229 = vmatprep.mubr.msk.bf16.mxu0 %vm264_vm0, %v6723_v9 }
 0x2ab   : > { %v12297_v63 = vadd.f32 %v4529_v7, %v4282_v29  ;;  %v4287_v49 = vadd.f32 %v9953_v4, %v12125_v18  ;;  %v4542_v0 = vpop.f32.mrf.mxu0  ;;  %10195 = vmatprep.mubr.msk.bf16.mxu1 %vm264_vm0, %v6423_v42  ;;  %v6424_v18 = vpack.c.bf16 %v8847_v46, %v8846_v28  ;;  %v8902_v42 = vld [vmem:[%s10408_s19 + $0x82] sm:$0xff] }
 0x2ac   : > { %v4242_v48 = vpop.f32.mrf.mxu1  ;;  %v8851_v4 = vld [vmem:[%s10408_s19 + $0x89] sm:$0xff]  ;;  %v6726_v5 = vpack.c.bf16 %v8903_v30, %v8902_v42  ;;  %v8856_v42 = vld [vmem:[%s10408_s19 + $0xb1] sm:$0xff]  ;;  %v8857_v30 = vld [vmem:[%s10408_s19 + $0xb9] sm:$0xff] }
 0x2ad   : > { %v12305_v10 = vadd.f32 %v9987_v34, %v4287_v49  ;;  %v4285_v6 = vadd.f32 %v4242_v48, %v12130_v53  ;;  %v9988_v60 = vpop.f32.mrf.mxu0 }
 0x2ae   : > { %v9954_v50 = vpop.f32.mrf.mxu1 }
 0x2af   : > { %v12310_v54 = vadd.f32 %v4542_v0, %v4285_v6  ;;  %v4288_v40 = vadd.f32 %v9954_v50, %v12138_v37  ;;  %v4545_v14 = vpop.f32.mrf.mxu0  ;;  %v8850_v37 = vld [vmem:[%s10408_s19 + $0x81] sm:$0xff]  ;;  %v8852_v0 = vld [vmem:[%s10408_s19 + $0x91] sm:$0xff] }
 0x2b0   : > { %v4245_v47 = vpop.f32.mrf.mxu1 }
 0x2b1   : > { %v12313_v9 = vadd.f32 %v9988_v60, %v4288_v40  ;;  %v4286_v53 = vadd.f32 %v4245_v47, %v12151_v8  ;;  %v10027_v20 = vpop.f32.mrf.mxu0  ;;  %10230 = vmatmul.mubr.msk.bf16.vlgmr.msra.gmra.mxu0 %vm264_vm0, %v6724_v59 }
 0x2b2   : > { %v9993_v7 = vpop.f32.mrf.mxu1  ;;  %10196 = vmatmul.mubr.msk.bf16.vlgmr.msra.gmra.mxu1 %vm264_vm0, %v6424_v18  ;;  %10296 = vmatpush3.bf16.msra.mxu0 %v12145_v44  ;;  %v8853_v44 = vld [vmem:[%s10408_s19 + $0x99] sm:$0xff] }
 0x2b3   : > { %v12322_v29 = vadd.f32 %v4545_v14, %v4286_v53  ;;  %v4859_v34 = vadd.f32 %v9993_v7, %v12160_v17  ;;  %10262 = vmatpush3.bf16.msra.mxu1 %v12136_v51  ;;  %v5030_v8 = vpop.f32.mrf.mxu0  ;;  %10199 = vmatprep.mubr.msk.bf16.mxu1 %vm264_vm0, %v6425_v55  ;;  %v6426_v51 = vpack.c.bf16 %v8851_v4, %v8850_v37  ;;  %v8906_v14 = vld [vmem:[%s10408_s19 + $0xa2] sm:$0xff]  ;;  %v8907_v55 = vld [vmem:[%s10408_s19 + $0xaa] sm:$0xff]  ;;  %v8909_v7 = vld [vmem:[%s10408_s19 + $0xba] sm:$0xff] }
 0x2b4   : > { %v4730_v49 = vpop.f32.mrf.mxu1  ;;  %10233 = vmatprep.mubr.msk.bf16.mxu0 %vm264_vm0, %v6725_v22  ;;  %v6427_v52 = vpack.c.bf16 %v8853_v44, %v8852_v0  ;;  %v6728_v61 = vpack.c.bf16 %v8907_v55, %v8906_v14  ;;  %v8860_v14 = vld [vmem:[%s10408_s19 + $0xd1] sm:$0xff]  ;;  %v8861_v55 = vld [vmem:[%s10408_s19 + $0xd9] sm:$0xff] }
 0x2b5   : > { %v12333_v28 = vadd.f32 %v10027_v20, %v4859_v34  ;;  %v4857_v46 = vadd.f32 %v4730_v49, %v12164_v56  ;;  %v10028_v48 = vpop.f32.mrf.mxu0  ;;  %v8908_v20 = vld [vmem:[%s10408_s19 + $0xb2] sm:$0xff] }
 0x2b6   : > { %v9994_v17 = vpop.f32.mrf.mxu1 }
 0x2b7   : > { %v12336_v6 = vadd.f32 %v5030_v8, %v4857_v46  ;;  %v4860_v60 = vadd.f32 %v9994_v17, %v12167_v41  ;;  %v5033_v59 = vpop.f32.mrf.mxu0  ;;  %v8854_v41 = vld [vmem:[%s10408_s19 + $0xa1] sm:$0xff] }
 0x2b8   : > { %v4733_v33 = vpop.f32.mrf.mxu1 }
 0x2b9   : > { %v12339_v50 = vadd.f32 %v10028_v48, %v4860_v60  ;;  %v4858_v56 = vadd.f32 %v4733_v33, %v12175_v43  ;;  %v10031_v18 = vpop.f32.mrf.mxu0  ;;  %10234 = vmatmul.mubr.msk.bf16.gmra.mxu0 %vm264_vm0, %v6726_v5  ;;  %v8855_v43 = vld [vmem:[%s10408_s19 + $0xa9] sm:$0xff]  ;;  %v6429_v48 = vpack.c.bf16 %v8857_v30, %v8856_v42 }
 0x2ba   : > { %v9997_v40 = vpop.f32.mrf.mxu1  ;;  %10200 = vmatmul.mubr.msk.bf16.gmra.mxu1 %vm264_vm0, %v6426_v51  ;;  %10237 = vmatprep.mubr.msk.bf16.mxu0 %vm264_vm0, %v6727_v13  ;;  %v6428_v49 = vpack.c.bf16 %v8855_v43, %v8854_v41  ;;  %v8910_v60 = vld [vmem:[%s10408_s19 + $0xc2] sm:$0xff] }
 0x2bb   : > { %v12348_v47 = vadd.f32 %v5033_v59, %v4858_v56  ;;  %v4863_v22 = vadd.f32 %v9997_v40, %v12181_v19  ;;  %v5046_v53 = vpop.f32.mrf.mxu0  ;;  %10203 = vmatprep.mubr.msk.bf16.mxu1 %vm264_vm0, %v6427_v52  ;;  %v6729_v19 = vpack.c.bf16 %v8909_v7, %v8908_v20  ;;  %v8911_v59 = vld [vmem:[%s10408_s19 + $0xca] sm:$0xff]  ;;  %v8913_v40 = vld [vmem:[%s10408_s19 + $0xda] sm:$0xff] }
 0x2bc   : > { %v4746_v37 = vpop.f32.mrf.mxu1  ;;  %v6730_v20 = vpack.c.bf16 %v8911_v59, %v8910_v60  ;;  %v8864_v60 = vld [vmem:[%s10408_s19 + $0xf1] sm:$0xff]  ;;  %v8865_v59 = vld [vmem:[%s10408_s19 + $0xf9] sm:$0xff] }
 0x2bd   : > { %v12357_v34 = vadd.f32 %v10031_v18, %v4863_v22  ;;  %v4861_v8 = vadd.f32 %v4746_v37, %v12184_v38  ;;  %v10032_v4 = vpop.f32.mrf.mxu0  ;;  %v8912_v18 = vld [vmem:[%s10408_s19 + $0xd2] sm:$0xff] }
 0x2be   : > { %v9998_v2 = vpop.f32.mrf.mxu1 }
 0x2bf   : > { %v12360_v0 = vadd.f32 %v5046_v53, %v4861_v8  ;;  %v4864_v44 = vadd.f32 %v9998_v2, %v12187_v16  ;;  %v5049_v46 = vpop.f32.mrf.mxu0  ;;  %v8858_v16 = vld [vmem:[%s10408_s19 + $0xc1] sm:$0xff] }
 0x2c0   : > { %v4749_v5 = vpop.f32.mrf.mxu1 }
 0x2c1   : > { %v12363_v17 = vadd.f32 %v10032_v4, %v4864_v44  ;;  %v4862_v38 = vadd.f32 %v4749_v5, %v12195_v58  ;;  %v10035_v51 = vpop.f32.mrf.mxu0  ;;  %10238 = vmatmul.mubr.msk.bf16.gmra.mxu0 %vm264_vm0, %v6728_v61  ;;  %v8859_v58 = vld [vmem:[%s10408_s19 + $0xc9] sm:$0xff]  ;;  %v6431_v4 = vpack.c.bf16 %v8861_v55, %v8860_v14 }
 0x2c2   : > { %v10001_v13 = vpop.f32.mrf.mxu1  ;;  %10204 = vmatmul.mubr.msk.bf16.gmra.mxu1 %vm264_vm0, %v6428_v49  ;;  %10241 = vmatprep.mubr.msk.bf16.mxu0 %vm264_vm0, %v6729_v19  ;;  %v6430_v37 = vpack.c.bf16 %v8859_v58, %v8858_v16  ;;  %v8914_v44 = vld [vmem:[%s10408_s19 + $0xe2] sm:$0xff] }
 0x2c3   : > { %v12372_v52 = vadd.f32 %v5049_v46, %v4862_v38  ;;  %v4867_v33 = vadd.f32 %v10001_v13, %v12201_v62  ;;  %v5062_v56 = vpop.f32.mrf.mxu0  ;;  %10207 = vmatprep.mubr.msk.bf16.mxu1 %vm264_vm0, %v6429_v48  ;;  %v6731_v62 = vpack.c.bf16 %v8913_v40, %v8912_v18  ;;  %v8915_v46 = vld [vmem:[%s10408_s19 + $0xea] sm:$0xff]  ;;  %v8917_v13 = vld [vmem:[%s10408_s19 + $0xfa] sm:$0xff] }
 0x2c4   : > { %v4762_v41 = vpop.f32.mrf.mxu1  ;;  %v6732_v18 = vpack.c.bf16 %v8915_v46, %v8914_v44  ;;  %v8868_v44 = vld [vmem:[%s10408_s19 + $0x111] sm:$0xff]  ;;  %v8869_v46 = vld [vmem:[%s10408_s19 + $0x119] sm:$0xff] }
 0x2c5   : > { %v12381_v22 = vadd.f32 %v10035_v51, %v4867_v33  ;;  %v4865_v53 = vadd.f32 %v4762_v41, %v12204_v1  ;;  %v10036_v43 = vpop.f32.mrf.mxu0  ;;  %v8916_v51 = vld [vmem:[%s10408_s19 + $0xf2] sm:$0xff] }
 0x2c6   : > { %v10002_v7 = vpop.f32.mrf.mxu1 }
 0x2c7   : > { %v12384_v42 = vadd.f32 %v5062_v56, %v4865_v53  ;;  %v4868_v30 = vadd.f32 %v10002_v7, %v12207_v25  ;;  %v5065_v8 = vpop.f32.mrf.mxu0  ;;  %v8862_v25 = vld [vmem:[%s10408_s19 + $0xe1] sm:$0xff] }
 0x2c8   : > { %v4765_v61 = vpop.f32.mrf.mxu1 }
 0x2c9   : > { %v12387_v2 = vadd.f32 %v10036_v43, %v4868_v30  ;;  %v4866_v1 = vadd.f32 %v4765_v61, %v12215_v15  ;;  %v10039_v49 = vpop.f32.mrf.mxu0  ;;  %10242 = vmatmul.mubr.msk.bf16.gmra.mxu0 %vm264_vm0, %v6730_v20  ;;  %v8863_v15 = vld [vmem:[%s10408_s19 + $0xe9] sm:$0xff]  ;;  %v6433_v43 = vpack.c.bf16 %v8865_v59, %v8864_v60 }
 0x2ca   : > { %v10005_v19 = vpop.f32.mrf.mxu1  ;;  %10208 = vmatmul.mubr.msk.bf16.gmra.mxu1 %vm264_vm0, %v6430_v37  ;;  %10245 = vmatprep.mubr.msk.bf16.mxu0 %vm264_vm0, %v6731_v62  ;;  %v6432_v41 = vpack.c.bf16 %v8863_v15, %v8862_v25  ;;  %v8918_v30 = vld [vmem:[%s10408_s19 + $0x102] sm:$0xff] }
 0x2cb   : > { %v12396_v48 = vadd.f32 %v5065_v8, %v4866_v1  ;;  %v4871_v5 = vadd.f32 %v10005_v19, %v12221_v36  ;;  %v5078_v38 = vpop.f32.mrf.mxu0  ;;  %10211 = vmatprep.mubr.msk.bf16.mxu1 %vm264_vm0, %v6431_v4  ;;  %v6733_v36 = vpack.c.bf16 %v8917_v13, %v8916_v51  ;;  %v8919_v8 = vld [vmem:[%s10408_s19 + $0x10a] sm:$0xff]  ;;  %v8921_v19 = vld [vmem:[%s10408_s19 + $0x11a] sm:$0xff] }
 0x2cc   : > { %v4778_v16 = vpop.f32.mrf.mxu1  ;;  %v6734_v51 = vpack.c.bf16 %v8919_v8, %v8918_v30  ;;  %v8872_v30 = vld [vmem:[%s10408_s19 + $0x131] sm:$0xff]  ;;  %v8873_v8 = vld [vmem:[%s10408_s19 + $0x139] sm:$0xff] }
 0x2cd   : > { %v12405_v33 = vadd.f32 %v10039_v49, %v4871_v5  ;;  %v4869_v56 = vadd.f32 %v4778_v16, %v12224_v12  ;;  %v10040_v58 = vpop.f32.mrf.mxu0  ;;  %v8920_v49 = vld [vmem:[%s10408_s19 + $0x112] sm:$0xff] }
 0x2ce   : > { %v10006_v40 = vpop.f32.mrf.mxu1 }
 0x2cf   : > { %v12408_v14 = vadd.f32 %v5078_v38, %v4869_v56  ;;  %v4872_v55 = vadd.f32 %v10006_v40, %v12227_v27  ;;  %v5081_v53 = vpop.f32.mrf.mxu0  ;;  %v8866_v27 = vld [vmem:[%s10408_s19 + $0x101] sm:$0xff] }
 0x2d0   : > { %v4781_v20 = vpop.f32.mrf.mxu1 }
 0x2d1   : > { %v12411_v7 = vadd.f32 %v10040_v58, %v4872_v55  ;;  %v4870_v12 = vadd.f32 %v4781_v20, %v12235_v45  ;;  %v10043_v37 = vpop.f32.mrf.mxu0  ;;  %10246 = vmatmul.mubr.msk.bf16.gmra.mxu0 %vm264_vm0, %v6732_v18  ;;  %v8867_v45 = vld [vmem:[%s10408_s19 + $0x109] sm:$0xff]  ;;  %v6435_v58 = vpack.c.bf16 %v8869_v46, %v8868_v44 }
 0x2d2   : > { %v10009_v62 = vpop.f32.mrf.mxu1  ;;  %10212 = vmatmul.mubr.msk.bf16.gmra.mxu1 %vm264_vm0, %v6432_v41  ;;  %10249 = vmatprep.mubr.msk.bf16.mxu0 %vm264_vm0, %v6733_v36  ;;  %v6434_v16 = vpack.c.bf16 %v8867_v45, %v8866_v27  ;;  %v8922_v55 = vld [vmem:[%s10408_s19 + $0x122] sm:$0xff] }
 0x2d3   : > { %v12420_v4 = vadd.f32 %v5081_v53, %v4870_v12  ;;  %v4875_v61 = vadd.f32 %v10009_v62, %v12241_v39  ;;  %v5094_v1 = vpop.f32.mrf.mxu0  ;;  %10215 = vmatprep.mubr.msk.bf16.mxu1 %vm264_vm0, %v6433_v43  ;;  %v6735_v39 = vpack.c.bf16 %v8921_v19, %v8920_v49  ;;  %v8923_v53 = vld [vmem:[%s10408_s19 + $0x12a] sm:$0xff]  ;;  %v8925_v62 = vld [vmem:[%s10408_s19 + $0x13a] sm:$0xff] }
 0x2d4   : > { %v4794_v25 = vpop.f32.mrf.mxu1  ;;  %v6736_v49 = vpack.c.bf16 %v8923_v53, %v8922_v55  ;;  %v8948_v55 = vld [vmem:[%s10408_s19 + $0x53] sm:$0xff]  ;;  %v8949_v53 = vld [vmem:[%s10408_s19 + $0x5b] sm:$0xff] }
 0x2d5   : > { %v12429_v5 = vadd.f32 %v10043_v37, %v4875_v61  ;;  %v4873_v38 = vadd.f32 %v4794_v25, %v12244_v26  ;;  %v10044_v15 = vpop.f32.mrf.mxu0  ;;  %v8924_v37 = vld [vmem:[%s10408_s19 + $0x132] sm:$0xff] }
 0x2d6   : > { %v10010_v13 = vpop.f32.mrf.mxu1 }
 0x2d7   : > { %v12432_v60 = vadd.f32 %v5094_v1, %v4873_v38  ;;  %v4876_v59 = vadd.f32 %v10010_v13, %v12247_v31  ;;  %v5097_v56 = vpop.f32.mrf.mxu0  ;;  %v8870_v31 = vld [vmem:[%s10408_s19 + $0x121] sm:$0xff] }
 0x2d8   : > { %v4797_v18 = vpop.f32.mrf.mxu1 }
 0x2d9   : > { %v12435_v40 = vadd.f32 %v10044_v15, %v4876_v59  ;;  %v4874_v26 = vadd.f32 %v4797_v18, %v12255_v3  ;;  %v10047_v41 = vpop.f32.mrf.mxu0  ;;  %10250 = vmatmul.mubr.msk.bf16.gmra.mxu0 %vm264_vm0, %v6734_v51  ;;  %v8871_v3 = vld [vmem:[%s10408_s19 + $0x129] sm:$0xff]  ;;  %v6437_v15 = vpack.c.bf16 %v8873_v8, %v8872_v30 }
 0x2da   : > { %v10013_v36 = vpop.f32.mrf.mxu1  ;;  %10216 = vmatmul.mubr.msk.bf16.gmra.mxu1 %vm264_vm0, %v6434_v16  ;;  %10253 = vmatprep.mubr.msk.bf16.mxu0 %vm264_vm0, %v6735_v39  ;;  %v6436_v25 = vpack.c.bf16 %v8871_v3, %v8870_v31  ;;  %v8926_v59 = vld [vmem:[%s10408_s19 + $0x142] sm:$0xff] }
 0x2db   : > { %v12444_v43 = vadd.f32 %v5097_v56, %v4874_v26  ;;  %v4879_v20 = vadd.f32 %v10013_v36, %v12261_v35  ;;  %v5110_v12 = vpop.f32.mrf.mxu0  ;;  %10219 = vmatprep.mubr.msk.bf16.mxu1 %vm264_vm0, %v6435_v58  ;;  %v6737_v35 = vpack.c.bf16 %v8925_v62, %v8924_v37  ;;  %v8927_v56 = vld [vmem:[%s10408_s19 + $0x14a] sm:$0xff]  ;;  %v9001_v36 = vld [vmem:[%s10408_s19 + $0x5c] sm:$0xff] }
 0x2dc   : > { %v4810_v27 = vpop.f32.mrf.mxu1  ;;  %v6738_v37 = vpack.c.bf16 %v8927_v56, %v8926_v59  ;;  %v8952_v59 = vld [vmem:[%s10408_s19 + $0x73] sm:$0xff]  ;;  %v8953_v56 = vld [vmem:[%s10408_s19 + $0x7b] sm:$0xff] }
 0x2dd   : > { %v12453_v61 = vadd.f32 %v10047_v41, %v4879_v20  ;;  %v4877_v1 = vadd.f32 %v4810_v27, %v12264_v24  ;;  %v10048_v45 = vpop.f32.mrf.mxu0  ;;  %v9000_v41 = vld [vmem:[%s10408_s19 + $0x54] sm:$0xff] }
 0x2de   : > { %v10014_v19 = vpop.f32.mrf.mxu1 }
 0x2df   : > { %v12456_v44 = vadd.f32 %v5110_v12, %v4877_v1  ;;  %v4880_v46 = vadd.f32 %v10014_v19, %v12267_v32  ;;  %v5113_v38 = vpop.f32.mrf.mxu0  ;;  %v8874_v32 = vld [vmem:[%s10408_s19 + $0x141] sm:$0xff] }
 0x2e0   : > { %v4813_v51 = vpop.f32.mrf.mxu1 }
 0x2e1   : > { %v12459_v13 = vadd.f32 %v10048_v45, %v4880_v46  ;;  %v4878_v24 = vadd.f32 %v4813_v51, %v12275_v11  ;;  %v10051_v16 = vpop.f32.mrf.mxu0  ;;  %10254 = vmatmul.mubr.msk.bf16.gmra.mxu0 %vm264_vm0, %v6736_v49  ;;  %v8875_v11 = vld [vmem:[%s10408_s19 + $0x149] sm:$0xff]  ;;  %v7023_v45 = vpack.c.bf16 %v8949_v53, %v8948_v55 }
 0x2e2   : > { %v10017_v39 = vpop.f32.mrf.mxu1  ;;  %10220 = vmatmul.mubr.msk.bf16.gmra.mxu1 %vm264_vm0, %v6436_v25  ;;  %10257 = vmatprep.mubr.msk.bf16.mxu0 %vm264_vm0, %v6737_v35  ;;  %v6438_v27 = vpack.c.bf16 %v8875_v11, %v8874_v32  ;;  %v9002_v46 = vld [vmem:[%s10408_s19 + $0x64] sm:$0xff] }
 0x2e3   : > { %v12468_v58 = vadd.f32 %v5113_v38, %v4878_v24  ;;  %v4883_v18 = vadd.f32 %v10017_v39, %v12283_v21  ;;  %v5126_v26 = vpop.f32.mrf.mxu0  ;;  %10223 = vmatprep.mubr.msk.bf16.mxu1 %vm264_vm0, %v6437_v15  ;;  %v7323_v21 = vpack.c.bf16 %v9001_v36, %v9000_v41  ;;  %v9003_v38 = vld [vmem:[%s10408_s19 + $0x6c] sm:$0xff]  ;;  %v9005_v39 = vld [vmem:[%s10408_s19 + $0x7c] sm:$0xff] }
 0x2e4   : > { %v4826_v31 = vpop.f32.mrf.mxu1  ;;  %v7324_v41 = vpack.c.bf16 %v9003_v38, %v9002_v46  ;;  %v8956_v46 = vld [vmem:[%s10408_s19 + $0x93] sm:$0xff]  ;;  %v8957_v38 = vld [vmem:[%s10408_s19 + $0x9b] sm:$0xff] }
 0x2e5   : > { %v12477_v20 = vadd.f32 %v10051_v16, %v4883_v18  ;;  %v4881_v12 = vadd.f32 %v4826_v31, %v12286_v23  ;;  %v10052_v3 = vpop.f32.mrf.mxu0  ;;  %v9004_v16 = vld [vmem:[%s10408_s19 + $0x74] sm:$0xff] }
 0x2e6   : > { %v10018_v62 = vpop.f32.mrf.mxu1 }
 0x2e7   : > { %v12480_v30 = vadd.f32 %v5126_v26, %v4881_v12  ;;  %v4884_v8 = vadd.f32 %v10018_v62, %v12289_v57  ;;  %v5129_v1 = vpop.f32.mrf.mxu0  ;;  %v8950_v57 = vld [vmem:[%s10408_s19 + $0x63] sm:$0xff] }
 0x2e8   : > { %v4829_v49 = vpop.f32.mrf.mxu1 }
 0x2e9   : > { %v12483_v19 = vadd.f32 %v10052_v3, %v4884_v8  ;;  %v4882_v23 = vadd.f32 %v4829_v49, %v12297_v63  ;;  %v10055_v25 = vpop.f32.mrf.mxu0  ;;  %10258 = vmatmul.mubr.msk.bf16.gmra.mxu0 %vm264_vm0, %v6738_v37  ;;  %v8951_v63 = vld [vmem:[%s10408_s19 + $0x6b] sm:$0xff]  ;;  %v7025_v3 = vpack.c.bf16 %v8953_v56, %v8952_v59 }
 0x2ea   : > { %v10021_v35 = vpop.f32.mrf.mxu1  ;;  %10224 = vmatmul.mubr.msk.bf16.gmra.mxu1 %vm264_vm0, %v6438_v27  ;;  %10297 = vmatprep.mubr.msk.bf16.mxu0 %vm264_vm0, %v7323_v21  ;;  %v7024_v31 = vpack.c.bf16 %v8951_v63, %v8950_v57  ;;  %v9006_v8 = vld [vmem:[%s10408_s19 + $0x84] sm:$0xff] }
 0x2eb   : > { %v12492_v15 = vadd.f32 %v5129_v1, %v4882_v23  ;;  %v4887_v51 = vadd.f32 %v10021_v35, %v12305_v10  ;;  %v5142_v24 = vpop.f32.mrf.mxu0  ;;  %10263 = vmatprep.mubr.msk.bf16.mxu1 %vm264_vm0, %v7023_v45  ;;  %v7325_v10 = vpack.c.bf16 %v9005_v39, %v9004_v16  ;;  %v9007_v1 = vld [vmem:[%s10408_s19 + $0x8c] sm:$0xff]  ;;  %v9009_v35 = vld [vmem:[%s10408_s19 + $0x9c] sm:$0xff] }
 0x2ec   : > { %v4842_v32 = vpop.f32.mrf.mxu1  ;;  %v7326_v16 = vpack.c.bf16 %v9007_v1, %v9006_v8  ;;  %v8960_v8 = vld [vmem:[%s10408_s19 + $0xb3] sm:$0xff]  ;;  %v8961_v1 = vld [vmem:[%s10408_s19 + $0xbb] sm:$0xff] }
 0x2ed   : > { %v12501_v18 = vadd.f32 %v10055_v25, %v4887_v51  ;;  %v4885_v26 = vadd.f32 %v4842_v32, %v12310_v54  ;;  %v10056_v11 = vpop.f32.mrf.mxu0  ;;  %v9008_v25 = vld [vmem:[%s10408_s19 + $0x94] sm:$0xff] }
 0x2ee   : > { %v10022_v36 = vpop.f32.mrf.mxu1 }
 0x2ef   : > { %v12504_v55 = vadd.f32 %v5142_v24, %v4885_v26  ;;  %v4888_v53 = vadd.f32 %v10022_v36, %v12313_v9  ;;  %v5145_v12 = vpop.f32.mrf.mxu0  ;;  %v8954_v9 = vld [vmem:[%s10408_s19 + $0x83] sm:$0xff] }
 0x2f0   : > { %v4845_v37 = vpop.f32.mrf.mxu1 }
 0x2f1   : > { %v12507_v62 = vadd.f32 %v10056_v11, %v4888_v53  ;;  %v4886_v54 = vadd.f32 %v4845_v37, %v12322_v29  ;;  %v10095_v27 = vpop.f32.mrf.mxu0  ;;  %10298 = vmatmul.mubr.msk.bf16.vlgmr.msra.gmra.mxu0 %vm264_vm0, %v7324_v41  ;;  %v8955_v29 = vld [vmem:[%s10408_s19 + $0x8b] sm:$0xff]  ;;  %v7027_v11 = vpack.c.bf16 %v8957_v38, %v8956_v46 }
 0x2f2   : > { %v10061_v21 = vpop.f32.mrf.mxu1  ;;  %10264 = vmatmul.mubr.msk.bf16.vlgmr.msra.gmra.mxu1 %vm264_vm0, %v7024_v31  ;;  %10301 = vmatprep.mubr.msk.bf16.mxu0 %vm264_vm0, %v7325_v10  ;;  %v7026_v32 = vpack.c.bf16 %v8955_v29, %v8954_v9  ;;  %v9010_v53 = vld [vmem:[%s10408_s19 + $0xa4] sm:$0xff] }
 0x2f3   : > { %v12516_v45 = vadd.f32 %v5145_v12, %v4886_v54  ;;  %v5459_v49 = vadd.f32 %v10061_v21, %v12333_v28  ;;  %v5630_v23 = vpop.f32.mrf.mxu0  ;;  %10267 = vmatprep.mubr.msk.bf16.mxu1 %vm264_vm0, %v7025_v3  ;;  %v7327_v28 = vpack.c.bf16 %v9009_v35, %v9008_v25  ;;  %v9011_v12 = vld [vmem:[%s10408_s19 + $0xac] sm:$0xff]  ;;  %v9013_v21 = vld [vmem:[%s10408_s19 + $0xbc] sm:$0xff] }
 0x2f4   : > { %v5330_v57 = vpop.f32.mrf.mxu1  ;;  %v7328_v25 = vpack.c.bf16 %v9011_v12, %v9010_v53  ;;  %v8964_v53 = vld [vmem:[%s10408_s19 + $0xd3] sm:$0xff]  ;;  %v8965_v12 = vld [vmem:[%s10408_s19 + $0xdb] sm:$0xff] }
 0x2f5   : > { %v12525_v51 = vadd.f32 %v10095_v27, %v5459_v49  ;;  %v5457_v24 = vadd.f32 %v5330_v57, %v12336_v6  ;;  %v10096_v63 = vpop.f32.mrf.mxu0  ;;  %v9012_v27 = vld [vmem:[%s10408_s19 + $0xb4] sm:$0xff] }
 0x2f6   : > { %v10062_v39 = vpop.f32.mrf.mxu1 }
 0x2f7   : > { %v12528_v59 = vadd.f32 %v5630_v23, %v5457_v24  ;;  %v5460_v56 = vadd.f32 %v10062_v39, %v12339_v50  ;;  %v5633_v26 = vpop.f32.mrf.mxu0  ;;  %v8958_v50 = vld [vmem:[%s10408_s19 + $0xa3] sm:$0xff] }
 0x2f8   : > { %v5333_v41 = vpop.f32.mrf.mxu1 }
 0x2f9   : > { %v12531_v36 = vadd.f32 %v10096_v63, %v5460_v56  ;;  %v5458_v6 = vadd.f32 %v5333_v41, %v12348_v47  ;;  %v10099_v31 = vpop.f32.mrf.mxu0  ;;  %10302 = vmatmul.mubr.msk.bf16.gmra.mxu0 %vm264_vm0, %v7326_v16  ;;  %v8959_v47 = vld [vmem:[%s10408_s19 + $0xab] sm:$0xff]  ;;  %v7029_v63 = vpack.c.bf16 %v8961_v1, %v8960_v8 }
 0x2fa   : > { %v10065_v10 = vpop.f32.mrf.mxu1  ;;  %10268 = vmatmul.mubr.msk.bf16.gmra.mxu1 %vm264_vm0, %v7026_v32  ;;  %10305 = vmatprep.mubr.msk.bf16.mxu0 %vm264_vm0, %v7327_v28  ;;  %v7028_v57 = vpack.c.bf16 %v8959_v47, %v8958_v50  ;;  %v9014_v56 = vld [vmem:[%s10408_s19 + $0xc4] sm:$0xff] }
 0x2fb   : > { %v12540_v3 = vadd.f32 %v5633_v26, %v5458_v6  ;;  %v5463_v37 = vadd.f32 %v10065_v10, %v12357_v34  ;;  %v5646_v54 = vpop.f32.mrf.mxu0  ;;  %10271 = vmatprep.mubr.msk.bf16.mxu1 %vm264_vm0, %v7027_v11  ;;  %v7329_v34 = vpack.c.bf16 %v9013_v21, %v9012_v27  ;;  %v9015_v26 = vld [vmem:[%s10408_s19 + $0xcc] sm:$0xff]  ;;  %v9017_v10 = vld [vmem:[%s10408_s19 + $0xdc] sm:$0xff] }
 0x2fc   : > { %v5346_v9 = vpop.f32.mrf.mxu1  ;;  %v7330_v27 = vpack.c.bf16 %v9015_v26, %v9014_v56  ;;  %v8968_v56 = vld [vmem:[%s10408_s19 + $0xf3] sm:$0xff]  ;;  %v8969_v26 = vld [vmem:[%s10408_s19 + $0xfb] sm:$0xff] }
 0x2fd   : > { %v12549_v49 = vadd.f32 %v10099_v31, %v5463_v37  ;;  %v5461_v23 = vadd.f32 %v5346_v9, %v12360_v0  ;;  %v10100_v29 = vpop.f32.mrf.mxu0  ;;  %v9016_v31 = vld [vmem:[%s10408_s19 + $0xd4] sm:$0xff] }
 0x2fe   : > { %v10066_v35 = vpop.f32.mrf.mxu1 }
 0x2ff   : > { %v12552_v46 = vadd.f32 %v5646_v54, %v5461_v23  ;;  %v5464_v38 = vadd.f32 %v10066_v35, %v12363_v17  ;;  %v5649_v24 = vpop.f32.mrf.mxu0  ;;  %v8962_v17 = vld [vmem:[%s10408_s19 + $0xc3] sm:$0xff] }
 0x300   : > { %v5349_v16 = vpop.f32.mrf.mxu1 }
 0x301   : > { %v12555_v39 = vadd.f32 %v10100_v29, %v5464_v38  ;;  %v5462_v0 = vadd.f32 %v5349_v16, %v12372_v52  ;;  %v10103_v32 = vpop.f32.mrf.mxu0  ;;  %10306 = vmatmul.mubr.msk.bf16.gmra.mxu0 %vm264_vm0, %v7328_v25  ;;  %v8963_v52 = vld [vmem:[%s10408_s19 + $0xcb] sm:$0xff]  ;;  %v7031_v29 = vpack.c.bf16 %v8965_v12, %v8964_v53 }
 0x302   : > { %v10069_v28 = vpop.f32.mrf.mxu1  ;;  %10272 = vmatmul.mubr.msk.bf16.gmra.mxu1 %vm264_vm0, %v7028_v57  ;;  %10309 = vmatprep.mubr.msk.bf16.mxu0 %vm264_vm0, %v7329_v34  ;;  %v7030_v9 = vpack.c.bf16 %v8963_v52, %v8962_v17  ;;  %v9018_v38 = vld [vmem:[%s10408_s19 + $0xe4] sm:$0xff] }
 0x303   : > { %v12564_v11 = vadd.f32 %v5649_v24, %v5462_v0  ;;  %v5467_v41 = vadd.f32 %v10069_v28, %v12381_v22  ;;  %v5662_v6 = vpop.f32.mrf.mxu0  ;;  %10275 = vmatprep.mubr.msk.bf16.mxu1 %vm264_vm0, %v7029_v63  ;;  %v7331_v22 = vpack.c.bf16 %v9017_v10, %v9016_v31  ;;  %v9019_v24 = vld [vmem:[%s10408_s19 + $0xec] sm:$0xff]  ;;  %v9021_v28 = vld [vmem:[%s10408_s19 + $0xfc] sm:$0xff] }
 0x304   : > { %v5362_v50 = vpop.f32.mrf.mxu1  ;;  %v7332_v31 = vpack.c.bf16 %v9019_v24, %v9018_v38  ;;  %v8972_v38 = vld [vmem:[%s10408_s19 + $0x113] sm:$0xff]  ;;  %v8973_v24 = vld [vmem:[%s10408_s19 + $0x11b] sm:$0xff] }
 0x305   : > { %v12573_v37 = vadd.f32 %v10103_v32, %v5467_v41  ;;  %v5465_v54 = vadd.f32 %v5362_v50, %v12384_v42  ;;  %v10104_v47 = vpop.f32.mrf.mxu0  ;;  %v9020_v32 = vld [vmem:[%s10408_s19 + $0xf4] sm:$0xff] }
 0x306   : > { %v10070_v21 = vpop.f32.mrf.mxu1 }
 0x307   : > { %v12576_v8 = vadd.f32 %v5662_v6, %v5465_v54  ;;  %v5468_v1 = vadd.f32 %v10070_v21, %v12387_v2  ;;  %v5665_v23 = vpop.f32.mrf.mxu0  ;;  %v8966_v2 = vld [vmem:[%s10408_s19 + $0xe3] sm:$0xff] }
 0x308   : > { %v5365_v25 = vpop.f32.mrf.mxu1 }
 0x309   : > { %v12579_v35 = vadd.f32 %v10104_v47, %v5468_v1  ;;  %v5466_v42 = vadd.f32 %v5365_v25, %v12396_v48  ;;  %v10107_v57 = vpop.f32.mrf.mxu0  ;;  %10310 = vmatmul.mubr.msk.bf16.gmra.mxu0 %vm264_vm0, %v7330_v27  ;;  %v8967_v48 = vld [vmem:[%s10408_s19 + $0xeb] sm:$0xff]  ;;  %v7033_v47 = vpack.c.bf16 %v8969_v26, %v8968_v56 }
 0x30a   : > { %v10073_v34 = vpop.f32.mrf.mxu1  ;;  %10276 = vmatmul.mubr.msk.bf16.gmra.mxu1 %vm264_vm0, %v7030_v9  ;;  %10313 = vmatprep.mubr.msk.bf16.mxu0 %vm264_vm0, %v7331_v22  ;;  %v7032_v50 = vpack.c.bf16 %v8967_v48, %v8966_v2  ;;  %v9022_v1 = vld [vmem:[%s10408_s19 + $0x104] sm:$0xff] }
 0x30b   : > { %v12588_v63 = vadd.f32 %v5665_v23, %v5466_v42  ;;  %v5471_v16 = vadd.f32 %v10073_v34, %v12405_v33  ;;  %v5678_v0 = vpop.f32.mrf.mxu0  ;;  %10279 = vmatprep.mubr.msk.bf16.mxu1 %vm264_vm0, %v7031_v29  ;;  %v7333_v33 = vpack.c.bf16 %v9021_v28, %v9020_v32  ;;  %v9023_v23 = vld [vmem:[%s10408_s19 + $0x10c] sm:$0xff]  ;;  %v9025_v34 = vld [vmem:[%s10408_s19 + $0x11c] sm:$0xff] }
 0x30c   : > { %v5378_v17 = vpop.f32.mrf.mxu1  ;;  %v7334_v32 = vpack.c.bf16 %v9023_v23, %v9022_v1  ;;  %v8976_v1 = vld [vmem:[%s10408_s19 + $0x133] sm:$0xff]  ;;  %v8977_v23 = vld [vmem:[%s10408_s19 + $0x13b] sm:$0xff] }
 0x30d   : > { %v12597_v41 = vadd.f32 %v10107_v57, %v5471_v16  ;;  %v5469_v6 = vadd.f32 %v5378_v17, %v12408_v14  ;;  %v10108_v52 = vpop.f32.mrf.mxu0  ;;  %v9024_v57 = vld [vmem:[%s10408_s19 + $0x114] sm:$0xff] }
 0x30e   : > { %v10074_v10 = vpop.f32.mrf.mxu1 }
 0x30f   : > { %v12600_v53 = vadd.f32 %v5678_v0, %v5469_v6  ;;  %v5472_v12 = vadd.f32 %v10074_v10, %v12411_v7  ;;  %v5681_v54 = vpop.f32.mrf.mxu0  ;;  %v8970_v7 = vld [vmem:[%s10408_s19 + $0x103] sm:$0xff] }
 0x310   : > { %v5381_v27 = vpop.f32.mrf.mxu1 }
 0x311   : > { %v12603_v21 = vadd.f32 %v10108_v52, %v5472_v12  ;;  %v5470_v14 = vadd.f32 %v5381_v27, %v12420_v4  ;;  %v10111_v9 = vpop.f32.mrf.mxu0  ;;  %10314 = vmatmul.mubr.msk.bf16.gmra.mxu0 %vm264_vm0, %v7332_v31  ;;  %v8971_v4 = vld [vmem:[%s10408_s19 + $0x10b] sm:$0xff]  ;;  %v7035_v52 = vpack.c.bf16 %v8973_v24, %v8972_v38 }
 0x312   : > { %v10077_v22 = vpop.f32.mrf.mxu1  ;;  %10280 = vmatmul.mubr.msk.bf16.gmra.mxu1 %vm264_vm0, %v7032_v50  ;;  %10317 = vmatprep.mubr.msk.bf16.mxu0 %vm264_vm0, %v7333_v33  ;;  %v7034_v17 = vpack.c.bf16 %v8971_v4, %v8970_v7  ;;  %v9026_v12 = vld [vmem:[%s10408_s19 + $0x124] sm:$0xff] }
 0x313   : > { %v12612_v29 = vadd.f32 %v5681_v54, %v5470_v14  ;;  %v5475_v25 = vadd.f32 %v10077_v22, %v12429_v5  ;;  %v5694_v42 = vpop.f32.mrf.mxu0  ;;  %10283 = vmatprep.mubr.msk.bf16.mxu1 %vm264_vm0, %v7033_v47  ;;  %v7335_v5 = vpack.c.bf16 %v9025_v34, %v9024_v57  ;;  %v9027_v54 = vld [vmem:[%s10408_s19 + $0x12c] sm:$0xff]  ;;  %v9029_v22 = vld [vmem:[%s10408_s19 + $0x13c] sm:$0xff] }
 0x314   : > { %v5394_v2 = vpop.f32.mrf.mxu1  ;;  %v7336_v57 = vpack.c.bf16 %v9027_v54, %v9026_v12 }
 0x315   : > { %v12621_v16 = vadd.f32 %v10111_v9, %v5475_v25  ;;  %v5473_v0 = vadd.f32 %v5394_v2, %v12432_v60  ;;  %v10112_v48 = vpop.f32.mrf.mxu0  ;;  %v9028_v9 = vld [vmem:[%s10408_s19 + $0x134] sm:$0xff] }
 0x316   : > { %v10078_v28 = vpop.f32.mrf.mxu1 }
 0x317   : > { %v12624_v56 = vadd.f32 %v5694_v42, %v5473_v0  ;;  %v5476_v26 = vadd.f32 %v10078_v28, %v12435_v40  ;;  %v5697_v6 = vpop.f32.mrf.mxu0  ;;  %v8974_v40 = vld [vmem:[%s10408_s19 + $0x123] sm:$0xff] }
 0x318   : > { %v5397_v31 = vpop.f32.mrf.mxu1 }
 0x319   : > { %v12627_v10 = vadd.f32 %v10112_v48, %v5476_v26  ;;  %v5474_v60 = vadd.f32 %v5397_v31, %v12444_v43  ;;  %v10115_v50 = vpop.f32.mrf.mxu0  ;;  %10318 = vmatmul.mubr.msk.bf16.gmra.mxu0 %vm264_vm0, %v7334_v32  ;;  %v8975_v43 = vld [vmem:[%s10408_s19 + $0x12b] sm:$0xff]  ;;  %v7037_v48 = vpack.c.bf16 %v8977_v23, %v8976_v1 }
 0x31a   : > { %v10081_v33 = vpop.f32.mrf.mxu1  ;;  %10284 = vmatmul.mubr.msk.bf16.gmra.mxu1 %vm264_vm0, %v7034_v17  ;;  %10321 = vmatprep.mubr.msk.bf16.mxu0 %vm264_vm0, %v7335_v5  ;;  %v7036_v2 = vpack.c.bf16 %v8975_v43, %v8974_v40  ;;  %v9030_v26 = vld [vmem:[%s10408_s19 + $0x144] sm:$0xff] }
 0x31b   : > { %v12636_v47 = vadd.f32 %v5697_v6, %v5474_v60  ;;  %v5479_v27 = vadd.f32 %v10081_v33, %v12453_v61  ;;  %v5710_v14 = vpop.f32.mrf.mxu0  ;;  %10287 = vmatprep.mubr.msk.bf16.mxu1 %vm264_vm0, %v7035_v52  ;;  %v7337_v61 = vpack.c.bf16 %v9029_v22, %v9028_v9  ;;  %v9031_v6 = vld [vmem:[%s10408_s19 + $0x14c] sm:$0xff]  ;;  %v8978_v60 = vld [vmem:[%s10408_s19 + $0x143] sm:$0xff] }
 0x31c   : > { %v5410_v7 = vpop.f32.mrf.mxu1  ;;  %v7338_v54 = vpack.c.bf16 %v9031_v6, %v9030_v26 }
 0x31d   : > { %v12645_v25 = vadd.f32 %v10115_v50, %v5479_v27  ;;  %v5477_v42 = vadd.f32 %v5410_v7, %v12456_v44  ;;  %v10116_v4 = vpop.f32.mrf.mxu0  ;;  %v8979_v50 = vld [vmem:[%s10408_s19 + $0x14b] sm:$0xff]  ;;  %s7783_s19 = sshll.u32 %s7779_s13, 5 }
 0x31e   : > { %v10082_v34 = vpop.f32.mrf.mxu1  ;;  %p147_p3 = scmp.lt.s32.totalorder %s7783_s19, 127 }
 0x31f   : > { %v12648_v38 = vadd.f32 %v5710_v14, %v5477_v42  ;;  %v5480_v24 = vadd.f32 %v10082_v34, %v12459_v13  ;;  %v5713_v0 = vpop.f32.mrf.mxu0  ;;  %v7038_v14 = vpack.c.bf16 %v8979_v50, %v8978_v60 }
 0x320   : > { %v5413_v32 = vpop.f32.mrf.mxu1  ;;  %s13213_s19 = smov (!%p147_p3, %s7783_s19), 127 }
 0x321   : > { %v12651_v28 = vadd.f32 %v10116_v4, %v5480_v24  ;;  %v5478_v44 = vadd.f32 %v5413_v32, %v12468_v58  ;;  %v10119_v17 = vpop.f32.mrf.mxu0  ;;  %10322 = vmatmul.mubr.msk.bf16.gmra.mxu0 %vm264_vm0, %v7336_v57  ;;  %s7784_s13 = sshll.u32 %s13213_s19, 3 }
 0x322   : > { %v10085_v5 = vpop.f32.mrf.mxu1  ;;  %10288 = vmatmul.mubr.msk.bf16.gmra.mxu1 %vm264_vm0, %v7036_v2  ;;  %10325 = vmatprep.mubr.msk.bf16.mxu0 %vm264_vm0, %v7337_v61  ;;  %s12933_s24 = scalar_lea.vmem %s13118_s3, %s7784_s13 }
 0x323   : > { %v12659_v13 = vadd.f32 %v5713_v0, %v5478_v44  ;;  %v5483_v52 = vadd.f32 %v10085_v5, %v12477_v20  ;;  %v5726_v31 = vpop.f32.mrf.mxu0  ;;  %10291 = vmatprep.mubr.msk.bf16.mxu1 %vm264_vm0, %v7037_v48 }
 0x324   : > { %v5426_v58 = vpop.f32.mrf.mxu1 }
 0x325   : > { %v12665_v33 = vadd.f32 %v10119_v17, %v5483_v52  ;;  %v5481_v40 = vadd.f32 %v5426_v58, %v12480_v30  ;;  %v10120_v12 = vpop.f32.mrf.mxu0 }
 0x326   : > { %v10086_v27 = vpop.f32.mrf.mxu1 }
 0x327   : > { %v12668_v43 = vadd.f32 %v5726_v31, %v5481_v40  ;;  %v5484_v9 = vadd.f32 %v10086_v27, %v12483_v19  ;;  %v5729_v22 = vpop.f32.mrf.mxu0 }
 0x328   : > { %v5429_v20 = vpop.f32.mrf.mxu1 }
 0x329   : > { %v12671_v7 = vadd.f32 %v10120_v12, %v5484_v9  ;;  %v5482_v1 = vadd.f32 %v5429_v20, %v12492_v15  ;;  %v10123_v23 = vpop.f32.mrf.mxu0  ;;  %10326 = vmatmul.mubr.msk.bf16.gmra.mxu0 %vm264_vm0, %v7338_v54 }
 0x32a   : > { %v10089_v42 = vpop.f32.mrf.mxu1  ;;  %10292 = vmatmul.mubr.msk.bf16.gmra.mxu1 %vm264_vm0, %v7038_v14 }
 0x32b   : > { %v12676_v30 = vadd.f32 %v5729_v22, %v5482_v1  ;;  %v5487_v4 = vadd.f32 %v10089_v42, %v12501_v18  ;;  %v5742_v57 = vpop.f32.mrf.mxu0 }
 0x32c   : > { %v5442_v34 = vpop.f32.mrf.mxu1 }
 0x32d   : > { %v12679_v2 = vadd.f32 %v10123_v23, %v5487_v4  ;;  %v5485_v19 = vadd.f32 %v5442_v34, %v12504_v55  ;;  %v10124_v61 = vpop.f32.mrf.mxu0 }
 0x32e   : > { %v10090_v24 = vpop.f32.mrf.mxu1 }
 0x32f   : > { %v12682_v0 = vadd.f32 %v5742_v57, %v5485_v19  ;;  %v5488_v15 = vadd.f32 %v10090_v24, %v12507_v62  ;;  %v5745_v48 = vpop.f32.mrf.mxu0 }
 0x330   : > { %v5445_v32 = vpop.f32.mrf.mxu1 }
 0x331   : > { %v12685_v44 = vadd.f32 %v10124_v61, %v5488_v15  ;;  %v5486_v17 = vadd.f32 %v5445_v32, %v12516_v45  ;;  %v10163_v5 = vpop.f32.mrf.mxu0 }
 0x332   : > { %v10129_v18 = vpop.f32.mrf.mxu1 }
 0x333   : > { %v12688_v26 = vadd.f32 %v5745_v48, %v5486_v17  ;;  %v6059_v6 = vadd.f32 %v10129_v18, %v12525_v51  ;;  %v6230_v52 = vpop.f32.mrf.mxu0 }
 0x334   : > { %v5930_v55 = vpop.f32.mrf.mxu1 }
 0x335   : > { %v12691_v31 = vadd.f32 %v10163_v5, %v6059_v6  ;;  %v6057_v60 = vadd.f32 %v5930_v55, %v12528_v59  ;;  %v10164_v50 = vpop.f32.mrf.mxu0 }
 0x336   : > { %v10130_v62 = vpop.f32.mrf.mxu1 }
 0x337   : > { %v12694_v58 = vadd.f32 %v6230_v52, %v6057_v60  ;;  %v6060_v40 = vadd.f32 %v10130_v62, %v12531_v36  ;;  %v6233_v12 = vpop.f32.mrf.mxu0 }
 0x338   : > { %v5933_v45 = vpop.f32.mrf.mxu1 }
 0x339   : > { %v12697_v54 = vadd.f32 %v10164_v50, %v6060_v40  ;;  %v6058_v27 = vadd.f32 %v5933_v45, %v12540_v3  ;;  %v10167_v14 = vpop.f32.mrf.mxu0 }
 0x33a   : > { %v10133_v51 = vpop.f32.mrf.mxu1 }
 0x33b   : > { %v12700_v9 = vadd.f32 %v6233_v12, %v6058_v27  ;;  %v6063_v22 = vadd.f32 %v10133_v51, %v12549_v49  ;;  %v6246_v20 = vpop.f32.mrf.mxu0 }
 0x33c   : > { %v5946_v59 = vpop.f32.mrf.mxu1 }
 0x33d   : > { %v12703_v1 = vadd.f32 %v10167_v14, %v6063_v22  ;;  %v6061_v23 = vadd.f32 %v5946_v59, %v12552_v46  ;;  %v10168_v42 = vpop.f32.mrf.mxu0 }
 0x33e   : > { %v10134_v36 = vpop.f32.mrf.mxu1 }
 0x33f   : > { %v12706_v4 = vadd.f32 %v6246_v20, %v6061_v23  ;;  %v6064_v57 = vadd.f32 %v10134_v36, %v12555_v39  ;;  %v6249_v34 = vpop.f32.mrf.mxu0 }
 0x340   : > { %v5949_v3 = vpop.f32.mrf.mxu1 }
 0x341   : > { %v12709_v19 = vadd.f32 %v10168_v42, %v6064_v57  ;;  %v6062_v61 = vadd.f32 %v5949_v3, %v12564_v11  ;;  %v10171_v24 = vpop.f32.mrf.mxu0 }
 0x342   : > { %v10137_v49 = vpop.f32.mrf.mxu1 }
 0x343   : > { %v12712_v15 = vadd.f32 %v6249_v34, %v6062_v61  ;;  %v6067_v48 = vadd.f32 %v10137_v49, %v12573_v37  ;;  %v6262_v32 = vpop.f32.mrf.mxu0 }
 0x344   : > { %v5962_v46 = vpop.f32.mrf.mxu1 }
 0x345   : > { %v12715_v17 = vadd.f32 %v10171_v24, %v6067_v48  ;;  %v6065_v5 = vadd.f32 %v5962_v46, %v12576_v8  ;;  %v10172_v18 = vpop.f32.mrf.mxu0 }
 0x346   : > { %v10138_v39 = vpop.f32.mrf.mxu1 }
 0x347   : > { %v12718_v6 = vadd.f32 %v6262_v32, %v6065_v5  ;;  %v6068_v52 = vadd.f32 %v10138_v39, %v12579_v35  ;;  %v6265_v55 = vpop.f32.mrf.mxu0 }
 0x348   : > { %v5965_v11 = vpop.f32.mrf.mxu1 }
 0x349   : > { %v12721_v60 = vadd.f32 %v10172_v18, %v6068_v52  ;;  %v6066_v50 = vadd.f32 %v5965_v11, %v12588_v63  ;;  %v10175_v62 = vpop.f32.mrf.mxu0 }
 0x34a   : > { %v10141_v37 = vpop.f32.mrf.mxu1 }
 0x34b   : > { %v12724_v40 = vadd.f32 %v6265_v55, %v6066_v50  ;;  %v6071_v12 = vadd.f32 %v10141_v37, %v12597_v41  ;;  %v6278_v45 = vpop.f32.mrf.mxu0 }
 0x34c   : > { %v5978_v8 = vpop.f32.mrf.mxu1 }
 0x34d   : > { %v12727_v27 = vadd.f32 %v10175_v62, %v6071_v12  ;;  %v6069_v14 = vadd.f32 %v5978_v8, %v12600_v53  ;;  %v10176_v51 = vpop.f32.mrf.mxu0 }
 0x34e   : > { %v10142_v35 = vpop.f32.mrf.mxu1 }
 0x34f   : > { %v12730_v22 = vadd.f32 %v6278_v45, %v6069_v14  ;;  %v6072_v20 = vadd.f32 %v10142_v35, %v12603_v21  ;;  %v6281_v59 = vpop.f32.mrf.mxu0 }
 0x350   : > { %v5981_v63 = vpop.f32.mrf.mxu1 }
 0x351   : > { %v12733_v23 = vadd.f32 %v10176_v51, %v6072_v20  ;;  %v6070_v42 = vadd.f32 %v5981_v63, %v12612_v29  ;;  %v10179_v36 = vpop.f32.mrf.mxu0 }
 0x352   : > { %v10145_v41 = vpop.f32.mrf.mxu1 }
 0x353   : > { %v12736_v57 = vadd.f32 %v6281_v59, %v6070_v42  ;;  %v6075_v34 = vadd.f32 %v10145_v41, %v12621_v16  ;;  %v6294_v3 = vpop.f32.mrf.mxu0 }
 0x354   : > { %v5994_v53 = vpop.f32.mrf.mxu1 }
 0x355   : > { %v12739_v61 = vadd.f32 %v10179_v36, %v6075_v34  ;;  %v6073_v24 = vadd.f32 %v5994_v53, %v12624_v56  ;;  %v10180_v49 = vpop.f32.mrf.mxu0 }
 0x356   : > { %v10146_v21 = vpop.f32.mrf.mxu1 }
 0x357   : > { %v12742_v48 = vadd.f32 %v6294_v3, %v6073_v24  ;;  %v6076_v32 = vadd.f32 %v10146_v21, %v12627_v10  ;;  %v6297_v46 = vpop.f32.mrf.mxu0 }
 0x358   : > { %v5997_v29 = vpop.f32.mrf.mxu1 }
 0x359   : > { %v12745_v5 = vadd.f32 %v10180_v49, %v6076_v32  ;;  %v6074_v18 = vadd.f32 %v5997_v29, %v12636_v47  ;;  %v10183_v39 = vpop.f32.mrf.mxu0 }
 0x35a   : > { %v10149_v16 = vpop.f32.mrf.mxu1 }
 0x35b   : > { %13132 = vst [vmem:[#allocation3_spill] sm:$0xff] %v12745_v5  ;;  %v12748_v52 = vadd.f32 %v6297_v46, %v6074_v18  ;;  %v6079_v55 = vadd.f32 %v10149_v16, %v12645_v25  ;;  %v6310_v11 = vpop.f32.mrf.mxu0 }
 0x35c   : > { %v6010_v56 = vpop.f32.mrf.mxu1 }
 0x35d   : > { %13133 = vst [vmem:[#allocation2_spill] sm:$0xff] %v12748_v52  ;;  %v12751_v50 = vadd.f32 %v10183_v39, %v6079_v55  ;;  %v6077_v62 = vadd.f32 %v6010_v56, %v12648_v38  ;;  %v10184_v37 = vpop.f32.mrf.mxu0 }
 0x35e   : > { %v10150_v10 = vpop.f32.mrf.mxu1 }
 0x35f   : > { %13134 = vst [vmem:[#allocation5_spill] sm:$0xff] %v12751_v50  ;;  %v12754_v12 = vadd.f32 %v6310_v11, %v6077_v62  ;;  %v6080_v45 = vadd.f32 %v10150_v10, %v12651_v28  ;;  %v6313_v8 = vpop.f32.mrf.mxu0 }
 0x360   : > { %v6013_v47 = vpop.f32.mrf.mxu1 }
 0x361   : > { %13135 = vst [vmem:[#allocation4_spill] sm:$0xff] %v12754_v12  ;;  %v12757_v14 = vadd.f32 %v10184_v37, %v6080_v45  ;;  %v6078_v51 = vadd.f32 %v6013_v47, %v12659_v13  ;;  %v10187_v35 = vpop.f32.mrf.mxu0 }
 0x362   : > { %v10153_v25 = vpop.f32.mrf.mxu1 }
 0x363   : > { %13136 = vst [vmem:[#allocation6_spill] sm:$0xff] %v12757_v14  ;;  %v12760_v20 = vadd.f32 %v6313_v8, %v6078_v51  ;;  %v6083_v59 = vadd.f32 %v10153_v25, %v12665_v33  ;;  %v6326_v63 = vpop.f32.mrf.mxu0 }
 0x364   : > { %v6026_v38 = vpop.f32.mrf.mxu1 }
 0x365   : > { %13137 = vst [vmem:[#allocation7_spill] sm:$0xff] %v12760_v20  ;;  %v12763_v42 = vadd.f32 %v10187_v35, %v6083_v59  ;;  %v6081_v36 = vadd.f32 %v6026_v38, %v12668_v43  ;;  %v10188_v41 = vpop.f32.mrf.mxu0 }
 0x366   : > { %v10154_v28 = vpop.f32.mrf.mxu1 }
 0x367   : > { %13138 = vst [vmem:[#allocation8_spill] sm:$0xff] %v12763_v42  ;;  %v12766_v34 = vadd.f32 %v6326_v63, %v6081_v36  ;;  %v6084_v3 = vadd.f32 %v10154_v28, %v12671_v7  ;;  %v6329_v53 = vpop.f32.mrf.mxu0 }
 0x368   : > { %v6029_v13 = vpop.f32.mrf.mxu1 }
 0x369   : > { %13139 = vst [vmem:[#allocation9_spill] sm:$0xff] %v12766_v34  ;;  %v12769_v24 = vadd.f32 %v10188_v41, %v6084_v3  ;;  %v6082_v49 = vadd.f32 %v6029_v13, %v12676_v30  ;;  %v10191_v21 = vpop.f32.mrf.mxu0 }
 0x36a   : > { %v10157_v33 = vpop.f32.mrf.mxu1 }
 0x36b   : > { %13140 = vst [vmem:[#allocation10_spill] sm:$0xff] %v12769_v24  ;;  %v12772_v32 = vadd.f32 %v6329_v53, %v6082_v49  ;;  %v6087_v46 = vadd.f32 %v10157_v33, %v12679_v2  ;;  %v6342_v29 = vpop.f32.mrf.mxu0 }
 0x36c   : > { %v6042_v43 = vpop.f32.mrf.mxu1 }
 0x36d   : > { %13141 = vst [vmem:[#allocation11_spill] sm:$0xff] %v12772_v32  ;;  %v12775_v18 = vadd.f32 %v10191_v21, %v6087_v46  ;;  %v6085_v39 = vadd.f32 %v6042_v43, %v12682_v0  ;;  %v10192_v16 = vpop.f32.mrf.mxu0 }
 0x36e   : > { %v10158_v7 = vpop.f32.mrf.mxu1 }
 0x36f   : > { %13142 = vst [vmem:[#allocation12_spill] sm:$0xff] %v12775_v18  ;;  %v12778_v55 = vadd.f32 %v6342_v29, %v6085_v39  ;;  %v6088_v11 = vadd.f32 %v10158_v7, %v12685_v44  ;;  %v6345_v56 = vpop.f32.mrf.mxu0 }
 0x370   : > { %v6045_v30 = vpop.f32.mrf.mxu1 }
 0x371   : > { %13143 = vst [vmem:[#allocation13_spill] sm:$0xff] %v12778_v55  ;;  %v12781_v62 = vadd.f32 %v10192_v16, %v6088_v11  ;;  %v6086_v37 = vadd.f32 %v6045_v30, %v12688_v26  ;;  %v12784_v10 = vpop.f32.mrf.mxu0 }
 0x372   : > { %v10197_v2 = vpop.f32.mrf.mxu1 }
 0x373   : > { %13144 = vst [vmem:[#allocation14_spill] sm:$0xff] %v12781_v62  ;;  %v12786_v45 = vadd.f32 %v6345_v56, %v6086_v37  ;;  %v12788_v8 = vpop.f32.mrf.mxu0 }
 0x374   : > { %v6530_v0 = vpop.f32.mrf.mxu1 }
 0x375   : > { %13145 = vst [vmem:[#allocation15_spill] sm:$0xff] %v12786_v45  ;;  %v12790_v47 = vpop.f32.mrf.mxu0 }
 0x376   : > { %v12792_v51 = vpop.f32.mrf.mxu1 }
 0x377   : > { %v12794_v35 = vpop.f32.mrf.mxu0 }
 0x378   : > { %v12796_v44 = vpop.f32.mrf.mxu1 }
 0x379   : > { %v12798_v25 = vpop.f32.mrf.mxu0 }
 0x37a   : > { %v12800_v59 = vpop.f32.mrf.mxu1 }
 0x37b   : > { %v12802_v26 = vpop.f32.mrf.mxu0 }
 0x37c   : > { %v12804_v63 = vpop.f32.mrf.mxu1 }
 0x37d   : > { %v12806_v38 = vpop.f32.mrf.mxu0 }
 0x37e   : > { %v12808_v36 = vpop.f32.mrf.mxu1 }
 0x37f   : > { %v12810_v41 = vpop.f32.mrf.mxu0 }
 0x380   : > { %v12812_v28 = vpop.f32.mrf.mxu1 }
 0x381   : > { %v12814_v3 = vpop.f32.mrf.mxu0 }
 0x382   : > { %v12816_v53 = vpop.f32.mrf.mxu1 }
 0x383   : > { %v12818_v13 = vpop.f32.mrf.mxu0 }
 0x384   : > { %v12820_v49 = vpop.f32.mrf.mxu1 }
 0x385   : > { %v12822_v21 = vpop.f32.mrf.mxu0 }
 0x386   : > { %v12824_v33 = vpop.f32.mrf.mxu1 }
 0x387   : > { %v12826_v46 = vpop.f32.mrf.mxu0 }
 0x388   : > { %v12828_v29 = vpop.f32.mrf.mxu1 }
 0x389   : > { %v12830_v43 = vpop.f32.mrf.mxu0 }
 0x38a   : > { %v12832_v39 = vpop.f32.mrf.mxu1 }
 0x38b   : > { %v12834_v16 = vpop.f32.mrf.mxu0 }
 0x38c   : > { %v12836_v7 = vpop.f32.mrf.mxu1 }
 0x38d   : > { %v12838_v11 = vpop.f32.mrf.mxu0 }
 0x38e   : > { %v12840_v56 = vpop.f32.mrf.mxu1 }
 0x38f   : > { %v12842_v30 = vpop.f32.mrf.mxu0 }
 0x390   : > { %v12844_v37 = vpop.f32.mrf.mxu1 }
 0x391   : > { %v12846_v45 = vpop.f32.mrf.mxu0 }
 0x392   : > { %v12848_v62 = vpop.f32.mrf.mxu1 }
 0x393   : > { %v12850_v55 = vpop.f32.mrf.mxu0 }
 0x394   : > { %13146 = vst [vmem:[#allocation16_spill] sm:$0xff] %v12850_v55  ;;  %v12852_v18 = vpop.f32.mrf.mxu1 }
 0x395   : > { %v12854_v32 = vpop.f32.mrf.mxu0 }
 0x396   : > { %13147 = vst [vmem:[#allocation17_spill] sm:$0xff] %v12854_v32  ;;  %v12856_v24 = vpop.f32.mrf.mxu1 }
 0x397   : > { %13148 = vst [vmem:[#allocation18_spill] sm:$0xff] %v12856_v24  ;;  %v12858_v34 = vpop.f32.mrf.mxu0 }
 0x398   : > { %13149 = vst [vmem:[#allocation19_spill] sm:$0xff] %v12858_v34  ;;  %v12860_v42 = vpop.f32.mrf.mxu1 }
 0x399   : > { %13150 = vst [vmem:[#allocation20_spill] sm:$0xff] %v12860_v42  ;;  %v12862_v20 = vpop.f32.mrf.mxu0 }
 0x39a   : > { %13151 = vst [vmem:[#allocation21_spill] sm:$0xff] %v12862_v20  ;;  %v12864_v14 = vpop.f32.mrf.mxu1 }
 0x39b   : > { %13152 = vst [vmem:[#allocation22_spill] sm:$0xff] %v12864_v14  ;;  %v12866_v12 = vpop.f32.mrf.mxu0 }
 0x39c   : > { %13153 = vst [vmem:[#allocation23_spill] sm:$0xff] %v12866_v12  ;;  %v12868_v50 = vpop.f32.mrf.mxu1 }
 0x39d   : > { %13154 = vst [vmem:[#allocation24_spill] sm:$0xff] %v12868_v50  ;;  %v12870_v52 = vpop.f32.mrf.mxu0 }
 0x39e   : > { %13155 = vst [vmem:[#allocation25_spill] sm:$0xff] %v12870_v52  ;;  %v12872_v55 = vpop.f32.mrf.mxu1 }
 0x39f   : > { %v12874_v32 = vpop.f32.mrf.mxu0 }
 0x3a0   : > { %13156 = vst [vmem:[#allocation26_spill] sm:$0xff] %v12874_v32  ;;  %v12876_v24 = vpop.f32.mrf.mxu1 }
 0x3a1   : > { %13157 = vst [vmem:[#allocation27_spill] sm:$0xff] %v12876_v24  ;;  %v12878_v34 = vpop.f32.mrf.mxu0 }
 0x3a2   : > { %13158 = vst [vmem:[#allocation28_spill] sm:$0xff] %v12878_v34  ;;  %v12880_v42 = vpop.f32.mrf.mxu1 }
 0x3a3   : > { %13159 = vst [vmem:[#allocation29_spill] sm:$0xff] %v12880_v42  ;;  %v12882_v20 = vpop.f32.mrf.mxu0 }
 0x3a4   : > { %13160 = vst [vmem:[#allocation30_spill] sm:$0xff] %v12882_v20  ;;  %v12884_v5 = vpop.f32.mrf.mxu1 }
 0x3a5   : > { %13161 = vst [vmem:[#allocation31_spill] sm:$0xff] %v12884_v5  ;;  %v12886_v14 = vpop.f32.mrf.mxu0  ;;  %v6659_v5 = vadd.f32 %v10197_v2, %v12691_v31  ;;  %v6658_v2 = vadd.f32 %v12796_v44, %v12700_v9  ;;  %v6661_v9 = vadd.f32 %v12804_v63, %v12706_v4  ;;  %v6664_v4 = vadd.f32 %v12808_v36, %v12709_v19 }
 0x3a6   : > { %13162 = vst [vmem:[#allocation32_spill] sm:$0xff] %v12886_v14  ;;  %v12888_v12 = vpop.f32.mrf.mxu1 }
 0x3a7   : > { %13163 = vst [vmem:[#allocation33_spill] sm:$0xff] %v12888_v12  ;;  %v12890_v50 = vpop.f32.mrf.mxu0 }
 0x3a8   : > { %13164 = vst [vmem:[#allocation34_spill] sm:$0xff] %v12890_v50  ;;  %v12892_v52 = vpop.f32.mrf.mxu1  ;;  %v6657_v50 = vadd.f32 %v6530_v0, %v12694_v58  ;;  %v6663_v0 = vadd.f32 %v12800_v59, %v12703_v1 }
 0x3a9   : > { %13165 = vst [vmem:[#allocation35_spill] sm:$0xff] %v12892_v52  ;;  %v12896_v32 = vpop.f32.mrf.mxu0 }
 0x3aa   : > { %13166 = vst [vmem:[#allocation36_spill] sm:$0xff] %v12896_v32  ;;  %v12898_v24 = vpop.f32.mrf.mxu1  ;;  %v6959_v32 = vadd.f32 %v12784_v10, %v6659_v5  ;;  %v6957_v31 = vadd.f32 %v12788_v8, %v6657_v50  ;;  %v12925_v5 = vld [vmem:[%s13117_s2] ss:$0 sm:$0xff]  ;;  %v6963_v8 = vadd.f32 %v12798_v25, %v6663_v0  ;;  %v6667_v0 = vadd.f32 %v12816_v53, %v12715_v17 }
 0x3ab   : > { %13167 = vst [vmem:[#allocation37_spill] sm:$0xff] %v12898_v24  ;;  %v12900_v34 = vpop.f32.mrf.mxu0 }
 0x3ac   : > { %13168 = vst [vmem:[#allocation38_spill] sm:$0xff] %v12900_v34  ;;  %v12902_v20 = vpop.f32.mrf.mxu1  ;;  %v6660_v34 = vadd.f32 %v12792_v51, %v12697_v54 }
 0x3ad   : > { %13169 = vst [vmem:[#allocation39_spill] sm:$0xff] %v12902_v20  ;;  %v12905_v14 = vpop.f32.mrf.mxu0 }
 0x3ae   : > { %13170 = vst [vmem:[#allocation40_spill] sm:$0xff] %v12905_v14  ;;  %v12907_v12 = vpop.f32.mrf.mxu1  ;;  %v6960_v54 = vadd.f32 %v12790_v47, %v6660_v34 }
 0x3af   : > { %v12910_v52 = vpop.f32.mrf.mxu0 }
 0x3b0   : > { %13171 = vst [vmem:[#allocation41_spill] sm:$0xff] %v12910_v52  ;;  %v12912_v42 = vpop.f32.mrf.mxu1 }
 0x3b1   : > { %v10299_v24 = vpop.f32.mrf.mxu0 }
 0x3b2   : > { %v10265_v20 = vpop.f32.mrf.mxu1 }
 0x3b3   : > { %v7259_v14 = vadd.f32 %v10265_v20, %v6959_v32  ;;  %v7430_v58 = vpop.f32.mrf.mxu0  ;;  %v6958_v20 = vadd.f32 %v12794_v35, %v6658_v2 }
 0x3b4   : > { %v7130_v10 = vpop.f32.mrf.mxu1 }
 0x3b5   : > { %v7559_v51 = vadd.f32 %v10299_v24, %v7259_v14  ;;  %v7257_v52 = vadd.f32 %v7130_v10, %v6957_v31  ;;  %v10300_v50 = vpop.f32.mrf.mxu0  ;;  %v6961_v31 = vadd.f32 %v12802_v26, %v6661_v9 }
 0x3b6   : > { %v10266_v1 = vpop.f32.mrf.mxu1 }
 0x3b7   : > { %v7598_v32 = vadd.f32 %v12925_v5, %v7559_v51  ;;  %v7557_v34 = vadd.f32 %v7430_v58, %v7257_v52  ;;  %v7260_v14 = vadd.f32 %v10266_v1, %v6960_v54  ;;  %v7433_v24 = vpop.f32.mrf.mxu0  ;;  %v6662_v52 = vadd.f32 %v12812_v28, %v12712_v15 }
 0x3b8   : > { %v7133_v47 = vpop.f32.mrf.mxu1  ;;  %v6964_v54 = vadd.f32 %v12806_v38, %v6664_v4  ;;  %v6666_v4 = vadd.f32 %v12828_v29, %v12724_v40 }
 0x3b9   : > { %7631 = vst.msk [vmem:[%s12933_s24 + $0x10] sm:$0xff] %vm7628_vm1, %v7598_v32  ;;  %v7596_v44 = vadd.f32 %v12925_v5, %v7557_v34  ;;  %v7560_v59 = vadd.f32 %v10300_v50, %v7260_v14  ;;  %v7258_v63 = vadd.f32 %v7133_v47, %v6958_v20  ;;  %v10303_v35 = vpop.f32.mrf.mxu0  ;;  %v6665_v50 = vadd.f32 %v12820_v49, %v12718_v6 }
 0x3ba   : > { %v10269_v2 = vpop.f32.mrf.mxu1  ;;  %v6962_v1 = vadd.f32 %v12810_v41, %v6662_v52  ;;  %v6967_v32 = vadd.f32 %v12814_v3, %v6667_v0  ;;  %v6668_v14 = vadd.f32 %v12824_v33, %v12721_v60  ;;  %v6672_v0 = vadd.f32 %v12840_v56, %v12733_v23 }
 0x3bb   : > { %7629 = vst.msk [vmem:[%s12933_s24] sm:$0xff] %vm7628_vm1, %v7596_v44  ;;  %v7599_v25 = vadd.f32 %v12925_v5, %v7560_v59  ;;  %v7558_v19 = vadd.f32 %v7433_v24, %v7258_v63  ;;  %v7263_v36 = vadd.f32 %v10269_v2, %v6963_v8  ;;  %v7446_v58 = vpop.f32.mrf.mxu0  ;;  %v6965_v8 = vadd.f32 %v12818_v13, %v6665_v50 }
 0x3bc   : > { %v7146_v10 = vpop.f32.mrf.mxu1  ;;  %v6671_v59 = vadd.f32 %v12832_v39, %v12727_v27  ;;  %v6669_v2 = vadd.f32 %v12836_v7, %v12730_v22 }
 0x3bd   : > { %7632 = vst.msk [vmem:[%s12933_s24 + $0x18] sm:$0xff] %vm7628_vm1, %v7599_v25  ;;  %v7597_v26 = vadd.f32 %v12925_v5, %v7558_v19  ;;  %v7563_v15 = vadd.f32 %v10303_v35, %v7263_v36  ;;  %v7261_v28 = vadd.f32 %v7146_v10, %v6961_v31  ;;  %v10304_v51 = vpop.f32.mrf.mxu0  ;;  %v6968_v35 = vadd.f32 %v12822_v21, %v6668_v14  ;;  %v13172_v14 = vld [vmem:[#allocation3_spill] sm:$0xff] }
 0x3be   : > { %v10270_v9 = vpop.f32.mrf.mxu1  ;;  %v6966_v25 = vadd.f32 %v12826_v46, %v6666_v4  ;;  %v6971_v36 = vadd.f32 %v12830_v43, %v6671_v59  ;;  %v13175_v4 = vld [vmem:[#allocation2_spill] sm:$0xff] }
 0x3bf   : > { %7630 = vst.msk [vmem:[%s12933_s24 + $0x8] sm:$0xff] %vm7628_vm1, %v7597_v26  ;;  %v7602_v17 = vadd.f32 %v12925_v5, %v7563_v15  ;;  %v7561_v38 = vadd.f32 %v7446_v58, %v7261_v28  ;;  %v7264_v53 = vadd.f32 %v10270_v9, %v6964_v54  ;;  %v7449_v20 = vpop.f32.mrf.mxu0  ;;  %v6969_v54 = vadd.f32 %v12834_v16, %v6669_v2 }
 0x3c0   : > { %v7149_v34 = vpop.f32.mrf.mxu1  ;;  %v6670_v15 = vadd.f32 %v12844_v37, %v12736_v57  ;;  %v6972_v9 = vadd.f32 %v12838_v11, %v6672_v0 }
 0x3c1   : > { %7635 = vst.msk [vmem:[%s12933_s24 + $0x30] sm:$0xff] %vm7628_vm1, %v7602_v17  ;;  %v7600_v6 = vadd.f32 %v12925_v5, %v7561_v38  ;;  %v7564_v41 = vadd.f32 %v10304_v51, %v7264_v53  ;;  %v7262_v49 = vadd.f32 %v7149_v34, %v6962_v1  ;;  %v10307_v24 = vpop.f32.mrf.mxu0  ;;  %v6675_v51 = vadd.f32 %v12848_v62, %v12739_v61 }
 0x3c2   : > { %v10273_v47 = vpop.f32.mrf.mxu1  ;;  %v6673_v17 = vadd.f32 %v12852_v18, %v12742_v48  ;;  %v6970_v53 = vadd.f32 %v12842_v30, %v6670_v15 }
 0x3c3   : > { %7633 = vst.msk [vmem:[%s12933_s24 + $0x20] sm:$0xff] %vm7628_vm1, %v7600_v6  ;;  %v7603_v3 = vadd.f32 %v12925_v5, %v7564_v41  ;;  %v7562_v60 = vadd.f32 %v7449_v20, %v7262_v49  ;;  %v7267_v33 = vadd.f32 %v10273_v47, %v6967_v32  ;;  %v7462_v44 = vpop.f32.mrf.mxu0  ;;  %v6975_v32 = vadd.f32 %v12846_v45, %v6675_v51  ;;  %v13173_v6 = vld [vmem:[#allocation18_spill] sm:$0xff] }
 0x3c4   : > { %v7162_v63 = vpop.f32.mrf.mxu1  ;;  %v6676_v41 = vadd.f32 %v13173_v6, %v13172_v14 }
 0x3c5   : > { %7636 = vst.msk [vmem:[%s12933_s24 + $0x38] sm:$0xff] %vm7628_vm1, %v7603_v3  ;;  %v7601_v13 = vadd.f32 %v12925_v5, %v7562_v60  ;;  %v7567_v40 = vadd.f32 %v10307_v24, %v7267_v33  ;;  %v7265_v29 = vadd.f32 %v7162_v63, %v6965_v8  ;;  %v10308_v31 = vpop.f32.mrf.mxu0  ;;  %v13174_v24 = vld [vmem:[#allocation16_spill] sm:$0xff]  ;;  %v13177_v63 = vld [vmem:[#allocation5_spill] sm:$0xff] }
 0x3c6   : > { %v10274_v52 = vpop.f32.mrf.mxu1  ;;  %v6973_v8 = vadd.f32 %v13174_v24, %v6673_v17  ;;  %v13176_v3 = vld [vmem:[#allocation20_spill] sm:$0xff] }
 0x3c7   : > { %7634 = vst.msk [vmem:[%s12933_s24 + $0x28] sm:$0xff] %vm7628_vm1, %v7601_v13  ;;  %v7606_v27 = vadd.f32 %v12925_v5, %v7567_v40  ;;  %v7565_v21 = vadd.f32 %v7462_v44, %v7265_v29  ;;  %v7268_v39 = vadd.f32 %v10274_v52, %v6968_v35  ;;  %v7465_v19 = vpop.f32.mrf.mxu0  ;;  %v6674_v60 = vadd.f32 %v13176_v3, %v13175_v4  ;;  %v13178_v35 = vld [vmem:[#allocation22_spill] sm:$0xff]  ;;  %v13179_v29 = vld [vmem:[#allocation17_spill] sm:$0xff] }
 0x3c8   : > { %v7165_v58 = vpop.f32.mrf.mxu1  ;;  %v6679_v13 = vadd.f32 %v13178_v35, %v13177_v63  ;;  %v13195_v35 = vld [vmem:[#allocation10_spill] sm:$0xff] }
 0x3c9   : > { %7639 = vst.msk [vmem:[%s12933_s24 + $0x50] sm:$0xff] %vm7628_vm1, %v7606_v27  ;;  %v7604_v22 = vadd.f32 %v12925_v5, %v7565_v21  ;;  %v7568_v46 = vadd.f32 %v10308_v31, %v7268_v39  ;;  %v7266_v7 = vadd.f32 %v7165_v58, %v6966_v25  ;;  %v10311_v10 = vpop.f32.mrf.mxu0  ;;  %v6976_v31 = vadd.f32 %v13179_v29, %v6676_v41  ;;  %v13180_v21 = vld [vmem:[#allocation4_spill] sm:$0xff]  ;;  %v13182_v58 = vld [vmem:[#allocation19_spill] sm:$0xff] }
 0x3ca   : > { %v10277_v26 = vpop.f32.mrf.mxu1  ;;  %v13181_v39 = vld [vmem:[#allocation24_spill] sm:$0xff]  ;;  %v6974_v0 = vadd.f32 %v13182_v58, %v6674_v60 }
 0x3cb   : > { %7637 = vst.msk [vmem:[%s12933_s24 + $0x40] sm:$0xff] %vm7628_vm1, %v7604_v22  ;;  %v7607_v43 = vadd.f32 %v12925_v5, %v7568_v46  ;;  %v7566_v23 = vadd.f32 %v7465_v19, %v7266_v7  ;;  %v7271_v56 = vadd.f32 %v10277_v26, %v6971_v36  ;;  %v7478_v28 = vpop.f32.mrf.mxu0  ;;  %v6677_v19 = vadd.f32 %v13181_v39, %v13180_v21  ;;  %v13198_v39 = vld [vmem:[#allocation11_spill] sm:$0xff] }
 0x3cc   : > { %v7178_v50 = vpop.f32.mrf.mxu1 }
 0x3cd   : > { %7640 = vst.msk [vmem:[%s12933_s24 + $0x58] sm:$0xff] %vm7628_vm1, %v7607_v43  ;;  %v7605_v16 = vadd.f32 %v12925_v5, %v7566_v23  ;;  %v7571_v57 = vadd.f32 %v10311_v10, %v7271_v56  ;;  %v7269_v37 = vadd.f32 %v7178_v50, %v6969_v54  ;;  %v10312_v1 = vpop.f32.mrf.mxu0  ;;  %v13183_v54 = vld [vmem:[#allocation21_spill] sm:$0xff]  ;;  %v13184_v43 = vld [vmem:[#allocation6_spill] sm:$0xff] }
 0x3ce   : > { %v10278_v38 = vpop.f32.mrf.mxu1  ;;  %v6979_v26 = vadd.f32 %v13183_v54, %v6679_v13  ;;  %v6680_v23 = vadd.f32 %v12872_v55, %v13184_v43  ;;  %v13196_v13 = vld [vmem:[#allocation33_spill] sm:$0xff] }
 0x3cf   : > { %7638 = vst.msk [vmem:[%s12933_s24 + $0x48] sm:$0xff] %vm7628_vm1, %v7605_v16  ;;  %v7610_v61 = vadd.f32 %v12925_v5, %v7571_v57  ;;  %v7569_v62 = vadd.f32 %v7478_v28, %v7269_v37  ;;  %v7272_v11 = vadd.f32 %v10278_v38, %v6972_v9  ;;  %v7481_v20 = vpop.f32.mrf.mxu0  ;;  %v13185_v9 = vld [vmem:[#allocation23_spill] sm:$0xff] }
 0x3d0   : > { %v7181_v34 = vpop.f32.mrf.mxu1  ;;  %v6977_v16 = vadd.f32 %v13185_v9, %v6677_v19  ;;  %v13186_v37 = vld [vmem:[#allocation7_spill] sm:$0xff] }
 0x3d1   : > { %7643 = vst.msk [vmem:[%s12933_s24 + $0x70] sm:$0xff] %vm7628_vm1, %v7610_v61  ;;  %v7608_v48 = vadd.f32 %v12925_v5, %v7569_v62  ;;  %v7572_v18 = vadd.f32 %v10312_v1, %v7272_v11  ;;  %v7270_v30 = vadd.f32 %v7181_v34, %v6970_v53  ;;  %v10315_v49 = vpop.f32.mrf.mxu0  ;;  %v13187_v1 = vld [vmem:[#allocation27_spill] sm:$0xff]  ;;  %v13188_v62 = vld [vmem:[#allocation8_spill] sm:$0xff]  ;;  %v13189_v11 = vld [vmem:[#allocation29_spill] sm:$0xff] }
 0x3d2   : > { %v10281_v47 = vpop.f32.mrf.mxu1  ;;  %v6678_v17 = vadd.f32 %v13187_v1, %v13186_v37  ;;  %v13190_v34 = vld [vmem:[#allocation25_spill] sm:$0xff]  ;;  %v13199_v19 = vld [vmem:[#allocation35_spill] sm:$0xff]  ;;  %v13205_v37 = vld [vmem:[#allocation34_spill] sm:$0xff] }
 0x3d3   : > { %7641 = vst.msk [vmem:[%s12933_s24 + $0x60] sm:$0xff] %vm7628_vm1, %v7608_v48  ;;  %v7611_v45 = vadd.f32 %v12925_v5, %v7572_v18  ;;  %v7570_v33 = vadd.f32 %v7481_v20, %v7270_v30  ;;  %v7275_v44 = vadd.f32 %v10281_v47, %v6975_v32  ;;  %v7494_v59 = vpop.f32.mrf.mxu0  ;;  %v6683_v20 = vadd.f32 %v13189_v11, %v13188_v62  ;;  %v13191_v30 = vld [vmem:[#allocation9_spill] sm:$0xff]  ;;  %v13193_v47 = vld [vmem:[#allocation26_spill] sm:$0xff]  ;;  %v13204_v9 = vld [vmem:[#allocation39_spill] sm:$0xff] }
 0x3d4   : > { %v7194_v40 = vpop.f32.mrf.mxu1  ;;  %v6980_v14 = vadd.f32 %v13190_v34, %v6680_v23  ;;  %v6978_v4 = vadd.f32 %v13193_v47, %v6678_v17 }
 0x3d5   : > { %7644 = vst.msk [vmem:[%s12933_s24 + $0x78] sm:$0xff] %vm7628_vm1, %v7611_v45  ;;  %v7609_v2 = vadd.f32 %v12925_v5, %v7570_v33  ;;  %v7575_v52 = vadd.f32 %v10315_v49, %v7275_v44  ;;  %v7273_v25 = vadd.f32 %v7194_v40, %v6973_v8  ;;  %v10316_v27 = vpop.f32.mrf.mxu0  ;;  %v13192_v49 = vld [vmem:[#allocation31_spill] sm:$0xff]  ;;  %v13194_v44 = vld [vmem:[#allocation28_spill] sm:$0xff]  ;;  %v6684_v40 = vadd.f32 %v13196_v13, %v13195_v35  ;;  %v13211_v35 = vld [vmem:[#allocation41_spill] sm:$0xff] }
 0x3d6   : > { %v10282_v36 = vpop.f32.mrf.mxu1  ;;  %v6681_v24 = vadd.f32 %v13192_v49, %v13191_v30  ;;  %v13209_v49 = vld [vmem:[#allocation15_spill] sm:$0xff] }
 0x3d7   : > { %7642 = vst.msk [vmem:[%s12933_s24 + $0x68] sm:$0xff] %vm7628_vm1, %v7609_v2  ;;  %v7614_v22 = vadd.f32 %v12925_v5, %v7575_v52  ;;  %v7573_v46 = vadd.f32 %v7494_v59, %v7273_v25  ;;  %v7276_v7 = vadd.f32 %v10282_v36, %v6976_v31  ;;  %v7497_v10 = vpop.f32.mrf.mxu0  ;;  %v6983_v59 = vadd.f32 %v13194_v44, %v6683_v20  ;;  %v13197_v25 = vld [vmem:[#allocation30_spill] sm:$0xff] }
 0x3d8   : > { %v7197_v15 = vpop.f32.mrf.mxu1  ;;  %v6682_v36 = vadd.f32 %v13199_v19, %v13198_v39  ;;  %v13207_v20 = vld [vmem:[#allocation14_spill] sm:$0xff] }
 0x3d9   : > { %7647 = vst.msk [vmem:[%s12933_s24 + $0x90] sm:$0xff] %vm7628_vm1, %v7614_v22  ;;  %v7612_v56 = vadd.f32 %v12925_v5, %v7573_v46  ;;  %v7576_v28 = vadd.f32 %v10316_v27, %v7276_v7  ;;  %v7274_v51 = vadd.f32 %v7197_v15, %v6974_v0  ;;  %v10319_v50 = vpop.f32.mrf.mxu0  ;;  %v6981_v27 = vadd.f32 %v13197_v25, %v6681_v24  ;;  %v13200_v7 = vld [vmem:[#allocation12_spill] sm:$0xff] }
 0x3da   : > { %v10285_v57 = vpop.f32.mrf.mxu1  ;;  %v13202_v15 = vld [vmem:[#allocation32_spill] sm:$0xff]  ;;  %v6982_v1 = vadd.f32 %v13205_v37, %v6682_v36  ;;  %v6686_v24 = vadd.f32 %v12912_v42, %v13209_v49 }
 0x3db   : > { %7645 = vst.msk [vmem:[%s12933_s24 + $0x80] sm:$0xff] %vm7628_vm1, %v7612_v56  ;;  %v7615_v38 = vadd.f32 %v12925_v5, %v7576_v28  ;;  %v7574_v55 = vadd.f32 %v7497_v10, %v7274_v51  ;;  %v7279_v53 = vadd.f32 %v10285_v57, %v6979_v26  ;;  %v7510_v61 = vpop.f32.mrf.mxu0  ;;  %v13201_v10 = vld [vmem:[#allocation37_spill] sm:$0xff]  ;;  %v6984_v43 = vadd.f32 %v13202_v15, %v6684_v40 }
 0x3dc   : > { %v7210_v32 = vpop.f32.mrf.mxu1  ;;  %v6687_v54 = vadd.f32 %v13201_v10, %v13200_v7  ;;  %v6986_v13 = vadd.f32 %v13211_v35, %v6686_v24 }
 0x3dd   : > { %7648 = vst.msk [vmem:[%s12933_s24 + $0x98] sm:$0xff] %vm7628_vm1, %v7615_v38  ;;  %v7613_v6 = vadd.f32 %v12925_v5, %v7574_v55  ;;  %v7579_v41 = vadd.f32 %v10319_v50, %v7279_v53  ;;  %v7277_v48 = vadd.f32 %v7210_v32, %v6977_v16  ;;  %v10320_v18 = vpop.f32.mrf.mxu0  ;;  %v13203_v50 = vld [vmem:[#allocation13_spill] sm:$0xff]  ;;  %v6688_v32 = vadd.f32 %v12907_v12, %v13207_v20 }
 0x3de   : > { %v10286_v8 = vpop.f32.mrf.mxu1  ;;  %v6685_v16 = vadd.f32 %v13204_v9, %v13203_v50 }
 0x3df   : > { %7646 = vst.msk [vmem:[%s12933_s24 + $0x88] sm:$0xff] %vm7628_vm1, %v7613_v6  ;;  %v7618_v3 = vadd.f32 %v12925_v5, %v7579_v41  ;;  %v7577_v60 = vadd.f32 %v7510_v61, %v7277_v48  ;;  %v7280_v45 = vadd.f32 %v10286_v8, %v6980_v14  ;;  %v7513_v33 = vpop.f32.mrf.mxu0  ;;  %v13206_v61 = vld [vmem:[#allocation36_spill] sm:$0xff]  ;;  %v13208_v48 = vld [vmem:[#allocation38_spill] sm:$0xff] }
 0x3e0   : > { %v7213_v63 = vpop.f32.mrf.mxu1  ;;  %v6987_v62 = vadd.f32 %v13206_v61, %v6687_v54 }
 0x3e1   : > { %7651 = vst.msk [vmem:[%s12933_s24 + $0xb0] sm:$0xff] %vm7628_vm1, %v7618_v3  ;;  %v7616_v29 = vadd.f32 %v12925_v5, %v7577_v60  ;;  %v7580_v31 = vadd.f32 %v10320_v18, %v7280_v45  ;;  %v7278_v2 = vadd.f32 %v7213_v63, %v6978_v4  ;;  %v10323_v52 = vpop.f32.mrf.mxu0  ;;  %v6985_v18 = vadd.f32 %v13208_v48, %v6685_v16  ;;  %v13210_v60 = vld [vmem:[#allocation40_spill] sm:$0xff] }
 0x3e2   : > { %v10289_v21 = vpop.f32.mrf.mxu1  ;;  %v6988_v45 = vadd.f32 %v13210_v60, %v6688_v32 }
 0x3e3   : > { %7649 = vst.msk [vmem:[%s12933_s24 + $0xa0] sm:$0xff] %vm7628_vm1, %v7616_v29  ;;  %v7619_v58 = vadd.f32 %v12925_v5, %v7580_v31  ;;  %v7578_v0 = vadd.f32 %v7513_v33, %v7278_v2  ;;  %v7283_v22 = vadd.f32 %v10289_v21, %v6983_v59  ;;  %v7526_v46 = vpop.f32.mrf.mxu0 }
 0x3e4   : > { %v7226_v26 = vpop.f32.mrf.mxu1 }
 0x3e5   : > { %7652 = vst.msk [vmem:[%s12933_s24 + $0xb8] sm:$0xff] %vm7628_vm1, %v7619_v58  ;;  %v7617_v23 = vadd.f32 %v12925_v5, %v7578_v0  ;;  %v7583_v56 = vadd.f32 %v10323_v52, %v7283_v22  ;;  %v7281_v28 = vadd.f32 %v7226_v26, %v6981_v27  ;;  %v10324_v51 = vpop.f32.mrf.mxu0 }
 0x3e6   : > { %v10290_v57 = vpop.f32.mrf.mxu1 }
 0x3e7   : > { %7650 = vst.msk [vmem:[%s12933_s24 + $0xa8] sm:$0xff] %vm7628_vm1, %v7617_v23  ;;  %v7622_v17 = vadd.f32 %v12925_v5, %v7583_v56  ;;  %v7581_v38 = vadd.f32 %v7526_v46, %v7281_v28  ;;  %v7284_v55 = vadd.f32 %v10290_v57, %v6984_v43  ;;  %v7529_v53 = vpop.f32.mrf.mxu0 }
 0x3e8   : > { %v7229_v11 = vpop.f32.mrf.mxu1 }
 0x3e9   : > { %7655 = vst.msk [vmem:[%s12933_s24 + $0xd0] sm:$0xff] %vm7628_vm1, %v7622_v17  ;;  %v7620_v34 = vadd.f32 %v12925_v5, %v7581_v38  ;;  %v7584_v14 = vadd.f32 %v10324_v51, %v7284_v55  ;;  %v7282_v6 = vadd.f32 %v7229_v11, %v6982_v1  ;;  %v10327_v41 = vpop.f32.mrf.mxu0 }
 0x3ea   : > { %v10293_v30 = vpop.f32.mrf.mxu1 }
 0x3eb   : > { %7653 = vst.msk [vmem:[%s12933_s24 + $0xc0] sm:$0xff] %vm7628_vm1, %v7620_v34  ;;  %v7623_v8 = vadd.f32 %v12925_v5, %v7584_v14  ;;  %v7582_v12 = vadd.f32 %v7529_v53, %v7282_v6  ;;  %v7287_v47 = vadd.f32 %v10293_v30, %v6987_v62  ;;  %v7542_v4 = vpop.f32.mrf.mxu0 }
 0x3ec   : > { %v7242_v3 = vpop.f32.mrf.mxu1 }
 0x3ed   : > { %7656 = vst.msk [vmem:[%s12933_s24 + $0xd8] sm:$0xff] %vm7628_vm1, %v7623_v8  ;;  %v7621_v33 = vadd.f32 %v12925_v5, %v7582_v12  ;;  %v7587_v44 = vadd.f32 %v10327_v41, %v7287_v47  ;;  %v7285_v59 = vadd.f32 %v7242_v3, %v6985_v18  ;;  %v10328_v42 = vpop.f32.mrf.mxu0 }
 0x3ee   : > { %v10294_v63 = vpop.f32.mrf.mxu1 }
 0x3ef   : > { %7654 = vst.msk [vmem:[%s12933_s24 + $0xc8] sm:$0xff] %vm7628_vm1, %v7621_v33  ;;  %v7626_v40 = vadd.f32 %v12925_v5, %v7587_v44  ;;  %v7585_v29 = vadd.f32 %v7542_v4, %v7285_v59  ;;  %v7288_v31 = vadd.f32 %v10294_v63, %v6988_v45  ;;  %v7545_v21 = vpop.f32.mrf.mxu0 }
 0x3f0   : > { %v7245_v2 = vpop.f32.mrf.mxu1 }
 0x3f1   : > { %7659 = vst.msk [vmem:[%s12933_s24 + $0xf0] sm:$0xff] %vm7628_vm1, %v7626_v40  ;;  %v7624_v52 = vadd.f32 %v12925_v5, %v7585_v29  ;;  %v7588_v25 = vadd.f32 %v10328_v42, %v7288_v31  ;;  %v7286_v27 = vadd.f32 %v7245_v2, %v6986_v13 }
 0x3f3   : > { %7657 = vst.msk [vmem:[%s12933_s24 + $0xe0] sm:$0xff] %vm7628_vm1, %v7624_v52  ;;  %v7627_v39 = vadd.f32 %v12925_v5, %v7588_v25  ;;  %v7586_v19 = vadd.f32 %v7545_v21, %v7286_v27 }
 0x3f5   : > { %7660 = vst.msk [vmem:[%s12933_s24 + $0xf8] sm:$0xff] %vm7628_vm1, %v7627_v39  ;;  %v7625_v36 = vadd.f32 %v12925_v5, %v7586_v19 }
 0x3f7   : > { %7658 = vst.msk [vmem:[%s12933_s24 + $0xe8] sm:$0xff] %vm7628_vm1, %v7625_v36 }
 0x3f8 PF: > { %s13_s12 = sadd.s32 1, %s10370_s12  }
 0x3f9   : > { %p10_p4 = scmp.ge.s32.totalorder %s13_s12, 6  }
 0x3fb   :  { %12 = sbr.rel (!%p10_p4) target bundleno = 1 (0x1), region = 108 }

</bundles_post_ra>
